<compile_context>
chip_gen: v5e
topology: v5e:2x2
jax: 0.10.0
libtpu: 0.0.40
codegen_flags: <defaults>
</compile_context>

<pallas_src>
import functools

import jax
import jax.numpy as jnp
from jax.experimental import pallas as pl
from jax.experimental.pallas import tpu as pltpu


def _round_up(x, m):
    return ((x + m - 1) // m) * m


# ------------------------------ fused kernel -------------------------------

def _fused_net_kernel(x_ref, w1_ref, b1_ref, w2_ref, b2_ref,
                      wfc1_ref, bfc1_ref, wfc2_ref, bfc2_ref,
                      out_ref, acc1_ref, acc2_ref, *, H, W, Bt):
    """Whole Net forward for Bt batch elements (grid axis 0 = batch tiles).

    Layouts (prepared once in prepare_params / net_forward glue):
      x_ref    : (Bt*S, K1P)      conv1 im2col patches, flat rows h*W+w with
                                  per-element stride S; K = 9*Cin zero-padded
      w1_ref   : (K1P, 32)        conv1 weight, row = di*3*Cin + dj*Cin + c
      w2_ref   : (9, 32, 32)      conv2 taps, k = di*3 + dj
      wfc1_ref : (Hp*Wp, 32, 128) fc1 weight per pooled position:
                 wfc1[hp*Wp+wp][c, j] == fc1_w[j, c*Hp*Wp + hp*Wp + wp]
      wfc2_ref : (128, 128)       fc2 weight zero-padded to 128 output lanes
      bfc2_ref : (1, 128)         fc2 bias, -1e30 on the 126 dummy lanes (f32)
      acc1_ref : (Bt*S, 32)       conv1 activations (compute dtype, e.g. bf16)
      acc2_ref : (Bt*S-TAIL, 32)  conv2 activations (f32)
    Flat row r = e*S + h*W + w.  Rows outside the valid conv output ranges
    hold finite garbage that is never consumed for valid outputs.
    """
    cdt = w2_ref.dtype                      # matmul operand dtype (bf16/f32)
    M1 = acc1_ref.shape[0]                  # Bt * S
    M2 = acc2_ref.shape[0]                  # Bt * S - TAIL
    S = M1 // Bt                            # per-element flat-row stride
    Hp, Wp = (H - 4) // 2, (W - 4) // 2     # pooled spatial size

    # ---- conv1 + bias + ReLU: ONE matmul (K = 9*Cin), one fused store ------
    y1 = jnp.dot(x_ref[...], w1_ref[...], preferred_element_type=jnp.float32)
    acc1_ref[...] = jnp.maximum(y1 + b1_ref[...], 0.0).astype(cdt)

    # ---- conv2 + bias + ReLU: 9 shifted-slice matmuls (K = 32), value acc --
    # (no per-tap read-modify-write on the scratch; single fused store)
    y2 = jnp.dot(acc1_ref[pl.ds(0, M2), :], w2_ref[0],
                 preferred_element_type=jnp.float32)
    for di in range(3):
        for dj in range(3):
            if di == 0 and dj == 0:
                continue
            y2 = y2 + jnp.dot(acc1_ref[pl.ds(di * W + dj, M2), :],
                              w2_ref[di * 3 + dj],
                              preferred_element_type=jnp.float32)
    acc2_ref[...] = jnp.maximum(y2 + b2_ref[...], 0.0)

    # ---- 2x2 maxpool fused with fc1 ---------------------------------------
    # For each pooled position (hp, wp): gather the Bt batch rows of the four
    # window taps with stride-S loads, take the max, and contract against the
    # (32, 128) fc1 weight slice.  M=Bt, K=32, N=128 -> no MXU overcompute.
    # Per-hp partials break the accumulation chain (review feedback).
    hp_parts = []
    for hp in range(Hp):
        part = None
        for wp in range(Wp):
            base = 2 * hp * W + 2 * wp                       # static offsets
            p00 = acc2_ref[pl.ds(base,         Bt, stride=S), :]
            p01 = acc2_ref[pl.ds(base + 1,     Bt, stride=S), :]
            p10 = acc2_ref[pl.ds(base + W,     Bt, stride=S), :]
            p11 = acc2_ref[pl.ds(base + W + 1, Bt, stride=S), :]
            pm = jnp.maximum(jnp.maximum(p00, p01), jnp.maximum(p10, p11))
            g = jnp.dot(pm.astype(cdt), wfc1_ref[hp * Wp + wp],
                        preferred_element_type=jnp.float32)  # (Bt, 128)
            part = g if part is None else part + g
        hp_parts.append(part)
    h1 = hp_parts[0]
    for t in hp_parts[1:]:
        h1 = h1 + t
    h1 = jnp.maximum(h1 + bfc1_ref[...], 0.0)                # (Bt, 128)

    # ---- fc2 + log_softmax on a lane-dense 128-wide padded class space ----
    logits = jnp.dot(h1.astype(cdt), wfc2_ref[...],
                     preferred_element_type=jnp.float32) + bfc2_ref[...]
    m = jnp.max(logits, axis=-1, keepdims=True)
    z = logits - m
    out = z - jnp.log(jnp.sum(jnp.exp(z), axis=-1, keepdims=True))  # (Bt,128)

    if Bt == out_ref.shape[0]:
        out_ref[...] = out
    else:
        out_ref[...] = jnp.zeros_like(out_ref)
        out_ref[pl.ds(0, Bt), :] = out


# ------------------------- one-time weight re-layout ------------------------

def prepare_params(params, H, W, compute_dtype=jnp.bfloat16):
    """Convert PyTorch-layout params to kernel layouts ONCE (not per call).

    compute_dtype=bfloat16 is the native MXU operand path on v6e/v7x (and
    halves weight DMA/VMEM); accumulation stays fp32 in-kernel.  Pass
    jnp.float32 for a bit-closer match to the fp32 reference.
    """
    Hp, Wp = (H - 4) // 2, (W - 4) // 2
    cin = params["conv1_w"].shape[1]
    k1 = 9 * cin
    k1p = _round_up(k1, 8)

    # conv1: (32, Cin, 3, 3) -> (K=9*Cin, 32) with row = di*3*Cin + dj*Cin + c,
    # zero-padded to k1p rows (matches the wrapper's zero-padded patch lanes).
    w1 = jnp.transpose(params["conv1_w"], (2, 3, 1, 0)).reshape(k1, 32)
    w1 = jnp.pad(w1, ((0, k1p - k1), (0, 0)))

    # conv2: (32, 32, 3, 3) -> (9, 32, 32), k = di*3 + dj, [k][cin, cout]
    w2 = jnp.transpose(params["conv2_w"], (2, 3, 1, 0)).reshape(9, 32, 32)

    # fc1: (128, 32*Hp*Wp) with torch (c, hp, wp) feature order
    #   -> (Hp*Wp, 32, 128) with wfc1[hp*Wp+wp][c, j] = fc1_w[j, c, hp, wp]
    wfc1 = (params["fc1_w"].reshape(128, 32, Hp, Wp)
            .transpose(2, 3, 1, 0)
            .reshape(Hp * Wp, 32, 128))

    # fc2: pad N=2 -> 128 lanes; dummy classes get a huge negative bias so the
    # in-kernel log_softmax over 128 lanes equals log_softmax over 2 classes.
    # bfc2 stays f32 (casting -1e30 to bf16 risks -inf edge cases).
    wfc2 = jnp.zeros((128, 128), jnp.float32).at[:, :2].set(params["fc2_w"].T)
    bfc2 = jnp.full((1, 128), -1e30, jnp.float32).at[0, :2].set(params["fc2_b"])

    return {
        "w1": w1.astype(compute_dtype),
        "b1": params["conv1_b"].reshape(1, 32).astype(jnp.float32),
        "w2": w2.astype(compute_dtype),
        "b2": params["conv2_b"].reshape(1, 32).astype(jnp.float32),
        "wfc1": wfc1.astype(compute_dtype),
        "bfc1": params["fc1_b"].reshape(1, 128).astype(jnp.float32),
        "wfc2": wfc2.astype(compute_dtype),
        "bfc2": bfc2,
    }


# -------------------------------- forward ----------------------------------

@functools.partial(jax.jit, static_argnames=("batch_tile",))
def net_forward(x_nchw, kparams, batch_tile=None):
    B, Cin, H, W = x_nchw.shape
    assert (H - 4) % 2 == 0 and (W - 4) % 2 == 0 and H >= 6 and W >= 6

    cdt = kparams["w1"].dtype
    K1P = kparams["w1"].shape[0]             # padded conv1 K (= round_up(9*Cin, 8))

    S = _round_up(H * W, 8)                  # per-element flat-row stride
    TAIL = _round_up(2 * W + 2, 8)           # slack so shifted slices stay in bounds

    # Batch tile: amortize per-grid-step overhead & weight residency, while
    # keeping >= 2 grid steps when B >= 2 so both v7x TensorCores get work.
    if batch_tile is None:
        Bt = max(1, min(8, B // 2))
    else:
        Bt = int(batch_tile)
    G = pl.cdiv(B, Bt)
    Bpad = G * Bt
    OUT_ROWS = _round_up(Bt, 8)              # lane/sublane-dense output block

    # Tiny wrapper glue on the ~3 KB/element input: NCHW -> flat NHWC rows and
    # conv1 im2col patches (folds conv1's 9 taps into K).  Zero spatial pad so
    # every flat row has a well-defined, finite patch; cast to bf16 once.
    xhw = jnp.transpose(x_nchw, (0, 2, 3, 1)).astype(jnp.float32)
    xp = jnp.pad(xhw, ((0, 0), (0, 2), (0, 2), (0, 0)))
    cols = jnp.concatenate(
        [xp[:, di:di + H, dj:dj + W, :] for di in range(3) for dj in range(3)],
        axis=-1).reshape(B, H * W, 9 * Cin)
    cols = jnp.pad(cols, ((0, Bpad - B), (0, S - H * W), (0, K1P - 9 * Cin)))
    xcol = cols.reshape(Bpad * S, K1P).astype(cdt)

    kernel = functools.partial(_fused_net_kernel, H=H, W=W, Bt=Bt)

    out = pl.pallas_call(
        kernel,
        out_shape=jax.ShapeDtypeStruct((G * OUT_ROWS, 128), jnp.float32),
        grid=(G,),
        in_specs=[
            pl.BlockSpec((Bt * S, K1P), lambda g: (g, 0)),       # im2col input
            pl.BlockSpec(kparams["w1"].shape, lambda g: (0, 0)),
            pl.BlockSpec((1, 32), lambda g: (0, 0)),
            pl.BlockSpec(kparams["w2"].shape, lambda g: (0, 0, 0)),
            pl.BlockSpec((1, 32), lambda g: (0, 0)),
            pl.BlockSpec(kparams["wfc1"].shape, lambda g: (0, 0, 0)),
            pl.BlockSpec((1, 128), lambda g: (0, 0)),
            pl.BlockSpec((128, 128), lambda g: (0, 0)),
            pl.BlockSpec((1, 128), lambda g: (0, 0)),
        ],
        out_specs=pl.BlockSpec((OUT_ROWS, 128), lambda g: (g, 0)),
        scratch_shapes=[
            pltpu.VMEM((Bt * S, 32), cdt),               # conv1 activations
            pltpu.VMEM((Bt * S - TAIL, 32), jnp.float32),  # conv2 activations
        ],
        compiler_params=pltpu.CompilerParams(
            dimension_semantics=("parallel",),           # batch tiles across TCs
            vmem_limit_bytes=32 * 1024 * 1024,           # footprint is ~2-3 MB
        ),
    )(xcol, kparams["w1"], kparams["b1"], kparams["w2"], kparams["b2"],
      kparams["wfc1"], kparams["bfc1"], kparams["wfc2"], kparams["bfc2"])

    # Drop padded batch rows and the 126 padded class lanes.
    out = out.reshape(G, OUT_ROWS, 128)[:, :Bt, :2].reshape(Bpad, 2)
    return out[:B]


# ------------------------------ reference & init ---------------------------

def init_params(key, h, w):
    hp = (h - 4) // 2
    wp = (w - 4) // 2
    fc1_in = 32 * hp * wp
    ks = jax.random.split(key, 8)
    s = 0.05
    return {
        "conv1_w": s * jax.random.normal(ks[0], (32, 3, 3, 3), jnp.float32),
        "conv1_b": s * jax.random.normal(ks[1], (32,), jnp.float32),
        "conv2_w": s * jax.random.normal(ks[2], (32, 32, 3, 3), jnp.float32),
        "conv2_b": s * jax.random.normal(ks[3], (32,), jnp.float32),
        "fc1_w": s * jax.random.normal(ks[4], (128, fc1_in), jnp.float32),
        "fc1_b": s * jax.random.normal(ks[5], (128,), jnp.float32),
        "fc2_w": s * jax.random.normal(ks[6], (2, 128), jnp.float32),
        "fc2_b": s * jax.random.normal(ks[7], (2,), jnp.float32),
    }


def ref_forward(x_nchw, params):
    """Pure-JAX fp32 reference (PyTorch layouts) for validation."""
    dn = ("NCHW", "OIHW", "NCHW")
    y = jax.lax.conv_general_dilated(x_nchw, params["conv1_w"], (1, 1), "VALID",
                                     dimension_numbers=dn)
    y = jax.nn.relu(y + params["conv1_b"][None, :, None, None])
    y = jax.lax.conv_general_dilated(y, params["conv2_w"], (1, 1), "VALID",
                                     dimension_numbers=dn)
    y = jax.nn.relu(y + params["conv2_b"][None, :, None, None])
    y = jax.lax.reduce_window(y, -jnp.inf, jax.lax.max,
                              (1, 1, 2, 2), (1, 1, 2, 2), "VALID")
    y = y.reshape(y.shape[0], -1)
    y = jax.nn.relu(y @ params["fc1_w"].T + params["fc1_b"])
    y = y @ params["fc2_w"].T + params["fc2_b"]
    return jax.nn.log_softmax(y, axis=1)


if __name__ == "__main__":
    key = jax.random.PRNGKey(0)
    kx, kp = jax.random.split(key)

    B, C, H, W = 4, 3, 16, 16      # small shapes (conv1 requires Cin=3)
    x = jax.random.normal(kx, (B, C, H, W), jnp.float32)

    params = init_params(kp, H, W)
    kparams = prepare_params(params, H, W)   # one-time re-layout, bf16 operands

    out = jax.block_until_ready(net_forward(x, kparams))   # Bt=2, grid=(2,)
    ref = jax.block_until_ready(ref_forward(x, params))

    assert out.shape == (B, 2)
    # Tolerance accounts for bf16 MXU operands (fp32 accumulation) vs. the
    # fp32 XLA reference; any wiring error would give O(0.1..1) differences.
    assert jnp.allclose(out, ref, rtol=2e-2, atol=2e-2), (out, ref)

    print("KERNEL_OK")
</pallas_src>

<mosaic_0001>
module attributes {stable_mosaic.version = 11 : i64} {
  func.func @_fused_net_kernel(%arg0: i32, %arg1: memref<512x32xbf16, #tpu.memory_space<vmem>>, %arg2: memref<32x32xbf16, #tpu.memory_space<vmem>>, %arg3: memref<1x32xf32, #tpu.memory_space<vmem>>, %arg4: memref<9x32x32xbf16, #tpu.memory_space<vmem>>, %arg5: memref<1x32xf32, #tpu.memory_space<vmem>>, %arg6: memref<36x32x128xbf16, #tpu.memory_space<vmem>>, %arg7: memref<1x128xf32, #tpu.memory_space<vmem>>, %arg8: memref<128x128xbf16, #tpu.memory_space<vmem>>, %arg9: memref<1x128xf32, #tpu.memory_space<vmem>>, %arg10: memref<8x128xf32, #tpu.memory_space<vmem>>, %arg11: memref<512x32xbf16, #tpu.memory_space<vmem>>, %arg12: memref<472x32xf32, #tpu.memory_space<vmem>>) attributes {dimension_semantics = [#tpu.dimension_semantics<parallel>], iteration_bounds = array<i64: 2>, scalar_prefetch = 0 : i64, scratch_operands = 2 : i64, tpu.core_type = #tpu.core_type<tc>, window_params = [{transform_indices = @transform_0, window_bounds = array<i64: 512, 32>}, {pipeline_mode = #tpu.pipeline_mode<synchronous>, transform_indices = @transform_1, window_bounds = array<i64: 32, 32>}, {pipeline_mode = #tpu.pipeline_mode<synchronous>, transform_indices = @transform_2, window_bounds = array<i64: 1, 32>}, {pipeline_mode = #tpu.pipeline_mode<synchronous>, transform_indices = @transform_3, window_bounds = array<i64: 9, 32, 32>}, {pipeline_mode = #tpu.pipeline_mode<synchronous>, transform_indices = @transform_4, window_bounds = array<i64: 1, 32>}, {pipeline_mode = #tpu.pipeline_mode<synchronous>, transform_indices = @transform_5, window_bounds = array<i64: 36, 32, 128>}, {pipeline_mode = #tpu.pipeline_mode<synchronous>, transform_indices = @transform_6, window_bounds = array<i64: 1, 128>}, {pipeline_mode = #tpu.pipeline_mode<synchronous>, transform_indices = @transform_7, window_bounds = array<i64: 128, 128>}, {pipeline_mode = #tpu.pipeline_mode<synchronous>, transform_indices = @transform_8, window_bounds = array<i64: 1, 128>}, {transform_indices = @transform_9, window_bounds = array<i64: 8, 128>}]} {
    %c0 = arith.constant 0 : index
    %c0_0 = arith.constant 0 : index
    %0 = vector.load %arg1[%c0, %c0_0] : memref<512x32xbf16, #tpu.memory_space<vmem>>, vector<512x32xbf16>
    %c0_1 = arith.constant 0 : index
    %c0_2 = arith.constant 0 : index
    %1 = vector.load %arg2[%c0_1, %c0_2] : memref<32x32xbf16, #tpu.memory_space<vmem>>, vector<32x32xbf16>
    %cst = arith.constant dense<0.000000e+00> : vector<512x32xf32>
    %2 = tpu.matmul %0, %1, %cst {dimension_numbers = #tpu.dot_dimension_numbers<[1], [0], [0], [1], [0, 0, 1, 1], [], []>} : vector<512x32xbf16>, vector<32x32xbf16>, vector<512x32xf32> -> vector<512x32xf32>
    %c0_3 = arith.constant 0 : index
    %c0_4 = arith.constant 0 : index
    %3 = vector.load %arg3[%c0_3, %c0_4] : memref<1x32xf32, #tpu.memory_space<vmem>>, vector<1x32xf32>
    %4 = vector.broadcast %3 : vector<1x32xf32> to vector<512x32xf32>
    %5 = arith.addf %2, %4 : vector<512x32xf32>
    %cst_5 = arith.constant 0.000000e+00 : f32
    %6 = vector.broadcast %cst_5 : f32 to vector<512x32xf32>
    %7 = arith.maximumf %5, %6 : vector<512x32xf32>
    %8 = arith.truncf %7 : vector<512x32xf32> to vector<512x32xbf16>
    %c0_6 = arith.constant 0 : index
    %c0_7 = arith.constant 0 : index
    %9 = vector.load %arg11[%c0_6, %c0_7] : memref<512x32xbf16, #tpu.memory_space<vmem>>, vector<512x32xbf16>
    tpu.vector_store %arg11[%c0_6, %c0_7], %8 {strides = array<i32>} : memref<512x32xbf16, #tpu.memory_space<vmem>>, vector<512x32xbf16>,
    %c0_8 = arith.constant 0 : index
    %c0_9 = arith.constant 0 : index
    %10 = vector.load %arg11[%c0_8, %c0_9] : memref<512x32xbf16, #tpu.memory_space<vmem>>, vector<472x32xbf16>
    %c0_10 = arith.constant 0 : index
    %c0_11 = arith.constant 0 : index
    %c0_12 = arith.constant 0 : index
    %11 = vector.load %arg4[%c0_10, %c0_11, %c0_12] : memref<9x32x32xbf16, #tpu.memory_space<vmem>>, vector<1x32x32xbf16>
    %12 = vector.shape_cast %11 : vector<1x32x32xbf16> to vector<32x32xbf16>
    %cst_13 = arith.constant dense<0.000000e+00> : vector<472x32xf32>
    %13 = tpu.matmul %10, %12, %cst_13 {dimension_numbers = #tpu.dot_dimension_numbers<[1], [0], [0], [1], [0, 0, 1, 1], [], []>} : vector<472x32xbf16>, vector<32x32xbf16>, vector<472x32xf32> -> vector<472x32xf32>
    %c1 = arith.constant 1 : index
    %c0_14 = arith.constant 0 : index
    %14 = vector.load %arg11[%c1, %c0_14] : memref<512x32xbf16, #tpu.memory_space<vmem>>, vector<472x32xbf16>
    %c1_15 = arith.constant 1 : index
    %c0_16 = arith.constant 0 : index
    %c0_17 = arith.constant 0 : index
    %15 = vector.load %arg4[%c1_15, %c0_16, %c0_17] : memref<9x32x32xbf16, #tpu.memory_space<vmem>>, vector<1x32x32xbf16>
    %16 = vector.shape_cast %15 : vector<1x32x32xbf16> to vector<32x32xbf16>
    %cst_18 = arith.constant dense<0.000000e+00> : vector<472x32xf32>
    %17 = tpu.matmul %14, %16, %cst_18 {dimension_numbers = #tpu.dot_dimension_numbers<[1], [0], [0], [1], [0, 0, 1, 1], [], []>} : vector<472x32xbf16>, vector<32x32xbf16>, vector<472x32xf32> -> vector<472x32xf32>
    %18 = arith.addf %13, %17 : vector<472x32xf32>
    %c2 = arith.constant 2 : index
    %c0_19 = arith.constant 0 : index
    %19 = vector.load %arg11[%c2, %c0_19] : memref<512x32xbf16, #tpu.memory_space<vmem>>, vector<472x32xbf16>
    %c2_20 = arith.constant 2 : index
    %c0_21 = arith.constant 0 : index
    %c0_22 = arith.constant 0 : index
    %20 = vector.load %arg4[%c2_20, %c0_21, %c0_22] : memref<9x32x32xbf16, #tpu.memory_space<vmem>>, vector<1x32x32xbf16>
    %21 = vector.shape_cast %20 : vector<1x32x32xbf16> to vector<32x32xbf16>
    %cst_23 = arith.constant dense<0.000000e+00> : vector<472x32xf32>
    %22 = tpu.matmul %19, %21, %cst_23 {dimension_numbers = #tpu.dot_dimension_numbers<[1], [0], [0], [1], [0, 0, 1, 1], [], []>} : vector<472x32xbf16>, vector<32x32xbf16>, vector<472x32xf32> -> vector<472x32xf32>
    %23 = arith.addf %18, %22 : vector<472x32xf32>
    %c16 = arith.constant 16 : index
    %c0_24 = arith.constant 0 : index
    %24 = vector.load %arg11[%c16, %c0_24] : memref<512x32xbf16, #tpu.memory_space<vmem>>, vector<472x32xbf16>
    %c3 = arith.constant 3 : index
    %c0_25 = arith.constant 0 : index
    %c0_26 = arith.constant 0 : index
    %25 = vector.load %arg4[%c3, %c0_25, %c0_26] : memref<9x32x32xbf16, #tpu.memory_space<vmem>>, vector<1x32x32xbf16>
    %26 = vector.shape_cast %25 : vector<1x32x32xbf16> to vector<32x32xbf16>
    %cst_27 = arith.constant dense<0.000000e+00> : vector<472x32xf32>
    %27 = tpu.matmul %24, %26, %cst_27 {dimension_numbers = #tpu.dot_dimension_numbers<[1], [0], [0], [1], [0, 0, 1, 1], [], []>} : vector<472x32xbf16>, vector<32x32xbf16>, vector<472x32xf32> -> vector<472x32xf32>
    %28 = arith.addf %23, %27 : vector<472x32xf32>
    %c17 = arith.constant 17 : index
    %c0_28 = arith.constant 0 : index
    %29 = vector.load %arg11[%c17, %c0_28] : memref<512x32xbf16, #tpu.memory_space<vmem>>, vector<472x32xbf16>
    %c4 = arith.constant 4 : index
    %c0_29 = arith.constant 0 : index
    %c0_30 = arith.constant 0 : index
    %30 = vector.load %arg4[%c4, %c0_29, %c0_30] : memref<9x32x32xbf16, #tpu.memory_space<vmem>>, vector<1x32x32xbf16>
    %31 = vector.shape_cast %30 : vector<1x32x32xbf16> to vector<32x32xbf16>
    %cst_31 = arith.constant dense<0.000000e+00> : vector<472x32xf32>
    %32 = tpu.matmul %29, %31, %cst_31 {dimension_numbers = #tpu.dot_dimension_numbers<[1], [0], [0], [1], [0, 0, 1, 1], [], []>} : vector<472x32xbf16>, vector<32x32xbf16>, vector<472x32xf32> -> vector<472x32xf32>
    %33 = arith.addf %28, %32 : vector<472x32xf32>
    %c18 = arith.constant 18 : index
    %c0_32 = arith.constant 0 : index
    %34 = vector.load %arg11[%c18, %c0_32] : memref<512x32xbf16, #tpu.memory_space<vmem>>, vector<472x32xbf16>
    %c5 = arith.constant 5 : index
    %c0_33 = arith.constant 0 : index
    %c0_34 = arith.constant 0 : index
    %35 = vector.load %arg4[%c5, %c0_33, %c0_34] : memref<9x32x32xbf16, #tpu.memory_space<vmem>>, vector<1x32x32xbf16>
    %36 = vector.shape_cast %35 : vector<1x32x32xbf16> to vector<32x32xbf16>
    %cst_35 = arith.constant dense<0.000000e+00> : vector<472x32xf32>
    %37 = tpu.matmul %34, %36, %cst_35 {dimension_numbers = #tpu.dot_dimension_numbers<[1], [0], [0], [1], [0, 0, 1, 1], [], []>} : vector<472x32xbf16>, vector<32x32xbf16>, vector<472x32xf32> -> vector<472x32xf32>
    %38 = arith.addf %33, %37 : vector<472x32xf32>
    %c32 = arith.constant 32 : index
    %c0_36 = arith.constant 0 : index
    %39 = vector.load %arg11[%c32, %c0_36] : memref<512x32xbf16, #tpu.memory_space<vmem>>, vector<472x32xbf16>
    %c6 = arith.constant 6 : index
    %c0_37 = arith.constant 0 : index
    %c0_38 = arith.constant 0 : index
    %40 = vector.load %arg4[%c6, %c0_37, %c0_38] : memref<9x32x32xbf16, #tpu.memory_space<vmem>>, vector<1x32x32xbf16>
    %41 = vector.shape_cast %40 : vector<1x32x32xbf16> to vector<32x32xbf16>
    %cst_39 = arith.constant dense<0.000000e+00> : vector<472x32xf32>
    %42 = tpu.matmul %39, %41, %cst_39 {dimension_numbers = #tpu.dot_dimension_numbers<[1], [0], [0], [1], [0, 0, 1, 1], [], []>} : vector<472x32xbf16>, vector<32x32xbf16>, vector<472x32xf32> -> vector<472x32xf32>
    %43 = arith.addf %38, %42 : vector<472x32xf32>
    %c33 = arith.constant 33 : index
    %c0_40 = arith.constant 0 : index
    %44 = vector.load %arg11[%c33, %c0_40] : memref<512x32xbf16, #tpu.memory_space<vmem>>, vector<472x32xbf16>
    %c7 = arith.constant 7 : index
    %c0_41 = arith.constant 0 : index
    %c0_42 = arith.constant 0 : index
    %45 = vector.load %arg4[%c7, %c0_41, %c0_42] : memref<9x32x32xbf16, #tpu.memory_space<vmem>>, vector<1x32x32xbf16>
    %46 = vector.shape_cast %45 : vector<1x32x32xbf16> to vector<32x32xbf16>
    %cst_43 = arith.constant dense<0.000000e+00> : vector<472x32xf32>
    %47 = tpu.matmul %44, %46, %cst_43 {dimension_numbers = #tpu.dot_dimension_numbers<[1], [0], [0], [1], [0, 0, 1, 1], [], []>} : vector<472x32xbf16>, vector<32x32xbf16>, vector<472x32xf32> -> vector<472x32xf32>
    %48 = arith.addf %43, %47 : vector<472x32xf32>
    %c34 = arith.constant 34 : index
    %c0_44 = arith.constant 0 : index
    %49 = vector.load %arg11[%c34, %c0_44] : memref<512x32xbf16, #tpu.memory_space<vmem>>, vector<472x32xbf16>
    %c8 = arith.constant 8 : index
    %c0_45 = arith.constant 0 : index
    %c0_46 = arith.constant 0 : index
    %50 = vector.load %arg4[%c8, %c0_45, %c0_46] : memref<9x32x32xbf16, #tpu.memory_space<vmem>>, vector<1x32x32xbf16>
    %51 = vector.shape_cast %50 : vector<1x32x32xbf16> to vector<32x32xbf16>
    %cst_47 = arith.constant dense<0.000000e+00> : vector<472x32xf32>
    %52 = tpu.matmul %49, %51, %cst_47 {dimension_numbers = #tpu.dot_dimension_numbers<[1], [0], [0], [1], [0, 0, 1, 1], [], []>} : vector<472x32xbf16>, vector<32x32xbf16>, vector<472x32xf32> -> vector<472x32xf32>
    %53 = arith.addf %48, %52 : vector<472x32xf32>
    %c0_48 = arith.constant 0 : index
    %c0_49 = arith.constant 0 : index
    %54 = vector.load %arg5[%c0_48, %c0_49] : memref<1x32xf32, #tpu.memory_space<vmem>>, vector<1x32xf32>
    %55 = vector.broadcast %54 : vector<1x32xf32> to vector<472x32xf32>
    %56 = arith.addf %53, %55 : vector<472x32xf32>
    %cst_50 = arith.constant 0.000000e+00 : f32
    %57 = vector.broadcast %cst_50 : f32 to vector<472x32xf32>
    %58 = arith.maximumf %56, %57 : vector<472x32xf32>
    %c0_51 = arith.constant 0 : index
    %c0_52 = arith.constant 0 : index
    %59 = vector.load %arg12[%c0_51, %c0_52] : memref<472x32xf32, #tpu.memory_space<vmem>>, vector<472x32xf32>
    tpu.vector_store %arg12[%c0_51, %c0_52], %58 {strides = array<i32>} : memref<472x32xf32, #tpu.memory_space<vmem>>, vector<472x32xf32>,
    %c0_53 = arith.constant 0 : index
    %c0_54 = arith.constant 0 : index
    %60 = tpu.strided_load %arg12[%c0_53, %c0_54] {strides = array<i32: 256, 1>} : memref<472x32xf32, #tpu.memory_space<vmem>>, vector<2x32xf32>
    %c1_55 = arith.constant 1 : index
    %c0_56 = arith.constant 0 : index
    %61 = tpu.strided_load %arg12[%c1_55, %c0_56] {strides = array<i32: 256, 1>} : memref<472x32xf32, #tpu.memory_space<vmem>>, vector<2x32xf32>
    %c16_57 = arith.constant 16 : index
    %c0_58 = arith.constant 0 : index
    %62 = tpu.strided_load %arg12[%c16_57, %c0_58] {strides = array<i32: 256, 1>} : memref<472x32xf32, #tpu.memory_space<vmem>>, vector<2x32xf32>
    %c17_59 = arith.constant 17 : index
    %c0_60 = arith.constant 0 : index
    %63 = tpu.strided_load %arg12[%c17_59, %c0_60] {strides = array<i32: 256, 1>} : memref<472x32xf32, #tpu.memory_space<vmem>>, vector<2x32xf32>
    %64 = arith.maximumf %60, %61 : vector<2x32xf32>
    %65 = arith.maximumf %62, %63 : vector<2x32xf32>
    %66 = arith.maximumf %64, %65 : vector<2x32xf32>
    %67 = arith.truncf %66 : vector<2x32xf32> to vector<2x32xbf16>
    %c0_61 = arith.constant 0 : index
    %c0_62 = arith.constant 0 : index
    %c0_63 = arith.constant 0 : index
    %68 = vector.load %arg6[%c0_61, %c0_62, %c0_63] : memref<36x32x128xbf16, #tpu.memory_space<vmem>>, vector<1x32x128xbf16>
    %69 = vector.shape_cast %68 : vector<1x32x128xbf16> to vector<32x128xbf16>
    %cst_64 = arith.constant dense<0.000000e+00> : vector<2x128xf32>
    %70 = tpu.matmul %67, %69, %cst_64 {dimension_numbers = #tpu.dot_dimension_numbers<[1], [0], [0], [1], [0, 0, 1, 1], [], []>} : vector<2x32xbf16>, vector<32x128xbf16>, vector<2x128xf32> -> vector<2x128xf32>
    %c2_65 = arith.constant 2 : index
    %c0_66 = arith.constant 0 : index
    %71 = tpu.strided_load %arg12[%c2_65, %c0_66] {strides = array<i32: 256, 1>} : memref<472x32xf32, #tpu.memory_space<vmem>>, vector<2x32xf32>
    %c3_67 = arith.constant 3 : index
    %c0_68 = arith.constant 0 : index
    %72 = tpu.strided_load %arg12[%c3_67, %c0_68] {strides = array<i32: 256, 1>} : memref<472x32xf32, #tpu.memory_space<vmem>>, vector<2x32xf32>
    %c18_69 = arith.constant 18 : index
    %c0_70 = arith.constant 0 : index
    %73 = tpu.strided_load %arg12[%c18_69, %c0_70] {strides = array<i32: 256, 1>} : memref<472x32xf32, #tpu.memory_space<vmem>>, vector<2x32xf32>
    %c19 = arith.constant 19 : index
    %c0_71 = arith.constant 0 : index
    %74 = tpu.strided_load %arg12[%c19, %c0_71] {strides = array<i32: 256, 1>} : memref<472x32xf32, #tpu.memory_space<vmem>>, vector<2x32xf32>
    %75 = arith.maximumf %71, %72 : vector<2x32xf32>
    %76 = arith.maximumf %73, %74 : vector<2x32xf32>
    %77 = arith.maximumf %75, %76 : vector<2x32xf32>
    %78 = arith.truncf %77 : vector<2x32xf32> to vector<2x32xbf16>
    %c1_72 = arith.constant 1 : index
    %c0_73 = arith.constant 0 : index
    %c0_74 = arith.constant 0 : index
    %79 = vector.load %arg6[%c1_72, %c0_73, %c0_74] : memref<36x32x128xbf16, #tpu.memory_space<vmem>>, vector<1x32x128xbf16>
    %80 = vector.shape_cast %79 : vector<1x32x128xbf16> to vector<32x128xbf16>
    %cst_75 = arith.constant dense<0.000000e+00> : vector<2x128xf32>
    %81 = tpu.matmul %78, %80, %cst_75 {dimension_numbers = #tpu.dot_dimension_numbers<[1], [0], [0], [1], [0, 0, 1, 1], [], []>} : vector<2x32xbf16>, vector<32x128xbf16>, vector<2x128xf32> -> vector<2x128xf32>
    %82 = arith.addf %70, %81 : vector<2x128xf32>
    %c4_76 = arith.constant 4 : index
    %c0_77 = arith.constant 0 : index
    %83 = tpu.strided_load %arg12[%c4_76, %c0_77] {strides = array<i32: 256, 1>} : memref<472x32xf32, #tpu.memory_space<vmem>>, vector<2x32xf32>
    %c5_78 = arith.constant 5 : index
    %c0_79 = arith.constant 0 : index
    %84 = tpu.strided_load %arg12[%c5_78, %c0_79] {strides = array<i32: 256, 1>} : memref<472x32xf32, #tpu.memory_space<vmem>>, vector<2x32xf32>
    %c20 = arith.constant 20 : index
    %c0_80 = arith.constant 0 : index
    %85 = tpu.strided_load %arg12[%c20, %c0_80] {strides = array<i32: 256, 1>} : memref<472x32xf32, #tpu.memory_space<vmem>>, vector<2x32xf32>
    %c21 = arith.constant 21 : index
    %c0_81 = arith.constant 0 : index
    %86 = tpu.strided_load %arg12[%c21, %c0_81] {strides = array<i32: 256, 1>} : memref<472x32xf32, #tpu.memory_space<vmem>>, vector<2x32xf32>
    %87 = arith.maximumf %83, %84 : vector<2x32xf32>
    %88 = arith.maximumf %85, %86 : vector<2x32xf32>
    %89 = arith.maximumf %87, %88 : vector<2x32xf32>
    %90 = arith.truncf %89 : vector<2x32xf32> to vector<2x32xbf16>
    %c2_82 = arith.constant 2 : index
    %c0_83 = arith.constant 0 : index
    %c0_84 = arith.constant 0 : index
    %91 = vector.load %arg6[%c2_82, %c0_83, %c0_84] : memref<36x32x128xbf16, #tpu.memory_space<vmem>>, vector<1x32x128xbf16>
    %92 = vector.shape_cast %91 : vector<1x32x128xbf16> to vector<32x128xbf16>
    %cst_85 = arith.constant dense<0.000000e+00> : vector<2x128xf32>
    %93 = tpu.matmul %90, %92, %cst_85 {dimension_numbers = #tpu.dot_dimension_numbers<[1], [0], [0], [1], [0, 0, 1, 1], [], []>} : vector<2x32xbf16>, vector<32x128xbf16>, vector<2x128xf32> -> vector<2x128xf32>
    %94 = arith.addf %82, %93 : vector<2x128xf32>
    %c6_86 = arith.constant 6 : index
    %c0_87 = arith.constant 0 : index
    %95 = tpu.strided_load %arg12[%c6_86, %c0_87] {strides = array<i32: 256, 1>} : memref<472x32xf32, #tpu.memory_space<vmem>>, vector<2x32xf32>
    %c7_88 = arith.constant 7 : index
    %c0_89 = arith.constant 0 : index
    %96 = tpu.strided_load %arg12[%c7_88, %c0_89] {strides = array<i32: 256, 1>} : memref<472x32xf32, #tpu.memory_space<vmem>>, vector<2x32xf32>
    %c22 = arith.constant 22 : index
    %c0_90 = arith.constant 0 : index
    %97 = tpu.strided_load %arg12[%c22, %c0_90] {strides = array<i32: 256, 1>} : memref<472x32xf32, #tpu.memory_space<vmem>>, vector<2x32xf32>
    %c23 = arith.constant 23 : index
    %c0_91 = arith.constant 0 : index
    %98 = tpu.strided_load %arg12[%c23, %c0_91] {strides = array<i32: 256, 1>} : memref<472x32xf32, #tpu.memory_space<vmem>>, vector<2x32xf32>
    %99 = arith.maximumf %95, %96 : vector<2x32xf32>
    %100 = arith.maximumf %97, %98 : vector<2x32xf32>
    %101 = arith.maximumf %99, %100 : vector<2x32xf32>
    %102 = arith.truncf %101 : vector<2x32xf32> to vector<2x32xbf16>
    %c3_92 = arith.constant 3 : index
    %c0_93 = arith.constant 0 : index
    %c0_94 = arith.constant 0 : index
    %103 = vector.load %arg6[%c3_92, %c0_93, %c0_94] : memref<36x32x128xbf16, #tpu.memory_space<vmem>>, vector<1x32x128xbf16>
    %104 = vector.shape_cast %103 : vector<1x32x128xbf16> to vector<32x128xbf16>
    %cst_95 = arith.constant dense<0.000000e+00> : vector<2x128xf32>
    %105 = tpu.matmul %102, %104, %cst_95 {dimension_numbers = #tpu.dot_dimension_numbers<[1], [0], [0], [1], [0, 0, 1, 1], [], []>} : vector<2x32xbf16>, vector<32x128xbf16>, vector<2x128xf32> -> vector<2x128xf32>
    %106 = arith.addf %94, %105 : vector<2x128xf32>
    %c8_96 = arith.constant 8 : index
    %c0_97 = arith.constant 0 : index
    %107 = tpu.strided_load %arg12[%c8_96, %c0_97] {strides = array<i32: 256, 1>} : memref<472x32xf32, #tpu.memory_space<vmem>>, vector<2x32xf32>
    %c9 = arith.constant 9 : index
    %c0_98 = arith.constant 0 : index
    %108 = tpu.strided_load %arg12[%c9, %c0_98] {strides = array<i32: 256, 1>} : memref<472x32xf32, #tpu.memory_space<vmem>>, vector<2x32xf32>
    %c24 = arith.constant 24 : index
    %c0_99 = arith.constant 0 : index
    %109 = tpu.strided_load %arg12[%c24, %c0_99] {strides = array<i32: 256, 1>} : memref<472x32xf32, #tpu.memory_space<vmem>>, vector<2x32xf32>
    %c25 = arith.constant 25 : index
    %c0_100 = arith.constant 0 : index
    %110 = tpu.strided_load %arg12[%c25, %c0_100] {strides = array<i32: 256, 1>} : memref<472x32xf32, #tpu.memory_space<vmem>>, vector<2x32xf32>
    %111 = arith.maximumf %107, %108 : vector<2x32xf32>
    %112 = arith.maximumf %109, %110 : vector<2x32xf32>
    %113 = arith.maximumf %111, %112 : vector<2x32xf32>
    %114 = arith.truncf %113 : vector<2x32xf32> to vector<2x32xbf16>
    %c4_101 = arith.constant 4 : index
    %c0_102 = arith.constant 0 : index
    %c0_103 = arith.constant 0 : index
    %115 = vector.load %arg6[%c4_101, %c0_102, %c0_103] : memref<36x32x128xbf16, #tpu.memory_space<vmem>>, vector<1x32x128xbf16>
    %116 = vector.shape_cast %115 : vector<1x32x128xbf16> to vector<32x128xbf16>
    %cst_104 = arith.constant dense<0.000000e+00> : vector<2x128xf32>
    %117 = tpu.matmul %114, %116, %cst_104 {dimension_numbers = #tpu.dot_dimension_numbers<[1], [0], [0], [1], [0, 0, 1, 1], [], []>} : vector<2x32xbf16>, vector<32x128xbf16>, vector<2x128xf32> -> vector<2x128xf32>
    %118 = arith.addf %106, %117 : vector<2x128xf32>
    %c10 = arith.constant 10 : index
    %c0_105 = arith.constant 0 : index
    %119 = tpu.strided_load %arg12[%c10, %c0_105] {strides = array<i32: 256, 1>} : memref<472x32xf32, #tpu.memory_space<vmem>>, vector<2x32xf32>
    %c11 = arith.constant 11 : index
    %c0_106 = arith.constant 0 : index
    %120 = tpu.strided_load %arg12[%c11, %c0_106] {strides = array<i32: 256, 1>} : memref<472x32xf32, #tpu.memory_space<vmem>>, vector<2x32xf32>
    %c26 = arith.constant 26 : index
    %c0_107 = arith.constant 0 : index
    %121 = tpu.strided_load %arg12[%c26, %c0_107] {strides = array<i32: 256, 1>} : memref<472x32xf32, #tpu.memory_space<vmem>>, vector<2x32xf32>
    %c27 = arith.constant 27 : index
    %c0_108 = arith.constant 0 : index
    %122 = tpu.strided_load %arg12[%c27, %c0_108] {strides = array<i32: 256, 1>} : memref<472x32xf32, #tpu.memory_space<vmem>>, vector<2x32xf32>
    %123 = arith.maximumf %119, %120 : vector<2x32xf32>
    %124 = arith.maximumf %121, %122 : vector<2x32xf32>
    %125 = arith.maximumf %123, %124 : vector<2x32xf32>
    %126 = arith.truncf %125 : vector<2x32xf32> to vector<2x32xbf16>
    %c5_109 = arith.constant 5 : index
    %c0_110 = arith.constant 0 : index
    %c0_111 = arith.constant 0 : index
    %127 = vector.load %arg6[%c5_109, %c0_110, %c0_111] : memref<36x32x128xbf16, #tpu.memory_space<vmem>>, vector<1x32x128xbf16>
    %128 = vector.shape_cast %127 : vector<1x32x128xbf16> to vector<32x128xbf16>
    %cst_112 = arith.constant dense<0.000000e+00> : vector<2x128xf32>
    %129 = tpu.matmul %126, %128, %cst_112 {dimension_numbers = #tpu.dot_dimension_numbers<[1], [0], [0], [1], [0, 0, 1, 1], [], []>} : vector<2x32xbf16>, vector<32x128xbf16>, vector<2x128xf32> -> vector<2x128xf32>
    %130 = arith.addf %118, %129 : vector<2x128xf32>
    %c32_113 = arith.constant 32 : index
    %c0_114 = arith.constant 0 : index
    %131 = tpu.strided_load %arg12[%c32_113, %c0_114] {strides = array<i32: 256, 1>} : memref<472x32xf32, #tpu.memory_space<vmem>>, vector<2x32xf32>
    %c33_115 = arith.constant 33 : index
    %c0_116 = arith.constant 0 : index
    %132 = tpu.strided_load %arg12[%c33_115, %c0_116] {strides = array<i32: 256, 1>} : memref<472x32xf32, #tpu.memory_space<vmem>>, vector<2x32xf32>
    %c48 = arith.constant 48 : index
    %c0_117 = arith.constant 0 : index
    %133 = tpu.strided_load %arg12[%c48, %c0_117] {strides = array<i32: 256, 1>} : memref<472x32xf32, #tpu.memory_space<vmem>>, vector<2x32xf32>
    %c49 = arith.constant 49 : index
    %c0_118 = arith.constant 0 : index
    %134 = tpu.strided_load %arg12[%c49, %c0_118] {strides = array<i32: 256, 1>} : memref<472x32xf32, #tpu.memory_space<vmem>>, vector<2x32xf32>
    %135 = arith.maximumf %131, %132 : vector<2x32xf32>
    %136 = arith.maximumf %133, %134 : vector<2x32xf32>
    %137 = arith.maximumf %135, %136 : vector<2x32xf32>
    %138 = arith.truncf %137 : vector<2x32xf32> to vector<2x32xbf16>
    %c6_119 = arith.constant 6 : index
    %c0_120 = arith.constant 0 : index
    %c0_121 = arith.constant 0 : index
    %139 = vector.load %arg6[%c6_119, %c0_120, %c0_121] : memref<36x32x128xbf16, #tpu.memory_space<vmem>>, vector<1x32x128xbf16>
    %140 = vector.shape_cast %139 : vector<1x32x128xbf16> to vector<32x128xbf16>
    %cst_122 = arith.constant dense<0.000000e+00> : vector<2x128xf32>
    %141 = tpu.matmul %138, %140, %cst_122 {dimension_numbers = #tpu.dot_dimension_numbers<[1], [0], [0], [1], [0, 0, 1, 1], [], []>} : vector<2x32xbf16>, vector<32x128xbf16>, vector<2x128xf32> -> vector<2x128xf32>
    %c34_123 = arith.constant 34 : index
    %c0_124 = arith.constant 0 : index
    %142 = tpu.strided_load %arg12[%c34_123, %c0_124] {strides = array<i32: 256, 1>} : memref<472x32xf32, #tpu.memory_space<vmem>>, vector<2x32xf32>
    %c35 = arith.constant 35 : index
    %c0_125 = arith.constant 0 : index
    %143 = tpu.strided_load %arg12[%c35, %c0_125] {strides = array<i32: 256, 1>} : memref<472x32xf32, #tpu.memory_space<vmem>>, vector<2x32xf32>
    %c50 = arith.constant 50 : index
    %c0_126 = arith.constant 0 : index
    %144 = tpu.strided_load %arg12[%c50, %c0_126] {strides = array<i32: 256, 1>} : memref<472x32xf32, #tpu.memory_space<vmem>>, vector<2x32xf32>
    %c51 = arith.constant 51 : index
    %c0_127 = arith.constant 0 : index
    %145 = tpu.strided_load %arg12[%c51, %c0_127] {strides = array<i32: 256, 1>} : memref<472x32xf32, #tpu.memory_space<vmem>>, vector<2x32xf32>
    %146 = arith.maximumf %142, %143 : vector<2x32xf32>
    %147 = arith.maximumf %144, %145 : vector<2x32xf32>
    %148 = arith.maximumf %146, %147 : vector<2x32xf32>
    %149 = arith.truncf %148 : vector<2x32xf32> to vector<2x32xbf16>
    %c7_128 = arith.constant 7 : index
    %c0_129 = arith.constant 0 : index
    %c0_130 = arith.constant 0 : index
    %150 = vector.load %arg6[%c7_128, %c0_129, %c0_130] : memref<36x32x128xbf16, #tpu.memory_space<vmem>>, vector<1x32x128xbf16>
    %151 = vector.shape_cast %150 : vector<1x32x128xbf16> to vector<32x128xbf16>
    %cst_131 = arith.constant dense<0.000000e+00> : vector<2x128xf32>
    %152 = tpu.matmul %149, %151, %cst_131 {dimension_numbers = #tpu.dot_dimension_numbers<[1], [0], [0], [1], [0, 0, 1, 1], [], []>} : vector<2x32xbf16>, vector<32x128xbf16>, vector<2x128xf32> -> vector<2x128xf32>
    %153 = arith.addf %141, %152 : vector<2x128xf32>
    %c36 = arith.constant 36 : index
    %c0_132 = arith.constant 0 : index
    %154 = tpu.strided_load %arg12[%c36, %c0_132] {strides = array<i32: 256, 1>} : memref<472x32xf32, #tpu.memory_space<vmem>>, vector<2x32xf32>
    %c37 = arith.constant 37 : index
    %c0_133 = arith.constant 0 : index
    %155 = tpu.strided_load %arg12[%c37, %c0_133] {strides = array<i32: 256, 1>} : memref<472x32xf32, #tpu.memory_space<vmem>>, vector<2x32xf32>
    %c52 = arith.constant 52 : index
    %c0_134 = arith.constant 0 : index
    %156 = tpu.strided_load %arg12[%c52, %c0_134] {strides = array<i32: 256, 1>} : memref<472x32xf32, #tpu.memory_space<vmem>>, vector<2x32xf32>
    %c53 = arith.constant 53 : index
    %c0_135 = arith.constant 0 : index
    %157 = tpu.strided_load %arg12[%c53, %c0_135] {strides = array<i32: 256, 1>} : memref<472x32xf32, #tpu.memory_space<vmem>>, vector<2x32xf32>
    %158 = arith.maximumf %154, %155 : vector<2x32xf32>
    %159 = arith.maximumf %156, %157 : vector<2x32xf32>
    %160 = arith.maximumf %158, %159 : vector<2x32xf32>
    %161 = arith.truncf %160 : vector<2x32xf32> to vector<2x32xbf16>
    %c8_136 = arith.constant 8 : index
    %c0_137 = arith.constant 0 : index
    %c0_138 = arith.constant 0 : index
    %162 = vector.load %arg6[%c8_136, %c0_137, %c0_138] : memref<36x32x128xbf16, #tpu.memory_space<vmem>>, vector<1x32x128xbf16>
    %163 = vector.shape_cast %162 : vector<1x32x128xbf16> to vector<32x128xbf16>
    %cst_139 = arith.constant dense<0.000000e+00> : vector<2x128xf32>
    %164 = tpu.matmul %161, %163, %cst_139 {dimension_numbers = #tpu.dot_dimension_numbers<[1], [0], [0], [1], [0, 0, 1, 1], [], []>} : vector<2x32xbf16>, vector<32x128xbf16>, vector<2x128xf32> -> vector<2x128xf32>
    %165 = arith.addf %153, %164 : vector<2x128xf32>
    %c38 = arith.constant 38 : index
    %c0_140 = arith.constant 0 : index
    %166 = tpu.strided_load %arg12[%c38, %c0_140] {strides = array<i32: 256, 1>} : memref<472x32xf32, #tpu.memory_space<vmem>>, vector<2x32xf32>
    %c39 = arith.constant 39 : index
    %c0_141 = arith.constant 0 : index
    %167 = tpu.strided_load %arg12[%c39, %c0_141] {strides = array<i32: 256, 1>} : memref<472x32xf32, #tpu.memory_space<vmem>>, vector<2x32xf32>
    %c54 = arith.constant 54 : index
    %c0_142 = arith.constant 0 : index
    %168 = tpu.strided_load %arg12[%c54, %c0_142] {strides = array<i32: 256, 1>} : memref<472x32xf32, #tpu.memory_space<vmem>>, vector<2x32xf32>
    %c55 = arith.constant 55 : index
    %c0_143 = arith.constant 0 : index
    %169 = tpu.strided_load %arg12[%c55, %c0_143] {strides = array<i32: 256, 1>} : memref<472x32xf32, #tpu.memory_space<vmem>>, vector<2x32xf32>
    %170 = arith.maximumf %166, %167 : vector<2x32xf32>
    %171 = arith.maximumf %168, %169 : vector<2x32xf32>
    %172 = arith.maximumf %170, %171 : vector<2x32xf32>
    %173 = arith.truncf %172 : vector<2x32xf32> to vector<2x32xbf16>
    %c9_144 = arith.constant 9 : index
    %c0_145 = arith.constant 0 : index
    %c0_146 = arith.constant 0 : index
    %174 = vector.load %arg6[%c9_144, %c0_145, %c0_146] : memref<36x32x128xbf16, #tpu.memory_space<vmem>>, vector<1x32x128xbf16>
    %175 = vector.shape_cast %174 : vector<1x32x128xbf16> to vector<32x128xbf16>
    %cst_147 = arith.constant dense<0.000000e+00> : vector<2x128xf32>
    %176 = tpu.matmul %173, %175, %cst_147 {dimension_numbers = #tpu.dot_dimension_numbers<[1], [0], [0], [1], [0, 0, 1, 1], [], []>} : vector<2x32xbf16>, vector<32x128xbf16>, vector<2x128xf32> -> vector<2x128xf32>
    %177 = arith.addf %165, %176 : vector<2x128xf32>
    %c40 = arith.constant 40 : index
    %c0_148 = arith.constant 0 : index
    %178 = tpu.strided_load %arg12[%c40, %c0_148] {strides = array<i32: 256, 1>} : memref<472x32xf32, #tpu.memory_space<vmem>>, vector<2x32xf32>
    %c41 = arith.constant 41 : index
    %c0_149 = arith.constant 0 : index
    %179 = tpu.strided_load %arg12[%c41, %c0_149] {strides = array<i32: 256, 1>} : memref<472x32xf32, #tpu.memory_space<vmem>>, vector<2x32xf32>
    %c56 = arith.constant 56 : index
    %c0_150 = arith.constant 0 : index
    %180 = tpu.strided_load %arg12[%c56, %c0_150] {strides = array<i32: 256, 1>} : memref<472x32xf32, #tpu.memory_space<vmem>>, vector<2x32xf32>
    %c57 = arith.constant 57 : index
    %c0_151 = arith.constant 0 : index
    %181 = tpu.strided_load %arg12[%c57, %c0_151] {strides = array<i32: 256, 1>} : memref<472x32xf32, #tpu.memory_space<vmem>>, vector<2x32xf32>
    %182 = arith.maximumf %178, %179 : vector<2x32xf32>
    %183 = arith.maximumf %180, %181 : vector<2x32xf32>
    %184 = arith.maximumf %182, %183 : vector<2x32xf32>
    %185 = arith.truncf %184 : vector<2x32xf32> to vector<2x32xbf16>
    %c10_152 = arith.constant 10 : index
    %c0_153 = arith.constant 0 : index
    %c0_154 = arith.constant 0 : index
    %186 = vector.load %arg6[%c10_152, %c0_153, %c0_154] : memref<36x32x128xbf16, #tpu.memory_space<vmem>>, vector<1x32x128xbf16>
    %187 = vector.shape_cast %186 : vector<1x32x128xbf16> to vector<32x128xbf16>
    %cst_155 = arith.constant dense<0.000000e+00> : vector<2x128xf32>
    %188 = tpu.matmul %185, %187, %cst_155 {dimension_numbers = #tpu.dot_dimension_numbers<[1], [0], [0], [1], [0, 0, 1, 1], [], []>} : vector<2x32xbf16>, vector<32x128xbf16>, vector<2x128xf32> -> vector<2x128xf32>
    %189 = arith.addf %177, %188 : vector<2x128xf32>
    %c42 = arith.constant 42 : index
    %c0_156 = arith.constant 0 : index
    %190 = tpu.strided_load %arg12[%c42, %c0_156] {strides = array<i32: 256, 1>} : memref<472x32xf32, #tpu.memory_space<vmem>>, vector<2x32xf32>
    %c43 = arith.constant 43 : index
    %c0_157 = arith.constant 0 : index
    %191 = tpu.strided_load %arg12[%c43, %c0_157] {strides = array<i32: 256, 1>} : memref<472x32xf32, #tpu.memory_space<vmem>>, vector<2x32xf32>
    %c58 = arith.constant 58 : index
    %c0_158 = arith.constant 0 : index
    %192 = tpu.strided_load %arg12[%c58, %c0_158] {strides = array<i32: 256, 1>} : memref<472x32xf32, #tpu.memory_space<vmem>>, vector<2x32xf32>
    %c59 = arith.constant 59 : index
    %c0_159 = arith.constant 0 : index
    %193 = tpu.strided_load %arg12[%c59, %c0_159] {strides = array<i32: 256, 1>} : memref<472x32xf32, #tpu.memory_space<vmem>>, vector<2x32xf32>
    %194 = arith.maximumf %190, %191 : vector<2x32xf32>
    %195 = arith.maximumf %192, %193 : vector<2x32xf32>
    %196 = arith.maximumf %194, %195 : vector<2x32xf32>
    %197 = arith.truncf %196 : vector<2x32xf32> to vector<2x32xbf16>
    %c11_160 = arith.constant 11 : index
    %c0_161 = arith.constant 0 : index
    %c0_162 = arith.constant 0 : index
    %198 = vector.load %arg6[%c11_160, %c0_161, %c0_162] : memref<36x32x128xbf16, #tpu.memory_space<vmem>>, vector<1x32x128xbf16>
    %199 = vector.shape_cast %198 : vector<1x32x128xbf16> to vector<32x128xbf16>
    %cst_163 = arith.constant dense<0.000000e+00> : vector<2x128xf32>
    %200 = tpu.matmul %197, %199, %cst_163 {dimension_numbers = #tpu.dot_dimension_numbers<[1], [0], [0], [1], [0, 0, 1, 1], [], []>} : vector<2x32xbf16>, vector<32x128xbf16>, vector<2x128xf32> -> vector<2x128xf32>
    %201 = arith.addf %189, %200 : vector<2x128xf32>
    %c64 = arith.constant 64 : index
    %c0_164 = arith.constant 0 : index
    %202 = tpu.strided_load %arg12[%c64, %c0_164] {strides = array<i32: 256, 1>} : memref<472x32xf32, #tpu.memory_space<vmem>>, vector<2x32xf32>
    %c65 = arith.constant 65 : index
    %c0_165 = arith.constant 0 : index
    %203 = tpu.strided_load %arg12[%c65, %c0_165] {strides = array<i32: 256, 1>} : memref<472x32xf32, #tpu.memory_space<vmem>>, vector<2x32xf32>
    %c80 = arith.constant 80 : index
    %c0_166 = arith.constant 0 : index
    %204 = tpu.strided_load %arg12[%c80, %c0_166] {strides = array<i32: 256, 1>} : memref<472x32xf32, #tpu.memory_space<vmem>>, vector<2x32xf32>
    %c81 = arith.constant 81 : index
    %c0_167 = arith.constant 0 : index
    %205 = tpu.strided_load %arg12[%c81, %c0_167] {strides = array<i32: 256, 1>} : memref<472x32xf32, #tpu.memory_space<vmem>>, vector<2x32xf32>
    %206 = arith.maximumf %202, %203 : vector<2x32xf32>
    %207 = arith.maximumf %204, %205 : vector<2x32xf32>
    %208 = arith.maximumf %206, %207 : vector<2x32xf32>
    %209 = arith.truncf %208 : vector<2x32xf32> to vector<2x32xbf16>
    %c12 = arith.constant 12 : index
    %c0_168 = arith.constant 0 : index
    %c0_169 = arith.constant 0 : index
    %210 = vector.load %arg6[%c12, %c0_168, %c0_169] : memref<36x32x128xbf16, #tpu.memory_space<vmem>>, vector<1x32x128xbf16>
    %211 = vector.shape_cast %210 : vector<1x32x128xbf16> to vector<32x128xbf16>
    %cst_170 = arith.constant dense<0.000000e+00> : vector<2x128xf32>
    %212 = tpu.matmul %209, %211, %cst_170 {dimension_numbers = #tpu.dot_dimension_numbers<[1], [0], [0], [1], [0, 0, 1, 1], [], []>} : vector<2x32xbf16>, vector<32x128xbf16>, vector<2x128xf32> -> vector<2x128xf32>
    %c66 = arith.constant 66 : index
    %c0_171 = arith.constant 0 : index
    %213 = tpu.strided_load %arg12[%c66, %c0_171] {strides = array<i32: 256, 1>} : memref<472x32xf32, #tpu.memory_space<vmem>>, vector<2x32xf32>
    %c67 = arith.constant 67 : index
    %c0_172 = arith.constant 0 : index
    %214 = tpu.strided_load %arg12[%c67, %c0_172] {strides = array<i32: 256, 1>} : memref<472x32xf32, #tpu.memory_space<vmem>>, vector<2x32xf32>
    %c82 = arith.constant 82 : index
    %c0_173 = arith.constant 0 : index
    %215 = tpu.strided_load %arg12[%c82, %c0_173] {strides = array<i32: 256, 1>} : memref<472x32xf32, #tpu.memory_space<vmem>>, vector<2x32xf32>
    %c83 = arith.constant 83 : index
    %c0_174 = arith.constant 0 : index
    %216 = tpu.strided_load %arg12[%c83, %c0_174] {strides = array<i32: 256, 1>} : memref<472x32xf32, #tpu.memory_space<vmem>>, vector<2x32xf32>
    %217 = arith.maximumf %213, %214 : vector<2x32xf32>
    %218 = arith.maximumf %215, %216 : vector<2x32xf32>
    %219 = arith.maximumf %217, %218 : vector<2x32xf32>
    %220 = arith.truncf %219 : vector<2x32xf32> to vector<2x32xbf16>
    %c13 = arith.constant 13 : index
    %c0_175 = arith.constant 0 : index
    %c0_176 = arith.constant 0 : index
    %221 = vector.load %arg6[%c13, %c0_175, %c0_176] : memref<36x32x128xbf16, #tpu.memory_space<vmem>>, vector<1x32x128xbf16>
    %222 = vector.shape_cast %221 : vector<1x32x128xbf16> to vector<32x128xbf16>
    %cst_177 = arith.constant dense<0.000000e+00> : vector<2x128xf32>
    %223 = tpu.matmul %220, %222, %cst_177 {dimension_numbers = #tpu.dot_dimension_numbers<[1], [0], [0], [1], [0, 0, 1, 1], [], []>} : vector<2x32xbf16>, vector<32x128xbf16>, vector<2x128xf32> -> vector<2x128xf32>
    %224 = arith.addf %212, %223 : vector<2x128xf32>
    %c68 = arith.constant 68 : index
    %c0_178 = arith.constant 0 : index
    %225 = tpu.strided_load %arg12[%c68, %c0_178] {strides = array<i32: 256, 1>} : memref<472x32xf32, #tpu.memory_space<vmem>>, vector<2x32xf32>
    %c69 = arith.constant 69 : index
    %c0_179 = arith.constant 0 : index
    %226 = tpu.strided_load %arg12[%c69, %c0_179] {strides = array<i32: 256, 1>} : memref<472x32xf32, #tpu.memory_space<vmem>>, vector<2x32xf32>
    %c84 = arith.constant 84 : index
    %c0_180 = arith.constant 0 : index
    %227 = tpu.strided_load %arg12[%c84, %c0_180] {strides = array<i32: 256, 1>} : memref<472x32xf32, #tpu.memory_space<vmem>>, vector<2x32xf32>
    %c85 = arith.constant 85 : index
    %c0_181 = arith.constant 0 : index
    %228 = tpu.strided_load %arg12[%c85, %c0_181] {strides = array<i32: 256, 1>} : memref<472x32xf32, #tpu.memory_space<vmem>>, vector<2x32xf32>
    %229 = arith.maximumf %225, %226 : vector<2x32xf32>
    %230 = arith.maximumf %227, %228 : vector<2x32xf32>
    %231 = arith.maximumf %229, %230 : vector<2x32xf32>
    %232 = arith.truncf %231 : vector<2x32xf32> to vector<2x32xbf16>
    %c14 = arith.constant 14 : index
    %c0_182 = arith.constant 0 : index
    %c0_183 = arith.constant 0 : index
    %233 = vector.load %arg6[%c14, %c0_182, %c0_183] : memref<36x32x128xbf16, #tpu.memory_space<vmem>>, vector<1x32x128xbf16>
    %234 = vector.shape_cast %233 : vector<1x32x128xbf16> to vector<32x128xbf16>
    %cst_184 = arith.constant dense<0.000000e+00> : vector<2x128xf32>
    %235 = tpu.matmul %232, %234, %cst_184 {dimension_numbers = #tpu.dot_dimension_numbers<[1], [0], [0], [1], [0, 0, 1, 1], [], []>} : vector<2x32xbf16>, vector<32x128xbf16>, vector<2x128xf32> -> vector<2x128xf32>
    %236 = arith.addf %224, %235 : vector<2x128xf32>
    %c70 = arith.constant 70 : index
    %c0_185 = arith.constant 0 : index
    %237 = tpu.strided_load %arg12[%c70, %c0_185] {strides = array<i32: 256, 1>} : memref<472x32xf32, #tpu.memory_space<vmem>>, vector<2x32xf32>
    %c71 = arith.constant 71 : index
    %c0_186 = arith.constant 0 : index
    %238 = tpu.strided_load %arg12[%c71, %c0_186] {strides = array<i32: 256, 1>} : memref<472x32xf32, #tpu.memory_space<vmem>>, vector<2x32xf32>
    %c86 = arith.constant 86 : index
    %c0_187 = arith.constant 0 : index
    %239 = tpu.strided_load %arg12[%c86, %c0_187] {strides = array<i32: 256, 1>} : memref<472x32xf32, #tpu.memory_space<vmem>>, vector<2x32xf32>
    %c87 = arith.constant 87 : index
    %c0_188 = arith.constant 0 : index
    %240 = tpu.strided_load %arg12[%c87, %c0_188] {strides = array<i32: 256, 1>} : memref<472x32xf32, #tpu.memory_space<vmem>>, vector<2x32xf32>
    %241 = arith.maximumf %237, %238 : vector<2x32xf32>
    %242 = arith.maximumf %239, %240 : vector<2x32xf32>
    %243 = arith.maximumf %241, %242 : vector<2x32xf32>
    %244 = arith.truncf %243 : vector<2x32xf32> to vector<2x32xbf16>
    %c15 = arith.constant 15 : index
    %c0_189 = arith.constant 0 : index
    %c0_190 = arith.constant 0 : index
    %245 = vector.load %arg6[%c15, %c0_189, %c0_190] : memref<36x32x128xbf16, #tpu.memory_space<vmem>>, vector<1x32x128xbf16>
    %246 = vector.shape_cast %245 : vector<1x32x128xbf16> to vector<32x128xbf16>
    %cst_191 = arith.constant dense<0.000000e+00> : vector<2x128xf32>
    %247 = tpu.matmul %244, %246, %cst_191 {dimension_numbers = #tpu.dot_dimension_numbers<[1], [0], [0], [1], [0, 0, 1, 1], [], []>} : vector<2x32xbf16>, vector<32x128xbf16>, vector<2x128xf32> -> vector<2x128xf32>
    %248 = arith.addf %236, %247 : vector<2x128xf32>
    %c72 = arith.constant 72 : index
    %c0_192 = arith.constant 0 : index
    %249 = tpu.strided_load %arg12[%c72, %c0_192] {strides = array<i32: 256, 1>} : memref<472x32xf32, #tpu.memory_space<vmem>>, vector<2x32xf32>
    %c73 = arith.constant 73 : index
    %c0_193 = arith.constant 0 : index
    %250 = tpu.strided_load %arg12[%c73, %c0_193] {strides = array<i32: 256, 1>} : memref<472x32xf32, #tpu.memory_space<vmem>>, vector<2x32xf32>
    %c88 = arith.constant 88 : index
    %c0_194 = arith.constant 0 : index
    %251 = tpu.strided_load %arg12[%c88, %c0_194] {strides = array<i32: 256, 1>} : memref<472x32xf32, #tpu.memory_space<vmem>>, vector<2x32xf32>
    %c89 = arith.constant 89 : index
    %c0_195 = arith.constant 0 : index
    %252 = tpu.strided_load %arg12[%c89, %c0_195] {strides = array<i32: 256, 1>} : memref<472x32xf32, #tpu.memory_space<vmem>>, vector<2x32xf32>
    %253 = arith.maximumf %249, %250 : vector<2x32xf32>
    %254 = arith.maximumf %251, %252 : vector<2x32xf32>
    %255 = arith.maximumf %253, %254 : vector<2x32xf32>
    %256 = arith.truncf %255 : vector<2x32xf32> to vector<2x32xbf16>
    %c16_196 = arith.constant 16 : index
    %c0_197 = arith.constant 0 : index
    %c0_198 = arith.constant 0 : index
    %257 = vector.load %arg6[%c16_196, %c0_197, %c0_198] : memref<36x32x128xbf16, #tpu.memory_space<vmem>>, vector<1x32x128xbf16>
    %258 = vector.shape_cast %257 : vector<1x32x128xbf16> to vector<32x128xbf16>
    %cst_199 = arith.constant dense<0.000000e+00> : vector<2x128xf32>
    %259 = tpu.matmul %256, %258, %cst_199 {dimension_numbers = #tpu.dot_dimension_numbers<[1], [0], [0], [1], [0, 0, 1, 1], [], []>} : vector<2x32xbf16>, vector<32x128xbf16>, vector<2x128xf32> -> vector<2x128xf32>
    %260 = arith.addf %248, %259 : vector<2x128xf32>
    %c74 = arith.constant 74 : index
    %c0_200 = arith.constant 0 : index
    %261 = tpu.strided_load %arg12[%c74, %c0_200] {strides = array<i32: 256, 1>} : memref<472x32xf32, #tpu.memory_space<vmem>>, vector<2x32xf32>
    %c75 = arith.constant 75 : index
    %c0_201 = arith.constant 0 : index
    %262 = tpu.strided_load %arg12[%c75, %c0_201] {strides = array<i32: 256, 1>} : memref<472x32xf32, #tpu.memory_space<vmem>>, vector<2x32xf32>
    %c90 = arith.constant 90 : index
    %c0_202 = arith.constant 0 : index
    %263 = tpu.strided_load %arg12[%c90, %c0_202] {strides = array<i32: 256, 1>} : memref<472x32xf32, #tpu.memory_space<vmem>>, vector<2x32xf32>
    %c91 = arith.constant 91 : index
    %c0_203 = arith.constant 0 : index
    %264 = tpu.strided_load %arg12[%c91, %c0_203] {strides = array<i32: 256, 1>} : memref<472x32xf32, #tpu.memory_space<vmem>>, vector<2x32xf32>
    %265 = arith.maximumf %261, %262 : vector<2x32xf32>
    %266 = arith.maximumf %263, %264 : vector<2x32xf32>
    %267 = arith.maximumf %265, %266 : vector<2x32xf32>
    %268 = arith.truncf %267 : vector<2x32xf32> to vector<2x32xbf16>
    %c17_204 = arith.constant 17 : index
    %c0_205 = arith.constant 0 : index
    %c0_206 = arith.constant 0 : index
    %269 = vector.load %arg6[%c17_204, %c0_205, %c0_206] : memref<36x32x128xbf16, #tpu.memory_space<vmem>>, vector<1x32x128xbf16>
    %270 = vector.shape_cast %269 : vector<1x32x128xbf16> to vector<32x128xbf16>
    %cst_207 = arith.constant dense<0.000000e+00> : vector<2x128xf32>
    %271 = tpu.matmul %268, %270, %cst_207 {dimension_numbers = #tpu.dot_dimension_numbers<[1], [0], [0], [1], [0, 0, 1, 1], [], []>} : vector<2x32xbf16>, vector<32x128xbf16>, vector<2x128xf32> -> vector<2x128xf32>
    %272 = arith.addf %260, %271 : vector<2x128xf32>
    %c96 = arith.constant 96 : index
    %c0_208 = arith.constant 0 : index
    %273 = tpu.strided_load %arg12[%c96, %c0_208] {strides = array<i32: 256, 1>} : memref<472x32xf32, #tpu.memory_space<vmem>>, vector<2x32xf32>
    %c97 = arith.constant 97 : index
    %c0_209 = arith.constant 0 : index
    %274 = tpu.strided_load %arg12[%c97, %c0_209] {strides = array<i32: 256, 1>} : memref<472x32xf32, #tpu.memory_space<vmem>>, vector<2x32xf32>
    %c112 = arith.constant 112 : index
    %c0_210 = arith.constant 0 : index
    %275 = tpu.strided_load %arg12[%c112, %c0_210] {strides = array<i32: 256, 1>} : memref<472x32xf32, #tpu.memory_space<vmem>>, vector<2x32xf32>
    %c113 = arith.constant 113 : index
    %c0_211 = arith.constant 0 : index
    %276 = tpu.strided_load %arg12[%c113, %c0_211] {strides = array<i32: 256, 1>} : memref<472x32xf32, #tpu.memory_space<vmem>>, vector<2x32xf32>
    %277 = arith.maximumf %273, %274 : vector<2x32xf32>
    %278 = arith.maximumf %275, %276 : vector<2x32xf32>
    %279 = arith.maximumf %277, %278 : vector<2x32xf32>
    %280 = arith.truncf %279 : vector<2x32xf32> to vector<2x32xbf16>
    %c18_212 = arith.constant 18 : index
    %c0_213 = arith.constant 0 : index
    %c0_214 = arith.constant 0 : index
    %281 = vector.load %arg6[%c18_212, %c0_213, %c0_214] : memref<36x32x128xbf16, #tpu.memory_space<vmem>>, vector<1x32x128xbf16>
    %282 = vector.shape_cast %281 : vector<1x32x128xbf16> to vector<32x128xbf16>
    %cst_215 = arith.constant dense<0.000000e+00> : vector<2x128xf32>
    %283 = tpu.matmul %280, %282, %cst_215 {dimension_numbers = #tpu.dot_dimension_numbers<[1], [0], [0], [1], [0, 0, 1, 1], [], []>} : vector<2x32xbf16>, vector<32x128xbf16>, vector<2x128xf32> -> vector<2x128xf32>
    %c98 = arith.constant 98 : index
    %c0_216 = arith.constant 0 : index
    %284 = tpu.strided_load %arg12[%c98, %c0_216] {strides = array<i32: 256, 1>} : memref<472x32xf32, #tpu.memory_space<vmem>>, vector<2x32xf32>
    %c99 = arith.constant 99 : index
    %c0_217 = arith.constant 0 : index
    %285 = tpu.strided_load %arg12[%c99, %c0_217] {strides = array<i32: 256, 1>} : memref<472x32xf32, #tpu.memory_space<vmem>>, vector<2x32xf32>
    %c114 = arith.constant 114 : index
    %c0_218 = arith.constant 0 : index
    %286 = tpu.strided_load %arg12[%c114, %c0_218] {strides = array<i32: 256, 1>} : memref<472x32xf32, #tpu.memory_space<vmem>>, vector<2x32xf32>
    %c115 = arith.constant 115 : index
    %c0_219 = arith.constant 0 : index
    %287 = tpu.strided_load %arg12[%c115, %c0_219] {strides = array<i32: 256, 1>} : memref<472x32xf32, #tpu.memory_space<vmem>>, vector<2x32xf32>
    %288 = arith.maximumf %284, %285 : vector<2x32xf32>
    %289 = arith.maximumf %286, %287 : vector<2x32xf32>
    %290 = arith.maximumf %288, %289 : vector<2x32xf32>
    %291 = arith.truncf %290 : vector<2x32xf32> to vector<2x32xbf16>
    %c19_220 = arith.constant 19 : index
    %c0_221 = arith.constant 0 : index
    %c0_222 = arith.constant 0 : index
    %292 = vector.load %arg6[%c19_220, %c0_221, %c0_222] : memref<36x32x128xbf16, #tpu.memory_space<vmem>>, vector<1x32x128xbf16>
    %293 = vector.shape_cast %292 : vector<1x32x128xbf16> to vector<32x128xbf16>
    %cst_223 = arith.constant dense<0.000000e+00> : vector<2x128xf32>
    %294 = tpu.matmul %291, %293, %cst_223 {dimension_numbers = #tpu.dot_dimension_numbers<[1], [0], [0], [1], [0, 0, 1, 1], [], []>} : vector<2x32xbf16>, vector<32x128xbf16>, vector<2x128xf32> -> vector<2x128xf32>
    %295 = arith.addf %283, %294 : vector<2x128xf32>
    %c100 = arith.constant 100 : index
    %c0_224 = arith.constant 0 : index
    %296 = tpu.strided_load %arg12[%c100, %c0_224] {strides = array<i32: 256, 1>} : memref<472x32xf32, #tpu.memory_space<vmem>>, vector<2x32xf32>
    %c101 = arith.constant 101 : index
    %c0_225 = arith.constant 0 : index
    %297 = tpu.strided_load %arg12[%c101, %c0_225] {strides = array<i32: 256, 1>} : memref<472x32xf32, #tpu.memory_space<vmem>>, vector<2x32xf32>
    %c116 = arith.constant 116 : index
    %c0_226 = arith.constant 0 : index
    %298 = tpu.strided_load %arg12[%c116, %c0_226] {strides = array<i32: 256, 1>} : memref<472x32xf32, #tpu.memory_space<vmem>>, vector<2x32xf32>
    %c117 = arith.constant 117 : index
    %c0_227 = arith.constant 0 : index
    %299 = tpu.strided_load %arg12[%c117, %c0_227] {strides = array<i32: 256, 1>} : memref<472x32xf32, #tpu.memory_space<vmem>>, vector<2x32xf32>
    %300 = arith.maximumf %296, %297 : vector<2x32xf32>
    %301 = arith.maximumf %298, %299 : vector<2x32xf32>
    %302 = arith.maximumf %300, %301 : vector<2x32xf32>
    %303 = arith.truncf %302 : vector<2x32xf32> to vector<2x32xbf16>
    %c20_228 = arith.constant 20 : index
    %c0_229 = arith.constant 0 : index
    %c0_230 = arith.constant 0 : index
    %304 = vector.load %arg6[%c20_228, %c0_229, %c0_230] : memref<36x32x128xbf16, #tpu.memory_space<vmem>>, vector<1x32x128xbf16>
    %305 = vector.shape_cast %304 : vector<1x32x128xbf16> to vector<32x128xbf16>
    %cst_231 = arith.constant dense<0.000000e+00> : vector<2x128xf32>
    %306 = tpu.matmul %303, %305, %cst_231 {dimension_numbers = #tpu.dot_dimension_numbers<[1], [0], [0], [1], [0, 0, 1, 1], [], []>} : vector<2x32xbf16>, vector<32x128xbf16>, vector<2x128xf32> -> vector<2x128xf32>
    %307 = arith.addf %295, %306 : vector<2x128xf32>
    %c102 = arith.constant 102 : index
    %c0_232 = arith.constant 0 : index
    %308 = tpu.strided_load %arg12[%c102, %c0_232] {strides = array<i32: 256, 1>} : memref<472x32xf32, #tpu.memory_space<vmem>>, vector<2x32xf32>
    %c103 = arith.constant 103 : index
    %c0_233 = arith.constant 0 : index
    %309 = tpu.strided_load %arg12[%c103, %c0_233] {strides = array<i32: 256, 1>} : memref<472x32xf32, #tpu.memory_space<vmem>>, vector<2x32xf32>
    %c118 = arith.constant 118 : index
    %c0_234 = arith.constant 0 : index
    %310 = tpu.strided_load %arg12[%c118, %c0_234] {strides = array<i32: 256, 1>} : memref<472x32xf32, #tpu.memory_space<vmem>>, vector<2x32xf32>
    %c119 = arith.constant 119 : index
    %c0_235 = arith.constant 0 : index
    %311 = tpu.strided_load %arg12[%c119, %c0_235] {strides = array<i32: 256, 1>} : memref<472x32xf32, #tpu.memory_space<vmem>>, vector<2x32xf32>
    %312 = arith.maximumf %308, %309 : vector<2x32xf32>
    %313 = arith.maximumf %310, %311 : vector<2x32xf32>
    %314 = arith.maximumf %312, %313 : vector<2x32xf32>
    %315 = arith.truncf %314 : vector<2x32xf32> to vector<2x32xbf16>
    %c21_236 = arith.constant 21 : index
    %c0_237 = arith.constant 0 : index
    %c0_238 = arith.constant 0 : index
    %316 = vector.load %arg6[%c21_236, %c0_237, %c0_238] : memref<36x32x128xbf16, #tpu.memory_space<vmem>>, vector<1x32x128xbf16>
    %317 = vector.shape_cast %316 : vector<1x32x128xbf16> to vector<32x128xbf16>
    %cst_239 = arith.constant dense<0.000000e+00> : vector<2x128xf32>
    %318 = tpu.matmul %315, %317, %cst_239 {dimension_numbers = #tpu.dot_dimension_numbers<[1], [0], [0], [1], [0, 0, 1, 1], [], []>} : vector<2x32xbf16>, vector<32x128xbf16>, vector<2x128xf32> -> vector<2x128xf32>
    %319 = arith.addf %307, %318 : vector<2x128xf32>
    %c104 = arith.constant 104 : index
    %c0_240 = arith.constant 0 : index
    %320 = tpu.strided_load %arg12[%c104, %c0_240] {strides = array<i32: 256, 1>} : memref<472x32xf32, #tpu.memory_space<vmem>>, vector<2x32xf32>
    %c105 = arith.constant 105 : index
    %c0_241 = arith.constant 0 : index
    %321 = tpu.strided_load %arg12[%c105, %c0_241] {strides = array<i32: 256, 1>} : memref<472x32xf32, #tpu.memory_space<vmem>>, vector<2x32xf32>
    %c120 = arith.constant 120 : index
    %c0_242 = arith.constant 0 : index
    %322 = tpu.strided_load %arg12[%c120, %c0_242] {strides = array<i32: 256, 1>} : memref<472x32xf32, #tpu.memory_space<vmem>>, vector<2x32xf32>
    %c121 = arith.constant 121 : index
    %c0_243 = arith.constant 0 : index
    %323 = tpu.strided_load %arg12[%c121, %c0_243] {strides = array<i32: 256, 1>} : memref<472x32xf32, #tpu.memory_space<vmem>>, vector<2x32xf32>
    %324 = arith.maximumf %320, %321 : vector<2x32xf32>
    %325 = arith.maximumf %322, %323 : vector<2x32xf32>
    %326 = arith.maximumf %324, %325 : vector<2x32xf32>
    %327 = arith.truncf %326 : vector<2x32xf32> to vector<2x32xbf16>
    %c22_244 = arith.constant 22 : index
    %c0_245 = arith.constant 0 : index
    %c0_246 = arith.constant 0 : index
    %328 = vector.load %arg6[%c22_244, %c0_245, %c0_246] : memref<36x32x128xbf16, #tpu.memory_space<vmem>>, vector<1x32x128xbf16>
    %329 = vector.shape_cast %328 : vector<1x32x128xbf16> to vector<32x128xbf16>
    %cst_247 = arith.constant dense<0.000000e+00> : vector<2x128xf32>
    %330 = tpu.matmul %327, %329, %cst_247 {dimension_numbers = #tpu.dot_dimension_numbers<[1], [0], [0], [1], [0, 0, 1, 1], [], []>} : vector<2x32xbf16>, vector<32x128xbf16>, vector<2x128xf32> -> vector<2x128xf32>
    %331 = arith.addf %319, %330 : vector<2x128xf32>
    %c106 = arith.constant 106 : index
    %c0_248 = arith.constant 0 : index
    %332 = tpu.strided_load %arg12[%c106, %c0_248] {strides = array<i32: 256, 1>} : memref<472x32xf32, #tpu.memory_space<vmem>>, vector<2x32xf32>
    %c107 = arith.constant 107 : index
    %c0_249 = arith.constant 0 : index
    %333 = tpu.strided_load %arg12[%c107, %c0_249] {strides = array<i32: 256, 1>} : memref<472x32xf32, #tpu.memory_space<vmem>>, vector<2x32xf32>
    %c122 = arith.constant 122 : index
    %c0_250 = arith.constant 0 : index
    %334 = tpu.strided_load %arg12[%c122, %c0_250] {strides = array<i32: 256, 1>} : memref<472x32xf32, #tpu.memory_space<vmem>>, vector<2x32xf32>
    %c123 = arith.constant 123 : index
    %c0_251 = arith.constant 0 : index
    %335 = tpu.strided_load %arg12[%c123, %c0_251] {strides = array<i32: 256, 1>} : memref<472x32xf32, #tpu.memory_space<vmem>>, vector<2x32xf32>
    %336 = arith.maximumf %332, %333 : vector<2x32xf32>
    %337 = arith.maximumf %334, %335 : vector<2x32xf32>
    %338 = arith.maximumf %336, %337 : vector<2x32xf32>
    %339 = arith.truncf %338 : vector<2x32xf32> to vector<2x32xbf16>
    %c23_252 = arith.constant 23 : index
    %c0_253 = arith.constant 0 : index
    %c0_254 = arith.constant 0 : index
    %340 = vector.load %arg6[%c23_252, %c0_253, %c0_254] : memref<36x32x128xbf16, #tpu.memory_space<vmem>>, vector<1x32x128xbf16>
    %341 = vector.shape_cast %340 : vector<1x32x128xbf16> to vector<32x128xbf16>
    %cst_255 = arith.constant dense<0.000000e+00> : vector<2x128xf32>
    %342 = tpu.matmul %339, %341, %cst_255 {dimension_numbers = #tpu.dot_dimension_numbers<[1], [0], [0], [1], [0, 0, 1, 1], [], []>} : vector<2x32xbf16>, vector<32x128xbf16>, vector<2x128xf32> -> vector<2x128xf32>
    %343 = arith.addf %331, %342 : vector<2x128xf32>
    %c128 = arith.constant 128 : index
    %c0_256 = arith.constant 0 : index
    %344 = tpu.strided_load %arg12[%c128, %c0_256] {strides = array<i32: 256, 1>} : memref<472x32xf32, #tpu.memory_space<vmem>>, vector<2x32xf32>
    %c129 = arith.constant 129 : index
    %c0_257 = arith.constant 0 : index
    %345 = tpu.strided_load %arg12[%c129, %c0_257] {strides = array<i32: 256, 1>} : memref<472x32xf32, #tpu.memory_space<vmem>>, vector<2x32xf32>
    %c144 = arith.constant 144 : index
    %c0_258 = arith.constant 0 : index
    %346 = tpu.strided_load %arg12[%c144, %c0_258] {strides = array<i32: 256, 1>} : memref<472x32xf32, #tpu.memory_space<vmem>>, vector<2x32xf32>
    %c145 = arith.constant 145 : index
    %c0_259 = arith.constant 0 : index
    %347 = tpu.strided_load %arg12[%c145, %c0_259] {strides = array<i32: 256, 1>} : memref<472x32xf32, #tpu.memory_space<vmem>>, vector<2x32xf32>
    %348 = arith.maximumf %344, %345 : vector<2x32xf32>
    %349 = arith.maximumf %346, %347 : vector<2x32xf32>
    %350 = arith.maximumf %348, %349 : vector<2x32xf32>
    %351 = arith.truncf %350 : vector<2x32xf32> to vector<2x32xbf16>
    %c24_260 = arith.constant 24 : index
    %c0_261 = arith.constant 0 : index
    %c0_262 = arith.constant 0 : index
    %352 = vector.load %arg6[%c24_260, %c0_261, %c0_262] : memref<36x32x128xbf16, #tpu.memory_space<vmem>>, vector<1x32x128xbf16>
    %353 = vector.shape_cast %352 : vector<1x32x128xbf16> to vector<32x128xbf16>
    %cst_263 = arith.constant dense<0.000000e+00> : vector<2x128xf32>
    %354 = tpu.matmul %351, %353, %cst_263 {dimension_numbers = #tpu.dot_dimension_numbers<[1], [0], [0], [1], [0, 0, 1, 1], [], []>} : vector<2x32xbf16>, vector<32x128xbf16>, vector<2x128xf32> -> vector<2x128xf32>
    %c130 = arith.constant 130 : index
    %c0_264 = arith.constant 0 : index
    %355 = tpu.strided_load %arg12[%c130, %c0_264] {strides = array<i32: 256, 1>} : memref<472x32xf32, #tpu.memory_space<vmem>>, vector<2x32xf32>
    %c131 = arith.constant 131 : index
    %c0_265 = arith.constant 0 : index
    %356 = tpu.strided_load %arg12[%c131, %c0_265] {strides = array<i32: 256, 1>} : memref<472x32xf32, #tpu.memory_space<vmem>>, vector<2x32xf32>
    %c146 = arith.constant 146 : index
    %c0_266 = arith.constant 0 : index
    %357 = tpu.strided_load %arg12[%c146, %c0_266] {strides = array<i32: 256, 1>} : memref<472x32xf32, #tpu.memory_space<vmem>>, vector<2x32xf32>
    %c147 = arith.constant 147 : index
    %c0_267 = arith.constant 0 : index
    %358 = tpu.strided_load %arg12[%c147, %c0_267] {strides = array<i32: 256, 1>} : memref<472x32xf32, #tpu.memory_space<vmem>>, vector<2x32xf32>
    %359 = arith.maximumf %355, %356 : vector<2x32xf32>
    %360 = arith.maximumf %357, %358 : vector<2x32xf32>
    %361 = arith.maximumf %359, %360 : vector<2x32xf32>
    %362 = arith.truncf %361 : vector<2x32xf32> to vector<2x32xbf16>
    %c25_268 = arith.constant 25 : index
    %c0_269 = arith.constant 0 : index
    %c0_270 = arith.constant 0 : index
    %363 = vector.load %arg6[%c25_268, %c0_269, %c0_270] : memref<36x32x128xbf16, #tpu.memory_space<vmem>>, vector<1x32x128xbf16>
    %364 = vector.shape_cast %363 : vector<1x32x128xbf16> to vector<32x128xbf16>
    %cst_271 = arith.constant dense<0.000000e+00> : vector<2x128xf32>
    %365 = tpu.matmul %362, %364, %cst_271 {dimension_numbers = #tpu.dot_dimension_numbers<[1], [0], [0], [1], [0, 0, 1, 1], [], []>} : vector<2x32xbf16>, vector<32x128xbf16>, vector<2x128xf32> -> vector<2x128xf32>
    %366 = arith.addf %354, %365 : vector<2x128xf32>
    %c132 = arith.constant 132 : index
    %c0_272 = arith.constant 0 : index
    %367 = tpu.strided_load %arg12[%c132, %c0_272] {strides = array<i32: 256, 1>} : memref<472x32xf32, #tpu.memory_space<vmem>>, vector<2x32xf32>
    %c133 = arith.constant 133 : index
    %c0_273 = arith.constant 0 : index
    %368 = tpu.strided_load %arg12[%c133, %c0_273] {strides = array<i32: 256, 1>} : memref<472x32xf32, #tpu.memory_space<vmem>>, vector<2x32xf32>
    %c148 = arith.constant 148 : index
    %c0_274 = arith.constant 0 : index
    %369 = tpu.strided_load %arg12[%c148, %c0_274] {strides = array<i32: 256, 1>} : memref<472x32xf32, #tpu.memory_space<vmem>>, vector<2x32xf32>
    %c149 = arith.constant 149 : index
    %c0_275 = arith.constant 0 : index
    %370 = tpu.strided_load %arg12[%c149, %c0_275] {strides = array<i32: 256, 1>} : memref<472x32xf32, #tpu.memory_space<vmem>>, vector<2x32xf32>
    %371 = arith.maximumf %367, %368 : vector<2x32xf32>
    %372 = arith.maximumf %369, %370 : vector<2x32xf32>
    %373 = arith.maximumf %371, %372 : vector<2x32xf32>
    %374 = arith.truncf %373 : vector<2x32xf32> to vector<2x32xbf16>
    %c26_276 = arith.constant 26 : index
    %c0_277 = arith.constant 0 : index
    %c0_278 = arith.constant 0 : index
    %375 = vector.load %arg6[%c26_276, %c0_277, %c0_278] : memref<36x32x128xbf16, #tpu.memory_space<vmem>>, vector<1x32x128xbf16>
    %376 = vector.shape_cast %375 : vector<1x32x128xbf16> to vector<32x128xbf16>
    %cst_279 = arith.constant dense<0.000000e+00> : vector<2x128xf32>
    %377 = tpu.matmul %374, %376, %cst_279 {dimension_numbers = #tpu.dot_dimension_numbers<[1], [0], [0], [1], [0, 0, 1, 1], [], []>} : vector<2x32xbf16>, vector<32x128xbf16>, vector<2x128xf32> -> vector<2x128xf32>
    %378 = arith.addf %366, %377 : vector<2x128xf32>
    %c134 = arith.constant 134 : index
    %c0_280 = arith.constant 0 : index
    %379 = tpu.strided_load %arg12[%c134, %c0_280] {strides = array<i32: 256, 1>} : memref<472x32xf32, #tpu.memory_space<vmem>>, vector<2x32xf32>
    %c135 = arith.constant 135 : index
    %c0_281 = arith.constant 0 : index
    %380 = tpu.strided_load %arg12[%c135, %c0_281] {strides = array<i32: 256, 1>} : memref<472x32xf32, #tpu.memory_space<vmem>>, vector<2x32xf32>
    %c150 = arith.constant 150 : index
    %c0_282 = arith.constant 0 : index
    %381 = tpu.strided_load %arg12[%c150, %c0_282] {strides = array<i32: 256, 1>} : memref<472x32xf32, #tpu.memory_space<vmem>>, vector<2x32xf32>
    %c151 = arith.constant 151 : index
    %c0_283 = arith.constant 0 : index
    %382 = tpu.strided_load %arg12[%c151, %c0_283] {strides = array<i32: 256, 1>} : memref<472x32xf32, #tpu.memory_space<vmem>>, vector<2x32xf32>
    %383 = arith.maximumf %379, %380 : vector<2x32xf32>
    %384 = arith.maximumf %381, %382 : vector<2x32xf32>
    %385 = arith.maximumf %383, %384 : vector<2x32xf32>
    %386 = arith.truncf %385 : vector<2x32xf32> to vector<2x32xbf16>
    %c27_284 = arith.constant 27 : index
    %c0_285 = arith.constant 0 : index
    %c0_286 = arith.constant 0 : index
    %387 = vector.load %arg6[%c27_284, %c0_285, %c0_286] : memref<36x32x128xbf16, #tpu.memory_space<vmem>>, vector<1x32x128xbf16>
    %388 = vector.shape_cast %387 : vector<1x32x128xbf16> to vector<32x128xbf16>
    %cst_287 = arith.constant dense<0.000000e+00> : vector<2x128xf32>
    %389 = tpu.matmul %386, %388, %cst_287 {dimension_numbers = #tpu.dot_dimension_numbers<[1], [0], [0], [1], [0, 0, 1, 1], [], []>} : vector<2x32xbf16>, vector<32x128xbf16>, vector<2x128xf32> -> vector<2x128xf32>
    %390 = arith.addf %378, %389 : vector<2x128xf32>
    %c136 = arith.constant 136 : index
    %c0_288 = arith.constant 0 : index
    %391 = tpu.strided_load %arg12[%c136, %c0_288] {strides = array<i32: 256, 1>} : memref<472x32xf32, #tpu.memory_space<vmem>>, vector<2x32xf32>
    %c137 = arith.constant 137 : index
    %c0_289 = arith.constant 0 : index
    %392 = tpu.strided_load %arg12[%c137, %c0_289] {strides = array<i32: 256, 1>} : memref<472x32xf32, #tpu.memory_space<vmem>>, vector<2x32xf32>
    %c152 = arith.constant 152 : index
    %c0_290 = arith.constant 0 : index
    %393 = tpu.strided_load %arg12[%c152, %c0_290] {strides = array<i32: 256, 1>} : memref<472x32xf32, #tpu.memory_space<vmem>>, vector<2x32xf32>
    %c153 = arith.constant 153 : index
    %c0_291 = arith.constant 0 : index
    %394 = tpu.strided_load %arg12[%c153, %c0_291] {strides = array<i32: 256, 1>} : memref<472x32xf32, #tpu.memory_space<vmem>>, vector<2x32xf32>
    %395 = arith.maximumf %391, %392 : vector<2x32xf32>
    %396 = arith.maximumf %393, %394 : vector<2x32xf32>
    %397 = arith.maximumf %395, %396 : vector<2x32xf32>
    %398 = arith.truncf %397 : vector<2x32xf32> to vector<2x32xbf16>
    %c28 = arith.constant 28 : index
    %c0_292 = arith.constant 0 : index
    %c0_293 = arith.constant 0 : index
    %399 = vector.load %arg6[%c28, %c0_292, %c0_293] : memref<36x32x128xbf16, #tpu.memory_space<vmem>>, vector<1x32x128xbf16>
    %400 = vector.shape_cast %399 : vector<1x32x128xbf16> to vector<32x128xbf16>
    %cst_294 = arith.constant dense<0.000000e+00> : vector<2x128xf32>
    %401 = tpu.matmul %398, %400, %cst_294 {dimension_numbers = #tpu.dot_dimension_numbers<[1], [0], [0], [1], [0, 0, 1, 1], [], []>} : vector<2x32xbf16>, vector<32x128xbf16>, vector<2x128xf32> -> vector<2x128xf32>
    %402 = arith.addf %390, %401 : vector<2x128xf32>
    %c138 = arith.constant 138 : index
    %c0_295 = arith.constant 0 : index
    %403 = tpu.strided_load %arg12[%c138, %c0_295] {strides = array<i32: 256, 1>} : memref<472x32xf32, #tpu.memory_space<vmem>>, vector<2x32xf32>
    %c139 = arith.constant 139 : index
    %c0_296 = arith.constant 0 : index
    %404 = tpu.strided_load %arg12[%c139, %c0_296] {strides = array<i32: 256, 1>} : memref<472x32xf32, #tpu.memory_space<vmem>>, vector<2x32xf32>
    %c154 = arith.constant 154 : index
    %c0_297 = arith.constant 0 : index
    %405 = tpu.strided_load %arg12[%c154, %c0_297] {strides = array<i32: 256, 1>} : memref<472x32xf32, #tpu.memory_space<vmem>>, vector<2x32xf32>
    %c155 = arith.constant 155 : index
    %c0_298 = arith.constant 0 : index
    %406 = tpu.strided_load %arg12[%c155, %c0_298] {strides = array<i32: 256, 1>} : memref<472x32xf32, #tpu.memory_space<vmem>>, vector<2x32xf32>
    %407 = arith.maximumf %403, %404 : vector<2x32xf32>
    %408 = arith.maximumf %405, %406 : vector<2x32xf32>
    %409 = arith.maximumf %407, %408 : vector<2x32xf32>
    %410 = arith.truncf %409 : vector<2x32xf32> to vector<2x32xbf16>
    %c29 = arith.constant 29 : index
    %c0_299 = arith.constant 0 : index
    %c0_300 = arith.constant 0 : index
    %411 = vector.load %arg6[%c29, %c0_299, %c0_300] : memref<36x32x128xbf16, #tpu.memory_space<vmem>>, vector<1x32x128xbf16>
    %412 = vector.shape_cast %411 : vector<1x32x128xbf16> to vector<32x128xbf16>
    %cst_301 = arith.constant dense<0.000000e+00> : vector<2x128xf32>
    %413 = tpu.matmul %410, %412, %cst_301 {dimension_numbers = #tpu.dot_dimension_numbers<[1], [0], [0], [1], [0, 0, 1, 1], [], []>} : vector<2x32xbf16>, vector<32x128xbf16>, vector<2x128xf32> -> vector<2x128xf32>
    %414 = arith.addf %402, %413 : vector<2x128xf32>
    %c160 = arith.constant 160 : index
    %c0_302 = arith.constant 0 : index
    %415 = tpu.strided_load %arg12[%c160, %c0_302] {strides = array<i32: 256, 1>} : memref<472x32xf32, #tpu.memory_space<vmem>>, vector<2x32xf32>
    %c161 = arith.constant 161 : index
    %c0_303 = arith.constant 0 : index
    %416 = tpu.strided_load %arg12[%c161, %c0_303] {strides = array<i32: 256, 1>} : memref<472x32xf32, #tpu.memory_space<vmem>>, vector<2x32xf32>
    %c176 = arith.constant 176 : index
    %c0_304 = arith.constant 0 : index
    %417 = tpu.strided_load %arg12[%c176, %c0_304] {strides = array<i32: 256, 1>} : memref<472x32xf32, #tpu.memory_space<vmem>>, vector<2x32xf32>
    %c177 = arith.constant 177 : index
    %c0_305 = arith.constant 0 : index
    %418 = tpu.strided_load %arg12[%c177, %c0_305] {strides = array<i32: 256, 1>} : memref<472x32xf32, #tpu.memory_space<vmem>>, vector<2x32xf32>
    %419 = arith.maximumf %415, %416 : vector<2x32xf32>
    %420 = arith.maximumf %417, %418 : vector<2x32xf32>
    %421 = arith.maximumf %419, %420 : vector<2x32xf32>
    %422 = arith.truncf %421 : vector<2x32xf32> to vector<2x32xbf16>
    %c30 = arith.constant 30 : index
    %c0_306 = arith.constant 0 : index
    %c0_307 = arith.constant 0 : index
    %423 = vector.load %arg6[%c30, %c0_306, %c0_307] : memref<36x32x128xbf16, #tpu.memory_space<vmem>>, vector<1x32x128xbf16>
    %424 = vector.shape_cast %423 : vector<1x32x128xbf16> to vector<32x128xbf16>
    %cst_308 = arith.constant dense<0.000000e+00> : vector<2x128xf32>
    %425 = tpu.matmul %422, %424, %cst_308 {dimension_numbers = #tpu.dot_dimension_numbers<[1], [0], [0], [1], [0, 0, 1, 1], [], []>} : vector<2x32xbf16>, vector<32x128xbf16>, vector<2x128xf32> -> vector<2x128xf32>
    %c162 = arith.constant 162 : index
    %c0_309 = arith.constant 0 : index
    %426 = tpu.strided_load %arg12[%c162, %c0_309] {strides = array<i32: 256, 1>} : memref<472x32xf32, #tpu.memory_space<vmem>>, vector<2x32xf32>
    %c163 = arith.constant 163 : index
    %c0_310 = arith.constant 0 : index
    %427 = tpu.strided_load %arg12[%c163, %c0_310] {strides = array<i32: 256, 1>} : memref<472x32xf32, #tpu.memory_space<vmem>>, vector<2x32xf32>
    %c178 = arith.constant 178 : index
    %c0_311 = arith.constant 0 : index
    %428 = tpu.strided_load %arg12[%c178, %c0_311] {strides = array<i32: 256, 1>} : memref<472x32xf32, #tpu.memory_space<vmem>>, vector<2x32xf32>
    %c179 = arith.constant 179 : index
    %c0_312 = arith.constant 0 : index
    %429 = tpu.strided_load %arg12[%c179, %c0_312] {strides = array<i32: 256, 1>} : memref<472x32xf32, #tpu.memory_space<vmem>>, vector<2x32xf32>
    %430 = arith.maximumf %426, %427 : vector<2x32xf32>
    %431 = arith.maximumf %428, %429 : vector<2x32xf32>
    %432 = arith.maximumf %430, %431 : vector<2x32xf32>
    %433 = arith.truncf %432 : vector<2x32xf32> to vector<2x32xbf16>
    %c31 = arith.constant 31 : index
    %c0_313 = arith.constant 0 : index
    %c0_314 = arith.constant 0 : index
    %434 = vector.load %arg6[%c31, %c0_313, %c0_314] : memref<36x32x128xbf16, #tpu.memory_space<vmem>>, vector<1x32x128xbf16>
    %435 = vector.shape_cast %434 : vector<1x32x128xbf16> to vector<32x128xbf16>
    %cst_315 = arith.constant dense<0.000000e+00> : vector<2x128xf32>
    %436 = tpu.matmul %433, %435, %cst_315 {dimension_numbers = #tpu.dot_dimension_numbers<[1], [0], [0], [1], [0, 0, 1, 1], [], []>} : vector<2x32xbf16>, vector<32x128xbf16>, vector<2x128xf32> -> vector<2x128xf32>
    %437 = arith.addf %425, %436 : vector<2x128xf32>
    %c164 = arith.constant 164 : index
    %c0_316 = arith.constant 0 : index
    %438 = tpu.strided_load %arg12[%c164, %c0_316] {strides = array<i32: 256, 1>} : memref<472x32xf32, #tpu.memory_space<vmem>>, vector<2x32xf32>
    %c165 = arith.constant 165 : index
    %c0_317 = arith.constant 0 : index
    %439 = tpu.strided_load %arg12[%c165, %c0_317] {strides = array<i32: 256, 1>} : memref<472x32xf32, #tpu.memory_space<vmem>>, vector<2x32xf32>
    %c180 = arith.constant 180 : index
    %c0_318 = arith.constant 0 : index
    %440 = tpu.strided_load %arg12[%c180, %c0_318] {strides = array<i32: 256, 1>} : memref<472x32xf32, #tpu.memory_space<vmem>>, vector<2x32xf32>
    %c181 = arith.constant 181 : index
    %c0_319 = arith.constant 0 : index
    %441 = tpu.strided_load %arg12[%c181, %c0_319] {strides = array<i32: 256, 1>} : memref<472x32xf32, #tpu.memory_space<vmem>>, vector<2x32xf32>
    %442 = arith.maximumf %438, %439 : vector<2x32xf32>
    %443 = arith.maximumf %440, %441 : vector<2x32xf32>
    %444 = arith.maximumf %442, %443 : vector<2x32xf32>
    %445 = arith.truncf %444 : vector<2x32xf32> to vector<2x32xbf16>
    %c32_320 = arith.constant 32 : index
    %c0_321 = arith.constant 0 : index
    %c0_322 = arith.constant 0 : index
    %446 = vector.load %arg6[%c32_320, %c0_321, %c0_322] : memref<36x32x128xbf16, #tpu.memory_space<vmem>>, vector<1x32x128xbf16>
    %447 = vector.shape_cast %446 : vector<1x32x128xbf16> to vector<32x128xbf16>
    %cst_323 = arith.constant dense<0.000000e+00> : vector<2x128xf32>
    %448 = tpu.matmul %445, %447, %cst_323 {dimension_numbers = #tpu.dot_dimension_numbers<[1], [0], [0], [1], [0, 0, 1, 1], [], []>} : vector<2x32xbf16>, vector<32x128xbf16>, vector<2x128xf32> -> vector<2x128xf32>
    %449 = arith.addf %437, %448 : vector<2x128xf32>
    %c166 = arith.constant 166 : index
    %c0_324 = arith.constant 0 : index
    %450 = tpu.strided_load %arg12[%c166, %c0_324] {strides = array<i32: 256, 1>} : memref<472x32xf32, #tpu.memory_space<vmem>>, vector<2x32xf32>
    %c167 = arith.constant 167 : index
    %c0_325 = arith.constant 0 : index
    %451 = tpu.strided_load %arg12[%c167, %c0_325] {strides = array<i32: 256, 1>} : memref<472x32xf32, #tpu.memory_space<vmem>>, vector<2x32xf32>
    %c182 = arith.constant 182 : index
    %c0_326 = arith.constant 0 : index
    %452 = tpu.strided_load %arg12[%c182, %c0_326] {strides = array<i32: 256, 1>} : memref<472x32xf32, #tpu.memory_space<vmem>>, vector<2x32xf32>
    %c183 = arith.constant 183 : index
    %c0_327 = arith.constant 0 : index
    %453 = tpu.strided_load %arg12[%c183, %c0_327] {strides = array<i32: 256, 1>} : memref<472x32xf32, #tpu.memory_space<vmem>>, vector<2x32xf32>
    %454 = arith.maximumf %450, %451 : vector<2x32xf32>
    %455 = arith.maximumf %452, %453 : vector<2x32xf32>
    %456 = arith.maximumf %454, %455 : vector<2x32xf32>
    %457 = arith.truncf %456 : vector<2x32xf32> to vector<2x32xbf16>
    %c33_328 = arith.constant 33 : index
    %c0_329 = arith.constant 0 : index
    %c0_330 = arith.constant 0 : index
    %458 = vector.load %arg6[%c33_328, %c0_329, %c0_330] : memref<36x32x128xbf16, #tpu.memory_space<vmem>>, vector<1x32x128xbf16>
    %459 = vector.shape_cast %458 : vector<1x32x128xbf16> to vector<32x128xbf16>
    %cst_331 = arith.constant dense<0.000000e+00> : vector<2x128xf32>
    %460 = tpu.matmul %457, %459, %cst_331 {dimension_numbers = #tpu.dot_dimension_numbers<[1], [0], [0], [1], [0, 0, 1, 1], [], []>} : vector<2x32xbf16>, vector<32x128xbf16>, vector<2x128xf32> -> vector<2x128xf32>
    %461 = arith.addf %449, %460 : vector<2x128xf32>
    %c168 = arith.constant 168 : index
    %c0_332 = arith.constant 0 : index
    %462 = tpu.strided_load %arg12[%c168, %c0_332] {strides = array<i32: 256, 1>} : memref<472x32xf32, #tpu.memory_space<vmem>>, vector<2x32xf32>
    %c169 = arith.constant 169 : index
    %c0_333 = arith.constant 0 : index
    %463 = tpu.strided_load %arg12[%c169, %c0_333] {strides = array<i32: 256, 1>} : memref<472x32xf32, #tpu.memory_space<vmem>>, vector<2x32xf32>
    %c184 = arith.constant 184 : index
    %c0_334 = arith.constant 0 : index
    %464 = tpu.strided_load %arg12[%c184, %c0_334] {strides = array<i32: 256, 1>} : memref<472x32xf32, #tpu.memory_space<vmem>>, vector<2x32xf32>
    %c185 = arith.constant 185 : index
    %c0_335 = arith.constant 0 : index
    %465 = tpu.strided_load %arg12[%c185, %c0_335] {strides = array<i32: 256, 1>} : memref<472x32xf32, #tpu.memory_space<vmem>>, vector<2x32xf32>
    %466 = arith.maximumf %462, %463 : vector<2x32xf32>
    %467 = arith.maximumf %464, %465 : vector<2x32xf32>
    %468 = arith.maximumf %466, %467 : vector<2x32xf32>
    %469 = arith.truncf %468 : vector<2x32xf32> to vector<2x32xbf16>
    %c34_336 = arith.constant 34 : index
    %c0_337 = arith.constant 0 : index
    %c0_338 = arith.constant 0 : index
    %470 = vector.load %arg6[%c34_336, %c0_337, %c0_338] : memref<36x32x128xbf16, #tpu.memory_space<vmem>>, vector<1x32x128xbf16>
    %471 = vector.shape_cast %470 : vector<1x32x128xbf16> to vector<32x128xbf16>
    %cst_339 = arith.constant dense<0.000000e+00> : vector<2x128xf32>
    %472 = tpu.matmul %469, %471, %cst_339 {dimension_numbers = #tpu.dot_dimension_numbers<[1], [0], [0], [1], [0, 0, 1, 1], [], []>} : vector<2x32xbf16>, vector<32x128xbf16>, vector<2x128xf32> -> vector<2x128xf32>
    %473 = arith.addf %461, %472 : vector<2x128xf32>
    %c170 = arith.constant 170 : index
    %c0_340 = arith.constant 0 : index
    %474 = tpu.strided_load %arg12[%c170, %c0_340] {strides = array<i32: 256, 1>} : memref<472x32xf32, #tpu.memory_space<vmem>>, vector<2x32xf32>
    %c171 = arith.constant 171 : index
    %c0_341 = arith.constant 0 : index
    %475 = tpu.strided_load %arg12[%c171, %c0_341] {strides = array<i32: 256, 1>} : memref<472x32xf32, #tpu.memory_space<vmem>>, vector<2x32xf32>
    %c186 = arith.constant 186 : index
    %c0_342 = arith.constant 0 : index
    %476 = tpu.strided_load %arg12[%c186, %c0_342] {strides = array<i32: 256, 1>} : memref<472x32xf32, #tpu.memory_space<vmem>>, vector<2x32xf32>
    %c187 = arith.constant 187 : index
    %c0_343 = arith.constant 0 : index
    %477 = tpu.strided_load %arg12[%c187, %c0_343] {strides = array<i32: 256, 1>} : memref<472x32xf32, #tpu.memory_space<vmem>>, vector<2x32xf32>
    %478 = arith.maximumf %474, %475 : vector<2x32xf32>
    %479 = arith.maximumf %476, %477 : vector<2x32xf32>
    %480 = arith.maximumf %478, %479 : vector<2x32xf32>
    %481 = arith.truncf %480 : vector<2x32xf32> to vector<2x32xbf16>
    %c35_344 = arith.constant 35 : index
    %c0_345 = arith.constant 0 : index
    %c0_346 = arith.constant 0 : index
    %482 = vector.load %arg6[%c35_344, %c0_345, %c0_346] : memref<36x32x128xbf16, #tpu.memory_space<vmem>>, vector<1x32x128xbf16>
    %483 = vector.shape_cast %482 : vector<1x32x128xbf16> to vector<32x128xbf16>
    %cst_347 = arith.constant dense<0.000000e+00> : vector<2x128xf32>
    %484 = tpu.matmul %481, %483, %cst_347 {dimension_numbers = #tpu.dot_dimension_numbers<[1], [0], [0], [1], [0, 0, 1, 1], [], []>} : vector<2x32xbf16>, vector<32x128xbf16>, vector<2x128xf32> -> vector<2x128xf32>
    %485 = arith.addf %473, %484 : vector<2x128xf32>
    %486 = arith.addf %130, %201 : vector<2x128xf32>
    %487 = arith.addf %486, %272 : vector<2x128xf32>
    %488 = arith.addf %487, %343 : vector<2x128xf32>
    %489 = arith.addf %488, %414 : vector<2x128xf32>
    %490 = arith.addf %489, %485 : vector<2x128xf32>
    %c0_348 = arith.constant 0 : index
    %c0_349 = arith.constant 0 : index
    %491 = vector.load %arg7[%c0_348, %c0_349] : memref<1x128xf32, #tpu.memory_space<vmem>>, vector<1x128xf32>
    %492 = vector.broadcast %491 : vector<1x128xf32> to vector<2x128xf32>
    %493 = arith.addf %490, %492 : vector<2x128xf32>
    %cst_350 = arith.constant 0.000000e+00 : f32
    %494 = vector.broadcast %cst_350 : f32 to vector<2x128xf32>
    %495 = arith.maximumf %493, %494 : vector<2x128xf32>
    %496 = arith.truncf %495 : vector<2x128xf32> to vector<2x128xbf16>
    %c0_351 = arith.constant 0 : index
    %c0_352 = arith.constant 0 : index
    %497 = vector.load %arg8[%c0_351, %c0_352] : memref<128x128xbf16, #tpu.memory_space<vmem>>, vector<128x128xbf16>
    %cst_353 = arith.constant dense<0.000000e+00> : vector<2x128xf32>
    %498 = tpu.matmul %496, %497, %cst_353 {dimension_numbers = #tpu.dot_dimension_numbers<[1], [0], [0], [1], [0, 0, 1, 1], [], []>} : vector<2x128xbf16>, vector<128x128xbf16>, vector<2x128xf32> -> vector<2x128xf32>
    %c0_354 = arith.constant 0 : index
    %c0_355 = arith.constant 0 : index
    %499 = vector.load %arg9[%c0_354, %c0_355] : memref<1x128xf32, #tpu.memory_space<vmem>>, vector<1x128xf32>
    %500 = vector.broadcast %499 : vector<1x128xf32> to vector<2x128xf32>
    %501 = arith.addf %498, %500 : vector<2x128xf32>
    %cst_356 = arith.constant dense<0xFF800000> : vector<2xf32>
    %502 = vector.multi_reduction <maximumf>, %501, %cst_356 [1] : vector<2x128xf32> to vector<2xf32>
    %503 = vector.shape_cast %502 : vector<2xf32> to vector<2x1xf32>
    %504 = vector.broadcast %503 : vector<2x1xf32> to vector<2x128xf32>
    %505 = arith.subf %501, %504 : vector<2x128xf32>
    %506 = math.exp %505 : vector<2x128xf32>
    %cst_357 = arith.constant dense<0.000000e+00> : vector<2xf32>
    %507 = vector.multi_reduction <add>, %506, %cst_357 [1] : vector<2x128xf32> to vector<2xf32>
    %508 = vector.shape_cast %507 : vector<2xf32> to vector<2x1xf32>
    %509 = math.log %508 : vector<2x1xf32>
    %510 = vector.broadcast %509 : vector<2x1xf32> to vector<2x128xf32>
    %511 = arith.subf %505, %510 : vector<2x128xf32>
    %cst_358 = arith.constant 0.000000e+00 : f32
    %512 = vector.broadcast %cst_358 : f32 to vector<8x128xf32>
    %c0_359 = arith.constant 0 : index
    %c0_360 = arith.constant 0 : index
    %513 = vector.load %arg10[%c0_359, %c0_360] : memref<8x128xf32, #tpu.memory_space<vmem>>, vector<8x128xf32>
    tpu.vector_store %arg10[%c0_359, %c0_360], %512 {strides = array<i32>} : memref<8x128xf32, #tpu.memory_space<vmem>>, vector<8x128xf32>,
    %c0_361 = arith.constant 0 : index
    %c0_362 = arith.constant 0 : index
    %514 = vector.load %arg10[%c0_361, %c0_362] : memref<8x128xf32, #tpu.memory_space<vmem>>, vector<2x128xf32>
    tpu.vector_store %arg10[%c0_361, %c0_362], %511 {strides = array<i32>} : memref<8x128xf32, #tpu.memory_space<vmem>>, vector<2x128xf32>,
    return
  }
  func.func @transform_0(%arg0: i32) -> (i32, i32) {
    %c0_i32 = arith.constant 0 : i32
    %c0_i32_0 = arith.constant 0 : i32
    return %arg0, %c0_i32 : i32, i32
  }
  func.func @transform_1(%arg0: i32) -> (i32, i32) {
    %c0_i32 = arith.constant 0 : i32
    %c0_i32_0 = arith.constant 0 : i32
    %c0_i32_1 = arith.constant 0 : i32
    return %c0_i32, %c0_i32_0 : i32, i32
  }
  func.func @transform_2(%arg0: i32) -> (i32, i32) {
    %c0_i32 = arith.constant 0 : i32
    %c0_i32_0 = arith.constant 0 : i32
    %c0_i32_1 = arith.constant 0 : i32
    return %c0_i32, %c0_i32_0 : i32, i32
  }
  func.func @transform_3(%arg0: i32) -> (i32, i32, i32) {
    %c0_i32 = arith.constant 0 : i32
    %c0_i32_0 = arith.constant 0 : i32
    %c0_i32_1 = arith.constant 0 : i32
    %c0_i32_2 = arith.constant 0 : i32
    return %c0_i32, %c0_i32_0, %c0_i32_1 : i32, i32, i32
  }
  func.func @transform_4(%arg0: i32) -> (i32, i32) {
    %c0_i32 = arith.constant 0 : i32
    %c0_i32_0 = arith.constant 0 : i32
    %c0_i32_1 = arith.constant 0 : i32
    return %c0_i32, %c0_i32_0 : i32, i32
  }
  func.func @transform_5(%arg0: i32) -> (i32, i32, i32) {
    %c0_i32 = arith.constant 0 : i32
    %c0_i32_0 = arith.constant 0 : i32
    %c0_i32_1 = arith.constant 0 : i32
    %c0_i32_2 = arith.constant 0 : i32
    return %c0_i32, %c0_i32_0, %c0_i32_1 : i32, i32, i32
  }
  func.func @transform_6(%arg0: i32) -> (i32, i32) {
    %c0_i32 = arith.constant 0 : i32
    %c0_i32_0 = arith.constant 0 : i32
    %c0_i32_1 = arith.constant 0 : i32
    return %c0_i32, %c0_i32_0 : i32, i32
  }
  func.func @transform_7(%arg0: i32) -> (i32, i32) {
    %c0_i32 = arith.constant 0 : i32
    %c0_i32_0 = arith.constant 0 : i32
    %c0_i32_1 = arith.constant 0 : i32
    return %c0_i32, %c0_i32_0 : i32, i32
  }
  func.func @transform_8(%arg0: i32) -> (i32, i32) {
    %c0_i32 = arith.constant 0 : i32
    %c0_i32_0 = arith.constant 0 : i32
    %c0_i32_1 = arith.constant 0 : i32
    return %c0_i32, %c0_i32_0 : i32, i32
  }
  func.func @transform_9(%arg0: i32) -> (i32, i32) {
    %c0_i32 = arith.constant 0 : i32
    %c0_i32_0 = arith.constant 0 : i32
    return %arg0, %c0_i32 : i32, i32
  }
}

</mosaic_0001>

<bundles_post_ra>
// kernel: net_forward.1
= control target key start
LH: loop header
LB: loop body
LE: loop exit
PB: predicated region body
PF: predicated region fallthrough
CT: control target
= control target key end

     0   :  { %s10071_s30 = smov 0   ;;  %s12405_s0 = inlined_call_operand.vmem [shape: bf16[1024,32], index: 0, kind: input, shape index: {}]   ;;  %s12406_s1 = inlined_call_operand.vmem [shape: bf16[32,32], index: 1, kind: input, shape index: {}]   ;;  %s12407_s2 = inlined_call_operand.vmem [shape: f32[1,32], index: 2, kind: input, shape index: {}]   ;;  %s12408_s3 = inlined_call_operand.vmem [shape: bf16[9,32,32], index: 3, kind: input, shape index: {}]   ;;  %s12409_s4 = inlined_call_operand.vmem [shape: f32[1,32], index: 4, kind: input, shape index: {}]   ;;  %s12410_s5 = inlined_call_operand.vmem [shape: bf16[36,32,128], index: 5, kind: input, shape index: {}]   ;;  %s12411_s6 = inlined_call_operand.vmem [shape: f32[1,128], index: 6, kind: input, shape index: {}]   ;;  %s12412_s7 = inlined_call_operand.vmem [shape: bf16[128,128], index: 7, kind: input, shape index: {}]   ;;  %s12413_s8 = inlined_call_operand.vmem [shape: f32[1,128], index: 8, kind: input, shape index: {}]   ;;  %s12414_s9 = inlined_call_operand.vmem [shape: f32[16,128], index: 9, kind: output, shape index: {}]  }
   0x1 LB: > { %s10077_s10 = sadd.s32 4294967295, %s10018_s30   ;;  %p8034_p0 = scmp.ge.s32.totalorder %s10018_s30, 1  ;;  %s10018_s30 = sphi %s10071_s30, %s19_s30  }
   0x2   : > { %p288_p1 = scmp.lt.s32.totalorder %s10018_s30, 3 }
   0x4   : > { %p289_p2 = pnand %p8034_p0, %p288_p1 }
   0x6   : > { %292 = sbr.rel (%p289_p2) target bundleno = 2447 (0x98f), region = 56 }
   0xb   : > { %v9687_v0 = vld [vmem:[%s12406_s1 + $0x8] sm:$0xff]  ;;  %s8035_s13 = sshll.u32 %s10077_s10, 6  ;;  %v9686_v1 = vld [vmem:[%s12406_s1] sm:$0xff]  ;;  %vm578_vm0 = vcmask 261120   ;;  %vm972_vm1 = vcmask 257024   ;;  %v9719_v15 = vld [vmem:[%s12408_s3 + $0x18] sm:$0xff] }
   0xc   : > { %p324_p3 = scmp.lt.s32.totalorder %s8035_s13, 127  ;;  %681 = vmatpush.bf16.msra.mxu0 %v9687_v0  ;;  %9953 = vmatpush.bf16.msra.mxu3 %v9687_v0  ;;  %v10112_v10 = vld [vmem:[%s12407_s2] ss:$0 sm:$0xff]  ;;  %v9718_v18 = vld [vmem:[%s12408_s3 + $0x10] sm:$0xff]  ;;  %vm1256_vm2 = vsmask.f32 7424 }
   0xd   : > { %1604 = vmatpush.bf16.msra.mxu1 %v9719_v15  ;;  %vm1997_vm3 = vcmask 1046528   ;;  %vm7962_vm4 = vcmask 1041408   ;;  %p329_p4 = scmp.lt.s32.totalorder %s10077_s10, 1 }
   0xe   : > { %s12717_s13 = smov (!%p324_p3, %s8035_s13), 127 }
   0xf   : > { %s8036_s16 = sshll.u32 %s12717_s13, 2  ;;  %s12719_s10 = smov (!%p329_p4, %s10077_s10), 1 }
  0x10   : > { %682 = vmatpush.bf16.msra.mxu0 %v9686_v1  ;;  %s10091_s19 = scalar_lea.vmem %s12405_s0, %s8036_s16  ;;  %9954 = vmatpush.bf16.msra.mxu3 %v9686_v1  ;;  %v9717_v1 = vld [vmem:[%s12408_s3 + $0x8] sm:$0xff] }
  0x11   : > { %v9654_v2 = vld [vmem:[%s10091_s19] sm:$0xff]  ;;  %v9655_v3 = vld [vmem:[%s10091_s19 + $0x8] sm:$0xff]  ;;  %v9656_v4 = vld [vmem:[%s10091_s19 + $0x10] sm:$0xff]  ;;  %1605 = vmatpush.bf16.msra.mxu1 %v9718_v18  ;;  %9957 = vmatpush.bf16.msra.mxu2 %v9717_v1 }
  0x12   : > { %v9657_v5 = vld [vmem:[%s10091_s19 + $0x18] sm:$0xff]  ;;  %v9658_v6 = vld [vmem:[%s10091_s19 + $0x20] sm:$0xff]  ;;  %v9659_v7 = vld [vmem:[%s10091_s19 + $0x28] sm:$0xff] }
  0x13   : > { %8174 = vmatmul.msk.bf16.vlgmr.msra.gmra.mxu0 %vm578_vm0, %v9654_v2  ;;  %v9660_v8 = vld [vmem:[%s10091_s19 + $0x30] sm:$0xff]  ;;  %v9661_v9 = vld [vmem:[%s10091_s19 + $0x38] sm:$0xff]  ;;  %v9662_v11 = vld [vmem:[%s10091_s19 + $0x40] sm:$0xff] }
  0x14   : > { %9955 = vmatpush.bf16.msrb.mxu3 %v9719_v15  ;;  %v9663_v22 = vld [vmem:[%s10091_s19 + $0x48] sm:$0xff]  ;;  %v9664_v31 = vld [vmem:[%s10091_s19 + $0x50] sm:$0xff]  ;;  %v9665_v49 = vld [vmem:[%s10091_s19 + $0x58] sm:$0xff]  ;;  %1836 = vmatpush.bf16.msrb.mxu0 %v9717_v1 }
  0x15   : > { %v9666_v0 = vld [vmem:[%s10091_s19 + $0x60] sm:$0xff] }
  0x18   : > { %9956 = vmatpush.bf16.msrb.mxu3 %v9718_v18 }
  0x23   : > { %8175 = vmatmul.msk.bf16.gmra.mxu0 %vm578_vm0, %v9655_v3 }
  0x33   : > { %8176 = vmatmul.msk.bf16.gmra.mxu0 %vm578_vm0, %v9656_v4 }
  0x43   : > { %8177 = vmatmul.msk.bf16.gmra.mxu0 %vm578_vm0, %v9657_v5  ;;  %v9716_v5 = vld [vmem:[%s12408_s3] sm:$0xff] }
  0x44   : > { %9958 = vmatpush.bf16.msra.mxu2 %v9716_v5  ;;  %1837 = vmatpush.bf16.msrb.mxu0 %v9716_v5 }
  0x53   : > { %8178 = vmatmul.msk.bf16.gmra.mxu0 %vm578_vm0, %v9658_v6 }
  0x63   : > { %8179 = vmatmul.msk.bf16.gmra.mxu0 %vm578_vm0, %v9659_v7 }
  0x73   : > { %8180 = vmatmul.msk.bf16.gmra.mxu0 %vm578_vm0, %v9660_v8 }
  0x83   : > { %8181 = vmatmul.msk.bf16.gmra.mxu0 %vm578_vm0, %v9661_v9 }
  0x90   : > { %v684_v12 = vpop.f32.mrf.mxu0 }
  0x91   : > { %v685_v13 = vadd.f32 %v10112_v10, %v684_v12 }
  0x93   : > { %v844_v14 = vmax.f32 %v685_v13, 0.0  ;;  %8182 = vmatmul.msk.bf16.gmra.mxu0 %vm578_vm0, %v9662_v11 }
  0x95   : > { %v908_v16 = vpack.c.bf16 %v844_v14, %v844_v14 }
  0x97   : > { %973 = vst.msk [vmem:[#allocation2] sm:$0xf] %vm972_vm1, %v908_v16 }
  0x98   : > { %v686_v17 = vpop.f32.mrf.mxu0 }
  0x99   : > { %v687_v19 = vadd.f32 %v10112_v10, %v686_v17 }
  0x9b   : > { %v845_v20 = vmax.f32 %v687_v19, 0.0 }
  0x9d   : > { %v909_v21 = vpack.c.bf16 %v845_v20, %v845_v20 }
  0x9f   : > { %974 = vst.msk [vmem:[#allocation2 + $0x4] sm:$0xf] %vm972_vm1, %v909_v21 }
  0xa0   : > { %v689_v23 = vpop.f32.mrf.mxu0 }
  0xa1   : > { %v690_v24 = vadd.f32 %v10112_v10, %v689_v23  ;;  %v9667_v23 = vld [vmem:[%s10091_s19 + $0x68] sm:$0xff] }
  0xa3   : > { %v846_v25 = vmax.f32 %v690_v24, 0.0  ;;  %8183 = vmatmul.msk.bf16.gmra.mxu0 %vm578_vm0, %v9663_v22 }
  0xa5   : > { %v910_v26 = vpack.c.bf16 %v846_v25, %v846_v25 }
  0xa6   : > { %v9931_v32 = vld [vmem:[#allocation2] sm:$0xff]  }
  0xa7   : > { %975 = vst.msk [vmem:[#allocation2 + $0x8] sm:$0xf] %vm972_vm1, %v910_v26  ;;  %v1260_v35 = vshll.u32 %v9931_v32, 16  ;;  %v1258_v41 = vshrl.u32 %v9931_v32, 16 }
  0xa8   : > { %v691_v27 = vpop.f32.mrf.mxu0 }
  0xa9   : > { %v692_v28 = vadd.f32 %v10112_v10, %v691_v27  ;;  %v1262_v39 = vrot.slane %v1260_v35, 1 }
  0xab   : > { %v847_v29 = vmax.f32 %v692_v28, 0.0  ;;  %v1263_v44 = vor.u32 %v1262_v39, %v1258_v41  ;;  %v9668_v41 = vld [vmem:[%s10091_s19 + $0x70] sm:$0xff] }
  0xad   : > { %v911_v30 = vpack.c.bf16 %v847_v29, %v847_v29 }
  0xaf   : > { %976 = vst.msk [vmem:[#allocation2 + $0xc] sm:$0xf] %vm972_vm1, %v911_v30 }
  0xb0   : > { %v694_v33 = vpop.f32.mrf.mxu0 }
  0xb1   : > { %v695_v34 = vadd.f32 %v10112_v10, %v694_v33 }
  0xb3   : > { %v848_v36 = vmax.f32 %v695_v34, 0.0  ;;  %8184 = vmatmul.msk.bf16.gmra.mxu0 %vm578_vm0, %v9664_v31 }
  0xb5   : > { %v912_v37 = vpack.c.bf16 %v848_v36, %v848_v36 }
  0xb6   : > { %v9688_v38 = vld [vmem:[#allocation2 + $0x8] sm:$0xff] }
  0xb7   : > { %977 = vst.msk [vmem:[#allocation2 + $0x10] sm:$0xf] %vm972_vm1, %v912_v37  ;;  %v1265_v42 = vshll.u32 %v9688_v38, 16  ;;  %v1269_v56 = vshrl.u32 %v9688_v38, 16 }
  0xb8   : > { %v696_v40 = vpop.f32.mrf.mxu0 }
  0xb9   : > { %v697_v43 = vadd.f32 %v10112_v10, %v696_v40  ;;  %v1267_v45 = vrot.slane %v1265_v42, 1 }
  0xbb   : > { %v849_v46 = vmax.f32 %v697_v43, 0.0  ;;  %v1268_v47 = vsel %vm1256_vm2, %v1263_v44, %v1267_v45  ;;  %v1271_v59 = vor.u32 %v1269_v56, %v1267_v45 }
  0xbc   : > { %8330 = vmatmul.msk.bf16.vlgmr.msra.gmra.mxu1 %vm578_vm0, %v1268_v47 }
  0xbd   : > { %v913_v48 = vpack.c.bf16 %v849_v46, %v849_v46 }
  0xbf   : > { %978 = vst.msk [vmem:[#allocation2 + $0x14] sm:$0xf] %vm972_vm1, %v913_v48 }
  0xc0   : > { %v699_v50 = vpop.f32.mrf.mxu0 }
  0xc1   : > { %v700_v51 = vadd.f32 %v10112_v10, %v699_v50 }
  0xc3   : > { %v850_v52 = vmax.f32 %v700_v51, 0.0  ;;  %8185 = vmatmul.msk.bf16.gmra.mxu0 %vm578_vm0, %v9665_v49 }
  0xc5   : > { %v914_v53 = vpack.c.bf16 %v850_v52, %v850_v52 }
  0xc6   : > { %v9689_v54 = vld [vmem:[#allocation2 + $0x10] sm:$0xff] }
  0xc7   : > { %979 = vst.msk [vmem:[#allocation2 + $0x18] sm:$0xf] %vm972_vm1, %v914_v53  ;;  %v1273_v57 = vshll.u32 %v9689_v54, 16  ;;  %v1277_v11 = vshrl.u32 %v9689_v54, 16  ;;  %v10158_v13 = vld [vmem:[#allocation2 + $0x10] sm:$0xff] }
  0xc8   : > { %v701_v55 = vpop.f32.mrf.mxu0  ;;  %12424 = vst [vmem:[#allocation4_spill] sm:$0xff] %v10158_v13  ;;  %v12415_v20 = vrot.slane %v10158_v13, 1 }
  0xc9   : > { %v702_v58 = vadd.f32 %v10112_v10, %v701_v55  ;;  %v1275_v60 = vrot.slane %v1273_v57, 1 }
  0xcb   : > { %v851_v61 = vmax.f32 %v702_v58, 0.0  ;;  %v1276_v62 = vsel %vm1256_vm2, %v1271_v59, %v1275_v60  ;;  %v1279_v15 = vor.u32 %v1277_v11, %v1275_v60  ;;  %v9669_v59 = vld [vmem:[%s10091_s19 + $0x78] sm:$0xff] }
  0xcc   : > { %8331 = vmatmul.msk.bf16.gmra.mxu1 %vm578_vm0, %v1276_v62 }
  0xcd   : > { %v915_v63 = vpack.c.bf16 %v851_v61, %v851_v61 }
  0xcf   : > { %980 = vst.msk [vmem:[#allocation2 + $0x1c] sm:$0xf] %vm972_vm1, %v915_v63 }
  0xd0   : > { %v704_v2 = vpop.f32.mrf.mxu0 }
  0xd1   : > { %v705_v3 = vadd.f32 %v10112_v10, %v704_v2 }
  0xd3   : > { %v852_v4 = vmax.f32 %v705_v3, 0.0  ;;  %8186 = vmatmul.msk.bf16.gmra.mxu0 %vm578_vm0, %v9666_v0 }
  0xd5   : > { %v916_v6 = vpack.c.bf16 %v852_v4, %v852_v4 }
  0xd6   : > { %v9690_v7 = vld [vmem:[#allocation2 + $0x18] sm:$0xff] }
  0xd7   : > { %981 = vst.msk [vmem:[#allocation2 + $0x20] sm:$0xf] %vm972_vm1, %v916_v6  ;;  %v9754_v8 = vld [vmem:[#allocation2 + $0x18] sm:$0xff]  ;;  %v1281_v12 = vshll.u32 %v9690_v7, 16  ;;  %v1285_v31 = vshrl.u32 %v9690_v7, 16 }
  0xd8   : > { %v706_v9 = vpop.f32.mrf.mxu0  ;;  %v3692_v18 = vrot.slane %v9754_v8, 1 }
  0xd9   : > { %v707_v14 = vadd.f32 %v10112_v10, %v706_v9  ;;  %v1283_v16 = vrot.slane %v1281_v12, 1 }
  0xda   : > { %v10167_v22 = vsel %vm1997_vm3, %v12415_v20, %v3692_v18 }
  0xdb   : > { %v853_v17 = vmax.f32 %v707_v14, 0.0  ;;  %v1284_v19 = vsel %vm1256_vm2, %v1279_v15, %v1283_v16  ;;  %12425 = vst [vmem:[#allocation5_spill] sm:$0xff] %v10167_v22  ;;  %v1287_v34 = vor.u32 %v1285_v31, %v1283_v16 }
  0xdc   : > { %8332 = vmatmul.msk.bf16.gmra.mxu1 %vm578_vm0, %v1284_v19 }
  0xdd   : > { %v917_v21 = vpack.c.bf16 %v853_v17, %v853_v17 }
  0xdf   : > { %982 = vst.msk [vmem:[#allocation2 + $0x24] sm:$0xf] %vm972_vm1, %v917_v21 }
  0xe0   : > { %v709_v24 = vpop.f32.mrf.mxu0 }
  0xe1   : > { %v710_v25 = vadd.f32 %v10112_v10, %v709_v24 }
  0xe3   : > { %v854_v26 = vmax.f32 %v710_v25, 0.0  ;;  %8187 = vmatmul.msk.bf16.gmra.mxu0 %vm578_vm0, %v9667_v23 }
  0xe5   : > { %v918_v27 = vpack.c.bf16 %v854_v26, %v854_v26 }
  0xe6   : > { %v9691_v28 = vld [vmem:[#allocation2 + $0x20] sm:$0xff] }
  0xe7   : > { %983 = vst.msk [vmem:[#allocation2 + $0x28] sm:$0xf] %vm972_vm1, %v918_v27  ;;  %v9755_v29 = vld [vmem:[#allocation2 + $0x20] sm:$0xff]  ;;  %v1289_v32 = vshll.u32 %v9691_v28, 16  ;;  %v1293_v49 = vshrl.u32 %v9691_v28, 16 }
  0xe8   : > { %v711_v30 = vpop.f32.mrf.mxu0  ;;  %v3694_v37 = vrot.slane %v9755_v29, 1 }
  0xe9   : > { %v712_v33 = vadd.f32 %v10112_v10, %v711_v30  ;;  %v1291_v35 = vrot.slane %v1289_v32, 1 }
  0xea   : > { %v10178_v40 = vsel %vm1997_vm3, %v3692_v18, %v3694_v37  ;;  %v9670_v18 = vld [vmem:[%s10091_s19 + $0x80] sm:$0xff] }
  0xeb   : > { %v855_v36 = vmax.f32 %v712_v33, 0.0  ;;  %v1292_v38 = vsel %vm1256_vm2, %v1287_v34, %v1291_v35  ;;  %12426 = vst [vmem:[#allocation6_spill] sm:$0xff] %v10178_v40  ;;  %v1295_v52 = vor.u32 %v1293_v49, %v1291_v35 }
  0xec   : > { %8333 = vmatmul.msk.bf16.gmra.mxu1 %vm578_vm0, %v1292_v38 }
  0xed   : > { %v919_v39 = vpack.c.bf16 %v855_v36, %v855_v36 }
  0xef   : > { %984 = vst.msk [vmem:[#allocation2 + $0x2c] sm:$0xf] %vm972_vm1, %v919_v39 }
  0xf0   : > { %v714_v42 = vpop.f32.mrf.mxu0 }
  0xf1   : > { %v715_v43 = vadd.f32 %v10112_v10, %v714_v42 }
  0xf3   : > { %v856_v44 = vmax.f32 %v715_v43, 0.0  ;;  %8188 = vmatmul.msk.bf16.gmra.mxu0 %vm578_vm0, %v9668_v41  ;;  %v9671_v41 = vld [vmem:[%s10091_s19 + $0x88] sm:$0xff] }
  0xf5   : > { %v920_v45 = vpack.c.bf16 %v856_v44, %v856_v44 }
  0xf6   : > { %v10184_v46 = vld [vmem:[#allocation2 + $0x28] sm:$0xff] }
  0xf7   : > { %985 = vst.msk [vmem:[#allocation2 + $0x30] sm:$0xf] %vm972_vm1, %v920_v45  ;;  %v9756_v47 = vld [vmem:[#allocation2 + $0x28] sm:$0xff]  ;;  %8373 = vmatmul.msk.bf16.vlgmr.msra.gmra.mxu2 %vm578_vm0, %v10184_v46  ;;  %v1297_v50 = vshll.u32 %v10184_v46, 16  ;;  %v1301_v3 = vshrl.u32 %v10184_v46, 16  ;;  %v12416_v5 = vrot.slane %v10184_v46, 1 }
  0xf8   : > { %v716_v48 = vpop.f32.mrf.mxu0  ;;  %v3696_v55 = vrot.slane %v9756_v47, 1 }
  0xf9   : > { %v717_v51 = vadd.f32 %v10112_v10, %v716_v48  ;;  %v1299_v53 = vrot.slane %v1297_v50, 1  ;;  %v9783_v48 = vld [vmem:[%s12408_s3 + $0x48] sm:$0xff] }
  0xfa   : > { %v10194_v58 = vsel %vm1997_vm3, %v3694_v37, %v3696_v55  ;;  %3469 = vmatpush.bf16.msrb.mxu2 %v9783_v48 }
  0xfb   : > { %v857_v54 = vmax.f32 %v717_v51, 0.0  ;;  %v1300_v56 = vsel %vm1256_vm2, %v1295_v52, %v1299_v53  ;;  %12427 = vst [vmem:[#allocation7_spill] sm:$0xff] %v10194_v58  ;;  %v1303_v8 = vor.u32 %v1301_v3, %v1299_v53 }
  0xfc   : > { %8334 = vmatmul.msk.bf16.gmra.mxu1 %vm578_vm0, %v1300_v56 }
  0xfd   : > { %v921_v57 = vpack.c.bf16 %v857_v54, %v857_v54 }
  0xff   : > { %986 = vst.msk [vmem:[#allocation2 + $0x34] sm:$0xf] %vm972_vm1, %v921_v57 }
 0x100   : > { %v719_v60 = vpop.f32.mrf.mxu0 }
 0x101   : > { %v720_v61 = vadd.f32 %v10112_v10, %v719_v60 }
 0x103   : > { %v858_v62 = vmax.f32 %v720_v61, 0.0  ;;  %8189 = vmatmul.msk.bf16.gmra.mxu0 %vm578_vm0, %v9669_v59 }
 0x105   : > { %v922_v63 = vpack.c.bf16 %v858_v62, %v858_v62 }
 0x106   : > { %v9693_v0 = vld [vmem:[#allocation2 + $0x30] sm:$0xff] }
 0x107   : > { %987 = vst.msk [vmem:[#allocation2 + $0x38] sm:$0xf] %vm972_vm1, %v922_v63  ;;  %v9757_v1 = vld [vmem:[#allocation2 + $0x30] sm:$0xff]  ;;  %8374 = vmatmul.msk.bf16.gmra.mxu2 %vm578_vm0, %v9693_v0  ;;  %v1305_v4 = vshll.u32 %v9693_v0, 16  ;;  %v2009_v6 = vrot.slane %v9693_v0, 1  ;;  %v1309_v28 = vshrl.u32 %v9693_v0, 16 }
 0x108   : > { %v721_v2 = vpop.f32.mrf.mxu0  ;;  %v3698_v14 = vrot.slane %v9757_v1, 1  ;;  %v9672_v0 = vld [vmem:[%s10091_s19 + $0x90] sm:$0xff]  ;;  %v9752_v1 = vld [vmem:[%s12408_s3 + $0x38] sm:$0xff] }
 0x109   : > { %v722_v7 = vadd.f32 %v10112_v10, %v721_v2  ;;  %v1307_v9 = vrot.slane %v1305_v4, 1  ;;  %v10208_v11 = vsel %vm1997_vm3, %v12416_v5, %v2009_v6  ;;  %2696 = vmatpush.bf16.msrb.mxu1 %v9752_v1 }
 0x10a   : > { %v10213_v17 = vsel %vm1997_vm3, %v3696_v55, %v3698_v14 }
 0x10b   : > { %v859_v12 = vmax.f32 %v722_v7, 0.0  ;;  %v1308_v15 = vsel %vm1256_vm2, %v1303_v8, %v1307_v9  ;;  %12428 = vst [vmem:[#allocation8_spill] sm:$0xff] %v10213_v17  ;;  %v1311_v32 = vor.u32 %v1309_v28, %v1307_v9 }
 0x10c   : > { %8335 = vmatmul.msk.bf16.gmra.mxu1 %vm578_vm0, %v1308_v15 }
 0x10d   : > { %v923_v16 = vpack.c.bf16 %v859_v12, %v859_v12 }
 0x10f   : > { %988 = vst.msk [vmem:[#allocation2 + $0x3c] sm:$0xf] %vm972_vm1, %v923_v16 }
 0x110   : > { %v724_v19 = vpop.f32.mrf.mxu0 }
 0x111   : > { %v725_v21 = vadd.f32 %v10112_v10, %v724_v19 }
 0x113   : > { %v860_v23 = vmax.f32 %v725_v21, 0.0  ;;  %8190 = vmatmul.msk.bf16.gmra.mxu0 %vm578_vm0, %v9670_v18 }
 0x115   : > { %v924_v24 = vpack.c.bf16 %v860_v23, %v860_v23 }
 0x116   : > { %v9694_v25 = vld [vmem:[#allocation2 + $0x38] sm:$0xff] }
 0x117   : > { %989 = vst.msk [vmem:[#allocation2 + $0x40] sm:$0xf] %vm972_vm1, %v924_v24  ;;  %v9758_v26 = vld [vmem:[#allocation2 + $0x38] sm:$0xff]  ;;  %8375 = vmatmul.msk.bf16.gmra.mxu2 %vm578_vm0, %v9694_v25  ;;  %v1313_v29 = vshll.u32 %v9694_v25, 16  ;;  %v2011_v30 = vrot.slane %v9694_v25, 1  ;;  %v1317_v51 = vshrl.u32 %v9694_v25, 16 }
 0x118   : > { %v726_v27 = vpop.f32.mrf.mxu0  ;;  %v3700_v36 = vrot.slane %v9758_v26, 1 }
 0x119   : > { %v727_v31 = vadd.f32 %v10112_v10, %v726_v27  ;;  %v1315_v33 = vrot.slane %v1313_v29, 1  ;;  %v10223_v34 = vsel %vm1997_vm3, %v2009_v6, %v2011_v30  ;;  %v9673_v29 = vld [vmem:[%s10091_s19 + $0x98] sm:$0xff] }
 0x11a   : > { %v10228_v39 = vsel %vm1997_vm3, %v3698_v14, %v3700_v36 }
 0x11b   : > { %v861_v35 = vmax.f32 %v727_v31, 0.0  ;;  %v1316_v37 = vsel %vm1256_vm2, %v1311_v32, %v1315_v33  ;;  %12429 = vst [vmem:[#allocation9_spill] sm:$0xff] %v10228_v39  ;;  %v1319_v55 = vor.u32 %v1317_v51, %v1315_v33 }
 0x11c   : > { %8336 = vmatmul.msk.bf16.gmra.mxu1 %vm578_vm0, %v1316_v37 }
 0x11d   : > { %v925_v38 = vpack.c.bf16 %v861_v35, %v861_v35 }
 0x11f   : > { %990 = vst.msk [vmem:[#allocation2 + $0x44] sm:$0xf] %vm972_vm1, %v925_v38 }
 0x120   : > { %v729_v42 = vpop.f32.mrf.mxu0 }
 0x121   : > { %v730_v43 = vadd.f32 %v10112_v10, %v729_v42 }
 0x123   : > { %v862_v44 = vmax.f32 %v730_v43, 0.0  ;;  %8191 = vmatmul.msk.bf16.gmra.mxu0 %vm578_vm0, %v9671_v41 }
 0x125   : > { %v926_v45 = vpack.c.bf16 %v862_v44, %v862_v44 }
 0x126   : > { %v9695_v47 = vld [vmem:[#allocation2 + $0x40] sm:$0xff] }
 0x127   : > { %991 = vst.msk [vmem:[#allocation2 + $0x48] sm:$0xf] %vm972_vm1, %v926_v45  ;;  %v9759_v49 = vld [vmem:[#allocation2 + $0x40] sm:$0xff]  ;;  %8376 = vmatmul.msk.bf16.gmra.mxu2 %vm578_vm0, %v9695_v47  ;;  %v1321_v52 = vshll.u32 %v9695_v47, 16  ;;  %v2013_v53 = vrot.slane %v9695_v47, 1  ;;  %v1325_v12 = vshrl.u32 %v9695_v47, 16 }
 0x128   : > { %v731_v50 = vpop.f32.mrf.mxu0  ;;  %v3702_v60 = vrot.slane %v9759_v49, 1 }
 0x129   : > { %v732_v54 = vadd.f32 %v10112_v10, %v731_v50  ;;  %v1323_v56 = vrot.slane %v1321_v52, 1  ;;  %v10241_v57 = vsel %vm1997_vm3, %v2011_v30, %v2013_v53 }
 0x12a   : > { %v10246_v63 = vsel %vm1997_vm3, %v3700_v36, %v3702_v60 }
 0x12b   : > { %v863_v59 = vmax.f32 %v732_v54, 0.0  ;;  %v1324_v61 = vsel %vm1256_vm2, %v1319_v55, %v1323_v56  ;;  %12430 = vst [vmem:[#allocation10_spill] sm:$0xff] %v10246_v63  ;;  %v1327_v19 = vor.u32 %v1325_v12, %v1323_v56  ;;  %v9674_v55 = vld [vmem:[%s10091_s19 + $0xa0] sm:$0xff] }
 0x12c   : > { %8337 = vmatmul.msk.bf16.gmra.mxu1 %vm578_vm0, %v1324_v61 }
 0x12d   : > { %v927_v62 = vpack.c.bf16 %v863_v59, %v863_v59 }
 0x12f   : > { %992 = vst.msk [vmem:[#allocation2 + $0x4c] sm:$0xf] %vm972_vm1, %v927_v62 }
 0x130   : > { %v734_v2 = vpop.f32.mrf.mxu0 }
 0x131   : > { %v735_v3 = vadd.f32 %v10112_v10, %v734_v2 }
 0x133   : > { %v864_v4 = vmax.f32 %v735_v3, 0.0  ;;  %8192 = vmatmul.msk.bf16.gmra.mxu0 %vm578_vm0, %v9672_v0 }
 0x135   : > { %v928_v6 = vpack.c.bf16 %v864_v4, %v864_v4 }
 0x136   : > { %v9696_v7 = vld [vmem:[#allocation2 + $0x48] sm:$0xff] }
 0x137   : > { %993 = vst.msk [vmem:[#allocation2 + $0x50] sm:$0xf] %vm972_vm1, %v928_v6  ;;  %v9760_v8 = vld [vmem:[#allocation2 + $0x48] sm:$0xff]  ;;  %8377 = vmatmul.msk.bf16.gmra.mxu2 %vm578_vm0, %v9696_v7  ;;  %v1329_v14 = vshll.u32 %v9696_v7, 16  ;;  %v2015_v15 = vrot.slane %v9696_v7, 1  ;;  %v1333_v41 = vshrl.u32 %v9696_v7, 16 }
 0x138   : > { %v736_v9 = vpop.f32.mrf.mxu0  ;;  %v3704_v25 = vrot.slane %v9760_v8, 1 }
 0x139   : > { %v737_v16 = vadd.f32 %v10112_v10, %v736_v9  ;;  %v10258_v18 = vpop.f32.mrf.mxu1  ;;  %v1331_v21 = vrot.slane %v1329_v14, 1  ;;  %v10261_v23 = vsel %vm1997_vm3, %v2013_v53, %v2015_v15 }
 0x13a   : > { %v10266_v28 = vsel %vm1997_vm3, %v3702_v60, %v3704_v25 }
 0x13b   : > { %v865_v24 = vmax.f32 %v737_v16, 0.0  ;;  %v1332_v26 = vsel %vm1256_vm2, %v1327_v19, %v1331_v21  ;;  %12431 = vst [vmem:[#allocation11_spill] sm:$0xff] %v10266_v28  ;;  %v1335_v47 = vor.u32 %v1333_v41, %v1331_v21 }
 0x13c   : > { %8338 = vmatmul.msk.bf16.gmra.mxu1 %vm578_vm0, %v1332_v26 }
 0x13d   : > { %v929_v27 = vpack.c.bf16 %v865_v24, %v865_v24 }
 0x13f   : > { %994 = vst.msk [vmem:[#allocation2 + $0x54] sm:$0xf] %vm972_vm1, %v929_v27 }
 0x140   : > { %v739_v30 = vpop.f32.mrf.mxu0 }
 0x141   : > { %v740_v31 = vadd.f32 %v10112_v10, %v739_v30  ;;  %v10271_v32 = vpop.f32.mrf.mxu1 }
 0x143   : > { %v866_v33 = vmax.f32 %v740_v31, 0.0  ;;  %8193 = vmatmul.msk.bf16.gmra.mxu0 %vm578_vm0, %v9673_v29 }
 0x145   : > { %v930_v35 = vpack.c.bf16 %v866_v33, %v866_v33 }
 0x146   : > { %v9697_v36 = vld [vmem:[#allocation2 + $0x50] sm:$0xff] }
 0x147   : > { %995 = vst.msk [vmem:[#allocation2 + $0x58] sm:$0xf] %vm972_vm1, %v930_v35  ;;  %v9761_v37 = vld [vmem:[#allocation2 + $0x50] sm:$0xff]  ;;  %8378 = vmatmul.msk.bf16.gmra.mxu2 %vm578_vm0, %v9697_v36  ;;  %v1337_v42 = vshll.u32 %v9697_v36, 16  ;;  %v2017_v43 = vrot.slane %v9697_v36, 1  ;;  %v1341_v3 = vshrl.u32 %v9697_v36, 16 }
 0x148   : > { %v741_v38 = vpop.f32.mrf.mxu0  ;;  %v3706_v51 = vrot.slane %v9761_v37, 1 }
 0x149   : > { %v742_v44 = vadd.f32 %v10112_v10, %v741_v38  ;;  %v10277_v45 = vpop.f32.mrf.mxu1  ;;  %v1339_v48 = vrot.slane %v1337_v42, 1  ;;  %v10280_v49 = vsel %vm1997_vm3, %v2015_v15, %v2017_v43 }
 0x14a   : > { %v10285_v54 = vsel %vm1997_vm3, %v3704_v25, %v3706_v51  ;;  %v9675_v25 = vld [vmem:[%s10091_s19 + $0xa8] sm:$0xff] }
 0x14b   : > { %v867_v50 = vmax.f32 %v742_v44, 0.0  ;;  %v1340_v52 = vsel %vm1256_vm2, %v1335_v47, %v1339_v48  ;;  %12432 = vst [vmem:[#allocation12_spill] sm:$0xff] %v10285_v54  ;;  %v1343_v9 = vor.u32 %v1341_v3, %v1339_v48 }
 0x14c   : > { %8339 = vmatmul.msk.bf16.gmra.mxu1 %vm578_vm0, %v1340_v52 }
 0x14d   : > { %v931_v53 = vpack.c.bf16 %v867_v50, %v867_v50 }
 0x14f   : > { %996 = vst.msk [vmem:[#allocation2 + $0x5c] sm:$0xf] %vm972_vm1, %v931_v53 }
 0x150   : > { %v744_v56 = vpop.f32.mrf.mxu0 }
 0x151   : > { %v745_v59 = vadd.f32 %v10112_v10, %v744_v56  ;;  %v10290_v60 = vpop.f32.mrf.mxu1  ;;  %v9676_v56 = vld [vmem:[%s10091_s19 + $0xb0] sm:$0xff] }
 0x153   : > { %v868_v61 = vmax.f32 %v745_v59, 0.0  ;;  %8194 = vmatmul.msk.bf16.gmra.mxu0 %vm578_vm0, %v9674_v55 }
 0x155   : > { %v932_v62 = vpack.c.bf16 %v868_v61, %v868_v61 }
 0x156   : > { %v9698_v0 = vld [vmem:[#allocation2 + $0x58] sm:$0xff] }
 0x157   : > { %997 = vst.msk [vmem:[#allocation2 + $0x60] sm:$0xf] %vm972_vm1, %v932_v62  ;;  %v9762_v1 = vld [vmem:[#allocation2 + $0x58] sm:$0xff]  ;;  %8379 = vmatmul.msk.bf16.gmra.mxu2 %vm578_vm0, %v9698_v0  ;;  %v1345_v4 = vshll.u32 %v9698_v0, 16  ;;  %v2019_v6 = vrot.slane %v9698_v0, 1  ;;  %v1349_v37 = vshrl.u32 %v9698_v0, 16 }
 0x158   : > { %v746_v2 = vpop.f32.mrf.mxu0  ;;  %v3708_v16 = vrot.slane %v9762_v1, 1 }
 0x159   : > { %v747_v7 = vadd.f32 %v10112_v10, %v746_v2  ;;  %v10296_v8 = vpop.f32.mrf.mxu1  ;;  %v1347_v12 = vrot.slane %v1345_v4, 1  ;;  %v10299_v14 = vsel %vm1997_vm3, %v2017_v43, %v2019_v6 }
 0x15a   : > { %v10304_v24 = vsel %vm1997_vm3, %v3706_v51, %v3708_v16 }
 0x15b   : > { %v869_v15 = vmax.f32 %v747_v7, 0.0  ;;  %v1348_v19 = vsel %vm1256_vm2, %v1343_v9, %v1347_v12  ;;  %12433 = vst [vmem:[#allocation13_spill] sm:$0xff] %v10304_v24  ;;  %v1351_v44 = vor.u32 %v1349_v37, %v1347_v12 }
 0x15c   : > { %8340 = vmatmul.msk.bf16.gmra.mxu1 %vm578_vm0, %v1348_v19 }
 0x15d   : > { %v933_v21 = vpack.c.bf16 %v869_v15, %v869_v15 }
 0x15f   : > { %998 = vst.msk [vmem:[#allocation2 + $0x64] sm:$0xf] %vm972_vm1, %v933_v21 }
 0x160   : > { %v749_v26 = vpop.f32.mrf.mxu0 }
 0x161   : > { %v750_v27 = vadd.f32 %v10112_v10, %v749_v26  ;;  %v10309_v29 = vpop.f32.mrf.mxu1 }
 0x163   : > { %v870_v30 = vmax.f32 %v750_v27, 0.0  ;;  %8195 = vmatmul.msk.bf16.gmra.mxu0 %vm578_vm0, %v9675_v25 }
 0x165   : > { %v934_v31 = vpack.c.bf16 %v870_v30, %v870_v30 }
 0x166   : > { %v9699_v33 = vld [vmem:[#allocation2 + $0x60] sm:$0xff] }
 0x167   : > { %999 = vst.msk [vmem:[#allocation2 + $0x68] sm:$0xf] %vm972_vm1, %v934_v31  ;;  %v9763_v35 = vld [vmem:[#allocation2 + $0x60] sm:$0xff]  ;;  %8380 = vmatmul.msk.bf16.gmra.mxu2 %vm578_vm0, %v9699_v33  ;;  %v1353_v38 = vshll.u32 %v9699_v33, 16  ;;  %v2021_v41 = vrot.slane %v9699_v33, 1 }
 0x168   : > { %v751_v36 = vpop.f32.mrf.mxu0  ;;  %v3710_v51 = vrot.slane %v9763_v35, 1  ;;  %v9677_v35 = vld [vmem:[%s10091_s19 + $0xb8] sm:$0xff] }
 0x169   : > { %v752_v42 = vadd.f32 %v10112_v10, %v751_v36  ;;  %v10315_v43 = vpop.f32.mrf.mxu1  ;;  %v1355_v47 = vrot.slane %v1353_v38, 1  ;;  %v10318_v48 = vsel %vm1997_vm3, %v2019_v6, %v2021_v41  ;;  %v1357_v6 = vshrl.u32 %v9699_v33, 16 }
 0x16a   : > { %v10323_v55 = vsel %vm1997_vm3, %v3708_v16, %v3710_v51 }
 0x16b   : > { %v871_v50 = vmax.f32 %v752_v42, 0.0  ;;  %v1356_v52 = vsel %vm1256_vm2, %v1351_v44, %v1355_v47  ;;  %12434 = vst [vmem:[#allocation14_spill] sm:$0xff] %v10323_v55  ;;  %v1359_v16 = vor.u32 %v1357_v6, %v1355_v47 }
 0x16c   : > { %8341 = vmatmul.msk.bf16.gmra.mxu1 %vm578_vm0, %v1356_v52 }
 0x16d   : > { %v935_v53 = vpack.c.bf16 %v871_v50, %v871_v50 }
 0x16f   : > { %1000 = vst.msk [vmem:[#allocation2 + $0x6c] sm:$0xf] %vm972_vm1, %v935_v53 }
 0x170   : > { %v754_v59 = vpop.f32.mrf.mxu0 }
 0x171   : > { %v755_v61 = vadd.f32 %v10112_v10, %v754_v59  ;;  %v10328_v62 = vpop.f32.mrf.mxu1 }
 0x173   : > { %v872_v0 = vmax.f32 %v755_v61, 0.0  ;;  %8196 = vmatmul.msk.bf16.gmra.mxu0 %vm578_vm0, %v9676_v56 }
 0x175   : > { %v936_v1 = vpack.c.bf16 %v872_v0, %v872_v0 }
 0x176   : > { %v9700_v2 = vld [vmem:[#allocation2 + $0x68] sm:$0xff] }
 0x177   : > { %1001 = vst.msk [vmem:[#allocation2 + $0x70] sm:$0xf] %vm972_vm1, %v936_v1  ;;  %v9764_v3 = vld [vmem:[#allocation2 + $0x68] sm:$0xff]  ;;  %8381 = vmatmul.msk.bf16.gmra.mxu2 %vm578_vm0, %v9700_v2  ;;  %v1361_v7 = vshll.u32 %v9700_v2, 16  ;;  %v2023_v9 = vrot.slane %v9700_v2, 1 }
 0x178   : > { %v756_v4 = vpop.f32.mrf.mxu0  ;;  %v3712_v27 = vrot.slane %v9764_v3, 1 }
 0x179   : > { %v757_v12 = vadd.f32 %v10112_v10, %v756_v4  ;;  %v10334_v15 = vpop.f32.mrf.mxu1  ;;  %v1363_v19 = vrot.slane %v1361_v7, 1  ;;  %v10337_v21 = vsel %vm1997_vm3, %v2021_v41, %v2023_v9 }
 0x17a   : > { %v1864_v26 = vpop.f32.mrf.mxu2  ;;  %v10342_v33 = vsel %vm1997_vm3, %v3710_v51, %v3712_v27  ;;  %v1365_v51 = vshrl.u32 %v9700_v2, 16 }
 0x17b   : > { %v873_v25 = vmax.f32 %v757_v12, 0.0  ;;  %v1364_v30 = vsel %vm1256_vm2, %v1359_v16, %v1363_v19  ;;  %12435 = vst [vmem:[#allocation15_spill] sm:$0xff] %v10342_v33 }
 0x17c   : > { %8342 = vmatmul.msk.bf16.gmra.mxu1 %vm578_vm0, %v1364_v30  ;;  %v1367_v0 = vor.u32 %v1365_v51, %v1363_v19  ;;  %v9678_v19 = vld [vmem:[%s10091_s19 + $0xc0] sm:$0xff] }
 0x17d   : > { %v937_v31 = vpack.c.bf16 %v873_v25, %v873_v25 }
 0x17f   : > { %1002 = vst.msk [vmem:[#allocation2 + $0x74] sm:$0xf] %vm972_vm1, %v937_v31 }
 0x180   : > { %v759_v36 = vpop.f32.mrf.mxu0 }
 0x181   : > { %v760_v37 = vadd.f32 %v10112_v10, %v759_v36  ;;  %v10347_v38 = vpop.f32.mrf.mxu1 }
 0x182   : > { %v1866_v42 = vpop.f32.mrf.mxu2 }
 0x183   : > { %v874_v41 = vmax.f32 %v760_v37, 0.0  ;;  %8197 = vmatmul.msk.bf16.gmra.mxu0 %vm578_vm0, %v9677_v35 }
 0x185   : > { %v938_v44 = vpack.c.bf16 %v874_v41, %v874_v41 }
 0x186   : > { %v9701_v47 = vld [vmem:[#allocation2 + $0x70] sm:$0xff] }
 0x187   : > { %1003 = vst.msk [vmem:[#allocation2 + $0x78] sm:$0xf] %vm972_vm1, %v938_v44  ;;  %8382 = vmatmul.msk.bf16.gmra.mxu2 %vm578_vm0, %v9701_v47  ;;  %v1369_v52 = vshll.u32 %v9701_v47, 16  ;;  %v9765_v53 = vld [vmem:[#allocation2 + $0x70] sm:$0xff]  ;;  %v2025_v56 = vrot.slane %v9701_v47, 1 }
 0x188   : > { %v761_v50 = vpop.f32.mrf.mxu0  ;;  %v3714_v16 = vrot.slane %v9765_v53, 1 }
 0x189   : > { %v762_v59 = vadd.f32 %v10112_v10, %v761_v50  ;;  %v1632_v61 = vpop.f32.mrf.mxu1  ;;  %v1371_v1 = vrot.slane %v1369_v52, 1  ;;  %v10354_v3 = vsel %vm1997_vm3, %v2023_v9, %v2025_v56 }
 0x18a   : > { %v10356_v6 = vadd.f32 %v1864_v26, %v1632_v61  ;;  %v1869_v7 = vpop.f32.mrf.mxu2  ;;  %v10361_v25 = vsel %vm1997_vm3, %v3712_v27, %v3714_v16  ;;  %v1373_v27 = vshrl.u32 %v9701_v47, 16 }
 0x18b   : > { %v875_v4 = vmax.f32 %v762_v59, 0.0  ;;  %v1372_v12 = vsel %vm1256_vm2, %v1367_v0, %v1371_v1  ;;  %12436 = vst [vmem:[#allocation16_spill] sm:$0xff] %v10361_v25 }
 0x18c   : > { %8343 = vmatmul.msk.bf16.gmra.mxu1 %vm578_vm0, %v1372_v12  ;;  %v1375_v61 = vor.u32 %v1373_v27, %v1371_v1  ;;  %v9679_v1 = vld [vmem:[%s10091_s19 + $0xc8] sm:$0xff] }
 0x18d   : > { %v939_v2 = vpack.c.bf16 %v875_v4, %v875_v4 }
 0x18f   : > { %1004 = vst.msk [vmem:[#allocation2 + $0x7c] sm:$0xf] %vm972_vm1, %v939_v2 }
 0x190   : > { %v764_v30 = vpop.f32.mrf.mxu0 }
 0x191   : > { %v765_v9 = vadd.f32 %v10112_v10, %v764_v30  ;;  %v1634_v31 = vpop.f32.mrf.mxu1 }
 0x192   : > { %v10367_v26 = vadd.f32 %v1866_v42, %v1634_v31  ;;  %v1871_v36 = vpop.f32.mrf.mxu2 }
 0x193   : > { %v876_v35 = vmax.f32 %v765_v9, 0.0  ;;  %8198 = vmatmul.msk.bf16.gmra.mxu0 %vm578_vm0, %v9678_v19 }
 0x195   : > { %v940_v37 = vpack.c.bf16 %v876_v35, %v876_v35 }
 0x196   : > { %v9702_v41 = vld [vmem:[#allocation2 + $0x78] sm:$0xff] }
 0x197   : > { %1005 = vst.msk [vmem:[#allocation2 + $0x80] sm:$0xf] %vm972_vm1, %v940_v37  ;;  %8383 = vmatmul.msk.bf16.gmra.mxu2 %vm578_vm0, %v9702_v41  ;;  %v1377_v50 = vshll.u32 %v9702_v41, 16  ;;  %v9766_v51 = vld [vmem:[#allocation2 + $0x78] sm:$0xff]  ;;  %v2027_v52 = vrot.slane %v9702_v41, 1 }
 0x198   : > { %v766_v44 = vpop.f32.mrf.mxu0  ;;  %v3716_v30 = vrot.slane %v9766_v51, 1 }
 0x199   : > { %v767_v53 = vadd.f32 %v10112_v10, %v766_v44  ;;  %v1637_v59 = vpop.f32.mrf.mxu1  ;;  %v1379_v0 = vrot.slane %v1377_v50, 1  ;;  %v10373_v42 = vsel %vm1997_vm3, %v2025_v56, %v2027_v52 }
 0x19a   : > { %v10375_v12 = vadd.f32 %v1869_v7, %v1637_v59  ;;  %v1874_v2 = vpop.f32.mrf.mxu2  ;;  %v10380_v9 = vsel %vm1997_vm3, %v3714_v16, %v3716_v30  ;;  %v1381_v16 = vshrl.u32 %v9702_v41, 16 }
 0x19b   : > { %v877_v4 = vmax.f32 %v767_v53, 0.0  ;;  %v1380_v19 = vsel %vm1256_vm2, %v1375_v61, %v1379_v0  ;;  %12437 = vst [vmem:[#allocation17_spill] sm:$0xff] %v10380_v9 }
 0x19c   : > { %8344 = vmatmul.msk.bf16.gmra.mxu1 %vm578_vm0, %v1380_v19 }
 0x19d   : > { %v941_v47 = vpack.c.bf16 %v877_v4, %v877_v4 }
 0x19f   : > { %1006 = vst.msk [vmem:[#allocation2 + $0x84] sm:$0xf] %vm972_vm1, %v941_v47  ;;  %v1383_v47 = vor.u32 %v1381_v16, %v1379_v0  ;;  %v9680_v0 = vld [vmem:[%s10091_s19 + $0xd0] sm:$0xff] }
 0x1a0   : > { %v769_v31 = vpop.f32.mrf.mxu0 }
 0x1a1   : > { %v770_v56 = vadd.f32 %v10112_v10, %v769_v31  ;;  %v1639_v35 = vpop.f32.mrf.mxu1 }
 0x1a2   : > { %v10386_v7 = vadd.f32 %v1871_v36, %v1639_v35  ;;  %v1876_v44 = vpop.f32.mrf.mxu2 }
 0x1a3   : > { %v878_v37 = vmax.f32 %v770_v56, 0.0  ;;  %8199 = vmatmul.msk.bf16.gmra.mxu0 %vm578_vm0, %v9679_v1 }
 0x1a5   : > { %v942_v27 = vpack.c.bf16 %v878_v37, %v878_v37 }
 0x1a6   : > { %v9703_v50 = vld [vmem:[#allocation2 + $0x80] sm:$0xff] }
 0x1a7   : > { %1007 = vst.msk [vmem:[#allocation2 + $0x88] sm:$0xf] %vm972_vm1, %v942_v27  ;;  %8384 = vmatmul.msk.bf16.gmra.mxu2 %vm578_vm0, %v9703_v50  ;;  %v1385_v53 = vshll.u32 %v9703_v50, 16  ;;  %v9767_v59 = vld [vmem:[#allocation2 + $0x80] sm:$0xff]  ;;  %v2029_v61 = vrot.slane %v9703_v50, 1 }
 0x1a8   : > { %v771_v51 = vpop.f32.mrf.mxu0  ;;  %v3718_v27 = vrot.slane %v9767_v59, 1 }
 0x1a9   : > { %v772_v4 = vadd.f32 %v10112_v10, %v771_v51  ;;  %v1642_v19 = vpop.f32.mrf.mxu1  ;;  %v1387_v1 = vrot.slane %v1385_v53, 1  ;;  %v10392_v36 = vsel %vm1997_vm3, %v2027_v52, %v2029_v61 }
 0x1aa   : > { %v10394_v56 = vadd.f32 %v1874_v2, %v1642_v19  ;;  %v1879_v35 = vpop.f32.mrf.mxu2  ;;  %v10399_v20 = vsel %vm1997_vm3, %v3716_v30, %v3718_v27  ;;  %v1389_v30 = vshrl.u32 %v9703_v50, 16 }
 0x1ab   : > { %v879_v31 = vmax.f32 %v772_v4, 0.0  ;;  %v1388_v37 = vsel %vm1256_vm2, %v1383_v47, %v1387_v1  ;;  %12438 = vst [vmem:[#allocation18_spill] sm:$0xff] %v10399_v20 }
 0x1ac   : > { %8345 = vmatmul.msk.bf16.gmra.mxu1 %vm578_vm0, %v1388_v37  ;;  %v1391_v5 = vor.u32 %v1389_v30, %v1387_v1  ;;  %v9681_v1 = vld [vmem:[%s10091_s19 + $0xd8] sm:$0xff] }
 0x1ad   : > { %v943_v41 = vpack.c.bf16 %v879_v31, %v879_v31 }
 0x1af   : > { %1008 = vst.msk [vmem:[#allocation2 + $0x8c] sm:$0xf] %vm972_vm1, %v943_v41 }
 0x1b0   : > { %v774_v51 = vpop.f32.mrf.mxu0 }
 0x1b1   : > { %v775_v52 = vadd.f32 %v10112_v10, %v774_v51  ;;  %v1644_v16 = vpop.f32.mrf.mxu1 }
 0x1b2   : > { %v10405_v2 = vadd.f32 %v1876_v44, %v1644_v16  ;;  %v1881_v4 = vpop.f32.mrf.mxu2 }
 0x1b3   : > { %v880_v53 = vmax.f32 %v775_v52, 0.0  ;;  %8200 = vmatmul.msk.bf16.gmra.mxu0 %vm578_vm0, %v9680_v0 }
 0x1b5   : > { %v944_v59 = vpack.c.bf16 %v880_v53, %v880_v53 }
 0x1b6   : > { %v9704_v19 = vld [vmem:[#allocation2 + $0x88] sm:$0xff] }
 0x1b7   : > { %1009 = vst.msk [vmem:[#allocation2 + $0x90] sm:$0xf] %vm972_vm1, %v944_v59  ;;  %8385 = vmatmul.msk.bf16.gmra.mxu2 %vm578_vm0, %v9704_v19  ;;  %v1393_v31 = vshll.u32 %v9704_v19, 16  ;;  %v9768_v37 = vld [vmem:[#allocation2 + $0x88] sm:$0xff]  ;;  %v2031_v41 = vrot.slane %v9704_v19, 1 }
 0x1b8   : > { %v776_v47 = vpop.f32.mrf.mxu0  ;;  %v3720_v9 = vrot.slane %v9768_v37, 1 }
 0x1b9   : > { %v777_v51 = vadd.f32 %v10112_v10, %v776_v47  ;;  %v1647_v52 = vpop.f32.mrf.mxu1  ;;  %v1395_v0 = vrot.slane %v1393_v31, 1  ;;  %v10411_v44 = vsel %vm1997_vm3, %v2029_v61, %v2031_v41 }
 0x1ba   : > { %12439 = vst [vmem:[#allocation19_spill] sm:$0xff] %v10411_v44  ;;  %v10413_v53 = vadd.f32 %v1879_v35, %v1647_v52  ;;  %v1884_v59 = vpop.f32.mrf.mxu2  ;;  %v10418_v25 = vsel %vm1997_vm3, %v3718_v27, %v3720_v9  ;;  %v1397_v27 = vshrl.u32 %v9704_v19, 16 }
 0x1bb   : > { %v881_v16 = vmax.f32 %v777_v51, 0.0  ;;  %v1396_v20 = vsel %vm1256_vm2, %v1391_v5, %v1395_v0  ;;  %12441 = vst [vmem:[#allocation21_spill] sm:$0xff] %v10418_v25 }
 0x1bc   : > { %12440 = vst [vmem:[#allocation20_spill] sm:$0xff] %v10413_v53  ;;  %8346 = vmatmul.msk.bf16.gmra.mxu1 %vm578_vm0, %v1396_v20  ;;  %v1399_v25 = vor.u32 %v1397_v27, %v1395_v0 }
 0x1bd   : > { %v945_v50 = vpack.c.bf16 %v881_v16, %v881_v16 }
 0x1bf   : > { %1010 = vst.msk [vmem:[#allocation2 + $0x94] sm:$0xf] %vm972_vm1, %v945_v50 }
 0x1c0   : > { %v779_v47 = vpop.f32.mrf.mxu0 }
 0x1c1   : > { %v780_v61 = vadd.f32 %v10112_v10, %v779_v47  ;;  %v1649_v30 = vpop.f32.mrf.mxu1 }
 0x1c2   : > { %v10424_v35 = vadd.f32 %v1881_v4, %v1649_v30  ;;  %v1886_v5 = vpop.f32.mrf.mxu2 }
 0x1c3   : > { %v882_v31 = vmax.f32 %v780_v61, 0.0  ;;  %8201 = vmatmul.msk.bf16.gmra.mxu0 %vm578_vm0, %v9681_v1 }
 0x1c4   : > { %12442 = vst [vmem:[#allocation22_spill] sm:$0xff] %v10424_v35 }
 0x1c5   : > { %v946_v37 = vpack.c.bf16 %v882_v31, %v882_v31 }
 0x1c6   : > { %v9705_v51 = vld [vmem:[#allocation2 + $0x90] sm:$0xff] }
 0x1c7   : > { %1011 = vst.msk [vmem:[#allocation2 + $0x98] sm:$0xf] %vm972_vm1, %v946_v37  ;;  %8386 = vmatmul.msk.bf16.gmra.mxu2 %vm578_vm0, %v9705_v51  ;;  %v1401_v52 = vshll.u32 %v9705_v51, 16  ;;  %v9769_v16 = vld [vmem:[#allocation2 + $0x90] sm:$0xff]  ;;  %v2033_v50 = vrot.slane %v9705_v51, 1 }
 0x1c8   : > { %v781_v20 = vpop.f32.mrf.mxu0  ;;  %v3722_v55 = vrot.slane %v9769_v16, 1 }
 0x1c9   : > { %v782_v47 = vadd.f32 %v10112_v10, %v781_v20  ;;  %v1652_v61 = vpop.f32.mrf.mxu1  ;;  %v1403_v1 = vrot.slane %v1401_v52, 1  ;;  %v10430_v4 = vsel %vm1997_vm3, %v2031_v41, %v2033_v50  ;;  %v9682_v10 = vld [vmem:[%s10091_s19 + $0xe0] sm:$0xff] }
 0x1ca   : > { %12443 = vst [vmem:[#allocation23_spill] sm:$0xff] %v10430_v4  ;;  %v10432_v31 = vadd.f32 %v1884_v59, %v1652_v61  ;;  %v1889_v37 = vpop.f32.mrf.mxu2  ;;  %v10437_v24 = vsel %vm1997_vm3, %v3720_v9, %v3722_v55  ;;  %v10444_v41 = vld [vmem:[%s12407_s2] ss:$0 sm:$0xff]  ;;  %v9735_v4 = vld [vmem:[#allocation2 + $0x70] sm:$0xff] }
 0x1cb   : > { %v883_v30 = vmax.f32 %v782_v47, 0.0  ;;  %v1404_v33 = vsel %vm1256_vm2, %v1399_v25, %v1403_v1  ;;  %12445 = vst [vmem:[#allocation25_spill] sm:$0xff] %v10437_v24  ;;  %v1405_v47 = vshrl.u32 %v9705_v51, 16 }
 0x1cc   : > { %12444 = vst [vmem:[#allocation24_spill] sm:$0xff] %v10432_v31  ;;  %8347 = vmatmul.msk.bf16.gmra.mxu1 %vm578_vm0, %v1404_v33 }
 0x1cd   : > { %v947_v19 = vpack.c.bf16 %v883_v30, %v883_v30  ;;  %v1407_v24 = vor.u32 %v1405_v47, %v1403_v1  ;;  %v9683_v1 = vld [vmem:[%s10091_s19 + $0xe8] sm:$0xff] }
 0x1cf   : > { %1012 = vst.msk [vmem:[#allocation2 + $0x9c] sm:$0xf] %vm972_vm1, %v947_v19 }
 0x1d0   : > { %v784_v0 = vpop.f32.mrf.mxu0 }
 0x1d1   : > { %v785_v59 = vadd.f32 %v10444_v41, %v784_v0  ;;  %v1654_v20 = vpop.f32.mrf.mxu1 }
 0x1d2   : > { %v10448_v27 = vadd.f32 %v1886_v5, %v1654_v20  ;;  %v1891_v33 = vpop.f32.mrf.mxu2 }
 0x1d3   : > { %v884_v25 = vmax.f32 %v785_v59, 0.0  ;;  %8202 = vmatmul.msk.bf16.gmra.mxu0 %vm578_vm0, %v9682_v10 }
 0x1d4   : > { %12446 = vst [vmem:[#allocation26_spill] sm:$0xff] %v10448_v27 }
 0x1d5   : > { %v948_v9 = vpack.c.bf16 %v884_v25, %v884_v25 }
 0x1d6   : > { %v9706_v52 = vld [vmem:[#allocation2 + $0x98] sm:$0xff] }
 0x1d7   : > { %1013 = vst.msk [vmem:[#allocation2 + $0xa0] sm:$0xf] %vm972_vm1, %v948_v9  ;;  %8387 = vmatmul.msk.bf16.gmra.mxu2 %vm578_vm0, %v9706_v52  ;;  %v1409_v61 = vshll.u32 %v9706_v52, 16  ;;  %v9770_v30 = vld [vmem:[#allocation2 + $0x98] sm:$0xff]  ;;  %v2035_v19 = vrot.slane %v9706_v52, 1 }
 0x1d8   : > { %v786_v16 = vpop.f32.mrf.mxu0  ;;  %v3724_v28 = vrot.slane %v9770_v30, 1 }
 0x1d9   : > { %v787_v0 = vadd.f32 %v10444_v41, %v786_v16  ;;  %v1657_v59 = vpop.f32.mrf.mxu1  ;;  %v1411_v10 = vrot.slane %v1409_v61, 1  ;;  %v10454_v5 = vsel %vm1997_vm3, %v2033_v50, %v2035_v19 }
 0x1da   : > { %12447 = vst [vmem:[#allocation27_spill] sm:$0xff] %v10454_v5  ;;  %v10456_v25 = vadd.f32 %v1889_v37, %v1657_v59  ;;  %v1894_v9 = vpop.f32.mrf.mxu2  ;;  %v10461_v63 = vsel %vm1997_vm3, %v3722_v55, %v3724_v28  ;;  %v1413_v55 = vshrl.u32 %v9706_v52, 16 }
 0x1db   : > { %v885_v20 = vmax.f32 %v787_v0, 0.0  ;;  %v1412_v54 = vsel %vm1256_vm2, %v1407_v24, %v1411_v10  ;;  %12449 = vst [vmem:[#allocation29_spill] sm:$0xff] %v10461_v63 }
 0x1dc   : > { %12448 = vst [vmem:[#allocation28_spill] sm:$0xff] %v10456_v25  ;;  %8348 = vmatmul.msk.bf16.gmra.mxu1 %vm578_vm0, %v1412_v54  ;;  %v1415_v63 = vor.u32 %v1413_v55, %v1411_v10  ;;  %v9684_v10 = vld [vmem:[%s10091_s19 + $0xf0] sm:$0xff] }
 0x1dd   : > { %v949_v51 = vpack.c.bf16 %v885_v20, %v885_v20 }
 0x1df   : > { %1014 = vst.msk [vmem:[#allocation2 + $0xa4] sm:$0xf] %vm972_vm1, %v949_v51 }
 0x1e0   : > { %v789_v16 = vpop.f32.mrf.mxu0 }
 0x1e1   : > { %v790_v50 = vadd.f32 %v10444_v41, %v789_v16  ;;  %v1659_v47 = vpop.f32.mrf.mxu1 }
 0x1e2   : > { %v10467_v37 = vadd.f32 %v1891_v33, %v1659_v47  ;;  %v1896_v24 = vpop.f32.mrf.mxu2 }
 0x1e3   : > { %v886_v61 = vmax.f32 %v790_v50, 0.0  ;;  %8203 = vmatmul.msk.bf16.gmra.mxu0 %vm578_vm0, %v9683_v1 }
 0x1e4   : > { %12450 = vst [vmem:[#allocation30_spill] sm:$0xff] %v10467_v37 }
 0x1e5   : > { %v950_v30 = vpack.c.bf16 %v886_v61, %v886_v61 }
 0x1e6   : > { %v9707_v0 = vld [vmem:[#allocation2 + $0xa0] sm:$0xff] }
 0x1e7   : > { %1015 = vst.msk [vmem:[#allocation2 + $0xa8] sm:$0xf] %vm972_vm1, %v950_v30  ;;  %8388 = vmatmul.msk.bf16.gmra.mxu2 %vm578_vm0, %v9707_v0  ;;  %v1417_v59 = vshll.u32 %v9707_v0, 16  ;;  %v9771_v20 = vld [vmem:[#allocation2 + $0xa0] sm:$0xff]  ;;  %v2037_v51 = vrot.slane %v9707_v0, 1 }
 0x1e8   : > { %v791_v54 = vpop.f32.mrf.mxu0  ;;  %v3726_v17 = vrot.slane %v9771_v20, 1 }
 0x1e9   : > { %v792_v16 = vadd.f32 %v10444_v41, %v791_v54  ;;  %v1662_v50 = vpop.f32.mrf.mxu1  ;;  %v1419_v1 = vrot.slane %v1417_v59, 1  ;;  %v10473_v33 = vsel %vm1997_vm3, %v2035_v19, %v2037_v51  ;;  %v9782_v19 = vld [vmem:[%s12408_s3 + $0x40] sm:$0xff] }
 0x1ea   : > { %12451 = vst [vmem:[#allocation31_spill] sm:$0xff] %v10473_v33  ;;  %v10475_v61 = vadd.f32 %v1894_v9, %v1662_v50  ;;  %v1899_v30 = vpop.f32.mrf.mxu2  ;;  %v10480_v58 = vsel %vm1997_vm3, %v3724_v28, %v3726_v17  ;;  %3470 = vmatpush.bf16.msrb.mxu2 %v9782_v19 }
 0x1eb   : > { %v887_v47 = vmax.f32 %v792_v16, 0.0  ;;  %v1420_v39 = vsel %vm1256_vm2, %v1415_v63, %v1419_v1  ;;  %12453 = vst [vmem:[#allocation33_spill] sm:$0xff] %v10480_v58  ;;  %v9751_v16 = vld [vmem:[%s12408_s3 + $0x30] sm:$0xff] }
 0x1ec   : > { %12452 = vst [vmem:[#allocation32_spill] sm:$0xff] %v10475_v61  ;;  %8349 = vmatmul.msk.bf16.gmra.mxu1 %vm578_vm0, %v1420_v39 }
 0x1ed   : > { %v951_v52 = vpack.c.bf16 %v887_v47, %v887_v47  ;;  %v1421_v47 = vshrl.u32 %v9707_v0, 16  ;;  %2697 = vmatpush.bf16.msrb.mxu1 %v9751_v16 }
 0x1ef   : > { %1016 = vst.msk [vmem:[#allocation2 + $0xac] sm:$0xf] %vm972_vm1, %v951_v52 }
 0x1f0   : > { %v794_v54 = vpop.f32.mrf.mxu0 }
 0x1f1   : > { %v795_v9 = vadd.f32 %v10444_v41, %v794_v54  ;;  %v1664_v55 = vpop.f32.mrf.mxu1  ;;  %v1423_v54 = vor.u32 %v1421_v47, %v1419_v1 }
 0x1f2   : > { %v10489_v59 = vadd.f32 %v1896_v24, %v1664_v55  ;;  %v1901_v39 = vpop.f32.mrf.mxu2 }
 0x1f3   : > { %v888_v63 = vmax.f32 %v795_v9, 0.0  ;;  %8204 = vmatmul.msk.bf16.gmra.mxu0 %vm578_vm0, %v9684_v10 }
 0x1f4   : > { %12454 = vst [vmem:[#allocation34_spill] sm:$0xff] %v10489_v59 }
 0x1f5   : > { %v952_v28 = vpack.c.bf16 %v888_v63, %v888_v63 }
 0x1f6   : > { %v9708_v20 = vld [vmem:[#allocation2 + $0xa8] sm:$0xff] }
 0x1f7   : > { %1017 = vst.msk [vmem:[#allocation2 + $0xb0] sm:$0xf] %vm972_vm1, %v952_v28  ;;  %8389 = vmatmul.msk.bf16.gmra.mxu2 %vm578_vm0, %v9708_v20  ;;  %v1425_v30 = vshll.u32 %v9708_v20, 16  ;;  %v9772_v52 = vld [vmem:[#allocation2 + $0xa8] sm:$0xff]  ;;  %v2039_v19 = vrot.slane %v9708_v20, 1 }
 0x1f8   : > { %v796_v50 = vpop.f32.mrf.mxu0  ;;  %v3728_v58 = vrot.slane %v9772_v52, 1 }
 0x1f9   : > { %v797_v10 = vadd.f32 %v10444_v41, %v796_v50  ;;  %v1667_v24 = vpop.f32.mrf.mxu1  ;;  %v1427_v9 = vrot.slane %v1425_v30, 1  ;;  %v10498_v55 = vsel %vm1997_vm3, %v2037_v51, %v2039_v19  ;;  %v9977_v51 = vld [vmem:[#allocation2] sm:$0xff]  }
 0x1fa   : > { %12455 = vst [vmem:[#allocation35_spill] sm:$0xff] %v10498_v55  ;;  %v1904_v39 = vpop.f32.mrf.mxu2  ;;  %v10503_v0 = vsel %vm1997_vm3, %v3726_v17, %v3728_v58  ;;  %v1429_v17 = vshrl.u32 %v9708_v20, 16 }
 0x1fb   : > { %v889_v63 = vmax.f32 %v797_v10, 0.0  ;;  %v1428_v28 = vsel %vm1256_vm2, %v1423_v54, %v1427_v9  ;;  %12456 = vst [vmem:[#allocation36_spill] sm:$0xff] %v10503_v0 }
 0x1fc   : > { %8350 = vmatmul.msk.bf16.gmra.mxu1 %vm578_vm0, %v1428_v28 }
 0x1fd   : > { %v953_v40 = vpack.c.bf16 %v889_v63, %v889_v63 }
 0x1ff   : > { %1018 = vst.msk [vmem:[#allocation2 + $0xb4] sm:$0xf] %vm972_vm1, %v953_v40 }
 0x200   : > { %v799_v16 = vpop.f32.mrf.mxu0 }
 0x201   : > { %v800_v1 = vadd.f32 %v10444_v41, %v799_v16  ;;  %v1669_v50 = vpop.f32.mrf.mxu1  ;;  %v1431_v16 = vor.u32 %v1429_v17, %v1427_v9 }
 0x202   : > { %v1906_v30 = vpop.f32.mrf.mxu2 }
 0x203   : > { %v890_v47 = vmax.f32 %v800_v1, 0.0  ;;  %8368 = vmatmul.msk.bf16.vlgmr.msrb.gmra.mxu0 %vm578_vm0, %v9977_v51 }
 0x205   : > { %v954_v10 = vpack.c.bf16 %v890_v47, %v890_v47 }
 0x206   : > { %v9709_v24 = vld [vmem:[#allocation2 + $0xb0] sm:$0xff] }
 0x207   : > { %1019 = vst.msk [vmem:[#allocation2 + $0xb8] sm:$0xf] %vm972_vm1, %v954_v10  ;;  %8390 = vmatmul.msk.bf16.gmra.mxu2 %vm578_vm0, %v9709_v24  ;;  %v1433_v54 = vshll.u32 %v9709_v24, 16  ;;  %v9773_v63 = vld [vmem:[#allocation2 + $0xb0] sm:$0xff]  ;;  %v2041_v40 = vrot.slane %v9709_v24, 1 }
 0x208   : > { %v801_v52 = vpop.f32.mrf.mxu0  ;;  %v3730_v10 = vrot.slane %v9773_v63, 1  ;;  %v9685_v63 = vld [vmem:[%s10091_s19 + $0xf8] sm:$0xff]  ;;  %s8037_s19 = sshll.u32 %s12719_s10, 3 }
 0x209   : > { %v802_v39 = vadd.f32 %v10444_v41, %v801_v52  ;;  %v1672_v28 = vpop.f32.mrf.mxu1  ;;  %v1435_v1 = vrot.slane %v1433_v54, 1  ;;  %v10512_v50 = vsel %vm1997_vm3, %v2039_v19, %v2041_v40  ;;  %v10521_v54 = vld [vmem:[#allocation2 + $0x8] sm:$0xff]  ;;  %8205 = vmatmul.msk.bf16.vlgmr.msra.gmra.mxu3 %vm578_vm0, %v9685_v63  ;;  %s332_s24 = scalar_lea.vmem %s12414_s9, %s8037_s19 }
 0x20a   : > { %12457 = vst [vmem:[#allocation37_spill] sm:$0xff] %v10512_v50  ;;  %v1909_v51 = vpop.f32.mrf.mxu2  ;;  %v10517_v20 = vsel %vm1997_vm3, %v3728_v58, %v3730_v10 }
 0x20b   : > { %v891_v47 = vmax.f32 %v802_v39, 0.0  ;;  %v1436_v30 = vsel %vm1256_vm2, %v1431_v16, %v1435_v1  ;;  %12458 = vst [vmem:[#allocation38_spill] sm:$0xff] %v10517_v20 }
 0x20c   : > { %8351 = vmatmul.msk.bf16.gmra.mxu1 %vm578_vm0, %v1436_v30 }
 0x20d   : > { %v955_v0 = vpack.c.bf16 %v891_v47, %v891_v47 }
 0x20f   : > { %1020 = vst.msk [vmem:[#allocation2 + $0xbc] sm:$0xf] %vm972_vm1, %v955_v0  ;;  %v1437_v0 = vshrl.u32 %v9709_v24, 16 }
 0x210   : > { %v804_v52 = vpop.f32.mrf.mxu0 }
 0x211   : > { %v805_v9 = vadd.f32 %v10444_v41, %v804_v52  ;;  %v1674_v17 = vpop.f32.mrf.mxu1 }
 0x212   : > { %v1911_v39 = vpop.f32.mrf.mxu2  ;;  %v1439_v17 = vor.u32 %v1437_v0, %v1435_v1 }
 0x213   : > { %v892_v19 = vmax.f32 %v805_v9, 0.0  ;;  %8369 = vmatmul.msk.bf16.gmra.mxu0 %vm578_vm0, %v10521_v54 }
 0x215   : > { %v956_v28 = vpack.c.bf16 %v892_v19, %v892_v19 }
 0x216   : > { %v9710_v16 = vld [vmem:[#allocation2 + $0xb8] sm:$0xff] }
 0x217   : > { %1021 = vst.msk [vmem:[#allocation2 + $0xc0] sm:$0xf] %vm972_vm1, %v956_v28  ;;  %8391 = vmatmul.msk.bf16.gmra.mxu2 %vm578_vm0, %v9710_v16  ;;  %v1441_v47 = vshll.u32 %v9710_v16, 16  ;;  %v9774_v51 = vld [vmem:[#allocation2 + $0xb8] sm:$0xff]  ;;  %v2043_v30 = vrot.slane %v9710_v16, 1 }
 0x218   : > { %v806_v58 = vpop.f32.mrf.mxu0  ;;  %v3732_v28 = vrot.slane %v9774_v51, 1 }
 0x219   : > { %v807_v52 = vadd.f32 %v10444_v41, %v806_v58  ;;  %v1677_v9 = vpop.f32.mrf.mxu1  ;;  %v1443_v20 = vrot.slane %v1441_v47, 1  ;;  %v10531_v39 = vsel %vm1997_vm3, %v2041_v40, %v2043_v30  ;;  %v10540_v40 = vld [vmem:[#allocation2 + $0x10] sm:$0xff] }
 0x21a   : > { %12459 = vst [vmem:[#allocation39_spill] sm:$0xff] %v10531_v39  ;;  %v1914_v22 = vpop.f32.mrf.mxu2  ;;  %v10536_v24 = vsel %vm1997_vm3, %v3730_v10, %v3732_v28  ;;  %v1445_v10 = vshrl.u32 %v9710_v16, 16 }
 0x21b   : > { %v893_v19 = vmax.f32 %v807_v52, 0.0  ;;  %v1444_v63 = vsel %vm1256_vm2, %v1439_v17, %v1443_v20  ;;  %12460 = vst [vmem:[#allocation40_spill] sm:$0xff] %v10536_v24 }
 0x21c   : > { %8352 = vmatmul.msk.bf16.gmra.mxu1 %vm578_vm0, %v1444_v63 }
 0x21d   : > { %v957_v13 = vpack.c.bf16 %v893_v19, %v893_v19 }
 0x21f   : > { %1022 = vst.msk [vmem:[#allocation2 + $0xc4] sm:$0xf] %vm972_vm1, %v957_v13 }
 0x220   : > { %v809_v58 = vpop.f32.mrf.mxu0 }
 0x221   : > { %v810_v1 = vadd.f32 %v10444_v41, %v809_v58  ;;  %v1679_v0 = vpop.f32.mrf.mxu1 }
 0x222   : > { %v1916_v22 = vpop.f32.mrf.mxu2 }
 0x223   : > { %v894_v47 = vmax.f32 %v810_v1, 0.0  ;;  %8370 = vmatmul.msk.bf16.gmra.mxu0 %vm578_vm0, %v10540_v40  ;;  %v1447_v1 = vor.u32 %v1445_v10, %v1443_v20  ;;  %v9816_v22 = vld [vmem:[%s12408_s3 + $0x68] sm:$0xff]  ;;  %v9815_v20 = vld [vmem:[%s12408_s3 + $0x60] sm:$0xff] }
 0x224   : > { %4387 = vmatpush.bf16.msra.mxu0 %v9816_v22 }
 0x225   : > { %v958_v51 = vpack.c.bf16 %v894_v47, %v894_v47 }
 0x226   : > { %v9711_v52 = vld [vmem:[#allocation2 + $0xc0] sm:$0xff] }
 0x227   : > { %1023 = vst.msk [vmem:[#allocation2 + $0xc8] sm:$0xf] %vm972_vm1, %v958_v51  ;;  %8392 = vmatmul.msk.bf16.gmra.mxu2 %vm578_vm0, %v9711_v52  ;;  %v1449_v13 = vshll.u32 %v9711_v52, 16  ;;  %v9775_v17 = vld [vmem:[#allocation2 + $0xc0] sm:$0xff]  ;;  %v2045_v19 = vrot.slane %v9711_v52, 1  ;;  %v1453_v22 = vshrl.u32 %v9711_v52, 16 }
 0x228   : > { %v811_v9 = vpop.f32.mrf.mxu0  ;;  %v3734_v16 = vrot.slane %v9775_v17, 1  ;;  %4388 = vmatpush.bf16.msra.mxu0 %v9815_v20 }
 0x229   : > { %v812_v63 = vadd.f32 %v10444_v41, %v811_v9  ;;  %v1682_v58 = vpop.f32.mrf.mxu1  ;;  %v1451_v0 = vrot.slane %v1449_v13, 1  ;;  %v10551_v47 = vsel %vm1997_vm3, %v2043_v30, %v2045_v19 }
 0x22a   : > { %12461 = vst [vmem:[#allocation41_spill] sm:$0xff] %v10551_v47  ;;  %v1919_v24 = vpop.f32.mrf.mxu2  ;;  %v10559_v9 = vsel %vm1997_vm3, %v3732_v28, %v3734_v16  ;;  %v10563_v58 = vld [vmem:[#allocation2 + $0x18] sm:$0xff] }
 0x22b   : > { %v895_v51 = vmax.f32 %v812_v63, 0.0  ;;  %v1452_v39 = vsel %vm1256_vm2, %v1447_v1, %v1451_v0  ;;  %12462 = vst [vmem:[#allocation42_spill] sm:$0xff] %v10559_v9  ;;  %v1455_v9 = vor.u32 %v1453_v22, %v1451_v0 }
 0x22c   : > { %8353 = vmatmul.msk.bf16.gmra.mxu1 %vm578_vm0, %v1452_v39 }
 0x22d   : > { %v959_v50 = vpack.c.bf16 %v895_v51, %v895_v51 }
 0x22f   : > { %1024 = vst.msk [vmem:[#allocation2 + $0xcc] sm:$0xf] %vm972_vm1, %v959_v50  ;;  %v9721_v50 = vld [vmem:[%s12408_s3 + $0x28] sm:$0xff] }
 0x230   : > { %v814_v30 = vpop.f32.mrf.mxu0  ;;  %2165 = vmatpush.bf16.msra.mxu3 %v9721_v50 }
 0x231   : > { %v815_v10 = vadd.f32 %v10444_v41, %v814_v30  ;;  %v1684_v13 = vpop.f32.mrf.mxu1 }
 0x232   : > { %v1921_v39 = vpop.f32.mrf.mxu2 }
 0x233   : > { %v896_v63 = vmax.f32 %v815_v10, 0.0  ;;  %8371 = vmatmul.msk.bf16.gmra.mxu0 %vm578_vm0, %v10563_v58 }
 0x235   : > { %v960_v17 = vpack.c.bf16 %v896_v63, %v896_v63 }
 0x236   : > { %v9712_v1 = vld [vmem:[#allocation2 + $0xc8] sm:$0xff] }
 0x237   : > { %1025 = vst.msk [vmem:[#allocation2 + $0xd0] sm:$0xf] %vm972_vm1, %v960_v17  ;;  %8393 = vmatmul.msk.bf16.gmra.mxu2 %vm578_vm0, %v9712_v1  ;;  %v1457_v51 = vshll.u32 %v9712_v1, 16  ;;  %v9776_v20 = vld [vmem:[#allocation2 + $0xc8] sm:$0xff]  ;;  %v2047_v30 = vrot.slane %v9712_v1, 1 }
 0x238   : > { %v816_v28 = vpop.f32.mrf.mxu0  ;;  %v3736_v33 = vrot.slane %v9776_v20, 1  ;;  %v1461_v20 = vshrl.u32 %v9712_v1, 16 }
 0x239   : > { %v817_v10 = vadd.f32 %v10444_v41, %v816_v28  ;;  %v1687_v13 = vpop.f32.mrf.mxu1  ;;  %v1459_v63 = vrot.slane %v1457_v51, 1  ;;  %v10574_v47 = vsel %vm1997_vm3, %v2045_v19, %v2047_v30 }
 0x23a   : > { %12463 = vst [vmem:[#allocation43_spill] sm:$0xff] %v10574_v47  ;;  %v10576_v55 = vadd.f32 %v1919_v24, %v1687_v13  ;;  %v1924_v59 = vpop.f32.mrf.mxu2  ;;  %v10581_v37 = vsel %vm1997_vm3, %v3734_v16, %v3736_v33  ;;  %v10587_v24 = vld [vmem:[#allocation2 + $0x20] sm:$0xff] }
 0x23b   : > { %v897_v17 = vmax.f32 %v817_v10, 0.0  ;;  %v1460_v61 = vsel %vm1256_vm2, %v1455_v9, %v1459_v63  ;;  %12465 = vst [vmem:[#allocation45_spill] sm:$0xff] %v10581_v37 }
 0x23c   : > { %12464 = vst [vmem:[#allocation44_spill] sm:$0xff] %v10576_v55  ;;  %8354 = vmatmul.msk.bf16.gmra.mxu1 %vm578_vm0, %v1460_v61 }
 0x23d   : > { %v961_v52 = vpack.c.bf16 %v897_v17, %v897_v17 }
 0x23f   : > { %1026 = vst.msk [vmem:[#allocation2 + $0xd4] sm:$0xf] %vm972_vm1, %v961_v52 }
 0x240   : > { %v819_v0 = vpop.f32.mrf.mxu0 }
 0x241   : > { %v820_v50 = vadd.f32 %v10444_v41, %v819_v0  ;;  %v1689_v19 = vpop.f32.mrf.mxu1  ;;  %v1463_v0 = vor.u32 %v1461_v20, %v1459_v63 }
 0x242   : > { %v10585_v22 = vadd.f32 %v1921_v39, %v1689_v19  ;;  %v1926_v9 = vpop.f32.mrf.mxu2 }
 0x243   : > { %v898_v28 = vmax.f32 %v820_v50, 0.0  ;;  %8372 = vmatmul.msk.bf16.gmra.mxu0 %vm578_vm0, %v10587_v24 }
 0x244   : > { %12466 = vst [vmem:[#allocation46_spill] sm:$0xff] %v10585_v22 }
 0x245   : > { %v962_v51 = vpack.c.bf16 %v898_v28, %v898_v28 }
 0x246   : > { %v9713_v61 = vld [vmem:[#allocation2 + $0xd0] sm:$0xff] }
 0x247   : > { %1027 = vst.msk [vmem:[#allocation2 + $0xd8] sm:$0xf] %vm972_vm1, %v962_v51  ;;  %8394 = vmatmul.msk.bf16.gmra.mxu2 %vm578_vm0, %v9713_v61  ;;  %v1465_v10 = vshll.u32 %v9713_v61, 16  ;;  %v9777_v13 = vld [vmem:[#allocation2 + $0xd0] sm:$0xff]  ;;  %v2049_v17 = vrot.slane %v9713_v61, 1  ;;  %v9722_v51 = vld [vmem:[#allocation2 + $0x8] sm:$0xff] }
 0x248   : > { %v821_v16 = vpop.f32.mrf.mxu0  ;;  %v3738_v47 = vrot.slane %v9777_v13, 1 }
 0x249   : > { %v822_v39 = vadd.f32 %v10444_v41, %v821_v16  ;;  %v1692_v52 = vpop.f32.mrf.mxu1  ;;  %v1467_v50 = vrot.slane %v1465_v10, 1  ;;  %v10595_v19 = vsel %vm1997_vm3, %v2047_v30, %v2049_v17 }
 0x24a   : > { %12467 = vst [vmem:[#allocation47_spill] sm:$0xff] %v10595_v19  ;;  %v10597_v28 = vadd.f32 %v1924_v59, %v1692_v52  ;;  %v1929_v22 = vpop.f32.mrf.mxu2  ;;  %v10603_v16 = vsel %vm1997_vm3, %v3736_v33, %v3738_v47  ;;  %v9786_v59 = vld [vmem:[#allocation2 + $0x10] sm:$0xff]  ;;  %v1469_v33 = vshrl.u32 %v9713_v61, 16 }
 0x24b   : > { %v899_v37 = vmax.f32 %v822_v39, 0.0  ;;  %v1468_v55 = vsel %vm1256_vm2, %v1463_v0, %v1467_v50  ;;  %12469 = vst [vmem:[#allocation49_spill] sm:$0xff] %v10603_v16 }
 0x24c   : > { %12468 = vst [vmem:[#allocation48_spill] sm:$0xff] %v10597_v28  ;;  %8355 = vmatmul.msk.bf16.vlgmr.msrb.gmra.mxu3 %vm578_vm0, %v1468_v55  ;;  %8568 = vmatmul.msk.bf16.vlgmr.msrb.gmra.mxu1 %vm578_vm0, %v9722_v51 }
 0x24d   : > { %v963_v1 = vpack.c.bf16 %v899_v37, %v899_v37 }
 0x24f   : > { %1028 = vst.msk [vmem:[#allocation2 + $0xdc] sm:$0xf] %vm972_vm1, %v963_v1 }
 0x250   : > { %v824_v30 = vpop.f32.mrf.mxu0 }
 0x251   : > { %v825_v63 = vadd.f32 %v10444_v41, %v824_v30  ;;  %v1694_v20 = vpop.f32.mrf.mxu1 }
 0x252   : > { %v10607_v39 = vadd.f32 %v1926_v9, %v1694_v20  ;;  %v1931_v37 = vpop.f32.mrf.mxu2 }
 0x253   : > { %v900_v10 = vmax.f32 %v825_v63, 0.0  ;;  %8926 = vmatmul.msk.bf16.vlgmr.msra.gmra.mxu0 %vm578_vm0, %v9786_v59  ;;  %v1471_v63 = vor.u32 %v1469_v33, %v1467_v50 }
 0x254   : > { %12470 = vst [vmem:[#allocation50_spill] sm:$0xff] %v10607_v39 }
 0x255   : > { %v964_v13 = vpack.c.bf16 %v900_v10, %v900_v10 }
 0x256   : > { %v9714_v55 = vld [vmem:[#allocation2 + $0xd8] sm:$0xff] }
 0x257   : > { %1029 = vst.msk [vmem:[#allocation2 + $0xe0] sm:$0xf] %vm972_vm1, %v964_v13  ;;  %8395 = vmatmul.msk.bf16.gmra.mxu2 %vm578_vm0, %v9714_v55  ;;  %v1473_v0 = vshll.u32 %v9714_v55, 16  ;;  %v9778_v51 = vld [vmem:[#allocation2 + $0xd8] sm:$0xff]  ;;  %v2051_v1 = vrot.slane %v9714_v55, 1  ;;  %v9723_v13 = vld [vmem:[#allocation2 + $0x10] sm:$0xff] }
 0x258   : > { %v826_v52 = vpop.f32.mrf.mxu0  ;;  %v3740_v19 = vrot.slane %v9778_v51, 1 }
 0x259   : > { %v827_v30 = vadd.f32 %v10444_v41, %v826_v52  ;;  %v1697_v16 = vpop.f32.mrf.mxu1  ;;  %v1475_v9 = vrot.slane %v1473_v0, 1  ;;  %v10614_v20 = vsel %vm1997_vm3, %v2049_v17, %v2051_v1 }
 0x25a   : > { %12471 = vst [vmem:[#allocation51_spill] sm:$0xff] %v10614_v20  ;;  %v10616_v10 = vadd.f32 %v1929_v22, %v1697_v16  ;;  %v1934_v39 = vpop.f32.mrf.mxu2  ;;  %v10622_v52 = vsel %vm1997_vm3, %v3738_v47, %v3740_v19  ;;  %v9720_v22 = vld [vmem:[%s12408_s3 + $0x20] sm:$0xff]  ;;  %v9787_v16 = vld [vmem:[#allocation2 + $0x18] sm:$0xff] }
 0x25b   : > { %v901_v59 = vmax.f32 %v827_v30, 0.0  ;;  %v1476_v28 = vsel %vm1256_vm2, %v1471_v63, %v1475_v9  ;;  %12473 = vst [vmem:[#allocation53_spill] sm:$0xff] %v10622_v52  ;;  %2166 = vmatpush.bf16.msra.mxu3 %v9720_v22 }
 0x25c   : > { %12472 = vst [vmem:[#allocation52_spill] sm:$0xff] %v10616_v10  ;;  %8356 = vmatmul.msk.bf16.gmra.mxu3 %vm578_vm0, %v1476_v28  ;;  %8569 = vmatmul.msk.bf16.gmra.mxu1 %vm578_vm0, %v9723_v13 }
 0x25d   : > { %v965_v61 = vpack.c.bf16 %v901_v59, %v901_v59  ;;  %v1477_v59 = vshrl.u32 %v9714_v55, 16 }
 0x25f   : > { %1030 = vst.msk [vmem:[#allocation2 + $0xe4] sm:$0xf] %vm972_vm1, %v965_v61 }
 0x260   : > { %v829_v17 = vpop.f32.mrf.mxu0 }
 0x261   : > { %v830_v50 = vadd.f32 %v10444_v41, %v829_v17  ;;  %v1699_v33 = vpop.f32.mrf.mxu1 }
 0x262   : > { %v10629_v51 = vadd.f32 %v1931_v37, %v1699_v33  ;;  %v1936_v28 = vpop.f32.mrf.mxu2 }
 0x263   : > { %v902_v0 = vmax.f32 %v830_v50, 0.0  ;;  %8927 = vmatmul.msk.bf16.gmra.mxu0 %vm578_vm0, %v9787_v16  ;;  %v1479_v50 = vor.u32 %v1477_v59, %v1475_v9 }
 0x264   : > { %12474 = vst [vmem:[#allocation54_spill] sm:$0xff] %v10629_v51 }
 0x265   : > { %v966_v47 = vpack.c.bf16 %v902_v0, %v902_v0 }
 0x266   : > { %v9715_v30 = vld [vmem:[#allocation2 + $0xe0] sm:$0xff] }
 0x267   : > { %1031 = vst.msk [vmem:[#allocation2 + $0xe8] sm:$0xf] %vm972_vm1, %v966_v47  ;;  %8396 = vmatmul.msk.bf16.gmra.mxu2 %vm578_vm0, %v9715_v30  ;;  %v1481_v13 = vshll.u32 %v9715_v30, 16  ;;  %v9779_v61 = vld [vmem:[#allocation2 + $0xe0] sm:$0xff]  ;;  %v2053_v17 = vrot.slane %v9715_v30, 1  ;;  %v9724_v47 = vld [vmem:[#allocation2 + $0x18] sm:$0xff] }
 0x268   : > { %v831_v63 = vpop.f32.mrf.mxu0  ;;  %v3742_v20 = vrot.slane %v9779_v61, 1 }
 0x269   : > { %v832_v22 = vadd.f32 %v10444_v41, %v831_v63  ;;  %v1702_v52 = vpop.f32.mrf.mxu1  ;;  %v1483_v37 = vrot.slane %v1481_v13, 1  ;;  %v10636_v33 = vsel %vm1997_vm3, %v2051_v1, %v2053_v17 }
 0x26a   : > { %12475 = vst [vmem:[#allocation55_spill] sm:$0xff] %v10636_v33  ;;  %v10638_v0 = vadd.f32 %v1934_v39, %v1702_v52  ;;  %v1939_v51 = vpop.f32.mrf.mxu2  ;;  %v10644_v63 = vsel %vm1997_vm3, %v3740_v19, %v3742_v20  ;;  %v9788_v52 = vld [vmem:[#allocation2 + $0x20] sm:$0xff] }
 0x26b   : > { %v903_v16 = vmax.f32 %v832_v22, 0.0  ;;  %v1484_v10 = vsel %vm1256_vm2, %v1479_v50, %v1483_v37  ;;  %12477 = vst [vmem:[#allocation57_spill] sm:$0xff] %v10644_v63 }
 0x26c   : > { %12476 = vst [vmem:[#allocation56_spill] sm:$0xff] %v10638_v0  ;;  %8357 = vmatmul.msk.bf16.gmra.mxu3 %vm578_vm0, %v1484_v10  ;;  %8570 = vmatmul.msk.bf16.gmra.mxu1 %vm578_vm0, %v9724_v47  ;;  %v9725_v0 = vld [vmem:[#allocation2 + $0x20] sm:$0xff] }
 0x26d   : > { %v967_v55 = vpack.c.bf16 %v903_v16, %v903_v16 }
 0x26e   : > { %v1095_v1 = vld [vmem:[#allocation2 + $0xe8] sm:$0xf] }
 0x26f   : > { %1032 = vst.msk [vmem:[#allocation2 + $0xec] sm:$0xf] %vm972_vm1, %v967_v55  ;;  %v1224_v13 = vunpack.c.l.b16 %v1095_v1 }
 0x270   : > { %v834_v9 = vpop.f32.mrf.mxu0 }
 0x271   : > { %v835_v39 = vadd.f32 %v10444_v41, %v834_v9  ;;  %v1704_v59 = vpop.f32.mrf.mxu1  ;;  %v1756_v16 = vpack.c.b16 %v1224_v13, %v1224_v13 }
 0x272   : > { %v10648_v50 = vadd.f32 %v1936_v28, %v1704_v59  ;;  %v1941_v10 = vpop.f32.mrf.mxu2  ;;  %v9945_v28 = vld [vmem:[#allocation2 + $0x8] sm:$0xff]  }
 0x273   : > { %v904_v22 = vmax.f32 %v835_v39, 0.0  ;;  %8928 = vmatmul.msk.bf16.gmra.mxu0 %vm578_vm0, %v9788_v52  ;;  %v3125_v33 = vshll.u32 %v9945_v28, 16 }
 0x274   : > { %12478 = vst [vmem:[#allocation58_spill] sm:$0xff] %v10648_v50 }
 0x275   : > { %v968_v61 = vpack.c.bf16 %v904_v22, %v904_v22 }
 0x276   : > { %v1100_v47 = vld [vmem:[#allocation2 + $0xec] sm:$0x1] }
 0x277   : > { %1033 = vst.msk [vmem:[#allocation2 + $0xf0] sm:$0xf] %vm972_vm1, %v968_v61  ;;  %v1225_v19 = vunpack.c.l.b16 %v1100_v47  ;;  %v10652_v55 = vld [vmem:[#allocation2 + $0xe8] sm:$0xff]  ;;  %8397 = vmatmul.msk.bf16.gmra.mxu2 %vm578_vm0, %v1756_v16  ;;  %v1485_v61 = vshrl.u32 %v9715_v30, 16 }
 0x278   : > { %12479 = vst [vmem:[#allocation59_spill] sm:$0xff] %v10652_v55  ;;  %v836_v63 = vpop.f32.mrf.mxu0  ;;  %v12418_v52 = vrot.slane %v10652_v55, 1 }
 0x279   : > { %v837_v9 = vadd.f32 %v10444_v41, %v836_v63  ;;  %v10656_v1 = vpack.c.b16 %v1225_v19, %v1224_v13  ;;  %v1707_v39 = vpop.f32.mrf.mxu1  ;;  %v1487_v63 = vor.u32 %v1485_v61, %v1483_v37 }
 0x27a   : > { %v10659_v22 = vadd.f32 %v1939_v51, %v1707_v39  ;;  %v1944_v50 = vpop.f32.mrf.mxu2  ;;  %v10667_v19 = vsel %vm1997_vm3, %v3742_v20, %v12418_v52  ;;  %v9785_v20 = vld [vmem:[%s12408_s3 + $0x58] sm:$0xff] }
 0x27b   : > { %12480 = vst [vmem:[#allocation60_spill] sm:$0xff] %v10656_v1  ;;  %v905_v59 = vmax.f32 %v837_v9, 0.0  ;;  %v1489_v47 = vshll.u32 %v10656_v1, 16  ;;  %v12419_v25 = vrot.slane %v10656_v1, 1  ;;  %v9982_v9 = vld [vmem:[#allocation2 + $0x10] sm:$0xff]  ;;  %3856 = vmatpush.bf16.msrb.mxu3 %v9785_v20 }
 0x27c   : > { %12481 = vst [vmem:[#allocation61_spill] sm:$0xff] %v10659_v22  ;;  %8571 = vmatmul.msk.bf16.gmra.mxu1 %vm578_vm0, %v9725_v0  ;;  %v3130_v39 = vshll.u32 %v9982_v9, 16  ;;  %v9789_v0 = vld [vmem:[#allocation2 + $0x28] sm:$0xff] }
 0x27d   : > { %v969_v16 = vpack.c.bf16 %v905_v59, %v905_v59  ;;  %v1491_v13 = vrot.slane %v1489_v47, 1  ;;  %12482 = vst [vmem:[#allocation62_spill] sm:$0xff] %v10667_v19  ;;  %v10672_v51 = vsel %vm1997_vm3, %v2053_v17, %v12419_v25  ;;  %v3127_v59 = vrot.slane %v3125_v33, 1  ;;  %v9726_v22 = vld [vmem:[#allocation2 + $0x28] sm:$0xff] }
 0x27e   : > { %12483 = vst [vmem:[#allocation63_spill] sm:$0xff] %v10672_v51 }
 0x27f   : > { %1034 = vst.msk [vmem:[#allocation2 + $0xf4] sm:$0xf] %vm972_vm1, %v969_v16  ;;  %v1492_v30 = vsel %vm1256_vm2, %v1487_v63, %v1491_v13  ;;  %v3123_v16 = vshrl.u32 %v9945_v28, 16  ;;  %v3132_v63 = vrot.slane %v3130_v39, 1  ;;  %v9983_v28 = vld [vmem:[#allocation2 + $0x18] sm:$0xff] }
 0x280   : > { %8358 = vmatmul.msk.bf16.gmra.mxu3 %vm578_vm0, %v1492_v30  ;;  %v10677_v37 = vpop.f32.mrf.mxu0  ;;  %v3138_v39 = vshll.u32 %v9983_v28, 16 }
 0x281   : > { %v1709_v61 = vpop.f32.mrf.mxu1  ;;  %v3128_v52 = vor.u32 %v3127_v59, %v3123_v16  ;;  %v3134_v16 = vshrl.u32 %v9982_v9, 16  ;;  %v1999_v9 = vrot.slane %v10521_v54, 1 }
 0x282   : > { %v10682_v47 = vadd.f32 %v1941_v10, %v1709_v61  ;;  %v1946_v17 = vpop.f32.mrf.mxu2  ;;  %v1493_v10 = vshrl.u32 %v10656_v1, 16 }
 0x283   : > { %8929 = vmatmul.msk.bf16.gmra.mxu0 %vm578_vm0, %v9789_v0  ;;  %v3133_v30 = vsel %vm1256_vm2, %v3128_v52, %v3132_v63  ;;  %v9790_v52 = vld [vmem:[#allocation2 + $0x30] sm:$0xff] }
 0x284   : > { %12484 = vst [vmem:[#allocation64_spill] sm:$0xff] %v10682_v47  ;;  %v1495_v0 = vor.u32 %v1493_v10, %v1491_v13  ;;  %v9943_v10 = vld [vmem:[#allocation2] sm:$0xe] }
 0x287   : > { %8726 = vmatmul.msk.bf16.vlgmr.msrb.gmra.mxu2 %vm578_vm0, %v3133_v30  ;;  %v3140_v30 = vrot.slane %v3138_v39, 1 }
 0x288   : > { %v10686_v25 = vpop.f32.mrf.mxu0 }
 0x289   : > { %v1712_v33 = vpop.f32.mrf.mxu1 }
 0x28a   : > { %v10689_v55 = vadd.f32 %v1944_v50, %v1712_v33  ;;  %v1949_v19 = vpop.f32.mrf.mxu2  ;;  %v3136_v33 = vor.u32 %v3134_v16, %v3132_v63 }
 0x28c   : > { %12485 = vst [vmem:[#allocation65_spill] sm:$0xff] %v10689_v55  ;;  %8572 = vmatmul.msk.bf16.gmra.mxu1 %vm578_vm0, %v9726_v22  ;;  %v9942_v55 = vld [vmem:[#allocation2] sm:$0xf0]  ;;  %v3141_v22 = vsel %vm1256_vm2, %v3136_v33, %v3140_v30  ;;  %v839_v1 = vpop.f32.mrf.mxu3 }
 0x290   : > { %8359 = vmatmul.msk.bf16.gmra.mxu3 %vm578_vm0, %v1495_v0  ;;  %v10694_v59 = vpop.f32.mrf.mxu0  ;;  %v9944_v0 = vor.u32 %v9943_v10, %v9942_v55 }
 0x291   : > { %v1714_v20 = vpop.f32.mrf.mxu1 }
 0x292   : > { %v10696_v61 = vadd.f32 %v1946_v17, %v1714_v20  ;;  %v1951_v50 = vpop.f32.mrf.mxu2  ;;  %v840_v17 = vadd.f32 %v10444_v41, %v839_v1  ;;  %v1998_v39 = vrot.slane %v9944_v0, 1  ;;  %v9791_v1 = vld [vmem:[#allocation2 + $0x38] sm:$0xff]  ;;  %v3142_v0 = vshrl.u32 %v9983_v28, 16  ;;  %v9985_v28 = vld [vmem:[#allocation2 + $0x28] sm:$0xff] }
 0x293   : > { %8930 = vmatmul.msk.bf16.gmra.mxu0 %vm578_vm0, %v9790_v52 }
 0x294   : > { %12486 = vst [vmem:[#allocation66_spill] sm:$0xff] %v10696_v61  ;;  %v9727_v61 = vld [vmem:[#allocation2 + $0x30] sm:$0xff]  ;;  %v906_v63 = vmax.f32 %v840_v17, 0.0  ;;  %v2000_v33 = vsel %vm1997_vm3, %v1998_v39, %v1999_v9  ;;  %v3144_v39 = vor.u32 %v3142_v0, %v3140_v30  ;;  %v3154_v30 = vshll.u32 %v9985_v28, 16 }
 0x296   : > { %v970_v16 = vpack.c.bf16 %v906_v63, %v906_v63 }
 0x297   : > { %8727 = vmatmul.msk.bf16.gmra.mxu2 %vm578_vm0, %v3141_v22  ;;  %v9984_v22 = vld [vmem:[#allocation2 + $0x20] sm:$0xff] }
 0x298   : > { %v10700_v13 = vpop.f32.mrf.mxu0  ;;  %v3146_v51 = vshll.u32 %v9984_v22, 16  ;;  %1035 = vst.msk [vmem:[#allocation2 + $0xf8] sm:$0xf] %vm972_vm1, %v970_v16  ;;  %v3150_v0 = vshrl.u32 %v9984_v22, 16 }
 0x299   : > { %v1717_v47 = vpop.f32.mrf.mxu1 }
 0x29a   : > { %v10704_v20 = vadd.f32 %v1949_v19, %v1717_v47  ;;  %v1954_v52 = vpop.f32.mrf.mxu2  ;;  %v841_v19 = vpop.f32.mrf.mxu3  ;;  %v3148_v17 = vrot.slane %v3146_v51, 1 }
 0x29b   : > { %v842_v54 = vadd.f32 %v10444_v41, %v841_v19  ;;  %v9728_v19 = vld [vmem:[#allocation2 + $0x38] sm:$0xff] }
 0x29c   : > { %12487 = vst [vmem:[#allocation67_spill] sm:$0xff] %v10704_v20  ;;  %8573 = vmatmul.msk.bf16.gmra.mxu1 %vm578_vm0, %v9727_v61  ;;  %v3149_v5 = vsel %vm1256_vm2, %v3144_v39, %v3148_v17 }
 0x29d   : > { %v907_v63 = vmax.f32 %v842_v54, 0.0 }
 0x29f   : > { %v971_v20 = vpack.c.bf16 %v907_v63, %v907_v63  ;;  %v3156_v63 = vrot.slane %v3154_v30, 1  ;;  %v9729_v30 = vld [vmem:[#allocation2 + $0x40] sm:$0xff] }
 0x2a0   : > { %v10709_v55 = vpop.f32.mrf.mxu0  ;;  %8410 = vmatmul.msk.bf16.vlgmr.msra.gmra.mxu3 %vm578_vm0, %v2000_v33 }
 0x2a1   : > { %v1719_v47 = vpop.f32.mrf.mxu1  ;;  %1036 = vst.msk [vmem:[#allocation2 + $0xfc] sm:$0xf] %vm972_vm1, %v971_v20 }
 0x2a2   : > { %v10714_v10 = vadd.f32 %v1951_v50, %v1719_v47  ;;  %v1956_v61 = vpop.f32.mrf.mxu2 }
 0x2a3   : > { %8931 = vmatmul.msk.bf16.gmra.mxu0 %vm578_vm0, %v9791_v1  ;;  %v2001_v1 = vrot.slane %v10540_v40, 1  ;;  %v9849_v40 = vld [vmem:[%s12408_s3 + $0x88] sm:$0xff] }
 0x2a4   : > { %12488 = vst [vmem:[#allocation68_spill] sm:$0xff] %v10714_v10  ;;  %5547 = vmatpush.bf16.msra.mxu2 %v9849_v40  ;;  %v2005_v10 = vrot.slane %v10587_v24, 1 }
 0x2a5   : > { %v2002_v51 = vsel %vm1997_vm3, %v1999_v9, %v2001_v1  ;;  %v3152_v9 = vor.u32 %v3150_v0, %v3148_v17 }
 0x2a7   : > { %8728 = vmatmul.msk.bf16.gmra.mxu2 %vm578_vm0, %v3149_v5  ;;  %v9792_v5 = vld [vmem:[#allocation2 + $0x40] sm:$0xff]  ;;  %v3157_v39 = vsel %vm1256_vm2, %v3152_v9, %v3156_v63  ;;  %v9793_v9 = vld [vmem:[#allocation2 + $0x48] sm:$0xff] }
 0x2a8   : > { %v10718_v33 = vpop.f32.mrf.mxu0 }
 0x2a9   : > { %v1722_v16 = vpop.f32.mrf.mxu1 }
 0x2aa   : > { %v10722_v41 = vadd.f32 %v1954_v52, %v1722_v16  ;;  %v1959_v50 = vpop.f32.mrf.mxu2 }
 0x2ac   : > { %12489 = vst [vmem:[#allocation69_spill] sm:$0xff] %v10722_v41  ;;  %8574 = vmatmul.msk.bf16.gmra.mxu1 %vm578_vm0, %v9728_v19 }
 0x2b0   : > { %v10727_v47 = vpop.f32.mrf.mxu0  ;;  %8411 = vmatmul.msk.bf16.gmra.mxu3 %vm578_vm0, %v2002_v51 }
 0x2b1   : > { %v1724_v54 = vpop.f32.mrf.mxu1 }
 0x2b2   : > { %v10730_v20 = vadd.f32 %v1956_v61, %v1724_v54  ;;  %v1961_v52 = vpop.f32.mrf.mxu2  ;;  %v9847_v61 = vld [vmem:[%s12408_s3 + $0x78] sm:$0xff]  ;;  %v9986_v54 = vld [vmem:[#allocation2 + $0x30] sm:$0xff] }
 0x2b3   : > { %8932 = vmatmul.msk.bf16.gmra.mxu0 %vm578_vm0, %v9792_v5  ;;  %v2003_v5 = vrot.slane %v10563_v58, 1  ;;  %5160 = vmatpush.bf16.msra.mxu1 %v9847_v61  ;;  %v3162_v0 = vshll.u32 %v9986_v54, 16  ;;  %v3166_v24 = vshrl.u32 %v9986_v54, 16 }
 0x2b4   : > { %12490 = vst [vmem:[#allocation70_spill] sm:$0xff] %v10730_v20 }
 0x2b5   : > { %v2004_v17 = vsel %vm1997_vm3, %v2001_v1, %v2003_v5  ;;  %v3164_v58 = vrot.slane %v3162_v0, 1 }
 0x2b7   : > { %8729 = vmatmul.msk.bf16.gmra.mxu2 %vm578_vm0, %v3157_v39 }
 0x2b8   : > { %v10737_v16 = vpop.f32.mrf.mxu0 }
 0x2b9   : > { %v1727_v19 = vpop.f32.mrf.mxu1 }
 0x2ba   : > { %v10743_v51 = vadd.f32 %v1959_v50, %v1727_v19  ;;  %v1964_v22 = vpop.f32.mrf.mxu2  ;;  %v3158_v19 = vshrl.u32 %v9985_v28, 16 }
 0x2bc   : > { %12491 = vst [vmem:[#allocation71_spill] sm:$0xff] %v10743_v51  ;;  %8575 = vmatmul.msk.bf16.gmra.mxu1 %vm578_vm0, %v9729_v30  ;;  %v3160_v61 = vor.u32 %v3158_v19, %v3156_v63  ;;  %v9794_v19 = vld [vmem:[#allocation2 + $0x50] sm:$0xff] }
 0x2be   : > { %v3165_v30 = vsel %vm1256_vm2, %v3160_v61, %v3164_v58 }
 0x2c0   : > { %v10748_v40 = vpop.f32.mrf.mxu0  ;;  %8412 = vmatmul.msk.bf16.gmra.mxu3 %vm578_vm0, %v2004_v17  ;;  %v9730_v17 = vld [vmem:[#allocation2 + $0x48] sm:$0xff] }
 0x2c1   : > { %v1729_v39 = vpop.f32.mrf.mxu1 }
 0x2c2   : > { %v10751_v20 = vadd.f32 %v1961_v52, %v1729_v39  ;;  %v1966_v50 = vpop.f32.mrf.mxu2  ;;  %v2006_v52 = vsel %vm1997_vm3, %v2003_v5, %v2005_v10 }
 0x2c3   : > { %8933 = vmatmul.msk.bf16.gmra.mxu0 %vm578_vm0, %v9793_v9  ;;  %v9987_v9 = vld [vmem:[#allocation2 + $0x38] sm:$0xff] }
 0x2c4   : > { %12492 = vst [vmem:[#allocation72_spill] sm:$0xff] %v10751_v20  ;;  %v3170_v28 = vshll.u32 %v9987_v9, 16 }
 0x2c6   : > { %v3172_v20 = vrot.slane %v3170_v28, 1 }
 0x2c7   : > { %8730 = vmatmul.msk.bf16.gmra.mxu2 %vm578_vm0, %v3165_v30 }
 0x2c8   : > { %v10755_v51 = vpop.f32.mrf.mxu0 }
 0x2c9   : > { %v10758_v1 = vpop.f32.mrf.mxu1 }
 0x2ca   : > { %v1969_v41 = vpop.f32.mrf.mxu2 }
 0x2cc   : > { %8576 = vmatmul.msk.bf16.gmra.mxu1 %vm578_vm0, %v9730_v17  ;;  %v3168_v17 = vor.u32 %v3166_v24, %v3164_v58  ;;  %v9988_v58 = vld [vmem:[#allocation2 + $0x40] sm:$0xff] }
 0x2cd   : > { %v3178_v28 = vshll.u32 %v9988_v58, 16 }
 0x2ce   : > { %v3173_v5 = vsel %vm1256_vm2, %v3168_v17, %v3172_v20 }
 0x2cf   : > { %v1732_v0 = vpop.f32.mrf.mxu3 }
 0x2d0   : > { %8413 = vmatmul.msk.bf16.gmra.mxu3 %vm578_vm0, %v2006_v52  ;;  %v10764_v63 = vpop.f32.mrf.mxu0  ;;  %v10766_v39 = vadd.f32 %v1964_v22, %v1732_v0 }
 0x2d1   : > { %12493 = vst [vmem:[#allocation73_spill] sm:$0xff] %v10764_v63  ;;  %v10768_v61 = vpop.f32.mrf.mxu1  ;;  %v9731_v63 = vld [vmem:[#allocation2 + $0x50] sm:$0xff] }
 0x2d2   : > { %12494 = vst [vmem:[#allocation74_spill] sm:$0xff] %v10766_v39  ;;  %v1971_v30 = vpop.f32.mrf.mxu2 }
 0x2d3   : > { %8934 = vmatmul.msk.bf16.gmra.mxu0 %vm578_vm0, %v9794_v19  ;;  %v12497_v19 = vrot.slane %v10184_v46, 1 }
 0x2d5   : > { %v2008_v54 = vsel %vm1997_vm3, %v2005_v10, %v12497_v19 }
 0x2d7   : > { %v1734_v31 = vpop.f32.mrf.mxu3  ;;  %8731 = vmatmul.msk.bf16.gmra.mxu2 %vm578_vm0, %v3173_v5 }
 0x2d8   : > { %v10772_v27 = vpop.f32.mrf.mxu0  ;;  %v10775_v52 = vadd.f32 %v1966_v50, %v1734_v31  ;;  %v9795_v31 = vld [vmem:[#allocation2 + $0x58] sm:$0xff] }
 0x2d9   : > { %12495 = vst [vmem:[#allocation75_spill] sm:$0xff] %v10772_v27  ;;  %v10777_v22 = vpop.f32.mrf.mxu1 }
 0x2da   : > { %12496 = vst [vmem:[#allocation76_spill] sm:$0xff] %v10775_v52  ;;  %v1974_v0 = vpop.f32.mrf.mxu2  ;;  %v3180_v52 = vrot.slane %v3178_v28, 1 }
 0x2dc   : > { %8577 = vmatmul.msk.bf16.gmra.mxu1 %vm578_vm0, %v9731_v63  ;;  %v3174_v63 = vshrl.u32 %v9987_v9, 16 }
 0x2de   : > { %v3176_v46 = vor.u32 %v3174_v63, %v3172_v20  ;;  %v9796_v63 = vld [vmem:[#allocation2 + $0x60] sm:$0xff] }
 0x2df   : > { %v1737_v17 = vpop.f32.mrf.mxu3 }
 0x2e0   : > { %8414 = vmatmul.msk.bf16.gmra.mxu3 %vm578_vm0, %v2008_v54  ;;  %v10784_v24 = vpop.f32.mrf.mxu0  ;;  %v10786_v5 = vadd.f32 %v1969_v41, %v1737_v17  ;;  %v3181_v10 = vsel %vm1256_vm2, %v3176_v46, %v3180_v52 }
 0x2e1   : > { %12498 = vst [vmem:[#allocation77_spill] sm:$0xff] %v10784_v24  ;;  %v10788_v50 = vpop.f32.mrf.mxu1  ;;  %v9732_v24 = vld [vmem:[#allocation2 + $0x58] sm:$0xff] }
 0x2e2   : > { %12499 = vst [vmem:[#allocation78_spill] sm:$0xff] %v10786_v5  ;;  %v1976_v27 = vpop.f32.mrf.mxu2 }
 0x2e3   : > { %8935 = vmatmul.msk.bf16.gmra.mxu0 %vm578_vm0, %v9795_v31  ;;  %v9989_v31 = vld [vmem:[#allocation2 + $0x48] sm:$0xff] }
 0x2e4   : > { %v3186_v5 = vshll.u32 %v9989_v31, 16 }
 0x2e7   : > { %v1739_v39 = vpop.f32.mrf.mxu3  ;;  %8732 = vmatmul.msk.bf16.gmra.mxu2 %vm578_vm0, %v3181_v10  ;;  %v3188_v10 = vrot.slane %v3186_v5, 1 }
 0x2e8   : > { %v10792_v19 = vpop.f32.mrf.mxu0  ;;  %v10795_v54 = vadd.f32 %v1971_v30, %v1739_v39  ;;  %v3182_v30 = vshrl.u32 %v9988_v58, 16  ;;  %v9797_v58 = vld [vmem:[#allocation2 + $0x68] sm:$0xff] }
 0x2e9   : > { %12500 = vst [vmem:[#allocation79_spill] sm:$0xff] %v10792_v19  ;;  %v10797_v41 = vpop.f32.mrf.mxu1 }
 0x2ea   : > { %12501 = vst [vmem:[#allocation80_spill] sm:$0xff] %v10795_v54  ;;  %v1979_v17 = vpop.f32.mrf.mxu2 }
 0x2eb   : > { %v3184_v17 = vor.u32 %v3182_v30, %v3180_v52 }
 0x2ec   : > { %8578 = vmatmul.msk.bf16.gmra.mxu1 %vm578_vm0, %v9732_v24 }
 0x2ed   : > { %v3189_v24 = vsel %vm1256_vm2, %v3184_v17, %v3188_v10 }
 0x2ef   : > { %v1742_v9 = vpop.f32.mrf.mxu3 }
 0x2f0   : > { %8415 = vmatmul.msk.bf16.gmra.mxu3 %vm578_vm0, %v10208_v11  ;;  %v10802_v20 = vpop.f32.mrf.mxu0  ;;  %v10804_v28 = vadd.f32 %v1974_v0, %v1742_v9 }
 0x2f1   : > { %12502 = vst [vmem:[#allocation81_spill] sm:$0xff] %v10802_v20  ;;  %v10806_v46 = vpop.f32.mrf.mxu1  ;;  %v9733_v20 = vld [vmem:[#allocation2 + $0x60] sm:$0xff] }
 0x2f2   : > { %12503 = vst [vmem:[#allocation82_spill] sm:$0xff] %v10804_v28  ;;  %v1981_v39 = vpop.f32.mrf.mxu2 }
 0x2f3   : > { %8936 = vmatmul.msk.bf16.gmra.mxu0 %vm578_vm0, %v9796_v63  ;;  %v9990_v63 = vld [vmem:[#allocation2 + $0x50] sm:$0xff] }
 0x2f4   : > { %v3194_v39 = vshll.u32 %v9990_v63, 16 }
 0x2f6   : > { %v3196_v17 = vrot.slane %v3194_v39, 1 }
 0x2f7   : > { %v1744_v54 = vpop.f32.mrf.mxu3  ;;  %8733 = vmatmul.msk.bf16.gmra.mxu2 %vm578_vm0, %v3189_v24 }
 0x2f8   : > { %v10810_v19 = vpop.f32.mrf.mxu0  ;;  %v10813_v11 = vadd.f32 %v1976_v27, %v1744_v54  ;;  %v3190_v54 = vshrl.u32 %v9989_v31, 16 }
 0x2f9   : > { %12504 = vst [vmem:[#allocation83_spill] sm:$0xff] %v10810_v19  ;;  %v10815_v0 = vpop.f32.mrf.mxu1 }
 0x2fa   : > { %12505 = vst [vmem:[#allocation84_spill] sm:$0xff] %v10813_v11  ;;  %v1984_v9 = vpop.f32.mrf.mxu2  ;;  %v3192_v24 = vor.u32 %v3190_v54, %v3188_v10  ;;  %v9734_v11 = vld [vmem:[#allocation2 + $0x68] sm:$0xff]  ;;  %v9798_v10 = vld [vmem:[#allocation2 + $0x70] sm:$0xff]  ;;  %v3198_v54 = vshrl.u32 %v9990_v63, 16  ;;  %v9799_v63 = vld [vmem:[#allocation2 + $0x78] sm:$0xff] }
 0x2fc   : > { %8579 = vmatmul.msk.bf16.gmra.mxu1 %vm578_vm0, %v9733_v20  ;;  %v3197_v9 = vsel %vm1256_vm2, %v3192_v24, %v3196_v17 }
 0x300   : > { %8416 = vmatmul.msk.bf16.gmra.mxu3 %vm578_vm0, %v10223_v34  ;;  %v10820_v52 = vpop.f32.mrf.mxu0 }
 0x301   : > { %12506 = vst [vmem:[#allocation85_spill] sm:$0xff] %v10820_v52  ;;  %v10822_v5 = vpop.f32.mrf.mxu1 }
 0x302   : > { %v1986_v27 = vpop.f32.mrf.mxu2 }
 0x303   : > { %v1747_v30 = vpop.f32.mrf.mxu3  ;;  %8937 = vmatmul.msk.bf16.gmra.mxu0 %vm578_vm0, %v9797_v58 }
 0x304   : > { %v9991_v30 = vld [vmem:[#allocation2 + $0x58] sm:$0xff] }
 0x305   : > { %v3202_v28 = vshll.u32 %v9991_v30, 16 }
 0x307   : > { %8734 = vmatmul.msk.bf16.gmra.mxu2 %vm578_vm0, %v3197_v9  ;;  %v3204_v24 = vrot.slane %v3202_v28, 1  ;;  %v3200_v9 = vor.u32 %v3198_v54, %v3196_v17  ;;  %v1840_v17 = vadd.f32 %v10677_v37, %v10258_v18  ;;  %v1842_v18 = vadd.f32 %v10686_v25, %v10271_v32  ;;  %v9800_v32 = vld [vmem:[#allocation2 + $0x80] sm:$0xff] }
 0x308   : > { %v10826_v20 = vpop.f32.mrf.mxu0  ;;  %v1845_v25 = vadd.f32 %v10694_v59, %v10277_v45  ;;  %v1847_v45 = vadd.f32 %v10700_v13, %v10290_v60  ;;  %v9801_v60 = vld [vmem:[#allocation2 + $0x88] sm:$0xff]  ;;  %v1850_v13 = vadd.f32 %v10709_v55, %v10296_v8  ;;  %v1852_v8 = vadd.f32 %v10718_v33, %v10309_v29  ;;  %v9802_v29 = vld [vmem:[#allocation2 + $0x90] sm:$0xff] }
 0x309   : > { %12507 = vst [vmem:[#allocation86_spill] sm:$0xff] %v10826_v20  ;;  %v10829_v19 = vpop.f32.mrf.mxu1  ;;  %v1855_v33 = vadd.f32 %v10727_v47, %v10315_v43  ;;  %v1857_v43 = vadd.f32 %v10737_v16, %v10328_v62  ;;  %v9803_v62 = vld [vmem:[#allocation2 + $0x98] sm:$0xff]  ;;  %v1860_v16 = vadd.f32 %v10748_v40, %v10334_v15  ;;  %v1862_v15 = vadd.f32 %v10755_v51, %v10347_v38  ;;  %v9784_v38 = vld [vmem:[%s12408_s3 + $0x50] sm:$0xff] }
 0x30a   : > { %v3472_v52 = vpop.f32.mrf.mxu2  ;;  %3857 = vmatpush.bf16.msrb.mxu3 %v9784_v38 }
 0x30b   : > { %v1749_v34 = vpop.f32.mrf.mxu3 }
 0x30c   : > { %8580 = vmatmul.msk.bf16.gmra.mxu1 %vm578_vm0, %v9734_v11  ;;  %v3205_v34 = vsel %vm1256_vm2, %v3200_v9, %v3204_v24 }
 0x310   : > { %8417 = vmatmul.msk.bf16.gmra.mxu3 %vm578_vm0, %v10241_v57  ;;  %v10834_v31 = vpop.f32.mrf.mxu0 }
 0x311   : > { %12508 = vst [vmem:[#allocation87_spill] sm:$0xff] %v10834_v31  ;;  %v10836_v39 = vpop.f32.mrf.mxu1 }
 0x312   : > { %v3474_v27 = vpop.f32.mrf.mxu2 }
 0x313   : > { %v1752_v58 = vpop.f32.mrf.mxu3  ;;  %8938 = vmatmul.msk.bf16.gmra.mxu0 %vm578_vm0, %v9798_v10 }
 0x314   : > { %v9992_v58 = vld [vmem:[#allocation2 + $0x60] sm:$0xff] }
 0x315   : > { %v3210_v35 = vshll.u32 %v9992_v58, 16 }
 0x317   : > { %8735 = vmatmul.msk.bf16.gmra.mxu2 %vm578_vm0, %v3205_v34  ;;  %v3206_v34 = vshrl.u32 %v9991_v30, 16 }
 0x318   : > { %v10840_v11 = vpop.f32.mrf.mxu0 }
 0x319   : > { %12509 = vst [vmem:[#allocation88_spill] sm:$0xff] %v10840_v11  ;;  %v10843_v20 = vpop.f32.mrf.mxu1  ;;  %v3208_v11 = vor.u32 %v3206_v34, %v3204_v24  ;;  %v9993_v24 = vld [vmem:[#allocation2 + $0x68] sm:$0xff] }
 0x31a   : > { %v3477_v31 = vpop.f32.mrf.mxu2 }
 0x31b   : > { %v1754_v57 = vpop.f32.mrf.mxu3 }
 0x31c   : > { %8581 = vmatmul.msk.bf16.gmra.mxu1 %vm578_vm0, %v9735_v4  ;;  %v3212_v57 = vrot.slane %v3210_v35, 1  ;;  %v9736_v35 = vld [vmem:[#allocation2 + $0x78] sm:$0xff] }
 0x320   : > { %8418 = vmatmul.msk.bf16.gmra.mxu3 %vm578_vm0, %v10261_v23  ;;  %v10848_v28 = vpop.f32.mrf.mxu0  ;;  %v3213_v23 = vsel %vm1256_vm2, %v3208_v11, %v3212_v57  ;;  %v3218_v11 = vshll.u32 %v9993_v24, 16 }
 0x321   : > { %12510 = vst [vmem:[#allocation89_spill] sm:$0xff] %v10848_v28  ;;  %v10852_v10 = vpop.f32.mrf.mxu1 }
 0x322   : > { %v3479_v9 = vpop.f32.mrf.mxu2 }
 0x323   : > { %v2168_v54 = vpop.f32.mrf.mxu3  ;;  %8939 = vmatmul.msk.bf16.gmra.mxu0 %vm578_vm0, %v9799_v63 }
 0x324   : > { %v2317_v4 = vadd.f32 %v2168_v54, %v1840_v17 }
 0x326   : > { %v2848_v53 = vadd.f32 %v10758_v1, %v2317_v4 }
 0x327   : > { %8736 = vmatmul.msk.bf16.gmra.mxu2 %vm578_vm0, %v3213_v23  ;;  %v3220_v23 = vrot.slane %v3218_v11, 1  ;;  %v9737_v11 = vld [vmem:[#allocation2 + $0x80] sm:$0xff] }
 0x328   : > { %v10857_v44 = vpop.f32.mrf.mxu0  ;;  %v10860_v28 = vadd.f32 %v3472_v52, %v2848_v53 }
 0x329   : > { %v10864_v37 = vpop.f32.mrf.mxu1 }
 0x32a   : > { %v3482_v30 = vpop.f32.mrf.mxu2 }
 0x32b   : > { %v2170_v63 = vpop.f32.mrf.mxu3 }
 0x32c   : > { %v2318_v17 = vadd.f32 %v2170_v63, %v1842_v18  ;;  %8582 = vmatmul.msk.bf16.gmra.mxu1 %vm578_vm0, %v9736_v35 }
 0x32e   : > { %v2849_v1 = vadd.f32 %v10768_v61, %v2318_v17  ;;  %v3214_v61 = vshrl.u32 %v9992_v58, 16 }
 0x330   : > { %8419 = vmatmul.msk.bf16.gmra.mxu3 %vm578_vm0, %v10280_v49  ;;  %v10870_v53 = vpop.f32.mrf.mxu0  ;;  %v10872_v52 = vadd.f32 %v3474_v27, %v2849_v1  ;;  %v3216_v63 = vor.u32 %v3214_v61, %v3212_v57  ;;  %v9994_v57 = vld [vmem:[#allocation2 + $0x70] sm:$0xff] }
 0x331   : > { %v10876_v54 = vpop.f32.mrf.mxu1 }
 0x332   : > { %v3484_v4 = vpop.f32.mrf.mxu2  ;;  %v3221_v35 = vsel %vm1256_vm2, %v3216_v63, %v3220_v23 }
 0x333   : > { %v2173_v34 = vpop.f32.mrf.mxu3  ;;  %8940 = vmatmul.msk.bf16.gmra.mxu0 %vm578_vm0, %v9800_v32 }
 0x334   : > { %v2319_v18 = vadd.f32 %v2173_v34, %v1845_v25  ;;  %v3226_v25 = vshll.u32 %v9994_v57, 16 }
 0x336   : > { %v2850_v49 = vadd.f32 %v10777_v22, %v2319_v18 }
 0x337   : > { %8737 = vmatmul.msk.bf16.gmra.mxu2 %vm578_vm0, %v3221_v35 }
 0x338   : > { %v10881_v27 = vpop.f32.mrf.mxu0  ;;  %v10884_v17 = vadd.f32 %v3477_v31, %v2850_v49  ;;  %v3228_v49 = vrot.slane %v3226_v25, 1 }
 0x339   : > { %v10888_v59 = vpop.f32.mrf.mxu1 }
 0x33a   : > { %v3487_v58 = vpop.f32.mrf.mxu2 }
 0x33b   : > { %v2175_v1 = vpop.f32.mrf.mxu3 }
 0x33c   : > { %v2320_v32 = vadd.f32 %v2175_v1, %v1847_v45  ;;  %8583 = vmatmul.msk.bf16.gmra.mxu1 %vm578_vm0, %v9737_v11 }
 0x33e   : > { %v2851_v22 = vadd.f32 %v10788_v50, %v2320_v32  ;;  %v3222_v50 = vshrl.u32 %v9993_v24, 16 }
 0x340   : > { %8420 = vmatmul.msk.bf16.gmra.mxu3 %vm578_vm0, %v10299_v14  ;;  %v10894_v31 = vpop.f32.mrf.mxu0  ;;  %v10896_v34 = vadd.f32 %v3479_v9, %v2851_v22  ;;  %v3224_v45 = vor.u32 %v3222_v50, %v3220_v23  ;;  %v9738_v22 = vld [vmem:[#allocation2 + $0x88] sm:$0xff]  ;;  %v9995_v23 = vld [vmem:[#allocation2 + $0x78] sm:$0xff] }
 0x341   : > { %v10900_v61 = vpop.f32.mrf.mxu1 }
 0x342   : > { %v3489_v63 = vpop.f32.mrf.mxu2  ;;  %v3229_v1 = vsel %vm1256_vm2, %v3224_v45, %v3228_v49 }
 0x343   : > { %v2178_v18 = vpop.f32.mrf.mxu3  ;;  %8941 = vmatmul.msk.bf16.gmra.mxu0 %vm578_vm0, %v9801_v60  ;;  %v3234_v60 = vshll.u32 %v9995_v23, 16 }
 0x344   : > { %v2321_v35 = vadd.f32 %v2178_v18, %v1850_v13 }
 0x345   : > { %v3236_v45 = vrot.slane %v3234_v60, 1 }
 0x346   : > { %v2852_v14 = vadd.f32 %v10797_v41, %v2321_v35 }
 0x347   : > { %8738 = vmatmul.msk.bf16.gmra.mxu2 %vm578_vm0, %v3229_v1 }
 0x348   : > { %v10905_v9 = vpop.f32.mrf.mxu0  ;;  %v10908_v11 = vadd.f32 %v3482_v30, %v2852_v14 }
 0x349   : > { %v10912_v55 = vpop.f32.mrf.mxu1 }
 0x34a   : > { %v3492_v24 = vpop.f32.mrf.mxu2 }
 0x34b   : > { %v2180_v32 = vpop.f32.mrf.mxu3 }
 0x34c   : > { %v2322_v25 = vadd.f32 %v2180_v32, %v1852_v8  ;;  %8584 = vmatmul.msk.bf16.gmra.mxu1 %vm578_vm0, %v9738_v22 }
 0x34e   : > { %v2853_v41 = vadd.f32 %v10806_v46, %v2322_v25  ;;  %v3230_v46 = vshrl.u32 %v9994_v57, 16  ;;  %v9739_v25 = vld [vmem:[#allocation2 + $0x90] sm:$0xff] }
 0x350   : > { %8421 = vmatmul.msk.bf16.gmra.mxu3 %vm578_vm0, %v10318_v48  ;;  %v10918_v30 = vpop.f32.mrf.mxu0  ;;  %v10920_v13 = vadd.f32 %v3484_v4, %v2853_v41  ;;  %v3232_v1 = vor.u32 %v3230_v46, %v3228_v49  ;;  %v9996_v49 = vld [vmem:[#allocation2 + $0x80] sm:$0xff] }
 0x351   : > { %v10924_v18 = vpop.f32.mrf.mxu1  ;;  %v3242_v60 = vshll.u32 %v9996_v49, 16 }
 0x352   : > { %v3494_v35 = vpop.f32.mrf.mxu2  ;;  %v3237_v8 = vsel %vm1256_vm2, %v3232_v1, %v3236_v45 }
 0x353   : > { %v2183_v50 = vpop.f32.mrf.mxu3  ;;  %8942 = vmatmul.msk.bf16.gmra.mxu0 %vm578_vm0, %v9802_v29 }
 0x354   : > { %v2323_v14 = vadd.f32 %v2183_v50, %v1855_v33 }
 0x356   : > { %v2854_v48 = vadd.f32 %v10815_v0, %v2323_v14  ;;  %v3244_v14 = vrot.slane %v3242_v60, 1  ;;  %v9804_v60 = vld [vmem:[#allocation2 + $0xa0] sm:$0xff] }
 0x357   : > { %8739 = vmatmul.msk.bf16.gmra.mxu2 %vm578_vm0, %v3237_v8 }
 0x358   : > { %v10929_v4 = vpop.f32.mrf.mxu0  ;;  %v10932_v32 = vadd.f32 %v3487_v58, %v2854_v48 }
 0x359   : > { %v10936_v47 = vpop.f32.mrf.mxu1 }
 0x35a   : > { %v3497_v57 = vpop.f32.mrf.mxu2 }
 0x35b   : > { %v2185_v22 = vpop.f32.mrf.mxu3 }
 0x35c   : > { %v2324_v41 = vadd.f32 %v2185_v22, %v1857_v43  ;;  %8585 = vmatmul.msk.bf16.gmra.mxu1 %vm578_vm0, %v9739_v25  ;;  %v9740_v25 = vld [vmem:[#allocation2 + $0x98] sm:$0xff] }
 0x35e   : > { %v2855_v0 = vadd.f32 %v10822_v5, %v2324_v41  ;;  %v3238_v5 = vshrl.u32 %v9995_v23, 16 }
 0x360   : > { %8422 = vmatmul.msk.bf16.gmra.mxu3 %vm578_vm0, %v10337_v21  ;;  %v10942_v58 = vpop.f32.mrf.mxu0  ;;  %v10944_v29 = vadd.f32 %v3489_v63, %v2855_v0  ;;  %v3240_v48 = vor.u32 %v3238_v5, %v3236_v45  ;;  %v9997_v45 = vld [vmem:[#allocation2 + $0x88] sm:$0xff] }
 0x361   : > { %12511 = vst [vmem:[#allocation90_spill] sm:$0xff] %v10942_v58  ;;  %v10948_v33 = vpop.f32.mrf.mxu1  ;;  %v3250_v0 = vshll.u32 %v9997_v45, 16  ;;  %v12554_v58 = vld [vmem:[#allocation46_spill] sm:$0xff] }
 0x362   : > { %v3499_v46 = vpop.f32.mrf.mxu2  ;;  %v3245_v8 = vsel %vm1256_vm2, %v3240_v48, %v3244_v14 }
 0x363   : > { %v2188_v50 = vpop.f32.mrf.mxu3  ;;  %8943 = vmatmul.msk.bf16.gmra.mxu0 %vm578_vm0, %v9803_v62  ;;  %v3252_v5 = vrot.slane %v3250_v0, 1  ;;  %v9805_v0 = vld [vmem:[#allocation2 + $0xa8] sm:$0xff] }
 0x364   : > { %v2325_v1 = vadd.f32 %v2188_v50, %v1860_v16  ;;  %v3246_v50 = vshrl.u32 %v9996_v49, 16 }
 0x366   : > { %v2856_v21 = vadd.f32 %v10829_v19, %v2325_v1  ;;  %v3248_v1 = vor.u32 %v3246_v50, %v3244_v14 }
 0x367   : > { %8740 = vmatmul.msk.bf16.gmra.mxu2 %vm578_vm0, %v3245_v8 }
 0x368   : > { %v10953_v63 = vpop.f32.mrf.mxu0  ;;  %v10956_v43 = vadd.f32 %v3492_v24, %v2856_v21  ;;  %v3253_v21 = vsel %vm1256_vm2, %v3248_v1, %v3252_v5 }
 0x369   : > { %12512 = vst [vmem:[#allocation91_spill] sm:$0xff] %v10953_v63  ;;  %v10960_v40 = vpop.f32.mrf.mxu1 }
 0x36a   : > { %v3502_v23 = vpop.f32.mrf.mxu2 }
 0x36b   : > { %v2190_v22 = vpop.f32.mrf.mxu3 }
 0x36c   : > { %v2326_v41 = vadd.f32 %v2190_v22, %v1862_v15  ;;  %8586 = vmatmul.msk.bf16.gmra.mxu1 %vm578_vm0, %v9740_v25 }
 0x36e   : > { %v2857_v19 = vadd.f32 %v10836_v39, %v2326_v41  ;;  %v9741_v41 = vld [vmem:[#allocation2 + $0xa0] sm:$0xff] }
 0x370   : > { %8423 = vmatmul.msk.bf16.gmra.mxu3 %vm578_vm0, %v10354_v3  ;;  %v10966_v24 = vpop.f32.mrf.mxu0  ;;  %v10971_v51 = vadd.f32 %v3494_v35, %v2857_v19 }
 0x371   : > { %12513 = vst [vmem:[#allocation92_spill] sm:$0xff] %v10966_v24  ;;  %v10973_v62 = vpop.f32.mrf.mxu1 }
 0x372   : > { %v3504_v39 = vpop.f32.mrf.mxu2 }
 0x373   : > { %v2193_v16 = vpop.f32.mrf.mxu3  ;;  %8944 = vmatmul.msk.bf16.gmra.mxu0 %vm578_vm0, %v9804_v60 }
 0x374   : > { %v2327_v3 = vadd.f32 %v2193_v16, %v10356_v6  ;;  %v3254_v16 = vshrl.u32 %v9997_v45, 16 }
 0x376   : > { %v2858_v48 = vadd.f32 %v10843_v20, %v2327_v3  ;;  %v9998_v20 = vld [vmem:[#allocation2 + $0x90] sm:$0xff]  ;;  %v3256_v3 = vor.u32 %v3254_v16, %v3252_v5  ;;  %v9999_v5 = vld [vmem:[#allocation2 + $0x98] sm:$0xff] }
 0x377   : > { %8741 = vmatmul.msk.bf16.gmra.mxu2 %vm578_vm0, %v3253_v21  ;;  %v3258_v14 = vshll.u32 %v9998_v20, 16 }
 0x378   : > { %v10979_v8 = vpop.f32.mrf.mxu0  ;;  %v10982_v35 = vadd.f32 %v3497_v57, %v2858_v48 }
 0x379   : > { %12514 = vst [vmem:[#allocation93_spill] sm:$0xff] %v10979_v8  ;;  %v10984_v15 = vpop.f32.mrf.mxu1  ;;  %v3260_v50 = vrot.slane %v3258_v14, 1 }
 0x37a   : > { %v3507_v25 = vpop.f32.mrf.mxu2 }
 0x37b   : > { %v2195_v22 = vpop.f32.mrf.mxu3 }
 0x37c   : > { %v2328_v49 = vadd.f32 %v2195_v22, %v10367_v26  ;;  %8587 = vmatmul.msk.bf16.gmra.mxu1 %vm578_vm0, %v9741_v41 }
 0x37e   : > { %v2859_v6 = vadd.f32 %v10852_v10, %v2328_v49  ;;  %v9742_v49 = vld [vmem:[#allocation2 + $0xa8] sm:$0xff] }
 0x380   : > { %8424 = vmatmul.msk.bf16.gmra.mxu3 %vm578_vm0, %v10373_v42  ;;  %v10991_v19 = vpop.f32.mrf.mxu0  ;;  %v10993_v57 = vadd.f32 %v3499_v46, %v2859_v6  ;;  %v3261_v42 = vsel %vm1256_vm2, %v3256_v3, %v3260_v50 }
 0x381   : > { %12515 = vst [vmem:[#allocation94_spill] sm:$0xff] %v10991_v19  ;;  %v10995_v38 = vpop.f32.mrf.mxu1 }
 0x382   : > { %v3509_v26 = vpop.f32.mrf.mxu2 }
 0x383   : > { %v2198_v60 = vpop.f32.mrf.mxu3  ;;  %8945 = vmatmul.msk.bf16.gmra.mxu0 %vm578_vm0, %v9805_v0 }
 0x384   : > { %v2329_v10 = vadd.f32 %v2198_v60, %v10375_v12 }
 0x386   : > { %v2860_v1 = vadd.f32 %v10864_v37, %v2329_v10  ;;  %v3266_v37 = vshll.u32 %v9999_v5, 16  ;;  %v3262_v10 = vshrl.u32 %v9998_v20, 16  ;;  %v10000_v20 = vld [vmem:[#allocation2 + $0xa0] sm:$0xff] }
 0x387   : > { %8742 = vmatmul.msk.bf16.gmra.mxu2 %vm578_vm0, %v3261_v42 }
 0x388   : > { %v11001_v48 = vpop.f32.mrf.mxu0  ;;  %v11004_v46 = vadd.f32 %v3502_v23, %v2860_v1  ;;  %v9806_v23 = vld [vmem:[#allocation2 + $0xb0] sm:$0xff]  ;;  %v3264_v1 = vor.u32 %v3262_v10, %v3260_v50  ;;  %v3274_v50 = vshll.u32 %v10000_v20, 16  ;;  %v3270_v10 = vshrl.u32 %v9999_v5, 16 }
 0x389   : > { %12516 = vst [vmem:[#allocation95_spill] sm:$0xff] %v11001_v48  ;;  %v2759_v21 = vpop.f32.mrf.mxu1 }
 0x38a   : > { %v3512_v41 = vpop.f32.mrf.mxu2 }
 0x38b   : > { %v2200_v22 = vpop.f32.mrf.mxu3 }
 0x38c   : > { %v2330_v45 = vadd.f32 %v2200_v22, %v10386_v7  ;;  %8588 = vmatmul.msk.bf16.gmra.mxu1 %vm578_vm0, %v9742_v49  ;;  %v3268_v7 = vrot.slane %v3266_v37, 1 }
 0x38e   : > { %v2861_v12 = vadd.f32 %v10876_v54, %v2330_v45  ;;  %v3269_v42 = vsel %vm1256_vm2, %v3264_v1, %v3268_v7  ;;  %v9743_v45 = vld [vmem:[#allocation2 + $0xb0] sm:$0xff] }
 0x390   : > { %8425 = vmatmul.msk.bf16.gmra.mxu3 %vm578_vm0, %v10392_v36  ;;  %v4450_v6 = vpop.f32.mrf.mxu0  ;;  %v11011_v14 = vadd.f32 %v3504_v39, %v2861_v12 }
 0x391   : > { %v2761_v0 = vpop.f32.mrf.mxu1 }
 0x392   : > { %v3514_v16 = vpop.f32.mrf.mxu2 }
 0x393   : > { %v2203_v60 = vpop.f32.mrf.mxu3  ;;  %8946 = vmatmul.msk.bf16.gmra.mxu0 %vm578_vm0, %v9806_v23 }
 0x394   : > { %v2331_v3 = vadd.f32 %v2203_v60, %v10394_v56 }
 0x396   : > { %v2862_v54 = vadd.f32 %v10888_v59, %v2331_v3  ;;  %v12517_v59 = vld [vmem:[#allocation19_spill] sm:$0xff]  ;;  %v12518_v3 = vld [vmem:[#allocation20_spill] sm:$0xff] }
 0x397   : > { %8743 = vmatmul.msk.bf16.gmra.mxu2 %vm578_vm0, %v3269_v42  ;;  %v9848_v42 = vld [vmem:[%s12408_s3 + $0x80] sm:$0xff] }
 0x398   : > { %v4452_v21 = vpop.f32.mrf.mxu0  ;;  %v11018_v36 = vadd.f32 %v3507_v25, %v2862_v54  ;;  %v9807_v25 = vld [vmem:[#allocation2 + $0xb8] sm:$0xff]  ;;  %v3272_v54 = vor.u32 %v3270_v10, %v3268_v7  ;;  %5548 = vmatpush.bf16.msra.mxu2 %v9848_v42 }
 0x399   : > { %v2764_v39 = vpop.f32.mrf.mxu1  ;;  %v12521_v42 = vld [vmem:[#allocation24_spill] sm:$0xff] }
 0x39a   : > { %v3517_v49 = vpop.f32.mrf.mxu2  ;;  %v9846_v39 = vld [vmem:[%s12408_s3 + $0x70] sm:$0xff] }
 0x39b   : > { %v2205_v22 = vpop.f32.mrf.mxu3  ;;  %5161 = vmatpush.bf16.msra.mxu1 %v9846_v39 }
 0x39c   : > { %v2332_v12 = vadd.f32 %v2205_v22, %v10405_v2  ;;  %8589 = vmatmul.msk.bf16.gmra.mxu1 %vm578_vm0, %v9743_v45  ;;  %v3276_v2 = vrot.slane %v3274_v50, 1  ;;  %v9744_v45 = vld [vmem:[#allocation2 + $0xb8] sm:$0xff] }
 0x39e   : > { %v2863_v56 = vadd.f32 %v10900_v61, %v2332_v12  ;;  %v12519_v12 = vld [vmem:[#allocation22_spill] sm:$0xff] }
 0x3a0   : > { %8426 = vmatmul.msk.bf16.gmra.mxu3 %vm578_vm0, %v12517_v59  ;;  %v4455_v37 = vpop.f32.mrf.mxu0  ;;  %v11025_v6 = vadd.f32 %v3509_v26, %v2863_v56  ;;  %v3277_v26 = vsel %vm1256_vm2, %v3272_v54, %v3276_v2  ;;  %v10001_v59 = vld [vmem:[#allocation2 + $0xa8] sm:$0xff]  ;;  %v3278_v54 = vshrl.u32 %v10000_v20, 16 }
 0x3a1   : > { %v2766_v23 = vpop.f32.mrf.mxu1  ;;  %v3282_v37 = vshll.u32 %v10001_v59, 16 }
 0x3a2   : > { %v3519_v60 = vpop.f32.mrf.mxu2 }
 0x3a3   : > { %v2208_v0 = vpop.f32.mrf.mxu3  ;;  %8947 = vmatmul.msk.bf16.gmra.mxu0 %vm578_vm0, %v9807_v25  ;;  %v12520_v25 = vld [vmem:[#allocation23_spill] sm:$0xff] }
 0x3a4   : > { %v2333_v1 = vadd.f32 %v2208_v0, %v12518_v3  ;;  %v9808_v0 = vld [vmem:[#allocation2 + $0xc0] sm:$0xff] }
 0x3a6   : > { %v2864_v61 = vadd.f32 %v10912_v55, %v2333_v1 }
 0x3a7   : > { %8744 = vmatmul.msk.bf16.gmra.mxu2 %vm578_vm0, %v3277_v26 }
 0x3a8   : > { %v4457_v21 = vpop.f32.mrf.mxu0  ;;  %v11038_v5 = vadd.f32 %v3512_v41, %v2864_v61  ;;  %v3284_v61 = vrot.slane %v3282_v37, 1 }
 0x3a9   : > { %v2769_v22 = vpop.f32.mrf.mxu1  ;;  %v3280_v21 = vor.u32 %v3278_v54, %v3276_v2  ;;  %v10002_v2 = vld [vmem:[#allocation2 + $0xb0] sm:$0xff] }
 0x3aa   : > { %v3522_v55 = vpop.f32.mrf.mxu2  ;;  %v3290_v37 = vshll.u32 %v10002_v2, 16 }
 0x3ab   : > { %v2210_v7 = vpop.f32.mrf.mxu3  ;;  %v3285_v39 = vsel %vm1256_vm2, %v3280_v21, %v3284_v61  ;;  %v12526_v21 = vld [vmem:[#allocation28_spill] sm:$0xff] }
 0x3ac   : > { %v2334_v56 = vadd.f32 %v2210_v7, %v12519_v12  ;;  %8590 = vmatmul.msk.bf16.gmra.mxu1 %vm578_vm0, %v9744_v45 }
 0x3ae   : > { %v2865_v50 = vadd.f32 %v10924_v18, %v2334_v56  ;;  %v9745_v56 = vld [vmem:[#allocation2 + $0xc0] sm:$0xff] }
 0x3b0   : > { %8427 = vmatmul.msk.bf16.gmra.mxu3 %vm578_vm0, %v12520_v25  ;;  %v4460_v23 = vpop.f32.mrf.mxu0  ;;  %v11045_v41 = vadd.f32 %v3514_v16, %v2865_v50  ;;  %v12523_v50 = vld [vmem:[#allocation26_spill] sm:$0xff] }
 0x3b1   : > { %v2771_v10 = vpop.f32.mrf.mxu1 }
 0x3b2   : > { %v3524_v1 = vpop.f32.mrf.mxu2 }
 0x3b3   : > { %v2213_v3 = vpop.f32.mrf.mxu3  ;;  %8948 = vmatmul.msk.bf16.gmra.mxu0 %vm578_vm0, %v9808_v0 }
 0x3b4   : > { %v2335_v26 = vadd.f32 %v2213_v3, %v12521_v42  ;;  %v3286_v42 = vshrl.u32 %v10001_v59, 16 }
 0x3b6   : > { %v2866_v18 = vadd.f32 %v10936_v47, %v2335_v26  ;;  %v12524_v47 = vld [vmem:[#allocation27_spill] sm:$0xff]  ;;  %v3292_v26 = vrot.slane %v3290_v37, 1  ;;  %v10003_v37 = vld [vmem:[#allocation2 + $0xb8] sm:$0xff] }
 0x3b7   : > { %8745 = vmatmul.msk.bf16.gmra.mxu2 %vm578_vm0, %v3285_v39  ;;  %v3288_v39 = vor.u32 %v3286_v42, %v3284_v61 }
 0x3b8   : > { %v4462_v22 = vpop.f32.mrf.mxu0  ;;  %v11052_v16 = vadd.f32 %v3517_v49, %v2866_v18  ;;  %v9809_v49 = vld [vmem:[#allocation2 + $0xc8] sm:$0xff] }
 0x3b9   : > { %v2774_v7 = vpop.f32.mrf.mxu1  ;;  %v3293_v22 = vsel %vm1256_vm2, %v3288_v39, %v3292_v26  ;;  %v12532_v39 = vld [vmem:[#allocation32_spill] sm:$0xff] }
 0x3ba   : > { %12522 = vst [vmem:[#allocation19_spill] sm:$0xff] %v11052_v16  ;;  %v3527_v12 = vpop.f32.mrf.mxu2  ;;  %v12591_v16 = vld [vmem:[#allocation4_spill] sm:$0xff] }
 0x3bb   : > { %v2215_v45 = vpop.f32.mrf.mxu3 }
 0x3bc   : > { %v2336_v25 = vadd.f32 %v2215_v45, %v12523_v50  ;;  %8591 = vmatmul.msk.bf16.gmra.mxu1 %vm578_vm0, %v9745_v56 }
 0x3be   : > { %v2867_v20 = vadd.f32 %v10948_v33, %v2336_v25  ;;  %v9746_v25 = vld [vmem:[#allocation2 + $0xc8] sm:$0xff] }
 0x3c0   : > { %8428 = vmatmul.msk.bf16.gmra.mxu3 %vm578_vm0, %v12524_v47  ;;  %v4465_v23 = vpop.f32.mrf.mxu0  ;;  %v11059_v0 = vadd.f32 %v3519_v60, %v2867_v20  ;;  %v12528_v20 = vld [vmem:[#allocation30_spill] sm:$0xff]  ;;  %v12529_v47 = vld [vmem:[#allocation31_spill] sm:$0xff] }
 0x3c1   : > { %v2776_v10 = vpop.f32.mrf.mxu1 }
 0x3c2   : > { %12525 = vst [vmem:[#allocation20_spill] sm:$0xff] %v11059_v0  ;;  %v3529_v54 = vpop.f32.mrf.mxu2 }
 0x3c3   : > { %v2218_v3 = vpop.f32.mrf.mxu3  ;;  %8949 = vmatmul.msk.bf16.gmra.mxu0 %vm578_vm0, %v9809_v49  ;;  %v9810_v49 = vld [vmem:[#allocation2 + $0xd0] sm:$0xff] }
 0x3c4   : > { %v2337_v18 = vadd.f32 %v2218_v3, %v12526_v21  ;;  %v3294_v21 = vshrl.u32 %v10002_v2, 16  ;;  %v12535_v2 = vld [vmem:[#allocation34_spill] sm:$0xff] }
 0x3c6   : > { %v2868_v33 = vadd.f32 %v10960_v40, %v2337_v18  ;;  %v3298_v40 = vshll.u32 %v10003_v37, 16 }
 0x3c7   : > { %8746 = vmatmul.msk.bf16.gmra.mxu2 %vm578_vm0, %v3293_v22 }
 0x3c8   : > { %v4467_v7 = vpop.f32.mrf.mxu0  ;;  %v11066_v60 = vadd.f32 %v3522_v55, %v2868_v33  ;;  %v3300_v18 = vrot.slane %v3298_v40, 1  ;;  %v3296_v33 = vor.u32 %v3294_v21, %v3292_v26 }
 0x3c9   : > { %v11068_v45 = vpop.f32.mrf.mxu1 }
 0x3ca   : > { %12527 = vst [vmem:[#allocation22_spill] sm:$0xff] %v11066_v60  ;;  %v3532_v50 = vpop.f32.mrf.mxu2  ;;  %v3301_v7 = vsel %vm1256_vm2, %v3296_v33, %v3300_v18 }
 0x3cb   : > { %v2220_v56 = vpop.f32.mrf.mxu3 }
 0x3cc   : > { %v2338_v59 = vadd.f32 %v2220_v56, %v12528_v20  ;;  %8592 = vmatmul.msk.bf16.gmra.mxu1 %vm578_vm0, %v9746_v25 }
 0x3ce   : > { %v2869_v61 = vadd.f32 %v10973_v62, %v2338_v59  ;;  %v9747_v59 = vld [vmem:[#allocation2 + $0xd0] sm:$0xff] }
 0x3d0   : > { %8429 = vmatmul.msk.bf16.gmra.mxu3 %vm578_vm0, %v12529_v47  ;;  %v11075_v23 = vpop.f32.mrf.mxu0  ;;  %v11077_v55 = vadd.f32 %v3524_v1, %v2869_v61  ;;  %v12536_v47 = vld [vmem:[#allocation35_spill] sm:$0xff] }
 0x3d1   : > { %12530 = vst [vmem:[#allocation23_spill] sm:$0xff] %v11075_v23  ;;  %v11079_v10 = vpop.f32.mrf.mxu1 }
 0x3d2   : > { %12531 = vst [vmem:[#allocation24_spill] sm:$0xff] %v11077_v55  ;;  %v3534_v42 = vpop.f32.mrf.mxu2 }
 0x3d3   : > { %v2223_v3 = vpop.f32.mrf.mxu3  ;;  %8950 = vmatmul.msk.bf16.gmra.mxu0 %vm578_vm0, %v9810_v49 }
 0x3d4   : > { %v2339_v62 = vadd.f32 %v2223_v3, %v12532_v39  ;;  %v9811_v3 = vld [vmem:[#allocation2 + $0xd8] sm:$0xff] }
 0x3d6   : > { %v2870_v22 = vadd.f32 %v10984_v15, %v2339_v62  ;;  %v10004_v15 = vld [vmem:[#allocation2 + $0xc0] sm:$0xff]  ;;  %v3302_v62 = vshrl.u32 %v10003_v37, 16 }
 0x3d7   : > { %8747 = vmatmul.msk.bf16.gmra.mxu2 %vm578_vm0, %v3301_v7  ;;  %v3306_v40 = vshll.u32 %v10004_v15, 16 }
 0x3d8   : > { %v11085_v56 = vpop.f32.mrf.mxu0  ;;  %v11088_v1 = vadd.f32 %v3527_v12, %v2870_v22  ;;  %v3304_v22 = vor.u32 %v3302_v62, %v3300_v18  ;;  %v9812_v18 = vld [vmem:[#allocation2 + $0xe0] sm:$0xff] }
 0x3d9   : > { %12533 = vst [vmem:[#allocation26_spill] sm:$0xff] %v11085_v56  ;;  %v11090_v50 = vpop.f32.mrf.mxu1  ;;  %v3308_v33 = vrot.slane %v3306_v40, 1 }
 0x3da   : > { %12534 = vst [vmem:[#allocation27_spill] sm:$0xff] %v11088_v1  ;;  %v3537_v20 = vpop.f32.mrf.mxu2  ;;  %v12551_v1 = vld [vmem:[#allocation44_spill] sm:$0xff] }
 0x3db   : > { %v2225_v25 = vpop.f32.mrf.mxu3 }
 0x3dc   : > { %v2340_v61 = vadd.f32 %v2225_v25, %v12535_v2  ;;  %8593 = vmatmul.msk.bf16.gmra.mxu1 %vm578_vm0, %v9747_v59  ;;  %v9748_v59 = vld [vmem:[#allocation2 + $0xd8] sm:$0xff]  ;;  %v10005_v2 = vld [vmem:[#allocation2 + $0xc8] sm:$0xff] }
 0x3de   : > { %v2871_v26 = vadd.f32 %v10995_v38, %v2340_v61  ;;  %v3309_v38 = vsel %vm1256_vm2, %v3304_v22, %v3308_v33  ;;  %v3314_v61 = vshll.u32 %v10005_v2, 16 }
 0x3e0   : > { %8430 = vmatmul.msk.bf16.gmra.mxu3 %vm578_vm0, %v12536_v47  ;;  %v11097_v49 = vpop.f32.mrf.mxu0  ;;  %v11099_v12 = vadd.f32 %v3529_v54, %v2871_v26  ;;  %v12540_v26 = vld [vmem:[#allocation37_spill] sm:$0xff] }
 0x3e1   : > { %12537 = vst [vmem:[#allocation28_spill] sm:$0xff] %v11097_v49  ;;  %v11101_v42 = vpop.f32.mrf.mxu1  ;;  %v10007_v49 = vld [vmem:[#allocation2 + $0xd8] sm:$0xff] }
 0x3e2   : > { %12538 = vst [vmem:[#allocation30_spill] sm:$0xff] %v11099_v12  ;;  %v3539_v39 = vpop.f32.mrf.mxu2 }
 0x3e3   : > { %v2228_v21 = vpop.f32.mrf.mxu3  ;;  %8951 = vmatmul.msk.bf16.gmra.mxu0 %vm578_vm0, %v9811_v3  ;;  %v3316_v39 = vrot.slane %v3314_v61, 1 }
 0x3e4   : > { %v3310_v21 = vshrl.u32 %v10004_v15, 16 }
 0x3e6   : > { %v3312_v62 = vor.u32 %v3310_v21, %v3308_v33  ;;  %v9813_v33 = vld [vmem:[#allocation2 + $0xe8] sm:$0xff] }
 0x3e7   : > { %8748 = vmatmul.msk.bf16.gmra.mxu2 %vm578_vm0, %v3309_v38 }
 0x3e8   : > { %v11105_v7 = vpop.f32.mrf.mxu0  ;;  %v3317_v22 = vsel %vm1256_vm2, %v3312_v62, %v3316_v39  ;;  %v3318_v62 = vshrl.u32 %v10005_v2, 16 }
 0x3e9   : > { %12539 = vst [vmem:[#allocation31_spill] sm:$0xff] %v11105_v7  ;;  %v11108_v25 = vpop.f32.mrf.mxu1  ;;  %v9750_v7 = vld [vmem:[#allocation2 + $0xe8] sm:$0xff] }
 0x3ea   : > { %v3542_v20 = vpop.f32.mrf.mxu2 }
 0x3eb   : > { %v2230_v54 = vpop.f32.mrf.mxu3 }
 0x3ec   : > { %8594 = vmatmul.msk.bf16.gmra.mxu1 %vm578_vm0, %v9748_v59 }
 0x3f0   : > { %8431 = vmatmul.msk.bf16.gmra.mxu3 %vm578_vm0, %v12540_v26  ;;  %v11113_v37 = vpop.f32.mrf.mxu0  ;;  %v9749_v26 = vld [vmem:[#allocation2 + $0xe0] sm:$0xff] }
 0x3f1   : > { %12541 = vst [vmem:[#allocation32_spill] sm:$0xff] %v11113_v37  ;;  %v11115_v40 = vpop.f32.mrf.mxu1 }
 0x3f2   : > { %v3544_v3 = vpop.f32.mrf.mxu2 }
 0x3f3   : > { %v2233_v47 = vpop.f32.mrf.mxu3  ;;  %8952 = vmatmul.msk.bf16.gmra.mxu0 %vm578_vm0, %v9812_v18  ;;  %v12543_v18 = vld [vmem:[#allocation39_spill] sm:$0xff] }
 0x3f4   : > { %v10006_v47 = vld [vmem:[#allocation2 + $0xd0] sm:$0xff] }
 0x3f5   : > { %v3322_v37 = vshll.u32 %v10006_v47, 16 }
 0x3f7   : > { %8749 = vmatmul.msk.bf16.gmra.mxu2 %vm578_vm0, %v3317_v22  ;;  %v3324_v22 = vrot.slane %v3322_v37, 1 }
 0x3f8   : > { %v11119_v38 = vpop.f32.mrf.mxu0 }
 0x3f9   : > { %12542 = vst [vmem:[#allocation34_spill] sm:$0xff] %v11119_v38  ;;  %v11122_v54 = vpop.f32.mrf.mxu1 }
 0x3fa   : > { %v3547_v59 = vpop.f32.mrf.mxu2 }
 0x3fb   : > { %v2235_v20 = vpop.f32.mrf.mxu3 }
 0x3fc   : > { %8595 = vmatmul.msk.bf16.gmra.mxu1 %vm578_vm0, %v9749_v26  ;;  %v3320_v20 = vor.u32 %v3318_v62, %v3316_v39  ;;  %v2434_v39 = vld [vmem:[#allocation2 + $0xf0] sm:$0xf] }
 0x3fd   : > { %v2557_v56 = vunpack.c.l.b16 %v2434_v39  ;;  %v11157_v39 = vld [vmem:[#allocation2 + $0x18] sm:$0xff] }
 0x3fe   : > { %v3325_v59 = vsel %vm1256_vm2, %v3320_v20, %v3324_v22  ;;  %v4821_v55 = vshll.u32 %v11157_v39, 16 }
 0x400   : > { %8432 = vmatmul.msk.bf16.gmra.mxu3 %vm578_vm0, %v12543_v18  ;;  %v11127_v15 = vpop.f32.mrf.mxu0  ;;  %v4823_v0 = vrot.slane %v4821_v55, 1 }
 0x401   : > { %12544 = vst [vmem:[#allocation35_spill] sm:$0xff] %v11127_v15  ;;  %v11129_v61 = vpop.f32.mrf.mxu1 }
 0x402   : > { %v3549_v21 = vpop.f32.mrf.mxu2 }
 0x403   : > { %v2238_v3 = vpop.f32.mrf.mxu3  ;;  %8953 = vmatmul.msk.bf16.gmra.mxu0 %vm578_vm0, %v9813_v33  ;;  %v3330_v33 = vshll.u32 %v10007_v49, 16  ;;  %v12546_v21 = vld [vmem:[#allocation41_spill] sm:$0xff] }
 0x404   : > { %v9814_v3 = vld [vmem:[#allocation2 + $0xf0] sm:$0xff] }
 0x407   : > { %8750 = vmatmul.msk.bf16.gmra.mxu2 %vm578_vm0, %v3325_v59  ;;  %v3326_v59 = vshrl.u32 %v10006_v47, 16 }
 0x408   : > { %v11133_v26 = vpop.f32.mrf.mxu0 }
 0x409   : > { %12545 = vst [vmem:[#allocation37_spill] sm:$0xff] %v11133_v26  ;;  %v11136_v38 = vpop.f32.mrf.mxu1  ;;  %v3328_v26 = vor.u32 %v3326_v59, %v3324_v22  ;;  %v12549_v22 = vld [vmem:[#allocation43_spill] sm:$0xff] }
 0x40a   : > { %v3552_v15 = vpop.f32.mrf.mxu2 }
 0x40b   : > { %v2240_v18 = vpop.f32.mrf.mxu3 }
 0x40c   : > { %8596 = vmatmul.msk.bf16.gmra.mxu1 %vm578_vm0, %v9750_v7  ;;  %v3332_v18 = vrot.slane %v3330_v33, 1  ;;  %v9949_v33 = vld [vmem:[#allocation2 + $0x10] sm:$0xff]  }
 0x40d   : > { %v4814_v63 = vshrl.u32 %v9949_v33, 16 }
 0x40e   : > { %v3333_v7 = vsel %vm1256_vm2, %v3328_v26, %v3332_v18 }
 0x410   : > { %8433 = vmatmul.msk.bf16.gmra.mxu3 %vm578_vm0, %v12546_v21  ;;  %v11141_v2 = vpop.f32.mrf.mxu0  ;;  %v2587_v21 = vpack.c.b16 %v2557_v56, %v2557_v56 }
 0x411   : > { %12547 = vst [vmem:[#allocation39_spill] sm:$0xff] %v11141_v2  ;;  %v11143_v37 = vpop.f32.mrf.mxu1  ;;  %v4125_v2 = vld [vmem:[#allocation2 + $0xf8] sm:$0xf] }
 0x412   : > { %v3554_v20 = vpop.f32.mrf.mxu2 }
 0x413   : > { %v2243_v62 = vpop.f32.mrf.mxu3  ;;  %8954 = vmatmul.msk.bf16.gmra.mxu0 %vm578_vm0, %v9814_v3  ;;  %v4248_v3 = vunpack.c.l.b16 %v4125_v2 }
 0x414   : > { %v10008_v62 = vld [vmem:[#allocation2 + $0xe0] sm:$0xff] }
 0x415   : > { %v3338_v47 = vshll.u32 %v10008_v62, 16  ;;  %v4278_v59 = vpack.c.b16 %v4248_v3, %v4248_v3 }
 0x417   : > { %8751 = vmatmul.msk.bf16.gmra.mxu2 %vm578_vm0, %v3333_v7  ;;  %v4816_v7 = vshll.u32 %v9949_v33, 16  ;;  %v3340_v2 = vrot.slane %v3338_v47, 1 }
 0x418   : > { %v11147_v23 = vpop.f32.mrf.mxu0 }
 0x419   : > { %12548 = vst [vmem:[#allocation41_spill] sm:$0xff] %v11147_v23  ;;  %v11150_v48 = vpop.f32.mrf.mxu1 }
 0x41a   : > { %v3557_v19 = vpop.f32.mrf.mxu2 }
 0x41b   : > { %v2245_v12 = vpop.f32.mrf.mxu3 }
 0x41c   : > { %8597 = vmatmul.msk.bf16.gmra.mxu1 %vm578_vm0, %v2587_v21  ;;  %v3334_v21 = vshrl.u32 %v10007_v49, 16 }
 0x41e   : > { %v3336_v24 = vor.u32 %v3334_v21, %v3332_v18  ;;  %v3342_v21 = vshrl.u32 %v10008_v62, 16 }
 0x420   : > { %8434 = vmatmul.msk.bf16.gmra.mxu3 %vm578_vm0, %v12549_v22  ;;  %v11155_v26 = vpop.f32.mrf.mxu0  ;;  %v3341_v60 = vsel %vm1256_vm2, %v3336_v24, %v3340_v2 }
 0x421   : > { %12550 = vst [vmem:[#allocation43_spill] sm:$0xff] %v11155_v26  ;;  %v11159_v56 = vpop.f32.mrf.mxu1  ;;  %v4818_v26 = vrot.slane %v4816_v7, 1 }
 0x422   : > { %v3559_v12 = vpop.f32.mrf.mxu2 }
 0x423   : > { %v2248_v23 = vpop.f32.mrf.mxu3  ;;  %8955 = vmatmul.msk.bf16.gmra.mxu0 %vm578_vm0, %v4278_v59  ;;  %v4819_v47 = vor.u32 %v4818_v26, %v4814_v63 }
 0x424   : > { %v2349_v8 = vadd.f32 %v2248_v23, %v12551_v1 }
 0x426   : > { %v2880_v22 = vadd.f32 %v11068_v45, %v2349_v8  ;;  %v4824_v8 = vsel %vm1256_vm2, %v4819_v47, %v4823_v0  ;;  %v10009_v45 = vld [vmem:[#allocation2 + $0xe8] sm:$0xff]  ;;  %v12558_v47 = vld [vmem:[#allocation48_spill] sm:$0xff] }
 0x427   : > { %8752 = vmatmul.msk.bf16.gmra.mxu2 %vm578_vm0, %v3341_v60  ;;  %v3346_v7 = vshll.u32 %v10009_v45, 16  ;;  %v12555_v60 = vld [vmem:[#allocation47_spill] sm:$0xff] }
 0x428   : > { %v11166_v3 = vpop.f32.mrf.mxu0  ;;  %v11169_v59 = vadd.f32 %v3552_v15, %v2880_v22  ;;  %v11181_v15 = vld [vmem:[#allocation2 + $0x20] sm:$0xff] }
 0x429   : > { %12552 = vst [vmem:[#allocation44_spill] sm:$0xff] %v11166_v3  ;;  %v11171_v49 = vpop.f32.mrf.mxu1  ;;  %v3348_v22 = vrot.slane %v3346_v7, 1  ;;  %v8716_v3 = vld [vmem:[#allocation2 + $0xf0] sm:$0xf] }
 0x42a   : > { %12553 = vst [vmem:[#allocation96_spill] sm:$0xff] %v11169_v59  ;;  %v3562_v1 = vpop.f32.mrf.mxu2  ;;  %v12569_v59 = vld [vmem:[#allocation54_spill] sm:$0xff] }
 0x42b   : > { %v2250_v23 = vpop.f32.mrf.mxu3 }
 0x42c   : > { %v2350_v18 = vadd.f32 %v2250_v23, %v12554_v58  ;;  %9084 = vmatmul.msk.bf16.vlgmr.msra.gmra.mxu1 %vm578_vm0, %v4824_v8 }
 0x42e   : > { %v2881_v24 = vadd.f32 %v11079_v10, %v2350_v18  ;;  %v4829_v10 = vshll.u32 %v11181_v15, 16  ;;  %v3344_v18 = vor.u32 %v3342_v21, %v3340_v2 }
 0x430   : > { %8435 = vmatmul.msk.bf16.gmra.mxu3 %vm578_vm0, %v12555_v60  ;;  %v11179_v55 = vpop.f32.mrf.mxu0  ;;  %v11183_v63 = vadd.f32 %v3554_v20, %v2881_v24  ;;  %v3349_v60 = vsel %vm1256_vm2, %v3344_v18, %v3348_v22  ;;  %v4825_v20 = vshrl.u32 %v11157_v39, 16  ;;  %v4831_v24 = vrot.slane %v4829_v10, 1 }
 0x431   : > { %12556 = vst [vmem:[#allocation46_spill] sm:$0xff] %v11179_v55  ;;  %v11185_v33 = vpop.f32.mrf.mxu1 }
 0x432   : > { %12557 = vst [vmem:[#allocation47_spill] sm:$0xff] %v11183_v63  ;;  %v3564_v26 = vpop.f32.mrf.mxu2  ;;  %v9781_v63 = vld [vmem:[#allocation2 + $0xf0] sm:$0x10] }
 0x433   : > { %v2253_v58 = vpop.f32.mrf.mxu3  ;;  %v11199_v21 = vor.u32 %v9781_v63, %v8716_v3 }
 0x434   : > { %v2351_v23 = vadd.f32 %v2253_v58, %v12558_v47  ;;  %v4827_v58 = vor.u32 %v4825_v20, %v4823_v0  ;;  %v11210_v0 = vld [vmem:[#allocation2 + $0x28] sm:$0xff] }
 0x435   : > { %12561 = vst [vmem:[#allocation98_spill] sm:$0xff] %v11199_v21  ;;  %v3354_v10 = vshll.u32 %v11199_v21, 16 }
 0x436   : > { %v2882_v8 = vadd.f32 %v11090_v50, %v2351_v23  ;;  %v12562_v50 = vld [vmem:[#allocation50_spill] sm:$0xff]  ;;  %v4832_v18 = vsel %vm1256_vm2, %v4827_v58, %v4831_v24  ;;  %v3350_v58 = vshrl.u32 %v10009_v45, 16 }
 0x437   : > { %8753 = vmatmul.msk.bf16.gmra.mxu2 %vm578_vm0, %v3349_v60 }
 0x438   : > { %v11191_v55 = vpop.f32.mrf.mxu0  ;;  %v11195_v62 = vadd.f32 %v3557_v19, %v2882_v8 }
 0x439   : > { %12559 = vst [vmem:[#allocation48_spill] sm:$0xff] %v11191_v55  ;;  %v11197_v7 = vpop.f32.mrf.mxu1  ;;  %v12563_v55 = vld [vmem:[#allocation51_spill] sm:$0xff] }
 0x43a   : > { %12560 = vst [vmem:[#allocation97_spill] sm:$0xff] %v11195_v62  ;;  %v3567_v2 = vpop.f32.mrf.mxu2 }
 0x43b   : > { %v2255_v47 = vpop.f32.mrf.mxu3 }
 0x43c   : > { %v2352_v23 = vadd.f32 %v2255_v47, %v12562_v50  ;;  %9085 = vmatmul.msk.bf16.gmra.mxu1 %vm578_vm0, %v4832_v18  ;;  %v3356_v47 = vrot.slane %v3354_v10, 1  ;;  %v12566_v50 = vld [vmem:[#allocation52_spill] sm:$0xff] }
 0x43e   : > { %v2883_v60 = vadd.f32 %v11101_v42, %v2352_v23  ;;  %v4837_v42 = vshll.u32 %v11210_v0, 16  ;;  %v3352_v23 = vor.u32 %v3350_v58, %v3348_v22 }
 0x440   : > { %8436 = vmatmul.msk.bf16.gmra.mxu3 %vm578_vm0, %v12563_v55  ;;  %v11208_v19 = vpop.f32.mrf.mxu0  ;;  %v11212_v8 = vadd.f32 %v3559_v12, %v2883_v60  ;;  %v3357_v55 = vsel %vm1256_vm2, %v3352_v23, %v3356_v47  ;;  %v4833_v12 = vshrl.u32 %v11181_v15, 16  ;;  %v4839_v60 = vrot.slane %v4837_v42, 1 }
 0x441   : > { %12564 = vst [vmem:[#allocation50_spill] sm:$0xff] %v11208_v19  ;;  %v11214_v3 = vpop.f32.mrf.mxu1 }
 0x442   : > { %12565 = vst [vmem:[#allocation51_spill] sm:$0xff] %v11212_v8  ;;  %v3569_v20 = vpop.f32.mrf.mxu2  ;;  %v4835_v10 = vor.u32 %v4833_v12, %v4831_v24  ;;  %v12573_v12 = vld [vmem:[#allocation56_spill] sm:$0xff] }
 0x443   : > { %v2258_v63 = vpop.f32.mrf.mxu3 }
 0x444   : > { %v2353_v18 = vadd.f32 %v2258_v63, %v12566_v50 }
 0x446   : > { %v2884_v62 = vadd.f32 %v11108_v25, %v2353_v18  ;;  %v4840_v25 = vsel %vm1256_vm2, %v4835_v10, %v4839_v60  ;;  %v12570_v18 = vld [vmem:[#allocation55_spill] sm:$0xff] }
 0x447   : > { %8754 = vmatmul.msk.bf16.gmra.mxu2 %vm578_vm0, %v3357_v55 }
 0x448   : > { %v11220_v19 = vpop.f32.mrf.mxu0  ;;  %v11224_v8 = vadd.f32 %v3562_v1, %v2884_v62  ;;  %v3358_v1 = vshrl.u32 %v11199_v21, 16  ;;  %v11237_v62 = vld [vmem:[#allocation2 + $0x30] sm:$0xff] }
 0x449   : > { %12567 = vst [vmem:[#allocation52_spill] sm:$0xff] %v11220_v19  ;;  %v11226_v45 = vpop.f32.mrf.mxu1 }
 0x44a   : > { %12568 = vst [vmem:[#allocation99_spill] sm:$0xff] %v11224_v8  ;;  %v3572_v50 = vpop.f32.mrf.mxu2 }
 0x44b   : > { %v2260_v63 = vpop.f32.mrf.mxu3 }
 0x44c   : > { %v2354_v22 = vadd.f32 %v2260_v63, %v12569_v59  ;;  %9086 = vmatmul.msk.bf16.gmra.mxu1 %vm578_vm0, %v4840_v25  ;;  %v3360_v63 = vor.u32 %v3358_v1, %v3356_v47 }
 0x44e   : > { %v2885_v58 = vadd.f32 %v11115_v40, %v2354_v22  ;;  %v4845_v40 = vshll.u32 %v11237_v62, 16 }
 0x450   : > { %8437 = vmatmul.msk.bf16.gmra.mxu3 %vm578_vm0, %v12570_v18  ;;  %v11234_v23 = vpop.f32.mrf.mxu0  ;;  %v11239_v24 = vadd.f32 %v3564_v26, %v2885_v58  ;;  %v4841_v18 = vshrl.u32 %v11210_v0, 16 }
 0x451   : > { %12571 = vst [vmem:[#allocation54_spill] sm:$0xff] %v11234_v23  ;;  %v11241_v42 = vpop.f32.mrf.mxu1  ;;  %v4847_v23 = vrot.slane %v4845_v40, 1  ;;  %v11262_v40 = vld [vmem:[#allocation2 + $0x38] sm:$0xff] }
 0x452   : > { %12572 = vst [vmem:[#allocation55_spill] sm:$0xff] %v11239_v24  ;;  %v3574_v55 = vpop.f32.mrf.mxu2  ;;  %v4843_v19 = vor.u32 %v4841_v18, %v4839_v60  ;;  %v9853_v60 = vld [vmem:[%s12410_s5 + $0x18] sm:$0xff] }
 0x453   : > { %v2263_v59 = vpop.f32.mrf.mxu3  ;;  %6008 = vmatpush.bf16.msra.mxu3 %v9853_v60 }
 0x454   : > { %v2355_v10 = vadd.f32 %v2263_v59, %v12573_v12  ;;  %v12576_v59 = vld [vmem:[#allocation58_spill] sm:$0xff]  ;;  %v4848_v1 = vsel %vm1256_vm2, %v4843_v19, %v4847_v23  ;;  %v9950_v12 = vld [vmem:[#allocation2 + $0x10] sm:$0xf0] }
 0x456   : > { %v2886_v22 = vadd.f32 %v11122_v54, %v2355_v10  ;;  %v12577_v10 = vld [vmem:[#allocation63_spill] sm:$0xff] }
 0x457   : > { %8755 = vmatmul.msk.bf16.gmra.mxu2 %vm578_vm0, %v3360_v63 }
 0x458   : > { %v11246_v25 = vpop.f32.mrf.mxu0  ;;  %v11250_v26 = vadd.f32 %v3567_v2, %v2886_v22  ;;  %v9951_v2 = vld [vmem:[#allocation2 + $0x10] sm:$0xe] }
 0x459   : > { %12574 = vst [vmem:[#allocation56_spill] sm:$0xff] %v11246_v25  ;;  %v11252_v58 = vpop.f32.mrf.mxu1  ;;  %v9952_v19 = vor.u32 %v9951_v2, %v9950_v12 }
 0x45a   : > { %12575 = vst [vmem:[#allocation100_spill] sm:$0xff] %v11250_v26  ;;  %v3577_v24 = vpop.f32.mrf.mxu2 }
 0x45b   : > { %v2265_v21 = vpop.f32.mrf.mxu3 }
 0x45c   : > { %v2356_v47 = vadd.f32 %v2265_v21, %v12576_v59  ;;  %9087 = vmatmul.msk.bf16.gmra.mxu1 %vm578_vm0, %v4848_v1  ;;  %v5381_v59 = vrot.slane %v11157_v39, 1 }
 0x45e   : > { %v2887_v54 = vadd.f32 %v11129_v61, %v2356_v47  ;;  %v12580_v47 = vld [vmem:[#allocation61_spill] sm:$0xff] }
 0x460   : > { %8438 = vmatmul.msk.bf16.gmra.mxu3 %vm578_vm0, %v12577_v10  ;;  %v11260_v63 = vpop.f32.mrf.mxu0  ;;  %v11267_v21 = vadd.f32 %v3569_v20, %v2887_v54  ;;  %v4853_v10 = vshll.u32 %v11262_v40, 16  ;;  %v4849_v20 = vshrl.u32 %v11237_v62, 16 }
 0x461   : > { %12578 = vst [vmem:[#allocation58_spill] sm:$0xff] %v11260_v63  ;;  %v11269_v22 = vpop.f32.mrf.mxu1  ;;  %v5380_v63 = vrot.slane %v9952_v19, 1 }
 0x462   : > { %12579 = vst [vmem:[#allocation63_spill] sm:$0xff] %v11267_v21  ;;  %v3579_v18 = vpop.f32.mrf.mxu2  ;;  %v4855_v54 = vrot.slane %v4853_v10, 1  ;;  %v4851_v39 = vor.u32 %v4849_v20, %v4847_v23 }
 0x463   : > { %v2268_v61 = vpop.f32.mrf.mxu3  ;;  %v5382_v26 = vsel %vm1997_vm3, %v5380_v63, %v5381_v59 }
 0x464   : > { %v2357_v1 = vadd.f32 %v2268_v61, %v12580_v47  ;;  %v12583_v47 = vld [vmem:[#allocation64_spill] sm:$0xff] }
 0x466   : > { %v2888_v25 = vadd.f32 %v11136_v38, %v2357_v1  ;;  %v4856_v38 = vsel %vm1256_vm2, %v4851_v39, %v4855_v54  ;;  %v12584_v1 = vld [vmem:[#allocation60_spill] sm:$0xff]  ;;  %v5383_v39 = vrot.slane %v11181_v15, 1 }
 0x467   : > { %9126 = vmatmul.msk.bf16.vlgmr.msra.gmra.mxu2 %vm578_vm0, %v5382_v26  ;;  %v12585_v26 = vrot.slane %v12584_v1, 1  ;;  %v9946_v1 = vld [vmem:[#allocation2 + $0x8] sm:$0xf0] }
 0x468   : > { %v11276_v8 = vpop.f32.mrf.mxu0  ;;  %v11280_v12 = vadd.f32 %v3572_v50, %v2888_v25  ;;  %v11293_v50 = vld [vmem:[#allocation2 + $0x40] sm:$0xff] }
 0x469   : > { %12581 = vst [vmem:[#allocation61_spill] sm:$0xff] %v11276_v8  ;;  %v11282_v2 = vpop.f32.mrf.mxu1  ;;  %v9947_v8 = vld [vmem:[#allocation2 + $0x8] sm:$0xe] }
 0x46a   : > { %12582 = vst [vmem:[#allocation101_spill] sm:$0xff] %v11280_v12  ;;  %v3582_v61 = vpop.f32.mrf.mxu2  ;;  %v9948_v15 = vor.u32 %v9947_v8, %v9946_v1 }
 0x46b   : > { %v2270_v60 = vpop.f32.mrf.mxu3 }
 0x46c   : > { %v2358_v19 = vadd.f32 %v2270_v60, %v12583_v47  ;;  %9088 = vmatmul.msk.bf16.gmra.mxu1 %vm578_vm0, %v4856_v38  ;;  %v12588_v47 = vld [vmem:[#allocation65_spill] sm:$0xff] }
 0x46e   : > { %v2889_v63 = vadd.f32 %v11143_v37, %v2358_v19  ;;  %v4861_v37 = vshll.u32 %v11293_v50, 16 }
 0x470   : > { %8439 = vmatmul.msk.bf16.gmra.mxu3 %vm578_vm0, %v12585_v26  ;;  %v11291_v10 = vpop.f32.mrf.mxu0  ;;  %v11295_v25 = vadd.f32 %v3574_v55, %v2889_v63  ;;  %v5384_v26 = vsel %vm1997_vm3, %v5381_v59, %v5383_v39  ;;  %v4857_v55 = vshrl.u32 %v11262_v40, 16  ;;  %v4863_v63 = vrot.slane %v4861_v37, 1 }
 0x471   : > { %12586 = vst [vmem:[#allocation64_spill] sm:$0xff] %v11291_v10  ;;  %v11297_v23 = vpop.f32.mrf.mxu1  ;;  %v12592_v37 = vrot.slane %v12591_v16, 1 }
 0x472   : > { %12587 = vst [vmem:[#allocation60_spill] sm:$0xff] %v11295_v25  ;;  %v3584_v60 = vpop.f32.mrf.mxu2 }
 0x473   : > { %v2273_v20 = vpop.f32.mrf.mxu3 }
 0x474   : > { %v2359_v38 = vadd.f32 %v2273_v20, %v12588_v47  ;;  %v4859_v20 = vor.u32 %v4857_v55, %v4855_v54  ;;  %v11322_v54 = vld [vmem:[#allocation2 + $0x48] sm:$0xff] }
 0x475   : > { %v4869_v16 = vshll.u32 %v11322_v54, 16 }
 0x476   : > { %v2890_v19 = vadd.f32 %v11150_v48, %v2359_v38  ;;  %v12590_v48 = vld [vmem:[#allocation66_spill] sm:$0xff]  ;;  %v4864_v59 = vsel %vm1256_vm2, %v4859_v20, %v4863_v63 }
 0x477   : > { %9127 = vmatmul.msk.bf16.gmra.mxu2 %vm578_vm0, %v5384_v26 }
 0x478   : > { %v11304_v10 = vpop.f32.mrf.mxu0  ;;  %v11308_v25 = vadd.f32 %v3577_v24, %v2890_v19 }
 0x479   : > { %12589 = vst [vmem:[#allocation65_spill] sm:$0xff] %v11304_v10  ;;  %v11310_v12 = vpop.f32.mrf.mxu1  ;;  %v3689_v10 = vrot.slane %v9948_v15, 1  ;;  %v5385_v15 = vrot.slane %v11210_v0, 1 }
 0x47a   : > { %v3587_v21 = vpop.f32.mrf.mxu2 }
 0x47b   : > { %v2275_v47 = vpop.f32.mrf.mxu3  ;;  %v3691_v24 = vsel %vm1997_vm3, %v3689_v10, %v12592_v37 }
 0x47c   : > { %v2360_v38 = vadd.f32 %v2275_v47, %v12590_v48  ;;  %9089 = vmatmul.msk.bf16.gmra.mxu1 %vm578_vm0, %v4864_v59  ;;  %v12594_v47 = vld [vmem:[#allocation67_spill] sm:$0xff]  ;;  %v9855_v48 = vld [vmem:[%s12410_s5 + $0x28] sm:$0xff]  ;;  %v4865_v59 = vshrl.u32 %v11293_v50, 16 }
 0x47d   : > { %6089 = vmatpush.bf16.msrb.mxu0 %v9855_v48 }
 0x47e   : > { %v2891_v26 = vadd.f32 %v11159_v56, %v2360_v38  ;;  %v5386_v38 = vsel %vm1997_vm3, %v5383_v39, %v5385_v15 }
 0x480   : > { %8768 = vmatmul.msk.bf16.vlgmr.msrb.gmra.mxu3 %vm578_vm0, %v3691_v24  ;;  %v11320_v8 = vpop.f32.mrf.mxu0  ;;  %v11324_v19 = vadd.f32 %v3579_v18, %v2891_v26  ;;  %v4871_v26 = vrot.slane %v4869_v16, 1  ;;  %v4867_v24 = vor.u32 %v4865_v59, %v4863_v63  ;;  %v11348_v16 = vld [vmem:[#allocation2 + $0x50] sm:$0xff]  ;;  %v5387_v59 = vrot.slane %v11237_v62, 1 }
 0x481   : > { %12593 = vst [vmem:[#allocation66_spill] sm:$0xff] %v11320_v8  ;;  %v11326_v1 = vpop.f32.mrf.mxu1 }
 0x482   : > { %v3589_v20 = vpop.f32.mrf.mxu2  ;;  %v4872_v8 = vsel %vm1256_vm2, %v4867_v24, %v4871_v26  ;;  %v4877_v24 = vshll.u32 %v11348_v16, 16 }
 0x483   : > { %v2278_v55 = vpop.f32.mrf.mxu3 }
 0x484   : > { %v2361_v56 = vadd.f32 %v2278_v55, %v12594_v47  ;;  %v12596_v47 = vld [vmem:[#allocation68_spill] sm:$0xff] }
 0x486   : > { %v2892_v10 = vadd.f32 %v11171_v49, %v2361_v56 }
 0x487   : > { %9128 = vmatmul.msk.bf16.gmra.mxu2 %vm578_vm0, %v5386_v38 }
 0x488   : > { %v11336_v18 = vpop.f32.mrf.mxu0  ;;  %v11340_v0 = vadd.f32 %v3582_v61, %v2892_v10 }
 0x489   : > { %12595 = vst [vmem:[#allocation4_spill] sm:$0xff] %v11336_v18  ;;  %v2839_v37 = vpop.f32.mrf.mxu1  ;;  %v12597_v18 = vld [vmem:[#allocation5_spill] sm:$0xff] }
 0x48a   : > { %v3592_v49 = vpop.f32.mrf.mxu2  ;;  %v12599_v37 = vld [vmem:[#allocation69_spill] sm:$0xff] }
 0x48b   : > { %v2280_v55 = vpop.f32.mrf.mxu3 }
 0x48c   : > { %v2362_v56 = vadd.f32 %v2280_v55, %v12596_v47  ;;  %9090 = vmatmul.msk.bf16.gmra.mxu1 %vm578_vm0, %v4872_v8 }
 0x48e   : > { %v2893_v39 = vadd.f32 %v11185_v33, %v2362_v56  ;;  %v5388_v33 = vsel %vm1997_vm3, %v5385_v15, %v5387_v59  ;;  %v12602_v15 = vld [vmem:[#allocation6_spill] sm:$0xff] }
 0x490   : > { %8769 = vmatmul.msk.bf16.gmra.mxu3 %vm578_vm0, %v12597_v18  ;;  %v4530_v38 = vpop.f32.mrf.mxu0  ;;  %v11350_v61 = vadd.f32 %v3584_v60, %v2893_v39  ;;  %v4873_v18 = vshrl.u32 %v11322_v54, 16  ;;  %v4879_v60 = vrot.slane %v4877_v24, 1 }
 0x491   : > { %v2841_v10 = vpop.f32.mrf.mxu1 }
 0x492   : > { %12598 = vst [vmem:[#allocation67_spill] sm:$0xff] %v11350_v61  ;;  %v3594_v48 = vpop.f32.mrf.mxu2  ;;  %v4875_v38 = vor.u32 %v4873_v18, %v4871_v26  ;;  %v12601_v61 = vld [vmem:[#allocation70_spill] sm:$0xff] }
 0x493   : > { %v2283_v63 = vpop.f32.mrf.mxu3 }
 0x494   : > { %v2363_v55 = vadd.f32 %v2283_v63, %v12599_v37  ;;  %v4880_v37 = vsel %vm1256_vm2, %v4875_v38, %v4879_v60 }
 0x496   : > { %v2894_v8 = vadd.f32 %v11197_v7, %v2363_v55 }
 0x497   : > { %9129 = vmatmul.msk.bf16.gmra.mxu2 %vm578_vm0, %v5388_v33  ;;  %v11367_v33 = vld [vmem:[#allocation2 + $0x58] sm:$0xff] }
 0x498   : > { %v4532_v47 = vpop.f32.mrf.mxu0  ;;  %v11359_v56 = vadd.f32 %v3587_v21, %v2894_v8 }
 0x499   : > { %v2844_v39 = vpop.f32.mrf.mxu1  ;;  %v5389_v47 = vrot.slane %v11262_v40, 1 }
 0x49a   : > { %12600 = vst [vmem:[#allocation68_spill] sm:$0xff] %v11359_v56  ;;  %v3597_v62 = vpop.f32.mrf.mxu2  ;;  %v4885_v39 = vshll.u32 %v11367_v33, 16  ;;  %v12627_v56 = vld [vmem:[#allocation75_spill] sm:$0xff] }
 0x49b   : > { %v2285_v10 = vpop.f32.mrf.mxu3 }
 0x49c   : > { %v2364_v63 = vadd.f32 %v2285_v10, %v12601_v61  ;;  %9091 = vmatmul.msk.bf16.gmra.mxu1 %vm578_vm0, %v4880_v37  ;;  %v12604_v61 = vld [vmem:[#allocation71_spill] sm:$0xff] }
 0x49e   : > { %v2895_v7 = vadd.f32 %v11214_v3, %v2364_v63  ;;  %v5390_v3 = vsel %vm1997_vm3, %v5387_v59, %v5389_v47  ;;  %v4881_v63 = vshrl.u32 %v11348_v16, 16  ;;  %v12607_v59 = vld [vmem:[#allocation7_spill] sm:$0xff] }
 0x4a0   : > { %8770 = vmatmul.msk.bf16.gmra.mxu3 %vm578_vm0, %v12602_v15  ;;  %v4535_v55 = vpop.f32.mrf.mxu0  ;;  %v11369_v21 = vadd.f32 %v3589_v20, %v2895_v7  ;;  %v4887_v20 = vrot.slane %v4885_v39, 1  ;;  %v4883_v15 = vor.u32 %v4881_v63, %v4879_v60 }
 0x4a1   : > { %v2846_v24 = vpop.f32.mrf.mxu1 }
 0x4a2   : > { %12603 = vst [vmem:[#allocation5_spill] sm:$0xff] %v11369_v21  ;;  %v3599_v8 = vpop.f32.mrf.mxu2  ;;  %v12606_v24 = vld [vmem:[#allocation72_spill] sm:$0xff] }
 0x4a3   : > { %v2288_v26 = vpop.f32.mrf.mxu3 }
 0x4a4   : > { %v2365_v18 = vadd.f32 %v2288_v26, %v12604_v61  ;;  %v4888_v61 = vsel %vm1256_vm2, %v4883_v15, %v4887_v20 }
 0x4a6   : > { %v2896_v38 = vadd.f32 %v11226_v45, %v2365_v18  ;;  %v11388_v18 = vld [vmem:[#allocation2 + $0x60] sm:$0xff] }
 0x4a7   : > { %9130 = vmatmul.msk.bf16.gmra.mxu2 %vm578_vm0, %v5390_v3  ;;  %v5391_v3 = vrot.slane %v11293_v50, 1  ;;  %v4893_v15 = vshll.u32 %v11388_v18, 16 }
 0x4a8   : > { %v4537_v10 = vpop.f32.mrf.mxu0  ;;  %v11378_v37 = vadd.f32 %v3592_v49, %v2896_v38 }
 0x4a9   : > { %v11380_v7 = vpop.f32.mrf.mxu1  ;;  %v12609_v10 = vld [vmem:[#allocation74_spill] sm:$0xff] }
 0x4aa   : > { %12605 = vst [vmem:[#allocation69_spill] sm:$0xff] %v11378_v37  ;;  %v3602_v55 = vpop.f32.mrf.mxu2 }
 0x4ab   : > { %v2290_v40 = vpop.f32.mrf.mxu3 }
 0x4ac   : > { %v2366_v26 = vadd.f32 %v2290_v40, %v12606_v24  ;;  %9092 = vmatmul.msk.bf16.gmra.mxu1 %vm578_vm0, %v4888_v61  ;;  %v4889_v24 = vshrl.u32 %v11367_v33, 16 }
 0x4ae   : > { %v2897_v45 = vadd.f32 %v11241_v42, %v2366_v26  ;;  %v5392_v42 = vsel %vm1997_vm3, %v5389_v47, %v5391_v3  ;;  %v12612_v47 = vld [vmem:[#allocation8_spill] sm:$0xff] }
 0x4b0   : > { %8771 = vmatmul.msk.bf16.gmra.mxu3 %vm578_vm0, %v12607_v59  ;;  %v11390_v49 = vadd.f32 %v3594_v48, %v2897_v45  ;;  %v4895_v48 = vrot.slane %v4893_v15, 1  ;;  %v4891_v45 = vor.u32 %v4889_v24, %v4887_v20 }
 0x4b1   : > { %v11392_v39 = vpop.f32.mrf.mxu1 }
 0x4b2   : > { %12608 = vst [vmem:[#allocation70_spill] sm:$0xff] %v11390_v49  ;;  %v3604_v38 = vpop.f32.mrf.mxu2  ;;  %v12611_v49 = vld [vmem:[#allocation76_spill] sm:$0xff] }
 0x4b3   : > { %v2293_v60 = vpop.f32.mrf.mxu3 }
 0x4b4   : > { %v2367_v63 = vadd.f32 %v2293_v60, %v12609_v10  ;;  %v4896_v10 = vsel %vm1256_vm2, %v4891_v45, %v4895_v48 }
 0x4b6   : > { %v2898_v40 = vadd.f32 %v11252_v58, %v2367_v63  ;;  %v11411_v63 = vld [vmem:[#allocation2 + $0x68] sm:$0xff] }
 0x4b7   : > { %9131 = vmatmul.msk.bf16.gmra.mxu2 %vm578_vm0, %v5392_v42  ;;  %v5393_v42 = vrot.slane %v11322_v54, 1  ;;  %v4901_v45 = vshll.u32 %v11411_v63, 16 }
 0x4b8   : > { %v11401_v26 = vadd.f32 %v3597_v62, %v2898_v40 }
 0x4b9   : > { %v11403_v61 = vpop.f32.mrf.mxu1 }
 0x4ba   : > { %12610 = vst [vmem:[#allocation6_spill] sm:$0xff] %v11401_v26  ;;  %v3607_v50 = vpop.f32.mrf.mxu2  ;;  %v12616_v26 = vld [vmem:[#allocation80_spill] sm:$0xff] }
 0x4bb   : > { %v2295_v59 = vpop.f32.mrf.mxu3 }
 0x4bc   : > { %v2368_v60 = vadd.f32 %v2295_v59, %v12611_v49  ;;  %9093 = vmatmul.msk.bf16.gmra.mxu1 %vm578_vm0, %v4896_v10  ;;  %v12614_v49 = vld [vmem:[#allocation78_spill] sm:$0xff] }
 0x4be   : > { %v2899_v58 = vadd.f32 %v11269_v22, %v2368_v60  ;;  %v5394_v22 = vsel %vm1997_vm3, %v5391_v3, %v5393_v42  ;;  %v4897_v60 = vshrl.u32 %v11388_v18, 16  ;;  %v12617_v3 = vld [vmem:[#allocation9_spill] sm:$0xff] }
 0x4c0   : > { %8772 = vmatmul.msk.bf16.gmra.mxu3 %vm578_vm0, %v12612_v47  ;;  %v11413_v62 = vadd.f32 %v3599_v8, %v2899_v58  ;;  %v4903_v8 = vrot.slane %v4901_v45, 1  ;;  %v4899_v47 = vor.u32 %v4897_v60, %v4895_v48 }
 0x4c1   : > { %v11415_v15 = vpop.f32.mrf.mxu1 }
 0x4c2   : > { %12613 = vst [vmem:[#allocation71_spill] sm:$0xff] %v11413_v62  ;;  %v3609_v40 = vpop.f32.mrf.mxu2 }
 0x4c3   : > { %v2298_v20 = vpop.f32.mrf.mxu3 }
 0x4c4   : > { %v2369_v24 = vadd.f32 %v2298_v20, %v12614_v49  ;;  %v4904_v49 = vsel %vm1256_vm2, %v4899_v47, %v4903_v8 }
 0x4c6   : > { %v2900_v59 = vadd.f32 %v11282_v2, %v2369_v24  ;;  %v11434_v24 = vld [vmem:[#allocation2 + $0x70] sm:$0xff] }
 0x4c7   : > { %9132 = vmatmul.msk.bf16.gmra.mxu2 %vm578_vm0, %v5394_v22  ;;  %v5395_v22 = vrot.slane %v11348_v16, 1  ;;  %v4909_v60 = vshll.u32 %v11434_v24, 16 }
 0x4c8   : > { %v11424_v10 = vadd.f32 %v3602_v55, %v2900_v59 }
 0x4c9   : > { %v11426_v58 = vpop.f32.mrf.mxu1 }
 0x4ca   : > { %12615 = vst [vmem:[#allocation72_spill] sm:$0xff] %v11424_v10  ;;  %v3612_v54 = vpop.f32.mrf.mxu2 }
 0x4cb   : > { %v2300_v62 = vpop.f32.mrf.mxu3  ;;  %v4905_v54 = vshrl.u32 %v11411_v63, 16 }
 0x4cc   : > { %v2370_v20 = vadd.f32 %v2300_v62, %v12616_v26  ;;  %9094 = vmatmul.msk.bf16.gmra.mxu1 %vm578_vm0, %v4904_v49  ;;  %v12619_v26 = vld [vmem:[#allocation82_spill] sm:$0xff] }
 0x4ce   : > { %v2901_v2 = vadd.f32 %v11297_v23, %v2370_v20  ;;  %v5396_v23 = vsel %vm1997_vm3, %v5393_v42, %v5395_v22  ;;  %v12622_v42 = vld [vmem:[#allocation10_spill] sm:$0xff] }
 0x4d0   : > { %8773 = vmatmul.msk.bf16.gmra.mxu3 %vm578_vm0, %v12617_v3  ;;  %v11436_v55 = vadd.f32 %v3604_v38, %v2901_v2  ;;  %v4911_v38 = vrot.slane %v4909_v60, 1  ;;  %v4907_v2 = vor.u32 %v4905_v54, %v4903_v8 }
 0x4d1   : > { %v11438_v45 = vpop.f32.mrf.mxu1 }
 0x4d2   : > { %12618 = vst [vmem:[#allocation7_spill] sm:$0xff] %v11436_v55  ;;  %v3614_v59 = vpop.f32.mrf.mxu2 }
 0x4d3   : > { %v2303_v48 = vpop.f32.mrf.mxu3  ;;  %v12621_v59 = vld [vmem:[#allocation84_spill] sm:$0xff] }
 0x4d4   : > { %v2371_v62 = vadd.f32 %v2303_v48, %v12619_v26  ;;  %v4912_v26 = vsel %vm1256_vm2, %v4907_v2, %v4911_v38 }
 0x4d6   : > { %v2902_v47 = vadd.f32 %v11310_v12, %v2371_v62  ;;  %v11457_v62 = vld [vmem:[#allocation2 + $0x78] sm:$0xff] }
 0x4d7   : > { %9133 = vmatmul.msk.bf16.gmra.mxu2 %vm578_vm0, %v5396_v23  ;;  %v5397_v23 = vrot.slane %v11367_v33, 1  ;;  %v4917_v54 = vshll.u32 %v11457_v62, 16  ;;  %v11474_v33 = vld [vmem:[#allocation2 + $0x80] sm:$0xff] }
 0x4d8   : > { %v11447_v20 = vadd.f32 %v3607_v50, %v2902_v47  ;;  %v4929_v10 = vshrl.u32 %v11474_v33, 16 }
 0x4d9   : > { %v11449_v49 = vpop.f32.mrf.mxu1  ;;  %v5398_v2 = vsel %vm1997_vm3, %v5395_v22, %v5397_v23 }
 0x4da   : > { %12620 = vst [vmem:[#allocation74_spill] sm:$0xff] %v11447_v20  ;;  %v3617_v16 = vpop.f32.mrf.mxu2 }
 0x4db   : > { %v2305_v3 = vpop.f32.mrf.mxu3 }
 0x4dc   : > { %v2372_v48 = vadd.f32 %v2305_v3, %v12621_v59  ;;  %9095 = vmatmul.msk.bf16.gmra.mxu1 %vm578_vm0, %v4912_v26  ;;  %v4919_v3 = vrot.slane %v4917_v54, 1  ;;  %v4925_v54 = vshll.u32 %v11474_v33, 16 }
 0x4de   : > { %v2903_v12 = vadd.f32 %v11326_v1, %v2372_v48  ;;  %v4913_v1 = vshrl.u32 %v11434_v24, 16 }
 0x4e0   : > { %8774 = vmatmul.msk.bf16.gmra.mxu3 %vm578_vm0, %v12622_v42  ;;  %v11459_v50 = vadd.f32 %v3609_v40, %v2903_v12  ;;  %v4915_v59 = vor.u32 %v4913_v1, %v4911_v38  ;;  %v12624_v12 = vld [vmem:[#allocation11_spill] sm:$0xff]  ;;  %v4927_v1 = vrot.slane %v4925_v54, 1  ;;  %v5401_v54 = vrot.slane %v11411_v63, 1 }
 0x4e1   : > { %v11461_v60 = vpop.f32.mrf.mxu1 }
 0x4e2   : > { %12623 = vst [vmem:[#allocation76_spill] sm:$0xff] %v11459_v50  ;;  %v3619_v47 = vpop.f32.mrf.mxu2  ;;  %v4920_v26 = vsel %vm1256_vm2, %v4915_v59, %v4919_v3 }
 0x4e3   : > { %v2308_v8 = vpop.f32.mrf.mxu3  ;;  %v5399_v47 = vrot.slane %v11388_v18, 1  ;;  %v11489_v18 = vld [vmem:[#allocation2 + $0x88] sm:$0xff] }
 0x4e5   : > { %v5400_v38 = vsel %vm1997_vm3, %v5397_v23, %v5399_v47 }
 0x4e7   : > { %9134 = vmatmul.msk.bf16.gmra.mxu2 %vm578_vm0, %v5398_v2  ;;  %v4921_v2 = vshrl.u32 %v11457_v62, 16 }
 0x4e9   : > { %v11468_v16 = vpop.f32.mrf.mxu1 }
 0x4ea   : > { %v5550_v48 = vpop.f32.mrf.mxu2 }
 0x4eb   : > { %v2310_v40 = vpop.f32.mrf.mxu3 }
 0x4ec   : > { %9096 = vmatmul.msk.bf16.gmra.mxu1 %vm578_vm0, %v4920_v26  ;;  %v4923_v40 = vor.u32 %v4921_v2, %v4919_v3  ;;  %v4933_v3 = vshll.u32 %v11489_v18, 16  ;;  %v12626_v2 = vld [vmem:[#allocation73_spill] sm:$0xff] }
 0x4ee   : > { %v4928_v50 = vsel %vm1256_vm2, %v4923_v40, %v4927_v1  ;;  %v5402_v40 = vsel %vm1997_vm3, %v5399_v47, %v5401_v54  ;;  %v4935_v63 = vrot.slane %v4933_v3, 1  ;;  %v12628_v3 = vld [vmem:[#allocation13_spill] sm:$0xff] }
 0x4f0   : > { %8775 = vmatmul.msk.bf16.gmra.mxu3 %vm578_vm0, %v12624_v12 }
 0x4f1   : > { %v11476_v22 = vpop.f32.mrf.mxu1 }
 0x4f2   : > { %v5552_v8 = vpop.f32.mrf.mxu2 }
 0x4f3   : > { %v2313_v42 = vpop.f32.mrf.mxu3 }
 0x4f4   : > { %v12625_v42 = vld [vmem:[#allocation12_spill] sm:$0xff] }
 0x4f7   : > { %9135 = vmatmul.msk.bf16.gmra.mxu2 %vm578_vm0, %v5400_v38 }
 0x4f9   : > { %v11483_v59 = vpop.f32.mrf.mxu1 }
 0x4fa   : > { %v5555_v12 = vpop.f32.mrf.mxu2 }
 0x4fb   : > { %v2315_v26 = vpop.f32.mrf.mxu3 }
 0x4fc   : > { %9097 = vmatmul.msk.bf16.gmra.mxu1 %vm578_vm0, %v4928_v50 }
 0x500   : > { %8776 = vmatmul.msk.bf16.gmra.mxu3 %vm578_vm0, %v12625_v42  ;;  %v11502_v42 = vld [vmem:[%s12409_s4] ss:$0 sm:$0xff] }
 0x501   : > { %v11491_v23 = vpop.f32.mrf.mxu1 }
 0x502   : > { %v5557_v20 = vpop.f32.mrf.mxu2 }
 0x503   : > { %v3859_v38 = vpop.f32.mrf.mxu3 }
 0x504   : > { %v4008_v55 = vadd.f32 %v3859_v38, %v10860_v28  ;;  %v4931_v38 = vor.u32 %v4929_v10, %v4927_v1  ;;  %v11517_v10 = vld [vmem:[#allocation2 + $0x90] sm:$0xff] }
 0x506   : > { %v4539_v26 = vadd.f32 %v12626_v2, %v4008_v55  ;;  %v4936_v2 = vsel %vm1256_vm2, %v4931_v38, %v4935_v63 }
 0x507   : > { %9136 = vmatmul.msk.bf16.gmra.mxu2 %vm578_vm0, %v5402_v40 }
 0x508   : > { %v5312_v50 = vadd.f32 %v11380_v7, %v4539_v26 }
 0x509   : > { %v11506_v28 = vpop.f32.mrf.mxu1 }
 0x50a   : > { %v5699_v37 = vadd.f32 %v5550_v48, %v5312_v50  ;;  %v5560_v55 = vpop.f32.mrf.mxu2  ;;  %v5403_v50 = vrot.slane %v11434_v24, 1 }
 0x50b   : > { %v3861_v21 = vpop.f32.mrf.mxu3 }
 0x50c   : > { %v5762_v47 = vadd.f32 %v11502_v42, %v5699_v37  ;;  %v4009_v7 = vadd.f32 %v3861_v21, %v10872_v52  ;;  %9098 = vmatmul.msk.bf16.gmra.mxu1 %vm578_vm0, %v4936_v2 }
 0x50e   : > { %v5821_v26 = vmax.f32 %v5762_v47, 0.0  ;;  %v4540_v40 = vadd.f32 %v12627_v56, %v4009_v7  ;;  %v4941_v47 = vshll.u32 %v11517_v10, 16 }
 0x510   : > { %5880 = vst.msk [vmem:[#allocation3] sm:$0xff] %vm578_vm0, %v5821_v26  ;;  %v5313_v48 = vadd.f32 %v11392_v39, %v4540_v40  ;;  %8777 = vmatmul.msk.bf16.gmra.mxu3 %vm578_vm0, %v12628_v3  ;;  %v12629_v39 = vld [vmem:[#allocation77_spill] sm:$0xff]  ;;  %v5404_v26 = vsel %vm1997_vm3, %v5401_v54, %v5403_v50  ;;  %v4937_v40 = vshrl.u32 %v11489_v18, 16  ;;  %v4943_v24 = vrot.slane %v4941_v47, 1  ;;  %v12631_v47 = vld [vmem:[#allocation14_spill] sm:$0xff] }
 0x511   : > { %v11519_v37 = vpop.f32.mrf.mxu1 }
 0x512   : > { %v5700_v1 = vadd.f32 %v5552_v8, %v5313_v48  ;;  %v5562_v21 = vpop.f32.mrf.mxu2 }
 0x513   : > { %v3864_v52 = vpop.f32.mrf.mxu3 }
 0x514   : > { %v5763_v38 = vadd.f32 %v11502_v42, %v5700_v1  ;;  %v4010_v56 = vadd.f32 %v3864_v52, %v10884_v17  ;;  %v4939_v17 = vor.u32 %v4937_v40, %v4935_v63  ;;  %v11542_v63 = vld [vmem:[#allocation2 + $0x98] sm:$0xff]  ;;  %v5405_v40 = vrot.slane %v11457_v62, 1 }
 0x516   : > { %v5822_v7 = vmax.f32 %v5763_v38, 0.0  ;;  %v4541_v2 = vadd.f32 %v12629_v39, %v4010_v56  ;;  %v4944_v54 = vsel %vm1256_vm2, %v4939_v17, %v4943_v24 }
 0x517   : > { %9137 = vmatmul.msk.bf16.gmra.mxu2 %vm578_vm0, %v5404_v26 }
 0x518   : > { %5881 = vst.msk [vmem:[#allocation3 + $0x8] sm:$0xff] %vm578_vm0, %v5822_v7  ;;  %v5314_v8 = vadd.f32 %v11403_v61, %v4541_v2  ;;  %v12630_v7 = vld [vmem:[#allocation79_spill] sm:$0xff] }
 0x519   : > { %v11531_v3 = vpop.f32.mrf.mxu1 }
 0x51a   : > { %v5701_v48 = vadd.f32 %v5555_v12, %v5314_v8  ;;  %v5565_v52 = vpop.f32.mrf.mxu2 }
 0x51b   : > { %v3866_v1 = vpop.f32.mrf.mxu3 }
 0x51c   : > { %v5764_v38 = vadd.f32 %v11502_v42, %v5701_v48  ;;  %v4011_v56 = vadd.f32 %v3866_v1, %v10896_v34  ;;  %9099 = vmatmul.msk.bf16.gmra.mxu1 %vm578_vm0, %v4944_v54  ;;  %v4949_v1 = vshll.u32 %v11542_v63, 16  ;;  %v5406_v54 = vsel %vm1997_vm3, %v5403_v50, %v5405_v40 }
 0x51e   : > { %v5823_v61 = vmax.f32 %v5764_v38, 0.0  ;;  %v4542_v39 = vadd.f32 %v12630_v7, %v4011_v56  ;;  %v4951_v62 = vrot.slane %v4949_v1, 1  ;;  %v12634_v1 = vld [vmem:[#allocation15_spill] sm:$0xff] }
 0x520   : > { %5882 = vst.msk [vmem:[#allocation3 + $0x10] sm:$0xff] %vm578_vm0, %v5823_v61  ;;  %v5315_v12 = vadd.f32 %v11415_v15, %v4542_v39  ;;  %8778 = vmatmul.msk.bf16.gmra.mxu3 %vm578_vm0, %v12631_v47  ;;  %v12632_v15 = vld [vmem:[#allocation81_spill] sm:$0xff]  ;;  %v4945_v61 = vshrl.u32 %v11517_v10, 16 }
 0x521   : > { %v11544_v26 = vpop.f32.mrf.mxu1 }
 0x522   : > { %v5702_v2 = vadd.f32 %v5557_v20, %v5315_v12  ;;  %v5567_v8 = vpop.f32.mrf.mxu2 }
 0x523   : > { %v3869_v34 = vpop.f32.mrf.mxu3 }
 0x524   : > { %v5765_v48 = vadd.f32 %v11502_v42, %v5702_v2  ;;  %v4012_v17 = vadd.f32 %v3869_v34, %v10908_v11  ;;  %v4947_v11 = vor.u32 %v4945_v61, %v4943_v24  ;;  %v11567_v24 = vld [vmem:[#allocation2 + $0xa0] sm:$0xff] }
 0x526   : > { %v5824_v38 = vmax.f32 %v5765_v48, 0.0  ;;  %v4543_v56 = vadd.f32 %v12632_v15, %v4012_v17  ;;  %v4952_v50 = vsel %vm1256_vm2, %v4947_v11, %v4951_v62  ;;  %v12633_v48 = vld [vmem:[#allocation83_spill] sm:$0xff] }
 0x527   : > { %9138 = vmatmul.msk.bf16.gmra.mxu2 %vm578_vm0, %v5406_v54  ;;  %v5407_v54 = vrot.slane %v11474_v33, 1 }
 0x528   : > { %5883 = vst.msk [vmem:[#allocation3 + $0x18] sm:$0xff] %vm578_vm0, %v5824_v38  ;;  %v5316_v20 = vadd.f32 %v11426_v58, %v4543_v56 }
 0x529   : > { %v11556_v39 = vpop.f32.mrf.mxu1 }
 0x52a   : > { %v5703_v7 = vadd.f32 %v5560_v55, %v5316_v20  ;;  %v5570_v47 = vpop.f32.mrf.mxu2 }
 0x52b   : > { %v3871_v12 = vpop.f32.mrf.mxu3 }
 0x52c   : > { %v5766_v2 = vadd.f32 %v11502_v42, %v5703_v7  ;;  %v4013_v34 = vadd.f32 %v3871_v12, %v10920_v13  ;;  %9100 = vmatmul.msk.bf16.gmra.mxu1 %vm578_vm0, %v4952_v50  ;;  %v4957_v7 = vshll.u32 %v11567_v24, 16 }
 0x52e   : > { %v5825_v58 = vmax.f32 %v5766_v2, 0.0  ;;  %v4544_v17 = vadd.f32 %v12633_v48, %v4013_v34  ;;  %v5408_v2 = vsel %vm1997_vm3, %v5405_v40, %v5407_v54  ;;  %v4953_v34 = vshrl.u32 %v11542_v63, 16 }
 0x52f   : > { %v4959_v33 = vrot.slane %v4957_v7, 1 }
 0x530   : > { %5884 = vst.msk [vmem:[#allocation3 + $0x20] sm:$0xff] %vm578_vm0, %v5825_v58  ;;  %v5317_v55 = vadd.f32 %v11438_v45, %v4544_v17  ;;  %8779 = vmatmul.msk.bf16.gmra.mxu3 %vm578_vm0, %v12634_v1  ;;  %v12635_v45 = vld [vmem:[#allocation85_spill] sm:$0xff] }
 0x531   : > { %v11569_v15 = vpop.f32.mrf.mxu1 }
 0x532   : > { %v5704_v38 = vadd.f32 %v5562_v21, %v5317_v55  ;;  %v5572_v56 = vpop.f32.mrf.mxu2 }
 0x533   : > { %v3874_v13 = vpop.f32.mrf.mxu3 }
 0x534   : > { %v5767_v20 = vadd.f32 %v11502_v42, %v5704_v38  ;;  %v4014_v61 = vadd.f32 %v3874_v13, %v10932_v32  ;;  %v4955_v32 = vor.u32 %v4953_v34, %v4951_v62  ;;  %v12636_v38 = vld [vmem:[#allocation86_spill] sm:$0xff] }
 0x535   : > { %v11592_v62 = vld [vmem:[#allocation2 + $0xa8] sm:$0xff] }
 0x536   : > { %v5826_v11 = vmax.f32 %v5767_v20, 0.0  ;;  %v4545_v12 = vadd.f32 %v12635_v45, %v4014_v61  ;;  %v4960_v40 = vsel %vm1256_vm2, %v4955_v32, %v4959_v33  ;;  %v12637_v20 = vld [vmem:[#allocation16_spill] sm:$0xff]  ;;  %v5409_v45 = vrot.slane %v11489_v18, 1 }
 0x537   : > { %9139 = vmatmul.msk.bf16.gmra.mxu2 %vm578_vm0, %v5408_v2 }
 0x538   : > { %5885 = vst.msk [vmem:[#allocation3 + $0x28] sm:$0xff] %vm578_vm0, %v5826_v11  ;;  %v5318_v21 = vadd.f32 %v11449_v49, %v4545_v12  ;;  %v5410_v32 = vsel %vm1997_vm3, %v5407_v54, %v5409_v45 }
 0x539   : > { %v11581_v58 = vpop.f32.mrf.mxu1 }
 0x53a   : > { %v5705_v50 = vadd.f32 %v5565_v52, %v5318_v21  ;;  %v5575_v17 = vpop.f32.mrf.mxu2  ;;  %v4965_v21 = vshll.u32 %v11592_v62, 16 }
 0x53b   : > { %v3876_v48 = vpop.f32.mrf.mxu3 }
 0x53c   : > { %v5768_v55 = vadd.f32 %v11502_v42, %v5705_v50  ;;  %v4015_v1 = vadd.f32 %v3876_v48, %v10944_v29  ;;  %9101 = vmatmul.msk.bf16.gmra.mxu1 %vm578_vm0, %v4960_v40  ;;  %v4961_v48 = vshrl.u32 %v11567_v24, 16  ;;  %v4967_v18 = vrot.slane %v4965_v21, 1 }
 0x53d   : > { %v5411_v21 = vrot.slane %v11517_v10, 1 }
 0x53e   : > { %v5827_v49 = vmax.f32 %v5768_v55, 0.0  ;;  %v4546_v13 = vadd.f32 %v12636_v38, %v4015_v1 }
 0x540   : > { %5886 = vst.msk [vmem:[#allocation3 + $0x30] sm:$0xff] %vm578_vm0, %v5827_v49  ;;  %v5319_v52 = vadd.f32 %v11461_v60, %v4546_v13  ;;  %8780 = vmatmul.msk.bf16.gmra.mxu3 %vm578_vm0, %v12637_v20  ;;  %v12638_v60 = vld [vmem:[#allocation87_spill] sm:$0xff] }
 0x541   : > { %v11594_v7 = vpop.f32.mrf.mxu1 }
 0x542   : > { %v5706_v61 = vadd.f32 %v5567_v8, %v5319_v52  ;;  %v5577_v11 = vpop.f32.mrf.mxu2  ;;  %v12639_v52 = vld [vmem:[#allocation88_spill] sm:$0xff] }
 0x543   : > { %v3879_v29 = vpop.f32.mrf.mxu3 }
 0x544   : > { %v5769_v12 = vadd.f32 %v11502_v42, %v5706_v61  ;;  %v4016_v2 = vadd.f32 %v3879_v29, %v10956_v43  ;;  %v4963_v43 = vor.u32 %v4961_v48, %v4959_v33  ;;  %v12640_v61 = vld [vmem:[#allocation17_spill] sm:$0xff]  ;;  %v11617_v33 = vld [vmem:[#allocation2 + $0xb0] sm:$0xff]  ;;  %v5412_v48 = vsel %vm1997_vm3, %v5409_v45, %v5411_v21 }
 0x546   : > { %v5828_v34 = vmax.f32 %v5769_v12, 0.0  ;;  %v4547_v50 = vadd.f32 %v12638_v60, %v4016_v2  ;;  %v4968_v54 = vsel %vm1256_vm2, %v4963_v43, %v4967_v18 }
 0x547   : > { %9140 = vmatmul.msk.bf16.gmra.mxu2 %vm578_vm0, %v5410_v32 }
 0x548   : > { %5887 = vst.msk [vmem:[#allocation3 + $0x38] sm:$0xff] %vm578_vm0, %v5828_v34  ;;  %v5320_v8 = vadd.f32 %v11468_v16, %v4547_v50  ;;  %v4973_v50 = vshll.u32 %v11617_v33, 16 }
 0x549   : > { %v11606_v1 = vpop.f32.mrf.mxu1 }
 0x54a   : > { %v5707_v55 = vadd.f32 %v5570_v47, %v5320_v8  ;;  %v5580_v49 = vpop.f32.mrf.mxu2  ;;  %v4975_v10 = vrot.slane %v4973_v50, 1 }
 0x54b   : > { %v3881_v40 = vpop.f32.mrf.mxu3 }
 0x54c   : > { %v5770_v38 = vadd.f32 %v11502_v42, %v5707_v55  ;;  %v4017_v13 = vadd.f32 %v3881_v40, %v10971_v51  ;;  %9102 = vmatmul.msk.bf16.gmra.mxu1 %vm578_vm0, %v4968_v54  ;;  %v4969_v55 = vshrl.u32 %v11592_v62, 16 }
 0x54e   : > { %v5829_v16 = vmax.f32 %v5770_v38, 0.0  ;;  %v4548_v20 = vadd.f32 %v12639_v52, %v4017_v13  ;;  %v4971_v38 = vor.u32 %v4969_v55, %v4967_v18  ;;  %v11645_v18 = vld [vmem:[#allocation2 + $0xb8] sm:$0xff] }
 0x54f   : > { %v4981_v50 = vshll.u32 %v11645_v18, 16 }
 0x550   : > { %5888 = vst.msk [vmem:[#allocation3 + $0x40] sm:$0xff] %vm578_vm0, %v5829_v16  ;;  %v5321_v47 = vadd.f32 %v11476_v22, %v4548_v20  ;;  %8781 = vmatmul.msk.bf16.gmra.mxu3 %vm578_vm0, %v12640_v61  ;;  %v12641_v22 = vld [vmem:[#allocation89_spill] sm:$0xff]  ;;  %v4976_v16 = vsel %vm1256_vm2, %v4971_v38, %v4975_v10 }
 0x551   : > { %v11619_v12 = vpop.f32.mrf.mxu1 }
 0x552   : > { %v5708_v29 = vadd.f32 %v5572_v56, %v5321_v47  ;;  %v5582_v2 = vpop.f32.mrf.mxu2  ;;  %v12642_v47 = vld [vmem:[#allocation18_spill] sm:$0xff] }
 0x553   : > { %v3884_v51 = vpop.f32.mrf.mxu3 }
 0x554   : > { %v5771_v34 = vadd.f32 %v11502_v42, %v5708_v29  ;;  %v4018_v60 = vadd.f32 %v3884_v51, %v10982_v35  ;;  %v9852_v35 = vld [vmem:[%s12410_s5 + $0x10] sm:$0xff] }
 0x555   : > { %6009 = vmatpush.bf16.msra.mxu3 %v9852_v35 }
 0x556   : > { %v5830_v32 = vmax.f32 %v5771_v34, 0.0  ;;  %v4549_v8 = vadd.f32 %v12641_v22, %v4018_v60  ;;  %v5413_v34 = vrot.slane %v11542_v63, 1  ;;  %v4983_v63 = vrot.slane %v4981_v50, 1 }
 0x557   : > { %9141 = vmatmul.msk.bf16.gmra.mxu2 %vm578_vm0, %v5412_v48 }
 0x558   : > { %5889 = vst.msk [vmem:[#allocation3 + $0x48] sm:$0xff] %vm578_vm0, %v5830_v32  ;;  %v5322_v56 = vadd.f32 %v11483_v59, %v4549_v8  ;;  %v5414_v22 = vsel %vm1997_vm3, %v5411_v21, %v5413_v34  ;;  %v4977_v8 = vshrl.u32 %v11617_v33, 16 }
 0x559   : > { %v11634_v40 = vpop.f32.mrf.mxu1 }
 0x55a   : > { %v5709_v43 = vadd.f32 %v5575_v17, %v5322_v56  ;;  %v5585_v45 = vpop.f32.mrf.mxu2  ;;  %v4979_v55 = vor.u32 %v4977_v8, %v4975_v10  ;;  %v11668_v10 = vld [vmem:[#allocation2 + $0xc0] sm:$0xff]  ;;  %v11689_v8 = vld [vmem:[#allocation2 + $0xc8] sm:$0xff] }
 0x55b   : > { %v3886_v13 = vpop.f32.mrf.mxu3 }
 0x55c   : > { %v5772_v54 = vadd.f32 %v11502_v42, %v5709_v43  ;;  %v4019_v59 = vadd.f32 %v3886_v13, %v10993_v57  ;;  %9103 = vmatmul.msk.bf16.gmra.mxu1 %vm578_vm0, %v4976_v16  ;;  %v4984_v21 = vsel %vm1256_vm2, %v4979_v55, %v4983_v63 }
 0x55e   : > { %v5831_v52 = vmax.f32 %v5772_v54, 0.0  ;;  %v4550_v20 = vadd.f32 %v10857_v44, %v4019_v59 }
 0x560   : > { %5890 = vst.msk [vmem:[#allocation3 + $0x50] sm:$0xff] %vm578_vm0, %v5831_v52  ;;  %v5323_v17 = vadd.f32 %v11491_v23, %v4550_v20  ;;  %8782 = vmatmul.msk.bf16.gmra.mxu3 %vm578_vm0, %v12642_v47  ;;  %v5415_v52 = vrot.slane %v11567_v24, 1 }
 0x561   : > { %v11647_v29 = vpop.f32.mrf.mxu1 }
 0x562   : > { %v5710_v61 = vadd.f32 %v5577_v11, %v5323_v17  ;;  %v5587_v51 = vpop.f32.mrf.mxu2 }
 0x563   : > { %v3889_v57 = vpop.f32.mrf.mxu3 }
 0x564   : > { %v5773_v60 = vadd.f32 %v11502_v42, %v5710_v61  ;;  %v4020_v44 = vadd.f32 %v3889_v57, %v11004_v46  ;;  %v5416_v61 = vsel %vm1997_vm3, %v5413_v34, %v5415_v52  ;;  %v4985_v57 = vshrl.u32 %v11645_v18, 16 }
 0x566   : > { %v5832_v32 = vmax.f32 %v5773_v60, 0.0  ;;  %v4551_v23 = vadd.f32 %v10870_v53, %v4020_v44  ;;  %v4987_v50 = vor.u32 %v4985_v57, %v4983_v63 }
 0x567   : > { %9142 = vmatmul.msk.bf16.gmra.mxu2 %vm578_vm0, %v5414_v22 }
 0x568   : > { %5891 = vst.msk [vmem:[#allocation3 + $0x58] sm:$0xff] %vm578_vm0, %v5832_v32  ;;  %v5324_v11 = vadd.f32 %v11506_v28, %v4551_v23 }
 0x569   : > { %v5223_v56 = vpop.f32.mrf.mxu1 }
 0x56a   : > { %v5711_v48 = vadd.f32 %v5580_v49, %v5324_v11  ;;  %v5590_v35 = vpop.f32.mrf.mxu2  ;;  %v12643_v49 = vld [vmem:[#allocation21_spill] sm:$0xff] }
 0x56b   : > { %v3891_v46 = vpop.f32.mrf.mxu3 }
 0x56c   : > { %v5774_v43 = vadd.f32 %v11502_v42, %v5711_v48  ;;  %v4021_v53 = vadd.f32 %v3891_v46, %v11011_v14  ;;  %9104 = vmatmul.msk.bf16.gmra.mxu1 %vm578_vm0, %v4984_v21 }
 0x56e   : > { %v5833_v38 = vmax.f32 %v5774_v43, 0.0  ;;  %v4552_v28 = vadd.f32 %v10881_v27, %v4021_v53  ;;  %v4989_v27 = vshll.u32 %v11668_v10, 16  ;;  %v4997_v43 = vshll.u32 %v11689_v8, 16 }
 0x570   : > { %5892 = vst.msk [vmem:[#allocation3 + $0x60] sm:$0xff] %vm578_vm0, %v5833_v38  ;;  %v5325_v13 = vadd.f32 %v11519_v37, %v4552_v28  ;;  %8783 = vmatmul.msk.bf16.gmra.mxu3 %vm578_vm0, %v12643_v49  ;;  %v4991_v24 = vrot.slane %v4989_v27, 1  ;;  %v4993_v28 = vshrl.u32 %v11668_v10, 16  ;;  %v11713_v27 = vld [vmem:[#allocation2 + $0xd0] sm:$0xff] }
 0x571   : > { %v5225_v59 = vpop.f32.mrf.mxu1 }
 0x572   : > { %v5712_v54 = vadd.f32 %v5582_v2, %v5325_v13  ;;  %v5592_v14 = vpop.f32.mrf.mxu2  ;;  %v4992_v34 = vsel %vm1256_vm2, %v4987_v50, %v4991_v24  ;;  %v12647_v50 = vld [vmem:[#allocation90_spill] sm:$0xff] }
 0x573   : > { %v3894_v16 = vpop.f32.mrf.mxu3 }
 0x574   : > { %v5775_v20 = vadd.f32 %v11502_v42, %v5712_v54  ;;  %v4022_v17 = vadd.f32 %v3894_v16, %v11018_v36  ;;  %v4995_v54 = vor.u32 %v4993_v28, %v4991_v24  ;;  %v12646_v24 = vld [vmem:[#allocation19_spill] sm:$0xff] }
 0x576   : > { %v5834_v47 = vmax.f32 %v5775_v20, 0.0  ;;  %v4553_v37 = vadd.f32 %v10894_v31, %v4022_v17 }
 0x577   : > { %9143 = vmatmul.msk.bf16.gmra.mxu2 %vm578_vm0, %v5416_v61 }
 0x578   : > { %5893 = vst.msk [vmem:[#allocation3 + $0x68] sm:$0xff] %vm578_vm0, %v5834_v47  ;;  %v5326_v2 = vadd.f32 %v11531_v3, %v4553_v37 }
 0x579   : > { %v5228_v44 = vpop.f32.mrf.mxu1 }
 0x57a   : > { %v5713_v60 = vadd.f32 %v5585_v45, %v5326_v2  ;;  %v5595_v32 = vpop.f32.mrf.mxu2  ;;  %v12644_v45 = vld [vmem:[#allocation25_spill] sm:$0xff]  ;;  %v5419_v2 = vrot.slane %v11617_v33, 1 }
 0x57b   : > { %v3896_v36 = vpop.f32.mrf.mxu3 }
 0x57c   : > { %v5776_v23 = vadd.f32 %v11502_v42, %v5713_v60  ;;  %v4023_v31 = vadd.f32 %v3896_v36, %v11025_v6  ;;  %9105 = vmatmul.msk.bf16.gmra.mxu1 %vm578_vm0, %v4992_v34  ;;  %v9854_v6 = vld [vmem:[%s12410_s5 + $0x20] sm:$0xff] }
 0x57d   : > { %6090 = vmatpush.bf16.msrb.mxu0 %v9854_v6  ;;  %v12648_v6 = vld [vmem:[#allocation20_spill] sm:$0xff] }
 0x57e   : > { %v5835_v22 = vmax.f32 %v5776_v23, 0.0  ;;  %v4554_v3 = vadd.f32 %v10905_v9, %v4023_v31  ;;  %v5417_v9 = vrot.slane %v11592_v62, 1  ;;  %v4999_v62 = vrot.slane %v4997_v43, 1 }
 0x57f   : > { %v5001_v23 = vshrl.u32 %v11689_v8, 16 }
 0x580   : > { %5894 = vst.msk [vmem:[#allocation3 + $0x70] sm:$0xff] %vm578_vm0, %v5835_v22  ;;  %v5327_v11 = vadd.f32 %v11544_v26, %v4554_v3  ;;  %8784 = vmatmul.msk.bf16.gmra.mxu3 %vm578_vm0, %v12644_v45  ;;  %v5418_v38 = vsel %vm1997_vm3, %v5415_v52, %v5417_v9  ;;  %v5000_v52 = vsel %vm1256_vm2, %v4995_v54, %v4999_v62 }
 0x581   : > { %v5230_v48 = vpop.f32.mrf.mxu1  ;;  %v5420_v36 = vsel %vm1997_vm3, %v5417_v9, %v5419_v2  ;;  %v5003_v22 = vor.u32 %v5001_v23, %v4999_v62  ;;  %v12651_v62 = vld [vmem:[#allocation22_spill] sm:$0xff] }
 0x582   : > { %v5714_v63 = vadd.f32 %v5587_v51, %v5327_v11  ;;  %v5597_v55 = vpop.f32.mrf.mxu2 }
 0x583   : > { %v3899_v56 = vpop.f32.mrf.mxu3 }
 0x584   : > { %v5777_v46 = vadd.f32 %v11502_v42, %v5714_v63  ;;  %v4024_v26 = vadd.f32 %v3899_v56, %v11038_v5 }
 0x586   : > { %v5836_v53 = vmax.f32 %v5777_v46, 0.0  ;;  %v4555_v21 = vadd.f32 %v10918_v30, %v4024_v26  ;;  %v11734_v26 = vld [vmem:[#allocation2 + $0xd8] sm:$0xff] }
 0x587   : > { %9144 = vmatmul.msk.bf16.gmra.mxu2 %vm578_vm0, %v5418_v38 }
 0x588   : > { %5895 = vst.msk [vmem:[#allocation3 + $0x78] sm:$0xff] %vm578_vm0, %v5836_v53  ;;  %v5328_v51 = vadd.f32 %v11556_v39, %v4555_v21 }
 0x589   : > { %v5233_v49 = vpop.f32.mrf.mxu1 }
 0x58a   : > { %v5715_v13 = vadd.f32 %v5590_v35, %v5328_v51  ;;  %v5600_v59 = vpop.f32.mrf.mxu2  ;;  %v12645_v35 = vld [vmem:[#allocation29_spill] sm:$0xff]  ;;  %v5421_v51 = vrot.slane %v11645_v18, 1  ;;  %v5013_v49 = vshll.u32 %v11734_v26, 16 }
 0x58b   : > { %v3901_v5 = vpop.f32.mrf.mxu3 }
 0x58c   : > { %v5778_v16 = vadd.f32 %v11502_v42, %v5715_v13  ;;  %v4025_v30 = vadd.f32 %v3901_v5, %v11045_v41  ;;  %9106 = vmatmul.msk.bf16.gmra.mxu1 %vm578_vm0, %v5000_v52  ;;  %v12652_v5 = vld [vmem:[#allocation92_spill] sm:$0xff]  ;;  %v5015_v18 = vrot.slane %v5013_v49, 1 }
 0x58e   : > { %v5837_v20 = vmax.f32 %v5778_v16, 0.0  ;;  %v4556_v39 = vadd.f32 %v10929_v4, %v4025_v30  ;;  %v5005_v4 = vshll.u32 %v11713_v27, 16  ;;  %v5422_v16 = vsel %vm1997_vm3, %v5419_v2, %v5421_v51 }
 0x58f   : > { %v5009_v30 = vshrl.u32 %v11713_v27, 16 }
 0x590   : > { %5896 = vst.msk [vmem:[#allocation3 + $0x80] sm:$0xff] %vm578_vm0, %v5837_v20  ;;  %v5329_v17 = vadd.f32 %v11569_v15, %v4556_v39  ;;  %8785 = vmatmul.msk.bf16.gmra.mxu3 %vm578_vm0, %v12645_v35  ;;  %v5007_v33 = vrot.slane %v5005_v4, 1  ;;  %v11757_v4 = vld [vmem:[#allocation2 + $0xe0] sm:$0xff] }
 0x591   : > { %v5235_v37 = vpop.f32.mrf.mxu1 }
 0x592   : > { %v5716_v47 = vadd.f32 %v5592_v14, %v5329_v17  ;;  %v5602_v41 = vpop.f32.mrf.mxu2  ;;  %v5008_v48 = vsel %vm1256_vm2, %v5003_v22, %v5007_v33  ;;  %v5011_v39 = vor.u32 %v5009_v30, %v5007_v33  ;;  %v12653_v37 = vld [vmem:[#allocation24_spill] sm:$0xff]  ;;  %v12656_v33 = vld [vmem:[#allocation27_spill] sm:$0xff] }
 0x593   : > { %v3904_v61 = vpop.f32.mrf.mxu3 }
 0x594   : > { %v5779_v57 = vadd.f32 %v11502_v42, %v5716_v47  ;;  %v4026_v60 = vadd.f32 %v3904_v61, %v12646_v24  ;;  %v5016_v2 = vsel %vm1256_vm2, %v5011_v39, %v5015_v18 }
 0x596   : > { %v5838_v44 = vmax.f32 %v5779_v57, 0.0  ;;  %v4557_v15 = vadd.f32 %v12647_v50, %v4026_v60  ;;  %v12654_v57 = vld [vmem:[#allocation93_spill] sm:$0xff]  ;;  %v12655_v60 = vld [vmem:[#allocation36_spill] sm:$0xff] }
 0x597   : > { %9145 = vmatmul.msk.bf16.gmra.mxu2 %vm578_vm0, %v5420_v36 }
 0x598   : > { %5897 = vst.msk [vmem:[#allocation3 + $0x88] sm:$0xff] %vm578_vm0, %v5838_v44  ;;  %v5330_v14 = vadd.f32 %v11581_v58, %v4557_v15  ;;  %v12649_v58 = vld [vmem:[#allocation91_spill] sm:$0xff] }
 0x599   : > { %v5238_v34 = vpop.f32.mrf.mxu1 }
 0x59a   : > { %v5717_v31 = vadd.f32 %v5595_v32, %v5330_v14  ;;  %v5605_v11 = vpop.f32.mrf.mxu2  ;;  %v12650_v32 = vld [vmem:[#allocation33_spill] sm:$0xff]  ;;  %v5423_v14 = vrot.slane %v11668_v10, 1  ;;  %v5021_v34 = vshll.u32 %v11757_v4, 16 }
 0x59b   : > { %v3906_v3 = vpop.f32.mrf.mxu3 }
 0x59c   : > { %v5780_v45 = vadd.f32 %v11502_v42, %v5717_v31  ;;  %v4027_v63 = vadd.f32 %v3906_v3, %v12648_v6  ;;  %9107 = vmatmul.msk.bf16.gmra.mxu1 %vm578_vm0, %v5008_v48  ;;  %v5017_v6 = vshrl.u32 %v11734_v26, 16  ;;  %v5023_v10 = vrot.slane %v5021_v34, 1  ;;  %v12662_v34 = vld [vmem:[#allocation42_spill] sm:$0xff] }
 0x59e   : > { %v5839_v56 = vmax.f32 %v5780_v45, 0.0  ;;  %v4558_v9 = vadd.f32 %v12649_v58, %v4027_v63  ;;  %v5424_v45 = vsel %vm1997_vm3, %v5421_v51, %v5423_v14 }
 0x5a0   : > { %5898 = vst.msk [vmem:[#allocation3 + $0x90] sm:$0xff] %vm578_vm0, %v5839_v56  ;;  %v5331_v46 = vadd.f32 %v11594_v7, %v4558_v9  ;;  %8786 = vmatmul.msk.bf16.gmra.mxu3 %vm578_vm0, %v12650_v32  ;;  %v5019_v56 = vor.u32 %v5017_v6, %v5015_v18  ;;  %v12658_v32 = vld [vmem:[#allocation30_spill] sm:$0xff] }
 0x5a1   : > { %v5240_v53 = vpop.f32.mrf.mxu1 }
 0x5a2   : > { %v5718_v43 = vadd.f32 %v5597_v55, %v5331_v46  ;;  %v5607_v38 = vpop.f32.mrf.mxu2  ;;  %v5024_v53 = vsel %vm1256_vm2, %v5019_v56, %v5023_v10 }
 0x5a3   : > { %v3909_v21 = vpop.f32.mrf.mxu3 }
 0x5a4   : > { %v5781_v28 = vadd.f32 %v11502_v42, %v5718_v43  ;;  %v4028_v13 = vadd.f32 %v3909_v21, %v12651_v62  ;;  %v12659_v21 = vld [vmem:[#allocation95_spill] sm:$0xff]  ;;  %v11782_v62 = vld [vmem:[#allocation2 + $0xe8] sm:$0xff] }
 0x5a6   : > { %v5840_v54 = vmax.f32 %v5781_v28, 0.0  ;;  %v4559_v7 = vadd.f32 %v12652_v5, %v4028_v13  ;;  %v12660_v28 = vld [vmem:[#allocation38_spill] sm:$0xff] }
 0x5a7   : > { %9146 = vmatmul.msk.bf16.gmra.mxu2 %vm578_vm0, %v5422_v16 }
 0x5a8   : > { %5899 = vst.msk [vmem:[#allocation3 + $0x98] sm:$0xff] %vm578_vm0, %v5840_v54  ;;  %v5332_v55 = vadd.f32 %v11606_v1, %v4559_v7  ;;  %v5425_v7 = vrot.slane %v11689_v8, 1 }
 0x5a9   : > { %v11746_v20 = vpop.f32.mrf.mxu1 }
 0x5aa   : > { %v5719_v52 = vadd.f32 %v5600_v59, %v5332_v55  ;;  %v5610_v35 = vpop.f32.mrf.mxu2  ;;  %v5029_v55 = vshll.u32 %v11782_v62, 16  ;;  %v5426_v18 = vsel %vm1997_vm3, %v5423_v14, %v5425_v7 }
 0x5ab   : > { %v3911_v17 = vpop.f32.mrf.mxu3 }
 0x5ac   : > { %v5782_v47 = vadd.f32 %v11502_v42, %v5719_v52  ;;  %v4029_v61 = vadd.f32 %v3911_v17, %v12653_v37  ;;  %9108 = vmatmul.msk.bf16.gmra.mxu1 %vm578_vm0, %v5016_v2  ;;  %v11799_v37 = vld [vmem:[#allocation2 + $0xf0] sm:$0xff] }
 0x5ad   : > { %v5041_v6 = vshrl.u32 %v11799_v37, 16 }
 0x5ae   : > { %v5841_v1 = vmax.f32 %v5782_v47, 0.0  ;;  %v4560_v24 = vadd.f32 %v12654_v57, %v4029_v61  ;;  %v12661_v47 = vld [vmem:[#allocation40_spill] sm:$0xff]  ;;  %v5427_v57 = vrot.slane %v11713_v27, 1 }
 0x5af   : > { %v9845_v27 = vld [vmem:[#allocation2 + $0xf8] sm:$0x10] }
 0x5b0   : > { %5900 = vst.msk [vmem:[#allocation3 + $0xa0] sm:$0xff] %vm578_vm0, %v5841_v1  ;;  %v5333_v59 = vadd.f32 %v11619_v12, %v4560_v24  ;;  %8787 = vmatmul.msk.bf16.gmra.mxu3 %vm578_vm0, %v12655_v60  ;;  %v12657_v12 = vld [vmem:[#allocation94_spill] sm:$0xff]  ;;  %v5037_v24 = vshll.u32 %v11799_v37, 16  ;;  %v5033_v60 = vshrl.u32 %v11782_v62, 16 }
 0x5b1   : > { %v11759_v50 = vpop.f32.mrf.mxu1 }
 0x5b2   : > { %v5720_v44 = vadd.f32 %v5602_v41, %v5333_v59  ;;  %v5612_v36 = vpop.f32.mrf.mxu2  ;;  %v5428_v59 = vsel %vm1997_vm3, %v5425_v7, %v5427_v57 }
 0x5b3   : > { %v3914_v15 = vpop.f32.mrf.mxu3 }
 0x5b4   : > { %v5783_v23 = vadd.f32 %v11502_v42, %v5720_v44  ;;  %v4030_v31 = vadd.f32 %v3914_v15, %v12656_v33  ;;  %v5039_v44 = vrot.slane %v5037_v24, 1 }
 0x5b6   : > { %v5842_v22 = vmax.f32 %v5783_v23, 0.0  ;;  %v4561_v3 = vadd.f32 %v12657_v12, %v4030_v31  ;;  %v9074_v31 = vld [vmem:[#allocation2 + $0xf8] sm:$0xf]  ;;  %v5043_v56 = vor.u32 %v5041_v6, %v5039_v44 }
 0x5b7   : > { %9147 = vmatmul.msk.bf16.gmra.mxu2 %vm578_vm0, %v5424_v45  ;;  %v11816_v12 = vor.u32 %v9845_v27, %v9074_v31  ;;  %v12671_v6 = vld [vmem:[#allocation28_spill] sm:$0xff] }
 0x5b8   : > { %5901 = vst.msk [vmem:[#allocation3 + $0xa8] sm:$0xff] %vm578_vm0, %v5842_v22  ;;  %v5334_v41 = vadd.f32 %v11634_v40, %v4561_v3 }
 0x5b9   : > { %v11771_v48 = vpop.f32.mrf.mxu1 }
 0x5ba   : > { %v5721_v63 = vadd.f32 %v5605_v11, %v5334_v41  ;;  %v5615_v9 = vpop.f32.mrf.mxu2  ;;  %v5429_v41 = vrot.slane %v11734_v26, 1 }
 0x5bb   : > { %v3916_v58 = vpop.f32.mrf.mxu3 }
 0x5bc   : > { %v5784_v46 = vadd.f32 %v11502_v42, %v5721_v63  ;;  %v4031_v43 = vadd.f32 %v3916_v58, %v12658_v32  ;;  %9109 = vmatmul.msk.bf16.gmra.mxu1 %vm578_vm0, %v5024_v53  ;;  %v5430_v63 = vsel %vm1997_vm3, %v5427_v57, %v5429_v41  ;;  %v12663_v53 = vld [vmem:[#allocation45_spill] sm:$0xff] }
 0x5be   : > { %v5843_v40 = vmax.f32 %v5784_v46, 0.0  ;;  %v4562_v51 = vadd.f32 %v12659_v21, %v4031_v43 }
 0x5c0   : > { %5902 = vst.msk [vmem:[#allocation3 + $0xb0] sm:$0xff] %vm578_vm0, %v5843_v40  ;;  %v5335_v11 = vadd.f32 %v11647_v29, %v4562_v51  ;;  %8788 = vmatmul.msk.bf16.gmra.mxu3 %vm578_vm0, %v12660_v28  ;;  %v5025_v29 = vshrl.u32 %v11757_v4, 16  ;;  %v5431_v51 = vrot.slane %v11757_v4, 1  ;;  %v5049_v28 = vshrl.u32 %v11816_v12, 16 }
 0x5c1   : > { %v11784_v49 = vpop.f32.mrf.mxu1 }
 0x5c2   : > { %v5722_v13 = vadd.f32 %v5607_v38, %v5335_v11  ;;  %v5617_v5 = vpop.f32.mrf.mxu2  ;;  %v5031_v38 = vrot.slane %v5029_v55, 1  ;;  %v5027_v39 = vor.u32 %v5025_v29, %v5023_v10  ;;  %v5045_v10 = vshll.u32 %v11816_v12, 16  ;;  %v12665_v29 = vld [vmem:[#allocation96_spill] sm:$0xff] }
 0x5c3   : > { %v3919_v54 = vpop.f32.mrf.mxu3  ;;  %v5432_v11 = vsel %vm1997_vm3, %v5429_v41, %v5431_v51 }
 0x5c4   : > { %v5785_v16 = vadd.f32 %v11502_v42, %v5722_v13  ;;  %v5032_v8 = vsel %vm1256_vm2, %v5027_v39, %v5031_v38  ;;  %v5035_v36 = vor.u32 %v5033_v60, %v5031_v38  ;;  %v5047_v9 = vrot.slane %v5045_v10, 1  ;;  %v12666_v39 = vld [vmem:[#allocation23_spill] sm:$0xff] }
 0x5c6   : > { %v5844_v30 = vmax.f32 %v5785_v16, 0.0  ;;  %v5040_v33 = vsel %vm1256_vm2, %v5035_v36, %v5039_v44  ;;  %v5048_v43 = vsel %vm1256_vm2, %v5043_v56, %v5047_v9  ;;  %v5051_v7 = vor.u32 %v5049_v28, %v5047_v9  ;;  %v12664_v16 = vld [vmem:[#allocation49_spill] sm:$0xff]  ;;  %v12668_v44 = vld [vmem:[#allocation26_spill] sm:$0xff] }
 0x5c7   : > { %9148 = vmatmul.msk.bf16.gmra.mxu2 %vm578_vm0, %v5426_v18  ;;  %v5433_v18 = vrot.slane %v11782_v62, 1  ;;  %v9858_v28 = vld [vmem:[%s12410_s5 + $0x40] sm:$0xff] }
 0x5c8   : > { %5903 = vst.msk [vmem:[#allocation3 + $0xb8] sm:$0xff] %vm578_vm0, %v5844_v30 }
 0x5c9   : > { %v11793_v52 = vpop.f32.mrf.mxu1 }
 0x5ca   : > { %v5620_v35 = vpop.f32.mrf.mxu2 }
 0x5cb   : > { %v3921_v17 = vpop.f32.mrf.mxu3  ;;  %v5434_v35 = vsel %vm1997_vm3, %v5431_v51, %v5433_v18 }
 0x5cc   : > { %9110 = vmatmul.msk.bf16.gmra.mxu1 %vm578_vm0, %v5032_v8 }
 0x5d0   : > { %8789 = vmatmul.msk.bf16.gmra.mxu3 %vm578_vm0, %v12661_v47 }
 0x5d1   : > { %v11801_v61 = vpop.f32.mrf.mxu1 }
 0x5d2   : > { %v5622_v1 = vpop.f32.mrf.mxu2 }
 0x5d3   : > { %v3924_v2 = vpop.f32.mrf.mxu3 }
 0x5d7   : > { %9149 = vmatmul.msk.bf16.gmra.mxu2 %vm578_vm0, %v5428_v59  ;;  %v12667_v59 = vld [vmem:[#allocation47_spill] sm:$0xff] }
 0x5d9   : > { %v11808_v15 = vpop.f32.mrf.mxu1 }
 0x5da   : > { %v5625_v23 = vpop.f32.mrf.mxu2 }
 0x5db   : > { %v3926_v14 = vpop.f32.mrf.mxu3  ;;  %v12669_v23 = vld [vmem:[#allocation53_spill] sm:$0xff] }
 0x5dc   : > { %9111 = vmatmul.msk.bf16.gmra.mxu1 %vm578_vm0, %v5040_v33 }
 0x5e0   : > { %8790 = vmatmul.msk.bf16.gmra.mxu3 %vm578_vm0, %v12662_v34  ;;  %v11865_v34 = vld [vmem:[%s12409_s4] ss:$0 sm:$0xff] }
 0x5e1   : > { %v11814_v22 = vpop.f32.mrf.mxu1 }
 0x5e2   : > { %v5627_v45 = vpop.f32.mrf.mxu2 }
 0x5e3   : > { %v3929_v3 = vpop.f32.mrf.mxu3  ;;  %v12670_v45 = vld [vmem:[#allocation97_spill] sm:$0xff] }
 0x5e7   : > { %9150 = vmatmul.msk.bf16.gmra.mxu2 %vm578_vm0, %v5430_v63 }
 0x5e9   : > { %v11823_v58 = vpop.f32.mrf.mxu1 }
 0x5ea   : > { %v5630_v32 = vpop.f32.mrf.mxu2 }
 0x5eb   : > { %v3931_v46 = vpop.f32.mrf.mxu3 }
 0x5ec   : > { %9112 = vmatmul.msk.bf16.gmra.mxu1 %vm578_vm0, %v5048_v43  ;;  %v9859_v43 = vld [vmem:[%s12410_s5 + $0x48] sm:$0xff] }
 0x5ed   : > { %6197 = vmatpush.bf16.msra.mxu0 %v9859_v43 }
 0x5f0   : > { %8791 = vmatmul.msk.bf16.gmra.mxu3 %vm578_vm0, %v12663_v53 }
 0x5f1   : > { %v11829_v26 = vpop.f32.mrf.mxu1  ;;  %6198 = vmatpush.bf16.msra.mxu0 %v9858_v28 }
 0x5f2   : > { %v5632_v21 = vpop.f32.mrf.mxu2 }
 0x5f3   : > { %v3934_v40 = vpop.f32.mrf.mxu3 }
 0x5f4   : > { %v12672_v40 = vld [vmem:[#allocation51_spill] sm:$0xff] }
 0x5f7   : > { %9151 = vmatmul.msk.bf16.gmra.mxu2 %vm578_vm0, %v5432_v11  ;;  %v12673_v11 = vld [vmem:[#allocation31_spill] sm:$0xff] }
 0x5f9   : > { %v11835_v13 = vpop.f32.mrf.mxu1 }
 0x5fa   : > { %v5635_v5 = vpop.f32.mrf.mxu2 }
 0x5fb   : > { %v3936_v54 = vpop.f32.mrf.mxu3 }
 0x5fc   : > { %9113 = vmatmul.msk.bf16.gmra.mxu1 %vm578_vm0, %v5051_v7 }
 0x600   : > { %8792 = vmatmul.msk.bf16.gmra.mxu3 %vm578_vm0, %v12664_v16 }
 0x601   : > { %v11840_v55 = vpop.f32.mrf.mxu1 }
 0x602   : > { %v5637_v4 = vpop.f32.mrf.mxu2 }
 0x603   : > { %v3939_v30 = vpop.f32.mrf.mxu3 }
 0x604   : > { %v4040_v38 = vadd.f32 %v3939_v30, %v12665_v29  ;;  %v5437_v30 = vrot.slane %v11816_v12, 1 }
 0x606   : > { %v4571_v17 = vadd.f32 %v12666_v39, %v4040_v38 }
 0x607   : > { %9152 = vmatmul.msk.bf16.gmra.mxu2 %vm578_vm0, %v5434_v35  ;;  %v12675_v35 = vld [vmem:[#allocation99_spill] sm:$0xff] }
 0x608   : > { %v5344_v8 = vadd.f32 %v11746_v20, %v4571_v17 }
 0x609   : > { %v11848_v2 = vpop.f32.mrf.mxu1 }
 0x60a   : > { %v5731_v47 = vadd.f32 %v5630_v32, %v5344_v8  ;;  %v5640_v57 = vpop.f32.mrf.mxu2 }
 0x60b   : > { %v3941_v1 = vpop.f32.mrf.mxu3 }
 0x60c   : > { %v5794_v24 = vadd.f32 %v11502_v42, %v5731_v47  ;;  %v4041_v60 = vadd.f32 %v3941_v1, %v12667_v59  ;;  %v5435_v42 = vrot.slane %v11799_v37, 1  ;;  %v6044_v47 = vld [vmem:[#allocation3 + $0x4] ss:$256 sm:$0x1]  ;;  %v12676_v59 = vld [vmem:[#allocation32_spill] sm:$0xff] }
 0x60d   : > { %v6052_v1 = vld [vmem:[#allocation3 + $0x14] ss:$256 sm:$0x1] }
 0x60e   : > { %v5853_v62 = vmax.f32 %v5794_v24, 0.0  ;;  %v4572_v36 = vadd.f32 %v12668_v44, %v4041_v60  ;;  %v5436_v63 = vsel %vm1997_vm3, %v5433_v18, %v5435_v42  ;;  %v6056_v44 = vld [vmem:[#allocation3 + $0x15] ss:$256 sm:$0x1] }
 0x610   : > { %5912 = vst.msk [vmem:[#allocation3 + $0x100] sm:$0xff] %vm578_vm0, %v5853_v62  ;;  %v5345_v14 = vadd.f32 %v11759_v50, %v4572_v36  ;;  %8793 = vmatmul.msk.bf16.gmra.mxu3 %vm578_vm0, %v12669_v23  ;;  %v5438_v36 = vsel %vm1997_vm3, %v5435_v42, %v5437_v30 }
 0x611   : > { %v11857_v33 = vpop.f32.mrf.mxu1 }
 0x612   : > { %v5732_v20 = vadd.f32 %v5632_v21, %v5345_v14  ;;  %v11859_v27 = vpop.f32.mrf.mxu2 }
 0x613   : > { %v3944_v31 = vpop.f32.mrf.mxu3 }
 0x614   : > { %v5795_v3 = vadd.f32 %v11865_v34, %v5732_v20  ;;  %v4042_v50 = vadd.f32 %v3944_v31, %v12670_v45 }
 0x616   : > { %v5854_v41 = vmax.f32 %v5795_v3, 0.0  ;;  %v4573_v10 = vadd.f32 %v12671_v6, %v4042_v50 }
 0x617   : > { %9153 = vmatmul.msk.bf16.gmra.mxu2 %vm578_vm0, %v5436_v63  ;;  %v6045_v38 = vld [vmem:[#allocation3 + $0x4] ss:$256 sm:$0x2]  ;;  %v6049_v39 = vld [vmem:[#allocation3 + $0x5] ss:$256 sm:$0x2] }
 0x618   : > { %5913 = vst.msk [vmem:[#allocation3 + $0x108] sm:$0xff] %vm578_vm0, %v5854_v41  ;;  %v5346_v56 = vadd.f32 %v11771_v48, %v4573_v10 }
 0x619   : > { %v11874_v9 = vpop.f32.mrf.mxu1 }
 0x61a   : > { %v5733_v37 = vadd.f32 %v5635_v5, %v5346_v56  ;;  %v11876_v32 = vpop.f32.mrf.mxu2  ;;  %v12674_v5 = vld [vmem:[#allocation57_spill] sm:$0xff]  ;;  %v12677_v56 = vld [vmem:[#allocation55_spill] sm:$0xff] }
 0x61b   : > { %v3946_v46 = vpop.f32.mrf.mxu3 }
 0x61c   : > { %v5796_v53 = vadd.f32 %v11865_v34, %v5733_v37  ;;  %v4043_v21 = vadd.f32 %v3946_v46, %v12672_v40 }
 0x61e   : > { %v5855_v51 = vmax.f32 %v5796_v53, 0.0  ;;  %v4574_v48 = vadd.f32 %v12673_v11, %v4043_v21  ;;  %v12678_v53 = vld [vmem:[#allocation34_spill] sm:$0xff]  ;;  %v6160_v21 = vld [vmem:[#allocation3 + $0x18] ss:$256 sm:$0x1] }
 0x61f   : > { %v6164_v11 = vld [vmem:[#allocation3 + $0x19] ss:$256 sm:$0x1] }
 0x620   : > { %5914 = vst.msk [vmem:[#allocation3 + $0x110] sm:$0xff] %vm578_vm0, %v5855_v51  ;;  %v5347_v54 = vadd.f32 %v11784_v49, %v4574_v48  ;;  %8794 = vmatmul.msk.bf16.gmra.mxu3 %vm578_vm0, %v12674_v5  ;;  %v6048_v49 = vld [vmem:[#allocation3 + $0x5] ss:$256 sm:$0x1] }
 0x621   : > { %v11891_v16 = vpop.f32.mrf.mxu1  ;;  %v6050_v62 = vor.u32 %v6049_v39, %v6048_v49  ;;  %v6153_v5 = vld [vmem:[#allocation3 + $0x8] ss:$256 sm:$0x2]  ;;  %v6156_v49 = vld [vmem:[#allocation3 + $0x9] ss:$256 sm:$0x1] }
 0x622   : > { %v5734_v7 = vadd.f32 %v5637_v4, %v5347_v54  ;;  %v11894_v29 = vpop.f32.mrf.mxu2  ;;  %v6046_v4 = vor.u32 %v6045_v38, %v6044_v47  ;;  %v12679_v54 = vld [vmem:[#allocation62_spill] sm:$0xff] }
 0x623   : > { %v3949_v18 = vpop.f32.mrf.mxu3  ;;  %v6152_v47 = vld [vmem:[#allocation3 + $0x8] ss:$256 sm:$0x1] }
 0x624   : > { %v5797_v17 = vadd.f32 %v11865_v34, %v5734_v7  ;;  %v4044_v8 = vadd.f32 %v3949_v18, %v12675_v35  ;;  %v6059_v41 = vmax.f32 %v6046_v4, %v6050_v62  ;;  %v6157_v7 = vld [vmem:[#allocation3 + $0x9] ss:$256 sm:$0x2]  ;;  %v9864_v18 = vld [vmem:[%s12410_s5 + $0x70] sm:$0xff] }
 0x625   : > { %v6158_v4 = vor.u32 %v6157_v7, %v6156_v49 }
 0x626   : > { %v5856_v24 = vmax.f32 %v5797_v17, 0.0  ;;  %v4575_v60 = vadd.f32 %v12676_v59, %v4044_v8 }
 0x627   : > { %v6053_v14 = vld [vmem:[#allocation3 + $0x14] ss:$256 sm:$0x2]  ;;  %v6057_v23 = vld [vmem:[#allocation3 + $0x15] ss:$256 sm:$0x2]  ;;  %9154 = vmatmul.msk.bf16.gmra.mxu2 %vm578_vm0, %v5438_v36 }
 0x628   : > { %5915 = vst.msk [vmem:[#allocation3 + $0x118] sm:$0xff] %vm578_vm0, %v5856_v24  ;;  %v5348_v20 = vadd.f32 %v11793_v52, %v4575_v60  ;;  %v6054_v31 = vor.u32 %v6053_v14, %v6052_v1  ;;  %v6058_v3 = vor.u32 %v6057_v23, %v6056_v44  ;;  %v9865_v52 = vld [vmem:[%s12410_s5 + $0x78] sm:$0xff]  ;;  %v6154_v60 = vor.u32 %v6153_v5, %v6152_v47  ;;  %v12681_v44 = vld [vmem:[#allocation35_spill] sm:$0xff]  ;;  %v12687_v5 = vld [vmem:[#allocation101_spill] sm:$0xff] }
 0x629   : > { %v11905_v50 = vpop.f32.mrf.mxu1  ;;  %v12680_v24 = vld [vmem:[#allocation100_spill] sm:$0xff] }
 0x62a   : > { %v5735_v45 = vadd.f32 %v5640_v57, %v5348_v20  ;;  %v6060_v6 = vmax.f32 %v6054_v31, %v6058_v3  ;;  %v11907_v63 = vpop.f32.mrf.mxu2  ;;  %v6167_v23 = vmax.f32 %v6154_v60, %v6158_v4 }
 0x62b   : > { %v3951_v10 = vpop.f32.mrf.mxu3 }
 0x62c   : > { %v5798_v42 = vadd.f32 %v11865_v34, %v5735_v45  ;;  %v4045_v37 = vadd.f32 %v3951_v10, %v12677_v56  ;;  %v6061_v46 = vmax.f32 %v6059_v41, %v6060_v6  ;;  %v12682_v6 = vld [vmem:[#allocation98_spill] sm:$0xff]  ;;  %v12683_v56 = vld [vmem:[#allocation63_spill] sm:$0xff] }
 0x62d   : > { %v3746_v10 = vrot.slane %v12682_v6, 1 }
 0x62e   : > { %v5857_v43 = vmax.f32 %v5798_v42, 0.0  ;;  %v4576_v40 = vadd.f32 %v12678_v53, %v4045_v37  ;;  %v6062_v57 = vpack.c.bf16 %v6061_v46, %v6061_v46 }
 0x62f   : > { %v6161_v51 = vld [vmem:[#allocation3 + $0x18] ss:$256 sm:$0x2]  ;;  %v6165_v48 = vld [vmem:[#allocation3 + $0x19] ss:$256 sm:$0x2] }
 0x630   : > { %5916 = vst.msk [vmem:[#allocation3 + $0x120] sm:$0xff] %vm578_vm0, %v5857_v43  ;;  %v5349_v28 = vadd.f32 %v11801_v61, %v4576_v40  ;;  %8795 = vmatmul.msk.bf16.gmra.mxu3 %vm578_vm0, %v12679_v54  ;;  %9190 = vmatmul.msk.bf16.vlgmr.msrb.gmra.mxu0 %vm578_vm0, %v6062_v57  ;;  %v6162_v17 = vor.u32 %v6161_v51, %v6160_v21  ;;  %v9866_v57 = vld [vmem:[%s12410_s5 + $0x80] sm:$0xff] }
 0x631   : > { %6330 = vmatpush.bf16.msrb.mxu0 %v9865_v52  ;;  %v11924_v39 = vpop.f32.mrf.mxu1  ;;  %v6166_v35 = vor.u32 %v6165_v48, %v6164_v11  ;;  %v12685_v52 = vld [vmem:[#allocation59_spill] sm:$0xff] }
 0x632   : > { %v5736_v38 = vadd.f32 %v11859_v27, %v5349_v28  ;;  %v11926_v61 = vpop.f32.mrf.mxu2  ;;  %v12686_v43 = vrot.slane %v12685_v52, 1  ;;  %v5964_v52 = vld [vmem:[#allocation3 + $0x2] ss:$256 sm:$0x2] }
 0x633   : > { %v3954_v8 = vpop.f32.mrf.mxu3  ;;  %v6168_v27 = vmax.f32 %v6162_v17, %v6166_v35  ;;  %v6293_v17 = vld [vmem:[#allocation3 + $0x32] ss:$256 sm:$0x1] }
 0x634   : > { %v5799_v1 = vadd.f32 %v11865_v34, %v5736_v38  ;;  %v4046_v59 = vadd.f32 %v3954_v8, %v12680_v24  ;;  %v3747_v53 = vsel %vm1997_vm3, %v12686_v43, %v3746_v10  ;;  %v6289_v38 = vld [vmem:[#allocation3 + $0x23] ss:$256 sm:$0x1]  ;;  %v12688_v8 = vld [vmem:[#allocation39_spill] sm:$0xff] }
 0x635   : > { %6331 = vmatpush.bf16.msrb.mxu0 %v9864_v18  ;;  %v6169_v3 = vmax.f32 %v6167_v23, %v6168_v27  ;;  %v6285_v18 = vld [vmem:[#allocation3 + $0x22] ss:$256 sm:$0x1]  ;;  %v5968_v43 = vld [vmem:[#allocation3 + $0x3] ss:$256 sm:$0x2] }
 0x636   : > { %v5858_v62 = vmax.f32 %v5799_v1, 0.0  ;;  %v4577_v36 = vadd.f32 %v12681_v44, %v4046_v59  ;;  %v6297_v1 = vld [vmem:[#allocation3 + $0x33] ss:$256 sm:$0x1]  ;;  %v9851_v44 = vld [vmem:[%s12410_s5 + $0x8] sm:$0xff] }
 0x637   : > { %9155 = vmatmul.msk.bf16.gmra.mxu2 %vm578_vm0, %v5437_v30  ;;  %v12684_v30 = vld [vmem:[#allocation37_spill] sm:$0xff]  ;;  %6036 = vmatpush.bf16.msrb.mxu3 %v9851_v44 }
 0x638   : > { %5917 = vst.msk [vmem:[#allocation3 + $0x128] sm:$0xff] %vm578_vm0, %v5858_v62  ;;  %v5350_v14 = vadd.f32 %v11808_v15, %v4577_v36  ;;  %v9867_v15 = vld [vmem:[%s12410_s5 + $0x88] sm:$0xff]  ;;  %v6286_v28 = vld [vmem:[#allocation3 + $0x22] ss:$256 sm:$0x2] }
 0x639   : > { %v11937_v31 = vpop.f32.mrf.mxu1  ;;  %v6290_v54 = vld [vmem:[#allocation3 + $0x23] ss:$256 sm:$0x2]  ;;  %v6287_v49 = vor.u32 %v6286_v28, %v6285_v18  ;;  %v6371_v18 = vld [vmem:[#allocation3 + $0x25] ss:$256 sm:$0x2] }
 0x63a   : > { %v5737_v20 = vadd.f32 %v11876_v32, %v5350_v14  ;;  %v11939_v41 = vpop.f32.mrf.mxu2  ;;  %v6170_v32 = vpack.c.bf16 %v6169_v3, %v6169_v3 }
 0x63b   : > { %v3956_v45 = vpop.f32.mrf.mxu3 }
 0x63c   : > { %v5800_v42 = vadd.f32 %v11865_v34, %v5737_v20  ;;  %v4047_v37 = vadd.f32 %v3956_v45, %v12683_v56 }
 0x63e   : > { %v5859_v12 = vmax.f32 %v5800_v42, 0.0  ;;  %v4578_v46 = vadd.f32 %v12684_v30, %v4047_v37  ;;  %v12689_v42 = vld [vmem:[#allocation60_spill] sm:$0xff]  ;;  %v5972_v37 = vld [vmem:[#allocation3 + $0x12] ss:$256 sm:$0x2]  ;;  %v12690_v30 = vld [vmem:[#allocation41_spill] sm:$0xff] }
 0x640   : > { %5918 = vst.msk [vmem:[#allocation3 + $0x130] sm:$0xff] %vm578_vm0, %v5859_v12  ;;  %v5351_v40 = vadd.f32 %v11814_v22, %v4578_v46  ;;  %8796 = vmatmul.msk.bf16.gmra.mxu3 %vm578_vm0, %v3747_v53  ;;  %9216 = vmatmul.msk.bf16.vlgmr.msra.gmra.mxu0 %vm578_vm0, %v6170_v32  ;;  %v9871_v12 = vld [vmem:[%s12410_s5 + $0xa8] sm:$0xff]  ;;  %v5971_v53 = vld [vmem:[#allocation3 + $0x12] ss:$256 sm:$0x1] }
 0x641   : > { %6411 = vmatpush.bf16.msra.mxu0 %v9867_v15  ;;  %v11961_v51 = vpop.f32.mrf.mxu1  ;;  %v5976_v15 = vld [vmem:[#allocation3 + $0x13] ss:$256 sm:$0x2] }
 0x642   : > { %v5738_v21 = vadd.f32 %v11894_v29, %v5351_v40  ;;  %v11963_v48 = vpop.f32.mrf.mxu2  ;;  %v6291_v29 = vor.u32 %v6290_v54, %v6289_v38  ;;  %v9850_v54 = vld [vmem:[%s12410_s5] sm:$0xff] }
 0x643   : > { %v3959_v11 = vpop.f32.mrf.mxu3  ;;  %6037 = vmatpush.bf16.msrb.mxu3 %v9850_v54  ;;  %v9870_v38 = vld [vmem:[%s12410_s5 + $0xa0] sm:$0xff]  ;;  %v5947_v54 = vld [vmem:[#allocation3 + $0x10] ss:$256 sm:$0x1] }
 0x644   : > { %v5801_v22 = vadd.f32 %v11865_v34, %v5738_v21  ;;  %v4048_v7 = vadd.f32 %v3959_v11, %v12687_v5  ;;  %v6300_v14 = vmax.f32 %v6287_v49, %v6291_v29  ;;  %v6374_v21 = vld [vmem:[#allocation3 + $0x34] ss:$256 sm:$0x1]  ;;  %v6378_v11 = vld [vmem:[#allocation3 + $0x35] ss:$256 sm:$0x1] }
 0x645   : > { %6412 = vmatpush.bf16.msra.mxu0 %v9866_v57  ;;  %v5975_v57 = vld [vmem:[#allocation3 + $0x13] ss:$256 sm:$0x1]  ;;  %v6367_v5 = vld [vmem:[#allocation3 + $0x24] ss:$256 sm:$0x2] }
 0x646   : > { %v5860_v35 = vmax.f32 %v5801_v22, 0.0  ;;  %v4579_v47 = vadd.f32 %v12688_v8, %v4048_v7  ;;  %v5973_v7 = vor.u32 %v5972_v37, %v5971_v53  ;;  %v5967_v8 = vld [vmem:[#allocation3 + $0x3] ss:$256 sm:$0x1]  ;;  %v5977_v6 = vor.u32 %v5976_v15, %v5975_v57  ;;  %v12692_v53 = vld [vmem:[#allocation44_spill] sm:$0xff] }
 0x647   : > { %v6294_v24 = vld [vmem:[#allocation3 + $0x32] ss:$256 sm:$0x2]  ;;  %v6298_v59 = vld [vmem:[#allocation3 + $0x33] ss:$256 sm:$0x2] }
 0x648   : > { %5919 = vst.msk [vmem:[#allocation3 + $0x138] sm:$0xff] %vm578_vm0, %v5860_v35  ;;  %v5352_v60 = vadd.f32 %v11823_v58, %v4579_v47  ;;  %v6295_v4 = vor.u32 %v6294_v24, %v6293_v17  ;;  %v6299_v62 = vor.u32 %v6298_v59, %v6297_v1  ;;  %v6375_v40 = vld [vmem:[#allocation3 + $0x34] ss:$256 sm:$0x2]  ;;  %v5969_v24 = vor.u32 %v5968_v43, %v5967_v8 }
 0x649   : > { %v11974_v27 = vpop.f32.mrf.mxu1  ;;  %v6379_v28 = vld [vmem:[#allocation3 + $0x35] ss:$256 sm:$0x2]  ;;  %v6376_v47 = vor.u32 %v6375_v40, %v6374_v21  ;;  %v6366_v59 = vld [vmem:[#allocation3 + $0x24] ss:$256 sm:$0x1] }
 0x64a   : > { %v5739_v36 = vadd.f32 %v11907_v63, %v5352_v60  ;;  %v6301_v23 = vmax.f32 %v6295_v4, %v6299_v62  ;;  %v11976_v3 = vpop.f32.mrf.mxu2  ;;  %v6370_v60 = vld [vmem:[#allocation3 + $0x25] ss:$256 sm:$0x1]  ;;  %v6368_v44 = vor.u32 %v6367_v5, %v6366_v59  ;;  %v5951_v5 = vld [vmem:[#allocation3 + $0x11] ss:$256 sm:$0x1] }
 0x64b   : > { %v3961_v20 = vpop.f32.mrf.mxu3 }
 0x64c   : > { %v5802_v45 = vadd.f32 %v11865_v34, %v5739_v36  ;;  %v4049_v58 = vadd.f32 %v3961_v20, %v12689_v42  ;;  %v6302_v56 = vmax.f32 %v6300_v14, %v6301_v23  ;;  %v12691_v14 = vld [vmem:[#allocation43_spill] sm:$0xff]  ;;  %v5979_v20 = vmax.f32 %v5973_v7, %v5977_v6  ;;  %v6479_v6 = vld [vmem:[#allocation3 + $0x29] ss:$256 sm:$0x2] }
 0x64e   : > { %v5861_v63 = vmax.f32 %v5802_v45, 0.0  ;;  %v4580_v46 = vadd.f32 %v12690_v30, %v4049_v58  ;;  %v6303_v32 = vpack.c.bf16 %v6302_v56, %v6302_v56 }
 0x64f   : > { %v6483_v7 = vld [vmem:[#allocation3 + $0x38] ss:$256 sm:$0x2] }
 0x650   : > { %5920 = vst.msk [vmem:[#allocation3 + $0x140] sm:$0xff] %vm578_vm0, %v5861_v63  ;;  %v5353_v22 = vadd.f32 %v11829_v26, %v4580_v46  ;;  %8797 = vmatmul.msk.bf16.gmra.mxu3 %vm578_vm0, %v3746_v10  ;;  %9246 = vmatmul.msk.bf16.vlgmr.msrb.gmra.mxu0 %vm578_vm0, %v6303_v32  ;;  %v5963_v26 = vld [vmem:[#allocation3 + $0x2] ss:$256 sm:$0x1]  ;;  %v6380_v10 = vor.u32 %v6379_v28, %v6378_v11 }
 0x651   : > { %6519 = vmatpush.bf16.msrb.mxu0 %v9871_v12  ;;  %v11997_v35 = vpop.f32.mrf.mxu1  ;;  %v5965_v1 = vor.u32 %v5964_v52, %v5963_v26  ;;  %v5948_v52 = vld [vmem:[#allocation3 + $0x10] ss:$256 sm:$0x2]  ;;  %v5940_v11 = vld [vmem:[#allocation3] ss:$256 sm:$0x2] }
 0x652   : > { %v5740_v17 = vadd.f32 %v11926_v61, %v5353_v22  ;;  %v11999_v29 = vpop.f32.mrf.mxu2  ;;  %v6372_v61 = vor.u32 %v6371_v18, %v6370_v60  ;;  %v6382_v45 = vmax.f32 %v6376_v47, %v6380_v10  ;;  %v5944_v28 = vld [vmem:[#allocation3 + $0x1] ss:$256 sm:$0x2]  ;;  %v5952_v22 = vld [vmem:[#allocation3 + $0x11] ss:$256 sm:$0x2]  ;;  %v5949_v8 = vor.u32 %v5948_v52, %v5947_v54 }
 0x653   : > { %v3964_v49 = vpop.f32.mrf.mxu3  ;;  %v5978_v58 = vmax.f32 %v5965_v1, %v5969_v24  ;;  %v6486_v18 = vld [vmem:[#allocation3 + $0x39] ss:$256 sm:$0x1]  ;;  %v6475_v26 = vld [vmem:[#allocation3 + $0x28] ss:$256 sm:$0x2]  ;;  %v5953_v59 = vor.u32 %v5952_v22, %v5951_v5 }
 0x654   : > { %v5803_v4 = vadd.f32 %v11865_v34, %v5740_v17  ;;  %v4050_v62 = vadd.f32 %v3964_v49, %v11308_v25  ;;  %v6381_v56 = vmax.f32 %v6368_v44, %v6372_v61  ;;  %v9856_v47 = vld [vmem:[%s12410_s5 + $0x30] sm:$0xff]  ;;  %v5939_v1 = vld [vmem:[#allocation3] ss:$256 sm:$0x1]  ;;  %v12695_v54 = vld [vmem:[#allocation48_spill] sm:$0xff] }
 0x655   : > { %6520 = vmatpush.bf16.msrb.mxu0 %v9870_v38  ;;  %v5980_v12 = vmax.f32 %v5978_v58, %v5979_v20  ;;  %v6487_v38 = vld [vmem:[#allocation3 + $0x39] ss:$256 sm:$0x2]  ;;  %v9876_v10 = vld [vmem:[%s12410_s5 + $0xd0] sm:$0xff]  ;;  %v5941_v61 = vor.u32 %v5940_v11, %v5939_v1 }
 0x656   : > { %v5862_v36 = vmax.f32 %v5803_v4, 0.0  ;;  %v4581_v23 = vadd.f32 %v12691_v14, %v4050_v62  ;;  %v6383_v25 = vmax.f32 %v6381_v56, %v6382_v45  ;;  %v5943_v24 = vld [vmem:[#allocation3 + $0x1] ss:$256 sm:$0x1]  ;;  %v6488_v4 = vor.u32 %v6487_v38, %v6486_v18  ;;  %v12693_v56 = vld [vmem:[#allocation46_spill] sm:$0xff] }
 0x657   : > { %v5981_v57 = vpack.c.bf16 %v5980_v12, %v5980_v12  ;;  %v6474_v14 = vld [vmem:[#allocation3 + $0x28] ss:$256 sm:$0x1]  ;;  %v5955_v12 = vmax.f32 %v5949_v8, %v5953_v59  ;;  %v6107_v11 = vld [vmem:[#allocation3 + $0x16] ss:$256 sm:$0x2] }
 0x658   : > { %5921 = vst.msk [vmem:[#allocation3 + $0x148] sm:$0xff] %vm578_vm0, %v5862_v36  ;;  %v5354_v42 = vadd.f32 %v11835_v13, %v4581_v23  ;;  %v9857_v13 = vld [vmem:[%s12410_s5 + $0x38] sm:$0xff]  ;;  %v6384_v21 = vpack.c.bf16 %v6383_v25, %v6383_v25  ;;  %v5945_v36 = vor.u32 %v5944_v28, %v5943_v24  ;;  %v6478_v23 = vld [vmem:[#allocation3 + $0x29] ss:$256 sm:$0x1] }
 0x659   : > { %v12007_v15 = vpop.f32.mrf.mxu1  ;;  %v9861_v28 = vld [vmem:[%s12410_s5 + $0x58] sm:$0xff]  ;;  %v6103_v18 = vld [vmem:[#allocation3 + $0x7] ss:$256 sm:$0x2] }
 0x65a   : > { %v5741_v37 = vadd.f32 %v11939_v41, %v5354_v42  ;;  %v12009_v30 = vpop.f32.mrf.mxu2  ;;  %v9877_v41 = vld [vmem:[%s12410_s5 + $0xd8] sm:$0xff]  ;;  %v6476_v42 = vor.u32 %v6475_v26, %v6474_v14  ;;  %v6106_v38 = vld [vmem:[#allocation3 + $0x16] ss:$256 sm:$0x1] }
 0x65b   : > { %v3966_v63 = vpop.f32.mrf.mxu3  ;;  %v6110_v26 = vld [vmem:[#allocation3 + $0x17] ss:$256 sm:$0x1]  ;;  %v6615_v8 = vld [vmem:[#allocation3 + $0x52] ss:$256 sm:$0x1]  ;;  %v6108_v24 = vor.u32 %v6107_v11, %v6106_v38 }
 0x65c   : > { %v5804_v46 = vadd.f32 %v11865_v34, %v5741_v37  ;;  %v4051_v32 = vadd.f32 %v3966_v63, %v11324_v19  ;;  %v6482_v19 = vld [vmem:[#allocation3 + $0x38] ss:$256 sm:$0x1]  ;;  %v6608_v1 = vld [vmem:[#allocation3 + $0x42] ss:$256 sm:$0x2] }
 0x65d   : > { %v6484_v60 = vor.u32 %v6483_v7, %v6482_v19  ;;  %v6099_v7 = vld [vmem:[#allocation3 + $0x6] ss:$256 sm:$0x2]  ;;  %v6612_v59 = vld [vmem:[#allocation3 + $0x43] ss:$256 sm:$0x2] }
 0x65e   : > { %v5863_v43 = vmax.f32 %v5804_v46, 0.0  ;;  %v4582_v40 = vadd.f32 %v12692_v53, %v4051_v32  ;;  %v5954_v46 = vmax.f32 %v5941_v61, %v5945_v36  ;;  %v6098_v61 = vld [vmem:[#allocation3 + $0x6] ss:$256 sm:$0x1]  ;;  %v12699_v38 = vld [vmem:[#allocation52_spill] sm:$0xff] }
 0x65f   : > { %v6490_v25 = vmax.f32 %v6484_v60, %v6488_v4  ;;  %v9860_v60 = vld [vmem:[%s12410_s5 + $0x50] sm:$0xff]  ;;  %v9878_v4 = vld [vmem:[%s12410_s5 + $0xe0] sm:$0xff] }
 0x660   : > { %5922 = vst.msk [vmem:[#allocation3 + $0x150] sm:$0xff] %vm578_vm0, %v5863_v43  ;;  %v5355_v17 = vadd.f32 %v11840_v55, %v4582_v40  ;;  %9168 = vmatmul.msk.bf16.vlgmr.msra.gmra.mxu3 %vm578_vm0, %v5981_v57  ;;  %9268 = vmatmul.msk.bf16.vlgmr.msra.gmra.mxu0 %vm578_vm0, %v6384_v21  ;;  %v12694_v57 = vld [vmem:[#allocation67_spill] sm:$0xff]  ;;  %v6102_v36 = vld [vmem:[#allocation3 + $0x7] ss:$256 sm:$0x1] }
 0x661   : > { %6143 = vmatpush.bf16.msra.mxu3 %v9857_v13  ;;  %6652 = vmatpush.bf16.msra.mxu0 %v9877_v41  ;;  %v12031_v55 = vpop.f32.mrf.mxu1  ;;  %v5956_v41 = vmax.f32 %v5954_v46, %v5955_v12 }
 0x662   : > { %v5742_v49 = vadd.f32 %v11963_v48, %v5355_v17  ;;  %v12033_v44 = vpop.f32.mrf.mxu2  ;;  %v6480_v48 = vor.u32 %v6479_v6, %v6478_v23  ;;  %v6111_v17 = vld [vmem:[#allocation3 + $0x17] ss:$256 sm:$0x2] }
 0x663   : > { %v3969_v62 = vpop.f32.mrf.mxu3  ;;  %v5957_v5 = vpack.c.bf16 %v5956_v41, %v5956_v41  ;;  %v6112_v14 = vor.u32 %v6111_v17, %v6110_v26 }
 0x664   : > { %v5805_v20 = vadd.f32 %v11865_v34, %v5742_v49  ;;  %v4052_v45 = vadd.f32 %v3969_v62, %v11340_v0  ;;  %v6489_v32 = vmax.f32 %v6476_v42, %v6480_v48  ;;  %v6100_v48 = vor.u32 %v6099_v7, %v6098_v61  ;;  %v6215_v7 = vld [vmem:[#allocation3 + $0x1a] ss:$256 sm:$0x2] }
 0x665   : > { %6144 = vmatpush.bf16.msra.mxu3 %v9856_v47  ;;  %6653 = vmatpush.bf16.msra.mxu0 %v9876_v10  ;;  %v6619_v47 = vld [vmem:[#allocation3 + $0x53] ss:$256 sm:$0x1]  ;;  %v6114_v41 = vmax.f32 %v6108_v24, %v6112_v14  ;;  %v6696_v24 = vld [vmem:[#allocation3 + $0x54] ss:$256 sm:$0x1] }
 0x666   : > { %v5864_v58 = vmax.f32 %v5805_v20, 0.0  ;;  %v4583_v37 = vadd.f32 %v12693_v56, %v4052_v45  ;;  %v6491_v0 = vmax.f32 %v6489_v32, %v6490_v25  ;;  %v6607_v56 = vld [vmem:[#allocation3 + $0x42] ss:$256 sm:$0x1]  ;;  %v12696_v25 = vld [vmem:[#allocation68_spill] sm:$0xff] }
 0x667   : > { %v6616_v6 = vld [vmem:[#allocation3 + $0x52] ss:$256 sm:$0x2]  ;;  %v6620_v10 = vld [vmem:[#allocation3 + $0x53] ss:$256 sm:$0x2]  ;;  %v6609_v46 = vor.u32 %v6608_v1, %v6607_v56 }
 0x668   : > { %5923 = vst.msk [vmem:[#allocation3 + $0x158] sm:$0xff] %vm578_vm0, %v5864_v58  ;;  %v5356_v63 = vadd.f32 %v11848_v2, %v4583_v37  ;;  %v9879_v2 = vld [vmem:[%s12410_s5 + $0xe8] sm:$0xff]  ;;  %v6492_v19 = vpack.c.bf16 %v6491_v0, %v6491_v0  ;;  %v6617_v23 = vor.u32 %v6616_v6, %v6615_v8  ;;  %v6621_v20 = vor.u32 %v6620_v10, %v6619_v47  ;;  %v6611_v37 = vld [vmem:[#allocation3 + $0x43] ss:$256 sm:$0x1] }
 0x669   : > { %v5303_v13 = vpop.f32.mrf.mxu1  ;;  %v6104_v58 = vor.u32 %v6103_v18, %v6102_v36  ;;  %v6613_v32 = vor.u32 %v6612_v59, %v6611_v37  ;;  %v9863_v18 = vld [vmem:[%s12410_s5 + $0x68] sm:$0xff]  ;;  %v6214_v10 = vld [vmem:[#allocation3 + $0x1a] ss:$256 sm:$0x1]  ;;  %v9862_v14 = vld [vmem:[%s12410_s5 + $0x60] sm:$0xff] }
 0x66a   : > { %v5743_v52 = vadd.f32 %v11976_v3, %v5356_v63  ;;  %v12041_v53 = vpop.f32.mrf.mxu2  ;;  %v6623_v0 = vmax.f32 %v6617_v23, %v6621_v20  ;;  %v6207_v6 = vld [vmem:[#allocation3 + $0xa] ss:$256 sm:$0x2]  ;;  %v6211_v47 = vld [vmem:[#allocation3 + $0xb] ss:$256 sm:$0x2]  ;;  %v6216_v61 = vor.u32 %v6215_v7, %v6214_v10 }
 0x66b   : > { %v3971_v43 = vpop.f32.mrf.mxu3  ;;  %v6218_v1 = vld [vmem:[#allocation3 + $0x1b] ss:$256 sm:$0x1]  ;;  %v6697_v59 = vld [vmem:[#allocation3 + $0x54] ss:$256 sm:$0x2] }
 0x66c   : > { %v5806_v40 = vadd.f32 %v11865_v34, %v5743_v52  ;;  %v4053_v21 = vadd.f32 %v3971_v43, %v12694_v57  ;;  %v12697_v52 = vld [vmem:[#allocation50_spill] sm:$0xff]  ;;  %v6622_v57 = vmax.f32 %v6609_v46, %v6613_v32  ;;  %v6693_v36 = vld [vmem:[#allocation3 + $0x45] ss:$256 sm:$0x2]  ;;  %v6698_v56 = vor.u32 %v6697_v59, %v6696_v24 }
 0x66d   : > { %v9882_v23 = vld [vmem:[%s12410_s5 + $0x100] sm:$0xff]  ;;  %v6268_v24 = vld [vmem:[#allocation3 + $0x30] ss:$256 sm:$0x1] }
 0x66e   : > { %v5865_v3 = vmax.f32 %v5806_v40, 0.0  ;;  %v4584_v22 = vadd.f32 %v12695_v54, %v4053_v21  ;;  %v6113_v40 = vmax.f32 %v6100_v48, %v6104_v58  ;;  %v6210_v48 = vld [vmem:[#allocation3 + $0xb] ss:$256 sm:$0x1] }
 0x66f   : > { %v6212_v46 = vor.u32 %v6211_v47, %v6210_v48  ;;  %v6688_v32 = vld [vmem:[#allocation3 + $0x44] ss:$256 sm:$0x1]  ;;  %v6273_v59 = vld [vmem:[#allocation3 + $0x31] ss:$256 sm:$0x2] }
 0x670   : > { %5924 = vst.msk [vmem:[#allocation3 + $0x160] sm:$0xff] %vm578_vm0, %v5865_v3  ;;  %v5357_v49 = vadd.f32 %v11857_v33, %v4584_v22  ;;  %9177 = vmatmul.msk.bf16.vlgmr.msrb.gmra.mxu3 %vm578_vm0, %v5957_v5  ;;  %9294 = vmatmul.msk.bf16.vlgmr.msrb.gmra.mxu0 %vm578_vm0, %v6492_v19  ;;  %v12698_v5 = vld [vmem:[#allocation5_spill] sm:$0xff] }
 0x671   : > { %6251 = vmatpush.bf16.msrb.mxu3 %v9861_v28  ;;  %6733 = vmatpush.bf16.msrb.mxu0 %v9879_v2  ;;  %v5305_v33 = vpop.f32.mrf.mxu1  ;;  %v6115_v28 = vmax.f32 %v6113_v40, %v6114_v41  ;;  %v6624_v2 = vmax.f32 %v6622_v57, %v6623_v0  ;;  %v12701_v40 = vld [vmem:[#allocation54_spill] sm:$0xff] }
 0x672   : > { %v5744_v62 = vadd.f32 %v11999_v29, %v5357_v49  ;;  %v12063_v42 = vpop.f32.mrf.mxu2  ;;  %v6219_v49 = vld [vmem:[#allocation3 + $0x1b] ss:$256 sm:$0x2]  ;;  %v6689_v33 = vld [vmem:[#allocation3 + $0x44] ss:$256 sm:$0x2] }
 0x673   : > { %v3974_v45 = vpop.f32.mrf.mxu3  ;;  %v6116_v26 = vpack.c.bf16 %v6115_v28, %v6115_v28  ;;  %v6625_v8 = vpack.c.bf16 %v6624_v2, %v6624_v2  ;;  %v6220_v58 = vor.u32 %v6219_v49, %v6218_v1  ;;  %v6690_v0 = vor.u32 %v6689_v33, %v6688_v32  ;;  %v6261_v49 = vld [vmem:[#allocation3 + $0x20] ss:$256 sm:$0x2]  ;;  %v6265_v1 = vld [vmem:[#allocation3 + $0x21] ss:$256 sm:$0x2] }
 0x674   : > { %v5807_v12 = vadd.f32 %v11865_v34, %v5744_v62  ;;  %v4054_v63 = vadd.f32 %v3974_v45, %v12696_v25  ;;  %v6206_v45 = vld [vmem:[#allocation3 + $0xa] ss:$256 sm:$0x1]  ;;  %v6808_v33 = vld [vmem:[#allocation3 + $0x59] ss:$256 sm:$0x1] }
 0x675   : > { %6252 = vmatpush.bf16.msrb.mxu3 %v9860_v60  ;;  %6734 = vmatpush.bf16.msrb.mxu0 %v9878_v4  ;;  %v6700_v60 = vld [vmem:[#allocation3 + $0x55] ss:$256 sm:$0x1] }
 0x676   : > { %v5866_v29 = vmax.f32 %v5807_v12, 0.0  ;;  %v4585_v13 = vadd.f32 %v12697_v52, %v4054_v63  ;;  %v6701_v4 = vld [vmem:[#allocation3 + $0x55] ss:$256 sm:$0x2]  ;;  %v6208_v63 = vor.u32 %v6207_v6, %v6206_v45 }
 0x677   : > { %v6702_v37 = vor.u32 %v6701_v4, %v6700_v60  ;;  %v6272_v60 = vld [vmem:[#allocation3 + $0x31] ss:$256 sm:$0x1]  ;;  %v6804_v4 = vld [vmem:[#allocation3 + $0x58] ss:$256 sm:$0x1] }
 0x678   : > { %5925 = vst.msk [vmem:[#allocation3 + $0x168] sm:$0xff] %vm578_vm0, %v5866_v29  ;;  %v5358_v43 = vadd.f32 %v11874_v9, %v4585_v13  ;;  %v9883_v9 = vld [vmem:[%s12410_s5 + $0x108] sm:$0xff]  ;;  %v6692_v29 = vld [vmem:[#allocation3 + $0x45] ss:$256 sm:$0x1]  ;;  %v6221_v2 = vmax.f32 %v6208_v63, %v6212_v46  ;;  %v9888_v45 = vld [vmem:[%s12410_s5 + $0x130] sm:$0xff] }
 0x679   : > { %v5308_v11 = vpop.f32.mrf.mxu1  ;;  %v12700_v13 = vld [vmem:[#allocation69_spill] sm:$0xff] }
 0x67a   : > { %v5745_v21 = vadd.f32 %v12009_v30, %v5358_v43  ;;  %v12071_v54 = vpop.f32.mrf.mxu2  ;;  %v6694_v43 = vor.u32 %v6693_v36, %v6692_v29  ;;  %v6704_v11 = vmax.f32 %v6698_v56, %v6702_v37  ;;  %v6274_v56 = vor.u32 %v6273_v59, %v6272_v60  ;;  %v6433_v59 = vld [vmem:[#allocation3 + $0x37] ss:$256 sm:$0x2] }
 0x67b   : > { %v3976_v3 = vpop.f32.mrf.mxu3  ;;  %v6432_v60 = vld [vmem:[#allocation3 + $0x37] ss:$256 sm:$0x1] }
 0x67c   : > { %v5808_v22 = vadd.f32 %v11865_v34, %v5745_v21  ;;  %v4055_v19 = vadd.f32 %v3976_v3, %v12698_v5  ;;  %v6222_v21 = vmax.f32 %v6216_v61, %v6220_v58  ;;  %v6703_v3 = vmax.f32 %v6690_v0, %v6694_v43  ;;  %v6809_v61 = vld [vmem:[#allocation3 + $0x59] ss:$256 sm:$0x2]  ;;  %v6264_v58 = vld [vmem:[#allocation3 + $0x21] ss:$256 sm:$0x1] }
 0x67d   : > { %v6266_v29 = vor.u32 %v6265_v1, %v6264_v58  ;;  %v12704_v0 = vld [vmem:[#allocation6_spill] sm:$0xff]  ;;  %v6425_v1 = vld [vmem:[#allocation3 + $0x27] ss:$256 sm:$0x2]  ;;  %v6434_v58 = vor.u32 %v6433_v59, %v6432_v60 }
 0x67e   : > { %v5867_v30 = vmax.f32 %v5808_v22, 0.0  ;;  %v4586_v17 = vadd.f32 %v12699_v38, %v4055_v19  ;;  %v6223_v5 = vmax.f32 %v6221_v2, %v6222_v21  ;;  %v6705_v19 = vmax.f32 %v6703_v3, %v6704_v11  ;;  %v7018_v59 = vld [vmem:[#allocation3 + $0x74] ss:$256 sm:$0x1] }
 0x680   : > { %5926 = vst.msk [vmem:[#allocation3 + $0x170] sm:$0xff] %vm578_vm0, %v5867_v30  ;;  %v5359_v62 = vadd.f32 %v11891_v16, %v4586_v17  ;;  %9203 = vmatmul.msk.bf16.vlgmr.msra.gmra.mxu3 %vm578_vm0, %v6116_v26  ;;  %9324 = vmatmul.msk.bf16.vlgmr.msra.gmra.mxu0 %vm578_vm0, %v6625_v8  ;;  %v12702_v30 = vld [vmem:[#allocation70_spill] sm:$0xff]  ;;  %v6269_v17 = vld [vmem:[#allocation3 + $0x30] ss:$256 sm:$0x2]  ;;  %v9869_v26 = vld [vmem:[%s12410_s5 + $0x98] sm:$0xff]  ;;  %v6224_v47 = vpack.c.bf16 %v6223_v5, %v6223_v5 }
 0x681   : > { %6358 = vmatpush.bf16.msra.mxu3 %v9863_v18  ;;  %6841 = vmatpush.bf16.msra.mxu0 %v9883_v9  ;;  %v5310_v16 = vpop.f32.mrf.mxu1  ;;  %v6706_v10 = vpack.c.bf16 %v6705_v19, %v6705_v19 }
 0x682   : > { %v5746_v20 = vadd.f32 %v12033_v44, %v5359_v62  ;;  %v12093_v25 = vpop.f32.mrf.mxu2  ;;  %v6805_v62 = vld [vmem:[#allocation3 + $0x58] ss:$256 sm:$0x2]  ;;  %v9868_v16 = vld [vmem:[%s12410_s5 + $0x90] sm:$0xff] }
 0x683   : > { %v3979_v12 = vpop.f32.mrf.mxu3  ;;  %v6806_v37 = vor.u32 %v6805_v62, %v6804_v4  ;;  %v6937_v4 = vld [vmem:[#allocation3 + $0x72] ss:$256 sm:$0x1] }
 0x684   : > { %v5809_v52 = vadd.f32 %v11865_v34, %v5746_v20  ;;  %v4056_v41 = vadd.f32 %v3979_v12, %v12700_v13  ;;  %v6801_v20 = vld [vmem:[#allocation3 + $0x49] ss:$256 sm:$0x2]  ;;  %v6810_v12 = vor.u32 %v6809_v61, %v6808_v33  ;;  %v6941_v33 = vld [vmem:[#allocation3 + $0x73] ss:$256 sm:$0x1] }
 0x685   : > { %6359 = vmatpush.bf16.msra.mxu3 %v9862_v14  ;;  %6842 = vmatpush.bf16.msra.mxu0 %v9882_v23  ;;  %v6797_v14 = vld [vmem:[#allocation3 + $0x48] ss:$256 sm:$0x2]  ;;  %v6270_v23 = vor.u32 %v6269_v17, %v6268_v24  ;;  %v6800_v13 = vld [vmem:[#allocation3 + $0x49] ss:$256 sm:$0x1] }
 0x686   : > { %v5868_v44 = vmax.f32 %v5809_v52, 0.0  ;;  %v4587_v57 = vadd.f32 %v12701_v40, %v4056_v41  ;;  %v6796_v52 = vld [vmem:[#allocation3 + $0x48] ss:$256 sm:$0x1]  ;;  %v6802_v40 = vor.u32 %v6801_v20, %v6800_v13  ;;  %v12706_v17 = vld [vmem:[#allocation71_spill] sm:$0xff] }
 0x687   : > { %v6276_v11 = vmax.f32 %v6270_v23, %v6274_v56  ;;  %v6428_v24 = vld [vmem:[#allocation3 + $0x36] ss:$256 sm:$0x1]  ;;  %v6938_v62 = vld [vmem:[#allocation3 + $0x72] ss:$256 sm:$0x2] }
 0x688   : > { %5927 = vst.msk [vmem:[#allocation3 + $0x178] sm:$0xff] %vm578_vm0, %v5868_v44  ;;  %v5360_v28 = vadd.f32 %v11905_v50, %v4587_v57  ;;  %v9889_v50 = vld [vmem:[%s12410_s5 + $0x138] sm:$0xff]  ;;  %v6798_v44 = vor.u32 %v6797_v14, %v6796_v52  ;;  %v12705_v57 = vld [vmem:[#allocation58_spill] sm:$0xff]  ;;  %v6942_v61 = vld [vmem:[#allocation3 + $0x73] ss:$256 sm:$0x2]  ;;  %v6939_v56 = vor.u32 %v6938_v62, %v6937_v4 }
 0x689   : > { %v6930_v14 = vld [vmem:[#allocation3 + $0x62] ss:$256 sm:$0x2]  ;;  %v6934_v20 = vld [vmem:[#allocation3 + $0x63] ss:$256 sm:$0x2] }
 0x68a   : > { %v5747_v22 = vadd.f32 %v12041_v53, %v5360_v28  ;;  %v12101_v18 = vpop.f32.mrf.mxu2  ;;  %v12703_v53 = vld [vmem:[#allocation56_spill] sm:$0xff]  ;;  %v6812_v28 = vmax.f32 %v6806_v37, %v6810_v12  ;;  %v6943_v37 = vor.u32 %v6942_v61, %v6941_v33  ;;  %v6929_v52 = vld [vmem:[#allocation3 + $0x62] ss:$256 sm:$0x1] }
 0x68b   : > { %v3981_v7 = vpop.f32.mrf.mxu3  ;;  %v6933_v13 = vld [vmem:[#allocation3 + $0x63] ss:$256 sm:$0x1]  ;;  %v7019_v60 = vld [vmem:[#allocation3 + $0x74] ss:$256 sm:$0x2] }
 0x68c   : > { %v5810_v9 = vadd.f32 %v11865_v34, %v5747_v22  ;;  %v4057_v38 = vadd.f32 %v3981_v7, %v12702_v30  ;;  %v6811_v22 = vmax.f32 %v6798_v44, %v6802_v40  ;;  %v6931_v44 = vor.u32 %v6930_v14, %v6929_v52  ;;  %v7022_v4 = vld [vmem:[#allocation3 + $0x75] ss:$256 sm:$0x1]  ;;  %v7011_v61 = vld [vmem:[#allocation3 + $0x64] ss:$256 sm:$0x2] }
 0x68d   : > { %v6935_v40 = vor.u32 %v6934_v20, %v6933_v13  ;;  %v7023_v62 = vld [vmem:[#allocation3 + $0x75] ss:$256 sm:$0x2]  ;;  %v7015_v14 = vld [vmem:[#allocation3 + $0x65] ss:$256 sm:$0x2] }
 0x68e   : > { %v5869_v8 = vmax.f32 %v5810_v9, 0.0  ;;  %v4588_v6 = vadd.f32 %v12703_v53, %v4057_v38  ;;  %v6813_v7 = vmax.f32 %v6811_v22, %v6812_v28  ;;  %v9894_v20 = vld [vmem:[%s12410_s5 + $0x160] sm:$0xff] }
 0x68f   : > { %v12186_v52 = vld [vmem:[%s12409_s4] ss:$0 sm:$0xff] }
 0x690   : > { %5928 = vst.msk [vmem:[#allocation3 + $0x180] sm:$0xff] %vm578_vm0, %v5869_v8  ;;  %v5361_v36 = vadd.f32 %v11924_v39, %v4588_v6  ;;  %9229 = vmatmul.msk.bf16.vlgmr.msrb.gmra.mxu3 %vm578_vm0, %v6224_v47  ;;  %9346 = vmatmul.msk.bf16.vlgmr.msrb.gmra.mxu0 %vm578_vm0, %v6706_v10  ;;  %v6260_v39 = vld [vmem:[#allocation3 + $0x20] ss:$256 sm:$0x1]  ;;  %v9873_v8 = vld [vmem:[%s12410_s5 + $0xb8] sm:$0xff]  ;;  %v6814_v10 = vpack.c.bf16 %v6813_v7, %v6813_v7 }
 0x691   : > { %6465 = vmatpush.bf16.msrb.mxu3 %v9869_v26  ;;  %6974 = vmatpush.bf16.msrb.mxu0 %v9889_v50  ;;  %v6262_v32 = vor.u32 %v6261_v49, %v6260_v39  ;;  %v6429_v50 = vld [vmem:[#allocation3 + $0x36] ss:$256 sm:$0x2]  ;;  %v6421_v49 = vld [vmem:[#allocation3 + $0x26] ss:$256 sm:$0x2] }
 0x692   : > { %v5748_v48 = vadd.f32 %v12063_v42, %v5361_v36  ;;  %v12123_v46 = vpop.f32.mrf.mxu2  ;;  %v6430_v23 = vor.u32 %v6429_v50, %v6428_v24  ;;  %v6424_v39 = vld [vmem:[#allocation3 + $0x27] ss:$256 sm:$0x1]  ;;  %v6540_v24 = vld [vmem:[#allocation3 + $0x3b] ss:$256 sm:$0x1] }
 0x693   : > { %v3984_v63 = vpop.f32.mrf.mxu3  ;;  %v6275_v3 = vmax.f32 %v6262_v32, %v6266_v29  ;;  %v6426_v29 = vor.u32 %v6425_v1, %v6424_v39  ;;  %v6541_v1 = vld [vmem:[#allocation3 + $0x3b] ss:$256 sm:$0x2]  ;;  %v7024_v39 = vor.u32 %v7023_v62, %v7022_v4  ;;  %v7119_v62 = vld [vmem:[#allocation3 + $0x68] ss:$256 sm:$0x2] }
 0x694   : > { %v5811_v41 = vadd.f32 %v11865_v34, %v5748_v48  ;;  %v4058_v43 = vadd.f32 %v3984_v63, %v12704_v0  ;;  %v12708_v0 = vld [vmem:[#allocation72_spill] sm:$0xff] }
 0x695   : > { %6466 = vmatpush.bf16.msrb.mxu3 %v9868_v16  ;;  %6975 = vmatpush.bf16.msrb.mxu0 %v9888_v45  ;;  %v6277_v19 = vmax.f32 %v6275_v3, %v6276_v11  ;;  %v9872_v16 = vld [vmem:[%s12410_s5 + $0xb0] sm:$0xff]  ;;  %v9890_v45 = vld [vmem:[%s12410_s5 + $0x140] sm:$0xff]  ;;  %v6945_v11 = vmax.f32 %v6939_v56, %v6943_v37  ;;  %v6944_v3 = vmax.f32 %v6931_v44, %v6935_v40 }
 0x696   : > { %v5870_v42 = vmax.f32 %v5811_v41, 0.0  ;;  %v4589_v21 = vadd.f32 %v12705_v57, %v4058_v43 }
 0x697   : > { %v6278_v47 = vpack.c.bf16 %v6277_v19, %v6277_v19  ;;  %v6946_v19 = vmax.f32 %v6944_v3, %v6945_v11 }
 0x698   : > { %5929 = vst.msk [vmem:[#allocation3 + $0x188] sm:$0xff] %vm578_vm0, %v5870_v42  ;;  %v5362_v2 = vadd.f32 %v11937_v31, %v4589_v21  ;;  %v9891_v31 = vld [vmem:[%s12410_s5 + $0x148] sm:$0xff]  ;;  %v12709_v42 = vld [vmem:[#allocation64_spill] sm:$0xff]  ;;  %v6436_v21 = vmax.f32 %v6430_v23, %v6434_v58  ;;  %v9874_v23 = vld [vmem:[%s12410_s5 + $0xc0] sm:$0xff] }
 0x69a   : > { %v5749_v5 = vadd.f32 %v12071_v54, %v5362_v2  ;;  %v12131_v30 = vpop.f32.mrf.mxu2  ;;  %v12707_v54 = vld [vmem:[#allocation61_spill] sm:$0xff] }
 0x69b   : > { %v3986_v9 = vpop.f32.mrf.mxu3 }
 0x69c   : > { %v5812_v38 = vadd.f32 %v11865_v34, %v5749_v5  ;;  %v4059_v26 = vadd.f32 %v3986_v9, %v12706_v17  ;;  %v12710_v17 = vld [vmem:[#allocation7_spill] sm:$0xff] }
 0x69e   : > { %v5871_v53 = vmax.f32 %v5812_v38, 0.0  ;;  %v4590_v6 = vadd.f32 %v12707_v54, %v4059_v26 }
 0x6a0   : > { %5930 = vst.msk [vmem:[#allocation3 + $0x190] sm:$0xff] %vm578_vm0, %v5871_v53  ;;  %v5363_v36 = vadd.f32 %v11961_v51, %v4590_v6  ;;  %9255 = vmatmul.msk.bf16.vlgmr.msra.gmra.mxu3 %vm578_vm0, %v6278_v47  ;;  %9372 = vmatmul.msk.bf16.vlgmr.msra.gmra.mxu0 %vm578_vm0, %v6814_v10  ;;  %v6420_v51 = vld [vmem:[#allocation3 + $0x26] ss:$256 sm:$0x1]  ;;  %v6947_v47 = vpack.c.bf16 %v6946_v19, %v6946_v19 }
 0x6a1   : > { %6573 = vmatpush.bf16.msra.mxu3 %v9873_v8  ;;  %7055 = vmatpush.bf16.msra.mxu0 %v9891_v31  ;;  %v6422_v32 = vor.u32 %v6421_v49, %v6420_v51  ;;  %v6537_v8 = vld [vmem:[#allocation3 + $0x3a] ss:$256 sm:$0x2]  ;;  %v9875_v31 = vld [vmem:[%s12410_s5 + $0xc8] sm:$0xff]  ;;  %v12711_v53 = vld [vmem:[#allocation65_spill] sm:$0xff]  ;;  %v7020_v51 = vor.u32 %v7019_v60, %v7018_v59 }
 0x6a2   : > { %v5750_v48 = vadd.f32 %v12093_v25, %v5363_v36  ;;  %v12153_v63 = vpop.f32.mrf.mxu2  ;;  %v6529_v10 = vld [vmem:[#allocation3 + $0x2a] ss:$256 sm:$0x2]  ;;  %v6536_v49 = vld [vmem:[#allocation3 + $0x3a] ss:$256 sm:$0x1] }
 0x6a3   : > { %v3989_v12 = vpop.f32.mrf.mxu3  ;;  %v6435_v2 = vmax.f32 %v6422_v32, %v6426_v29  ;;  %v6538_v36 = vor.u32 %v6537_v8, %v6536_v49  ;;  %v7010_v32 = vld [vmem:[#allocation3 + $0x64] ss:$256 sm:$0x1]  ;;  %v7014_v29 = vld [vmem:[#allocation3 + $0x65] ss:$256 sm:$0x1] }
 0x6a4   : > { %v5813_v41 = vadd.f32 %v11865_v34, %v5750_v48  ;;  %v4060_v43 = vadd.f32 %v3989_v12, %v12708_v0  ;;  %v6542_v48 = vor.u32 %v6541_v1, %v6540_v24  ;;  %v7012_v0 = vor.u32 %v7011_v61, %v7010_v32  ;;  %v6591_v8 = vld [vmem:[#allocation3 + $0x50] ss:$256 sm:$0x2]  ;;  %v6594_v49 = vld [vmem:[#allocation3 + $0x51] ss:$256 sm:$0x1] }
 0x6a5   : > { %6574 = vmatpush.bf16.msra.mxu3 %v9872_v16  ;;  %7056 = vmatpush.bf16.msra.mxu0 %v9890_v45  ;;  %v6437_v5 = vmax.f32 %v6435_v2, %v6436_v21  ;;  %v6532_v45 = vld [vmem:[#allocation3 + $0x2b] ss:$256 sm:$0x1]  ;;  %v7026_v21 = vmax.f32 %v7020_v51, %v7024_v39  ;;  %v7126_v1 = vld [vmem:[#allocation3 + $0x78] ss:$256 sm:$0x1] }
 0x6a6   : > { %v5872_v25 = vmax.f32 %v5813_v41, 0.0  ;;  %v4591_v57 = vadd.f32 %v12709_v42, %v4060_v43  ;;  %v12712_v41 = vld [vmem:[#allocation74_spill] sm:$0xff]  ;;  %v7016_v43 = vor.u32 %v7015_v14, %v7014_v29  ;;  %v7127_v24 = vld [vmem:[#allocation3 + $0x78] ss:$256 sm:$0x2]  ;;  %v9900_v14 = vld [vmem:[%s12410_s5 + $0x190] sm:$0xff] }
 0x6a7   : > { %v6438_v6 = vpack.c.bf16 %v6437_v5, %v6437_v5  ;;  %v7130_v59 = vld [vmem:[#allocation3 + $0x79] ss:$256 sm:$0x1]  ;;  %v7123_v61 = vld [vmem:[#allocation3 + $0x69] ss:$256 sm:$0x2] }
 0x6a8   : > { %5931 = vst.msk [vmem:[#allocation3 + $0x198] sm:$0xff] %vm578_vm0, %v5872_v25  ;;  %v5364_v28 = vadd.f32 %v11974_v27, %v4591_v57  ;;  %v9895_v27 = vld [vmem:[%s12410_s5 + $0x168] sm:$0xff]  ;;  %v6544_v57 = vmax.f32 %v6538_v36, %v6542_v48  ;;  %v7025_v2 = vmax.f32 %v7012_v0, %v7016_v43  ;;  %v7131_v60 = vld [vmem:[#allocation3 + $0x79] ss:$256 sm:$0x2]  ;;  %v9880_v36 = vld [vmem:[%s12410_s5 + $0xf0] sm:$0xff] }
 0x6a9   : > { %v12713_v25 = vld [vmem:[#allocation66_spill] sm:$0xff] }
 0x6aa   : > { %v5751_v22 = vadd.f32 %v12101_v18, %v5364_v28  ;;  %v5690_v9 = vpop.f32.mrf.mxu2  ;;  %v7027_v5 = vmax.f32 %v7025_v2, %v7026_v21  ;;  %v9903_v21 = vld [vmem:[%s12410_s5 + $0x1a8] sm:$0xff]  ;;  %v6743_v2 = vld [vmem:[#allocation3 + $0x46] ss:$256 sm:$0x2] }
 0x6ab   : > { %v3991_v7 = vpop.f32.mrf.mxu3 }
 0x6ac   : > { %v5814_v38 = vadd.f32 %v11865_v34, %v5751_v22  ;;  %v4061_v26 = vadd.f32 %v3991_v7, %v12710_v17  ;;  %v6533_v34 = vld [vmem:[#allocation3 + $0x2b] ss:$256 sm:$0x2] }
 0x6ad   : > { %v12163_v50 = vpop.f32.mrf.mxu0  ;;  %v6534_v12 = vor.u32 %v6533_v34, %v6532_v45  ;;  %v6595_v34 = vld [vmem:[#allocation3 + $0x51] ss:$256 sm:$0x2]  ;;  %v7132_v45 = vor.u32 %v7131_v60, %v7130_v59 }
 0x6ae   : > { %v5873_v18 = vmax.f32 %v5814_v38, 0.0  ;;  %v4592_v54 = vadd.f32 %v12711_v53, %v4061_v26  ;;  %v12714_v38 = vld [vmem:[#allocation76_spill] sm:$0xff] }
 0x6b0   : > { %5932 = vst.msk [vmem:[#allocation3 + $0x1a0] sm:$0xff] %vm578_vm0, %v5873_v18  ;;  %v5365_v33 = vadd.f32 %v11997_v35, %v4592_v54  ;;  %9281 = vmatmul.msk.bf16.vlgmr.msrb.gmra.mxu3 %vm578_vm0, %v6438_v6  ;;  %9402 = vmatmul.msk.bf16.vlgmr.msrb.gmra.mxu0 %vm578_vm0, %v6947_v47  ;;  %v6528_v35 = vld [vmem:[#allocation3 + $0x2a] ss:$256 sm:$0x1]  ;;  %v7028_v54 = vpack.c.bf16 %v7027_v5, %v7027_v5 }
 0x6b1   : > { %6680 = vmatpush.bf16.msrb.mxu3 %v9875_v31  ;;  %7163 = vmatpush.bf16.msrb.mxu0 %v9895_v27  ;;  %v6530_v37 = vor.u32 %v6529_v10, %v6528_v35  ;;  %v9881_v31 = vld [vmem:[%s12410_s5 + $0xf8] sm:$0xff]  ;;  %v6583_v6 = vld [vmem:[#allocation3 + $0x40] ss:$256 sm:$0x2]  ;;  %v7128_v35 = vor.u32 %v7127_v24, %v7126_v1 }
 0x6b2   : > { %v5752_v16 = vadd.f32 %v12123_v46, %v5365_v33  ;;  %v5692_v56 = vpop.f32.mrf.mxu2  ;;  %v12715_v27 = vld [vmem:[#allocation4_spill] sm:$0xff]  ;;  %v6587_v47 = vld [vmem:[#allocation3 + $0x41] ss:$256 sm:$0x2] }
 0x6b3   : > { %v3994_v58 = vpop.f32.mrf.mxu3  ;;  %v6543_v28 = vmax.f32 %v6530_v37, %v6534_v12  ;;  %v6590_v10 = vld [vmem:[#allocation3 + $0x50] ss:$256 sm:$0x1]  ;;  %v7118_v56 = vld [vmem:[#allocation3 + $0x68] ss:$256 sm:$0x1] }
 0x6b4   : > { %v5815_v13 = vadd.f32 %v12186_v52, %v5752_v16  ;;  %v4062_v46 = vadd.f32 %v3994_v58, %v12712_v41  ;;  %v6592_v33 = vor.u32 %v6591_v8, %v6590_v10  ;;  %v6596_v16 = vor.u32 %v6595_v34, %v6594_v49  ;;  %v7122_v37 = vld [vmem:[#allocation3 + $0x69] ss:$256 sm:$0x1]  ;;  %v6755_v5 = vld [vmem:[#allocation3 + $0x57] ss:$256 sm:$0x2] }
 0x6b5   : > { %v6094_v44 = vpop.f32.mrf.mxu0  ;;  %6681 = vmatpush.bf16.msrb.mxu3 %v9874_v23  ;;  %7164 = vmatpush.bf16.msrb.mxu0 %v9894_v20  ;;  %v6545_v22 = vmax.f32 %v6543_v28, %v6544_v57  ;;  %v6586_v20 = vld [vmem:[#allocation3 + $0x41] ss:$256 sm:$0x1]  ;;  %v7120_v32 = vor.u32 %v7119_v62, %v7118_v56  ;;  %v7124_v29 = vor.u32 %v7123_v61, %v7122_v37  ;;  %v6751_v57 = vld [vmem:[#allocation3 + $0x56] ss:$256 sm:$0x2] }
 0x6b6   : > { %v5874_v40 = vmax.f32 %v5815_v13, 0.0  ;;  %v4593_v42 = vadd.f32 %v12713_v25, %v4062_v46  ;;  %v6588_v58 = vor.u32 %v6587_v47, %v6586_v20  ;;  %v7134_v46 = vmax.f32 %v7128_v35, %v7132_v45  ;;  %v7252_v8 = vld [vmem:[#allocation3 + $0x82] ss:$256 sm:$0x2]  ;;  %v9887_v35 = vld [vmem:[%s12410_s5 + $0x128] sm:$0xff] }
 0x6b7   : > { %v6546_v53 = vpack.c.bf16 %v6545_v22, %v6545_v22  ;;  %v7133_v43 = vmax.f32 %v7120_v32, %v7124_v29  ;;  %v6750_v22 = vld [vmem:[#allocation3 + $0x56] ss:$256 sm:$0x1]  ;;  %v7251_v1 = vld [vmem:[#allocation3 + $0x82] ss:$256 sm:$0x1] }
 0x6b8   : > { %5933 = vst.msk [vmem:[#allocation3 + $0x1a8] sm:$0xff] %vm578_vm0, %v5874_v40  ;;  %v5366_v11 = vadd.f32 %v12007_v15, %v4593_v42  ;;  %v9901_v15 = vld [vmem:[%s12410_s5 + $0x198] sm:$0xff]  ;;  %v7255_v24 = vld [vmem:[#allocation3 + $0x83] ss:$256 sm:$0x1]  ;;  %v7253_v59 = vor.u32 %v7252_v8, %v7251_v1  ;;  %v9907_v45 = vld [vmem:[%s12410_s5 + $0x1c8] sm:$0xff] }
 0x6b9   : > { %v7135_v40 = vmax.f32 %v7133_v43, %v7134_v46  ;;  %v6855_v56 = vld [vmem:[#allocation3 + $0x4b] ss:$256 sm:$0x2]  ;;  %v6858_v37 = vld [vmem:[#allocation3 + $0x5a] ss:$256 sm:$0x1] }
 0x6ba   : > { %v5753_v3 = vadd.f32 %v12131_v30, %v5366_v11  ;;  %v5695_v7 = vpop.f32.mrf.mxu2  ;;  %v7340_v32 = vld [vmem:[#allocation3 + $0x94] ss:$256 sm:$0x1]  ;;  %v7337_v46 = vld [vmem:[#allocation3 + $0x85] ss:$256 sm:$0x2] }
 0x6bb   : > { %v3996_v19 = vpop.f32.mrf.mxu3  ;;  %v7136_v28 = vpack.c.bf16 %v7135_v40, %v7135_v40  ;;  %v7259_v7 = vld [vmem:[#allocation3 + $0x92] ss:$256 sm:$0x1]  ;;  %v7341_v29 = vld [vmem:[#allocation3 + $0x94] ss:$256 sm:$0x2] }
 0x6bc   : > { %v5816_v9 = vadd.f32 %v12186_v52, %v5753_v3  ;;  %v4063_v17 = vadd.f32 %v3996_v19, %v12714_v38  ;;  %v6747_v3 = vld [vmem:[#allocation3 + $0x47] ss:$256 sm:$0x2]  ;;  %v6754_v19 = vld [vmem:[#allocation3 + $0x57] ss:$256 sm:$0x1] }
 0x6bd   : > { %v12196_v26 = vpop.f32.mrf.mxu0  ;;  %v7263_v38 = vld [vmem:[#allocation3 + $0x93] ss:$256 sm:$0x1]  ;;  %v9906_v43 = vld [vmem:[%s12410_s5 + $0x1c0] sm:$0xff] }
 0x6be   : > { %v5875_v30 = vmax.f32 %v5816_v9, 0.0  ;;  %v4594_v18 = vadd.f32 %v12715_v27, %v4063_v17  ;;  %v7260_v9 = vld [vmem:[#allocation3 + $0x92] ss:$256 sm:$0x2]  ;;  %v9902_v27 = vld [vmem:[%s12410_s5 + $0x1a0] sm:$0xff] }
 0x6bf   : > { %v7264_v17 = vld [vmem:[#allocation3 + $0x93] ss:$256 sm:$0x2]  ;;  %v6854_v40 = vld [vmem:[#allocation3 + $0x4b] ss:$256 sm:$0x1] }
 0x6c0   : > { %5934 = vst.msk [vmem:[#allocation3 + $0x1b0] sm:$0xff] %vm578_vm0, %v5875_v30  ;;  %v5367_v4 = vadd.f32 %v12031_v55, %v4594_v18  ;;  %9307 = vmatmul.msk.bf16.vlgmr.msra.gmra.mxu3 %vm578_vm0, %v6546_v53  ;;  %9424 = vmatmul.msk.bf16.vlgmr.msra.gmra.mxu0 %vm578_vm0, %v7028_v54  ;;  %v6582_v55 = vld [vmem:[#allocation3 + $0x40] ss:$256 sm:$0x1]  ;;  %v9884_v30 = vld [vmem:[%s12410_s5 + $0x110] sm:$0xff]  ;;  %v6756_v54 = vor.u32 %v6755_v5, %v6754_v19 }
 0x6c1   : > { %6787 = vmatpush.bf16.msra.mxu3 %v9881_v31  ;;  %7296 = vmatpush.bf16.msra.mxu0 %v9901_v15  ;;  %v6584_v39 = vor.u32 %v6583_v6, %v6582_v55  ;;  %v6752_v31 = vor.u32 %v6751_v57, %v6750_v22  ;;  %v7256_v15 = vld [vmem:[#allocation3 + $0x83] ss:$256 sm:$0x2]  ;;  %v6742_v18 = vld [vmem:[#allocation3 + $0x46] ss:$256 sm:$0x1]  ;;  %v7261_v6 = vor.u32 %v7260_v9, %v7259_v7 }
 0x6c2   : > { %v5754_v23 = vadd.f32 %v12153_v63, %v5367_v4  ;;  %v5697_v51 = vpop.f32.mrf.mxu2  ;;  %v6598_v63 = vmax.f32 %v6592_v33, %v6596_v16  ;;  %v6746_v53 = vld [vmem:[#allocation3 + $0x47] ss:$256 sm:$0x1]  ;;  %v7265_v47 = vor.u32 %v7264_v17, %v7263_v38  ;;  %v6744_v34 = vor.u32 %v6743_v2, %v6742_v18  ;;  %v6859_v16 = vld [vmem:[#allocation3 + $0x5a] ss:$256 sm:$0x2] }
 0x6c3   : > { %v3999_v48 = vpop.f32.mrf.mxu3  ;;  %v6597_v0 = vmax.f32 %v6584_v39, %v6588_v58  ;;  %v6748_v49 = vor.u32 %v6747_v3, %v6746_v53  ;;  %v7257_v60 = vor.u32 %v7256_v15, %v7255_v24  ;;  %v6758_v62 = vmax.f32 %v6752_v31, %v6756_v54  ;;  %v6863_v39 = vld [vmem:[#allocation3 + $0x5b] ss:$256 sm:$0x2]  ;;  %v6851_v58 = vld [vmem:[#allocation3 + $0x4a] ss:$256 sm:$0x2] }
 0x6c4   : > { %v5817_v12 = vadd.f32 %v12186_v52, %v5754_v23  ;;  %v9885_v52 = vld [vmem:[%s12410_s5 + $0x118] sm:$0xff]  ;;  %v7267_v33 = vmax.f32 %v7261_v6, %v7265_v47  ;;  %v7336_v2 = vld [vmem:[#allocation3 + $0x85] ss:$256 sm:$0x1]  ;;  %v6856_v22 = vor.u32 %v6855_v56, %v6854_v40 }
 0x6c5   : > { %v6202_v13 = vpop.f32.mrf.mxu0  ;;  %6788 = vmatpush.bf16.msra.mxu3 %v9880_v36  ;;  %7297 = vmatpush.bf16.msra.mxu0 %v9900_v14  ;;  %v6599_v44 = vmax.f32 %v6597_v0, %v6598_v63  ;;  %v6757_v61 = vmax.f32 %v6744_v34, %v6748_v49  ;;  %v7266_v36 = vmax.f32 %v7253_v59, %v7257_v60  ;;  %v7333_v63 = vld [vmem:[#allocation3 + $0x84] ss:$256 sm:$0x2]  ;;  %v9893_v18 = vld [vmem:[%s12410_s5 + $0x158] sm:$0xff] }
 0x6c6   : > { %v5876_v41 = vmax.f32 %v5817_v12, 0.0  ;;  %v6862_v12 = vld [vmem:[#allocation3 + $0x5b] ss:$256 sm:$0x1]  ;;  %v9886_v0 = vld [vmem:[%s12410_s5 + $0x120] sm:$0xff]  ;;  %v7338_v19 = vor.u32 %v7337_v46, %v7336_v2 }
 0x6c7   : > { %v6600_v11 = vpack.c.bf16 %v6599_v44, %v6599_v44  ;;  %v6759_v14 = vmax.f32 %v6757_v61, %v6758_v62  ;;  %v7268_v23 = vmax.f32 %v7266_v36, %v7267_v33  ;;  %v7344_v13 = vld [vmem:[#allocation3 + $0x95] ss:$256 sm:$0x1]  ;;  %v6850_v44 = vld [vmem:[#allocation3 + $0x4a] ss:$256 sm:$0x1]  ;;  %v6864_v57 = vor.u32 %v6863_v39, %v6862_v12 }
 0x6c8   : > { %5935 = vst.msk [vmem:[#allocation3 + $0x1b8] sm:$0xff] %vm578_vm0, %v5876_v41  ;;  %v7345_v41 = vld [vmem:[#allocation3 + $0x95] ss:$256 sm:$0x2]  ;;  %v6852_v3 = vor.u32 %v6851_v58, %v6850_v44  ;;  %v9913_v53 = vld [vmem:[%s12410_s5 + $0x1f8] sm:$0xff] }
 0x6c9   : > { %v6760_v48 = vpack.c.bf16 %v6759_v14, %v6759_v14  ;;  %v7269_v51 = vpack.c.bf16 %v7268_v23, %v7268_v23  ;;  %v6905_v47 = vld [vmem:[#allocation3 + $0x60] ss:$256 sm:$0x2]  ;;  %v6917_v34 = vld [vmem:[#allocation3 + $0x71] ss:$256 sm:$0x2] }
 0x6ca   : > { %v6865_v17 = vmax.f32 %v6852_v3, %v6856_v22  ;;  %v6912_v49 = vld [vmem:[#allocation3 + $0x70] ss:$256 sm:$0x1]  ;;  %v6916_v1 = vld [vmem:[#allocation3 + $0x71] ss:$256 sm:$0x1] }
 0x6cb   : > { %v4001_v25 = vpop.f32.mrf.mxu3  ;;  %v7448_v24 = vld [vmem:[#allocation3 + $0x98] ss:$256 sm:$0x1]  ;;  %v7452_v60 = vld [vmem:[#allocation3 + $0x99] ss:$256 sm:$0x1] }
 0x6cc   : > { %v6860_v25 = vor.u32 %v6859_v16, %v6858_v37  ;;  %v7449_v59 = vld [vmem:[#allocation3 + $0x98] ss:$256 sm:$0x2]  ;;  %v6909_v62 = vld [vmem:[#allocation3 + $0x61] ss:$256 sm:$0x2] }
 0x6cd   : > { %v12218_v42 = vpop.f32.mrf.mxu0  ;;  %v7441_v33 = vld [vmem:[#allocation3 + $0x88] ss:$256 sm:$0x2]  ;;  %v7445_v61 = vld [vmem:[#allocation3 + $0x89] ss:$256 sm:$0x2] }
 0x6ce   : > { %v6866_v9 = vmax.f32 %v6860_v25, %v6864_v57  ;;  %v9892_v36 = vld [vmem:[%s12410_s5 + $0x150] sm:$0xff]  ;;  %v6904_v23 = vld [vmem:[#allocation3 + $0x60] ss:$256 sm:$0x1]  ;;  %v9897_v57 = vld [vmem:[%s12410_s5 + $0x178] sm:$0xff] }
 0x6cf   : > { %v9912_v14 = vld [vmem:[%s12410_s5 + $0x1f0] sm:$0xff]  ;;  %v6906_v39 = vor.u32 %v6905_v47, %v6904_v23  ;;  %v7440_v58 = vld [vmem:[#allocation3 + $0x88] ss:$256 sm:$0x1] }
 0x6d0   : > { %9333 = vmatmul.msk.bf16.vlgmr.msrb.gmra.mxu3 %vm578_vm0, %v6600_v11  ;;  %9450 = vmatmul.msk.bf16.vlgmr.msrb.gmra.mxu0 %vm578_vm0, %v7136_v28  ;;  %v7332_v28 = vld [vmem:[#allocation3 + $0x84] ss:$256 sm:$0x1]  ;;  %v6867_v31 = vmax.f32 %v6865_v17, %v6866_v9  ;;  %v7444_v56 = vld [vmem:[#allocation3 + $0x89] ss:$256 sm:$0x1] }
 0x6d1   : > { %6895 = vmatpush.bf16.msrb.mxu3 %v9885_v52  ;;  %7377 = vmatpush.bf16.msrb.mxu0 %v9903_v21  ;;  %v7342_v52 = vor.u32 %v7341_v29, %v7340_v32  ;;  %v7346_v21 = vor.u32 %v7345_v41, %v7344_v13  ;;  %v7334_v5 = vor.u32 %v7333_v63, %v7332_v28  ;;  %v7065_v28 = vld [vmem:[#allocation3 + $0x66] ss:$256 sm:$0x2]  ;;  %v7072_v2 = vld [vmem:[#allocation3 + $0x76] ss:$256 sm:$0x1] }
 0x6d2   : > { %v6868_v54 = vpack.c.bf16 %v6867_v31, %v6867_v31  ;;  %v7442_v32 = vor.u32 %v7441_v33, %v7440_v58  ;;  %v7446_v29 = vor.u32 %v7445_v61, %v7444_v56  ;;  %v7073_v3 = vld [vmem:[#allocation3 + $0x76] ss:$256 sm:$0x2]  ;;  %v7077_v22 = vld [vmem:[#allocation3 + $0x77] ss:$256 sm:$0x2] }
 0x6d3   : > { %v4004_v10 = vpop.f32.mrf.mxu3  ;;  %v7348_v38 = vmax.f32 %v7342_v52, %v7346_v21  ;;  %v7347_v8 = vmax.f32 %v7334_v5, %v7338_v19  ;;  %v9915_v52 = vld [vmem:[%s12410_s5 + $0x208] sm:$0xff]  ;;  %v7076_v5 = vld [vmem:[#allocation3 + $0x77] ss:$256 sm:$0x1]  ;;  %v7074_v31 = vor.u32 %v7073_v3, %v7072_v2 }
 0x6d4   : > { %v6913_v10 = vld [vmem:[#allocation3 + $0x70] ss:$256 sm:$0x2]  ;;  %v7581_v19 = vld [vmem:[#allocation3 + $0xb2] ss:$256 sm:$0x1]  ;;  %v7078_v47 = vor.u32 %v7077_v22, %v7076_v5 }
 0x6d5   : > { %v6335_v4 = vpop.f32.mrf.mxu0  ;;  %6896 = vmatpush.bf16.msrb.mxu3 %v9884_v30  ;;  %7378 = vmatpush.bf16.msrb.mxu0 %v9902_v27  ;;  %v7349_v15 = vmax.f32 %v7347_v8, %v7348_v38  ;;  %v6914_v16 = vor.u32 %v6913_v10, %v6912_v49  ;;  %v7585_v9 = vld [vmem:[#allocation3 + $0xb3] ss:$256 sm:$0x1]  ;;  %v7069_v17 = vld [vmem:[#allocation3 + $0x67] ss:$256 sm:$0x2] }
 0x6d6   : > { %v7453_v4 = vld [vmem:[#allocation3 + $0x99] ss:$256 sm:$0x2]  ;;  %v7586_v38 = vld [vmem:[#allocation3 + $0xb3] ss:$256 sm:$0x2] }
 0x6d7   : > { %v7350_v6 = vpack.c.bf16 %v7349_v15, %v7349_v15  ;;  %v7574_v8 = vld [vmem:[#allocation3 + $0xa2] ss:$256 sm:$0x2]  ;;  %v7578_v15 = vld [vmem:[#allocation3 + $0xa3] ss:$256 sm:$0x2] }
 0x6d8   : > { %v7173_v56 = vld [vmem:[#allocation3 + $0x6a] ss:$256 sm:$0x2] }
 0x6db   : > { %v4006_v55 = vpop.f32.mrf.mxu3 }
 0x6dc   : > { %v6908_v55 = vld [vmem:[#allocation3 + $0x61] ss:$256 sm:$0x1] }
 0x6dd   : > { %v12234_v20 = vpop.f32.mrf.mxu0  ;;  %v6910_v12 = vor.u32 %v6909_v62, %v6908_v55 }
 0x6df   : > { %v6919_v46 = vmax.f32 %v6906_v39, %v6910_v12  ;;  %v7181_v12 = vld [vmem:[#allocation3 + $0x7a] ss:$256 sm:$0x2] }
 0x6e0   : > { %9359 = vmatmul.msk.bf16.vlgmr.msra.gmra.mxu3 %vm578_vm0, %v6760_v48  ;;  %9480 = vmatmul.msk.bf16.vlgmr.msra.gmra.mxu0 %vm578_vm0, %v7269_v51  ;;  %v7454_v48 = vor.u32 %v7453_v4, %v7452_v60 }
 0x6e1   : > { %7002 = vmatpush.bf16.msra.mxu3 %v9887_v35  ;;  %7485 = vmatpush.bf16.msra.mxu0 %v9907_v45  ;;  %v6918_v35 = vor.u32 %v6917_v34, %v6916_v1  ;;  %v7450_v45 = vor.u32 %v7449_v59, %v7448_v24  ;;  %v7587_v34 = vor.u32 %v7586_v38, %v7585_v9  ;;  %v7573_v24 = vld [vmem:[#allocation3 + $0xa2] ss:$256 sm:$0x1]  ;;  %v7577_v59 = vld [vmem:[#allocation3 + $0xa3] ss:$256 sm:$0x1] }
 0x6e2   : > { %v7575_v62 = vor.u32 %v7574_v8, %v7573_v24  ;;  %v7579_v33 = vor.u32 %v7578_v15, %v7577_v59  ;;  %v7658_v9 = vld [vmem:[#allocation3 + $0xa5] ss:$256 sm:$0x1]  ;;  %v7235_v24 = vld [vmem:[#allocation3 + $0x90] ss:$256 sm:$0x2] }
 0x6e3   : > { %v6011_v11 = vpop.f32.mrf.mxu3  ;;  %v6920_v41 = vmax.f32 %v6914_v16, %v6918_v35  ;;  %v7456_v63 = vmax.f32 %v7450_v45, %v7454_v48  ;;  %v9899_v48 = vld [vmem:[%s12410_s5 + $0x188] sm:$0xff]  ;;  %v7239_v59 = vld [vmem:[#allocation3 + $0x91] ss:$256 sm:$0x2] }
 0x6e5   : > { %v6416_v7 = vpop.f32.mrf.mxu0  ;;  %7003 = vmatpush.bf16.msra.mxu3 %v9886_v0  ;;  %7486 = vmatpush.bf16.msra.mxu0 %v9906_v43  ;;  %v7455_v0 = vmax.f32 %v7442_v32, %v7446_v29  ;;  %v6921_v43 = vmax.f32 %v6919_v46, %v6920_v41  ;;  %v7185_v32 = vld [vmem:[#allocation3 + $0x7b] ss:$256 sm:$0x2]  ;;  %v7663_v41 = vld [vmem:[#allocation3 + $0xb4] ss:$256 sm:$0x2] }
 0x6e6   : > { %v7582_v7 = vld [vmem:[#allocation3 + $0xb2] ss:$256 sm:$0x2]  ;;  %v7184_v29 = vld [vmem:[#allocation3 + $0x7b] ss:$256 sm:$0x1] }
 0x6e7   : > { %v7457_v44 = vmax.f32 %v7455_v0, %v7456_v63  ;;  %v6922_v21 = vpack.c.bf16 %v6921_v43, %v6921_v43  ;;  %v7583_v10 = vor.u32 %v7582_v7, %v7581_v19  ;;  %v7666_v63 = vld [vmem:[#allocation3 + $0xb5] ss:$256 sm:$0x1]  ;;  %v7177_v0 = vld [vmem:[#allocation3 + $0x6b] ss:$256 sm:$0x2]  ;;  %v7186_v2 = vor.u32 %v7185_v32, %v7184_v29 }
 0x6e8   : > { %v7667_v46 = vld [vmem:[#allocation3 + $0xb5] ss:$256 sm:$0x2]  ;;  %v7655_v43 = vld [vmem:[#allocation3 + $0xa4] ss:$256 sm:$0x2] }
 0x6e9   : > { %v7668_v22 = vor.u32 %v7667_v46, %v7666_v63  ;;  %v7654_v7 = vld [vmem:[#allocation3 + $0xa4] ss:$256 sm:$0x1]  ;;  %v7766_v32 = vld [vmem:[#allocation3 + $0xa9] ss:$256 sm:$0x1] }
 0x6ea   : > { %v7656_v8 = vor.u32 %v7655_v43, %v7654_v7  ;;  %v7399_v7 = vld [vmem:[#allocation3 + $0x97] ss:$256 sm:$0x2] }
 0x6eb   : > { %v6013_v30 = vpop.f32.mrf.mxu3 }
 0x6ec   : > { %v9896_v30 = vld [vmem:[%s12410_s5 + $0x170] sm:$0xff] }
 0x6ed   : > { %v12250_v27 = vpop.f32.mrf.mxu0 }
 0x6f0   : > { %9385 = vmatmul.msk.bf16.vlgmr.msrb.gmra.mxu3 %vm578_vm0, %v6868_v54  ;;  %9502 = vmatmul.msk.bf16.vlgmr.msrb.gmra.mxu0 %vm578_vm0, %v7350_v6  ;;  %v7064_v54 = vld [vmem:[#allocation3 + $0x66] ss:$256 sm:$0x1]  ;;  %v7068_v6 = vld [vmem:[#allocation3 + $0x67] ss:$256 sm:$0x1] }
 0x6f1   : > { %7109 = vmatpush.bf16.msrb.mxu3 %v9893_v18  ;;  %7618 = vmatpush.bf16.msrb.mxu0 %v9913_v53  ;;  %v9914_v18 = vld [vmem:[%s12410_s5 + $0x200] sm:$0xff]  ;;  %v7066_v1 = vor.u32 %v7065_v28, %v7064_v54  ;;  %v7070_v4 = vor.u32 %v7069_v17, %v7068_v6  ;;  %v7176_v28 = vld [vmem:[#allocation3 + $0x6b] ss:$256 sm:$0x1] }
 0x6f2   : > { %v7178_v17 = vor.u32 %v7177_v0, %v7176_v28  ;;  %v9909_v28 = vld [vmem:[%s12410_s5 + $0x1d8] sm:$0xff] }
 0x6f3   : > { %v6039_v51 = vpop.f32.mrf.mxu3  ;;  %v7079_v23 = vmax.f32 %v7066_v1, %v7070_v4  ;;  %v7234_v4 = vld [vmem:[#allocation3 + $0x90] ss:$256 sm:$0x1] }
 0x6f4   : > { %v6040_v37 = vadd.f32 %v6039_v51, %v6011_v11  ;;  %v7458_v11 = vpack.c.bf16 %v7457_v44, %v7457_v44  ;;  %v9919_v51 = vld [vmem:[%s12410_s5 + $0x228] sm:$0xff] }
 0x6f5   : > { %v6524_v13 = vpop.f32.mrf.mxu0  ;;  %7110 = vmatpush.bf16.msrb.mxu3 %v9892_v36  ;;  %7619 = vmatpush.bf16.msrb.mxu0 %v9912_v14  ;;  %v7080_v36 = vmax.f32 %v7074_v31, %v7078_v47  ;;  %v7589_v14 = vmax.f32 %v7583_v10, %v7587_v34  ;;  %v9905_v34 = vld [vmem:[%s12410_s5 + $0x1b8] sm:$0xff] }
 0x6f6   : > { %v6096_v53 = vadd.f32 %v12163_v50, %v6040_v37  ;;  %v7588_v50 = vmax.f32 %v7575_v62, %v7579_v33  ;;  %v7180_v37 = vld [vmem:[#allocation3 + $0x7a] ss:$256 sm:$0x1]  ;;  %v7662_v13 = vld [vmem:[#allocation3 + $0xb4] ss:$256 sm:$0x1] }
 0x6f7   : > { %v7081_v55 = vmax.f32 %v7079_v23, %v7080_v36  ;;  %v7182_v44 = vor.u32 %v7181_v12, %v7180_v37  ;;  %v7664_v3 = vor.u32 %v7663_v41, %v7662_v13  ;;  %v7238_v62 = vld [vmem:[#allocation3 + $0x91] ss:$256 sm:$0x1]  ;;  %v7770_v33 = vld [vmem:[#allocation3 + $0xb8] ss:$256 sm:$0x1] }
 0x6f8   : > { %v7590_v16 = vmax.f32 %v7588_v50, %v7589_v14  ;;  %v7774_v36 = vld [vmem:[#allocation3 + $0xb9] ss:$256 sm:$0x1]  ;;  %v7231_v23 = vld [vmem:[#allocation3 + $0x81] ss:$256 sm:$0x2] }
 0x6f9   : > { %v7082_v39 = vpack.c.bf16 %v7081_v55, %v7081_v55  ;;  %v7775_v14 = vld [vmem:[#allocation3 + $0xb9] ss:$256 sm:$0x2]  ;;  %v7763_v50 = vld [vmem:[#allocation3 + $0xa8] ss:$256 sm:$0x2] }
 0x6fa   : > { %v7591_v58 = vpack.c.bf16 %v7590_v16, %v7590_v16  ;;  %v7767_v55 = vld [vmem:[#allocation3 + $0xa9] ss:$256 sm:$0x2]  ;;  %v9904_v16 = vld [vmem:[%s12410_s5 + $0x1b0] sm:$0xff] }
 0x6fb   : > { %v6041_v40 = vpop.f32.mrf.mxu3  ;;  %v7762_v12 = vld [vmem:[#allocation3 + $0xa8] ss:$256 sm:$0x1]  ;;  %v7768_v63 = vor.u32 %v7767_v55, %v7766_v32 }
 0x6fc   : > { %v7659_v40 = vld [vmem:[#allocation3 + $0xa5] ss:$256 sm:$0x2]  ;;  %v7764_v41 = vor.u32 %v7763_v50, %v7762_v12 }
 0x6fd   : > { %v12266_v25 = vpop.f32.mrf.mxu0  ;;  %v7660_v31 = vor.u32 %v7659_v40, %v7658_v9  ;;  %v7387_v9 = vld [vmem:[#allocation3 + $0x86] ss:$256 sm:$0x2] }
 0x6fe   : > { %v7777_v40 = vmax.f32 %v7764_v41, %v7768_v63  ;;  %v9910_v50 = vld [vmem:[%s12410_s5 + $0x1e0] sm:$0xff] }
 0x700   : > { %9411 = vmatmul.msk.bf16.vlgmr.msra.gmra.mxu3 %vm578_vm0, %v6922_v21  ;;  %9528 = vmatmul.msk.bf16.vlgmr.msra.gmra.mxu0 %vm578_vm0, %v7458_v11  ;;  %v7172_v11 = vld [vmem:[#allocation3 + $0x6a] ss:$256 sm:$0x1] }
 0x701   : > { %7217 = vmatpush.bf16.msra.mxu3 %v9897_v57  ;;  %7699 = vmatpush.bf16.msra.mxu0 %v9915_v52  ;;  %v9898_v57 = vld [vmem:[%s12410_s5 + $0x180] sm:$0xff]  ;;  %v7174_v19 = vor.u32 %v7173_v56, %v7172_v11  ;;  %v7776_v56 = vor.u32 %v7775_v14, %v7774_v36  ;;  %v7495_v36 = vld [vmem:[#allocation3 + $0x8a] ss:$256 sm:$0x2] }
 0x702   : > { %v9918_v52 = vld [vmem:[%s12410_s5 + $0x220] sm:$0xff]  ;;  %v7506_v14 = vld [vmem:[#allocation3 + $0x9b] ss:$256 sm:$0x1] }
 0x703   : > { %v6146_v49 = vpop.f32.mrf.mxu3 }
 0x704   : > { %v6150_v60 = vadd.f32 %v6146_v49, %v6096_v53  ;;  %v7669_v53 = vmax.f32 %v7656_v8, %v7660_v31  ;;  %v7391_v8 = vld [vmem:[#allocation3 + $0x87] ss:$256 sm:$0x2]  ;;  %v9908_v31 = vld [vmem:[%s12410_s5 + $0x1d0] sm:$0xff] }
 0x705   : > { %v6657_v61 = vpop.f32.mrf.mxu0  ;;  %7218 = vmatpush.bf16.msra.mxu3 %v9896_v30  ;;  %7700 = vmatpush.bf16.msra.mxu0 %v9914_v18  ;;  %v7188_v30 = vmax.f32 %v7182_v44, %v7186_v2  ;;  %v7670_v18 = vmax.f32 %v7664_v3, %v7668_v22 }
 0x706   : > { %v6204_v21 = vadd.f32 %v12196_v26, %v6150_v60  ;;  %v7187_v26 = vmax.f32 %v7174_v19, %v7178_v17  ;;  %v7227_v60 = vld [vmem:[#allocation3 + $0x80] ss:$256 sm:$0x2]  ;;  %v7771_v61 = vld [vmem:[#allocation3 + $0xb8] ss:$256 sm:$0x2] }
 0x707   : > { %v7671_v6 = vmax.f32 %v7669_v53, %v7670_v18  ;;  %v7395_v19 = vld [vmem:[#allocation3 + $0x96] ss:$256 sm:$0x2]  ;;  %v7398_v17 = vld [vmem:[#allocation3 + $0x97] ss:$256 sm:$0x1] }
 0x708   : > { %v7189_v54 = vmax.f32 %v7187_v26, %v7188_v30  ;;  %v7400_v30 = vor.u32 %v7399_v7, %v7398_v17  ;;  %v7386_v26 = vld [vmem:[#allocation3 + $0x86] ss:$256 sm:$0x1]  ;;  %v7390_v53 = vld [vmem:[#allocation3 + $0x87] ss:$256 sm:$0x1] }
 0x709   : > { %v7672_v1 = vpack.c.bf16 %v7671_v6, %v7671_v6  ;;  %v7388_v6 = vor.u32 %v7387_v9, %v7386_v26 }
 0x70a   : > { %v7190_v49 = vpack.c.bf16 %v7189_v54, %v7189_v54 }
 0x70b   : > { %v6148_v35 = vpop.f32.mrf.mxu3 }
 0x70c   : > { %v7226_v35 = vld [vmem:[#allocation3 + $0x80] ss:$256 sm:$0x1] }
 0x70d   : > { %v12283_v45 = vpop.f32.mrf.mxu0  ;;  %v7228_v29 = vor.u32 %v7227_v60, %v7226_v35 }
 0x710   : > { %9437 = vmatmul.msk.bf16.vlgmr.msrb.gmra.mxu3 %vm578_vm0, %v7082_v39  ;;  %9558 = vmatmul.msk.bf16.vlgmr.msrb.gmra.mxu0 %vm578_vm0, %v7591_v58  ;;  %v7240_v39 = vor.u32 %v7239_v59, %v7238_v62  ;;  %v7772_v58 = vor.u32 %v7771_v61, %v7770_v33  ;;  %v7502_v62 = vld [vmem:[#allocation3 + $0x9a] ss:$256 sm:$0x1]  ;;  %v7507_v61 = vld [vmem:[#allocation3 + $0x9b] ss:$256 sm:$0x2] }
 0x711   : > { %7324 = vmatpush.bf16.msrb.mxu3 %v9899_v48  ;;  %7807 = vmatpush.bf16.msrb.mxu0 %v9919_v51  ;;  %v7230_v48 = vld [vmem:[#allocation3 + $0x81] ss:$256 sm:$0x1]  ;;  %v7236_v51 = vor.u32 %v7235_v24, %v7234_v4  ;;  %v7503_v33 = vld [vmem:[#allocation3 + $0x9a] ss:$256 sm:$0x2]  ;;  %v7508_v35 = vor.u32 %v7507_v61, %v7506_v14 }
 0x712   : > { %v7232_v13 = vor.u32 %v7231_v23, %v7230_v48  ;;  %v7778_v43 = vmax.f32 %v7772_v58, %v7776_v56  ;;  %v7499_v23 = vld [vmem:[#allocation3 + $0x8b] ss:$256 sm:$0x2] }
 0x713   : > { %v6254_v5 = vpop.f32.mrf.mxu3  ;;  %v7242_v0 = vmax.f32 %v7236_v51, %v7240_v39  ;;  %v7494_v51 = vld [vmem:[#allocation3 + $0x8a] ss:$256 sm:$0x1]  ;;  %v7498_v39 = vld [vmem:[#allocation3 + $0x8b] ss:$256 sm:$0x1] }
 0x714   : > { %v12300_v38 = vadd.f32 %v6254_v5, %v6204_v21  ;;  %v7241_v44 = vmax.f32 %v7228_v29, %v7232_v13  ;;  %v7394_v5 = vld [vmem:[#allocation3 + $0x96] ss:$256 sm:$0x1]  ;;  %v7496_v56 = vor.u32 %v7495_v36, %v7494_v51  ;;  %v7825_v51 = vld [vmem:[#allocation3 + $0xba] ss:$256 sm:$0x2] }
 0x715   : > { %v6738_v15 = vpop.f32.mrf.mxu0  ;;  %7325 = vmatpush.bf16.msrb.mxu3 %v9898_v57  ;;  %7808 = vmatpush.bf16.msrb.mxu0 %v9918_v52  ;;  %v7779_v52 = vmax.f32 %v7777_v40, %v7778_v43  ;;  %v7556_v43 = vld [vmem:[#allocation3 + $0xb0] ss:$256 sm:$0x1]  ;;  %v7561_v40 = vld [vmem:[#allocation3 + $0xb1] ss:$256 sm:$0x2] }
 0x716   : > { %v7243_v57 = vmax.f32 %v7241_v44, %v7242_v0  ;;  %v7557_v44 = vld [vmem:[#allocation3 + $0xb0] ss:$256 sm:$0x2] }
 0x717   : > { %v7780_v22 = vpack.c.bf16 %v7779_v52, %v7779_v52  ;;  %v7560_v52 = vld [vmem:[#allocation3 + $0xb1] ss:$256 sm:$0x1] }
 0x718   : > { %v7244_v3 = vpack.c.bf16 %v7243_v57, %v7243_v57  ;;  %v7549_v57 = vld [vmem:[#allocation3 + $0xa0] ss:$256 sm:$0x2] }
 0x71b   : > { %v6256_v47 = vpop.f32.mrf.mxu3 }
 0x71c   : > { %v7392_v47 = vor.u32 %v7391_v8, %v7390_v53  ;;  %v7716_v53 = vld [vmem:[#allocation3 + $0xb6] ss:$256 sm:$0x1] }
 0x71d   : > { %v12302_v10 = vpop.f32.mrf.mxu0 }
 0x720   : > { %9463 = vmatmul.msk.bf16.vlgmr.msra.gmra.mxu3 %vm578_vm0, %v7190_v49  ;;  %9580 = vmatmul.msk.bf16.vlgmr.msra.gmra.mxu0 %vm578_vm0, %v7672_v1  ;;  %v7401_v1 = vmax.f32 %v7388_v6, %v7392_v47  ;;  %v7721_v6 = vld [vmem:[#allocation3 + $0xb7] ss:$256 sm:$0x2]  ;;  %v7709_v47 = vld [vmem:[#allocation3 + $0xa6] ss:$256 sm:$0x2] }
 0x721   : > { %7431 = vmatpush.bf16.msra.mxu3 %v9905_v34 }
 0x723   : > { %v6361_v37 = vpop.f32.mrf.mxu3 }
 0x724   : > { %v6362_v2 = vadd.f32 %v6361_v37, %v12218_v42  ;;  %v7396_v42 = vor.u32 %v7395_v19, %v7394_v5  ;;  %v7500_v37 = vor.u32 %v7499_v23, %v7498_v39  ;;  %v7552_v5 = vld [vmem:[#allocation3 + $0xa1] ss:$256 sm:$0x1]  ;;  %v7829_v39 = vld [vmem:[#allocation3 + $0xbb] ss:$256 sm:$0x2] }
 0x725   : > { %v6846_v46 = vpop.f32.mrf.mxu0  ;;  %7432 = vmatpush.bf16.msra.mxu3 %v9904_v16  ;;  %v7504_v16 = vor.u32 %v7503_v33, %v7502_v62  ;;  %v7712_v62 = vld [vmem:[#allocation3 + $0xa7] ss:$256 sm:$0x1] }
 0x726   : > { %v6418_v15 = vadd.f32 %v12234_v20, %v6362_v2  ;;  %v7402_v49 = vmax.f32 %v7396_v42, %v7400_v30  ;;  %v9911_v20 = vld [vmem:[%s12410_s5 + $0x1e8] sm:$0xff]  ;;  %v7509_v13 = vmax.f32 %v7496_v56, %v7500_v37  ;;  %v7562_v2 = vor.u32 %v7561_v40, %v7560_v52  ;;  %v9921_v30 = vld [vmem:[%s12410_s5 + $0x238] sm:$0xff] }
 0x727   : > { %v7510_v29 = vmax.f32 %v7504_v16, %v7508_v35  ;;  %v7817_v56 = vld [vmem:[#allocation3 + $0xaa] ss:$256 sm:$0x2]  ;;  %v7821_v37 = vld [vmem:[#allocation3 + $0xab] ss:$256 sm:$0x2] }
 0x728   : > { %v7403_v24 = vmax.f32 %v7401_v1, %v7402_v49  ;;  %v7713_v49 = vld [vmem:[#allocation3 + $0xa7] ss:$256 sm:$0x2]  ;;  %v9920_v1 = vld [vmem:[%s12410_s5 + $0x230] sm:$0xff] }
 0x729   : > { %v7511_v41 = vmax.f32 %v7509_v13, %v7510_v29  ;;  %v7714_v36 = vor.u32 %v7713_v49, %v7712_v62 }
 0x72a   : > { %v7404_v4 = vpack.c.bf16 %v7403_v24, %v7403_v24 }
 0x72b   : > { %v6363_v21 = vpop.f32.mrf.mxu3  ;;  %v7512_v0 = vpack.c.bf16 %v7511_v41, %v7511_v41 }
 0x72c   : > { %v9916_v21 = vld [vmem:[%s12410_s5 + $0x210] sm:$0xff] }
 0x72d   : > { %v12312_v11 = vpop.f32.mrf.mxu0 }
 0x730   : > { %9489 = vmatmul.msk.bf16.vlgmr.msrb.gmra.mxu3 %vm578_vm0, %v7244_v3  ;;  %9606 = vmatmul.msk.bf16.vlgmr.msrb.gmra.mxu0 %vm578_vm0, %v7780_v22  ;;  %v7548_v22 = vld [vmem:[#allocation3 + $0xa0] ss:$256 sm:$0x1] }
 0x731   : > { %7539 = vmatpush.bf16.msrb.mxu3 %v9909_v28  ;;  %v7558_v28 = vor.u32 %v7557_v44, %v7556_v43  ;;  %v7550_v19 = vor.u32 %v7549_v57, %v7548_v22 }
 0x733   : > { %v6468_v18 = vpop.f32.mrf.mxu3  ;;  %v7564_v17 = vmax.f32 %v7558_v28, %v7562_v2 }
 0x734   : > { %v6472_v54 = vadd.f32 %v6468_v18, %v6418_v15 }
 0x735   : > { %v6979_v34 = vpop.f32.mrf.mxu0  ;;  %7540 = vmatpush.bf16.msrb.mxu3 %v9908_v31 }
 0x736   : > { %v6526_v55 = vadd.f32 %v12250_v27, %v6472_v54  ;;  %v9917_v27 = vld [vmem:[%s12410_s5 + $0x218] sm:$0xff]  ;;  %v7717_v54 = vld [vmem:[#allocation3 + $0xb6] ss:$256 sm:$0x2] }
 0x737   : > { %v7720_v34 = vld [vmem:[#allocation3 + $0xb7] ss:$256 sm:$0x1] }
 0x73b   : > { %v6470_v59 = vpop.f32.mrf.mxu3 }
 0x73c   : > { %v7718_v59 = vor.u32 %v7717_v54, %v7716_v53 }
 0x73d   : > { %v12324_v60 = vpop.f32.mrf.mxu0 }
 0x740   : > { %9515 = vmatmul.msk.bf16.vlgmr.msra.gmra.mxu3 %vm578_vm0, %v7404_v4 }
 0x741   : > { %7646 = vmatpush.bf16.msra.mxu3 %v9911_v20  ;;  %v7722_v20 = vor.u32 %v7721_v6, %v7720_v34 }
 0x743   : > { %v6576_v48 = vpop.f32.mrf.mxu3  ;;  %v7724_v23 = vmax.f32 %v7718_v59, %v7722_v20  ;;  %v9929_v59 = vld [vmem:[%s12412_s7 + $0x38] sm:$0xff] }
 0x744   : > { %v6580_v58 = vadd.f32 %v6576_v48, %v6526_v55  ;;  %7949 = vmatpush.bf16.msra.mxu0 %v9929_v59 }
 0x745   : > { %v7060_v12 = vpop.f32.mrf.mxu0  ;;  %7647 = vmatpush.bf16.msra.mxu3 %v9910_v50 }
 0x746   : > { %v12335_v32 = vadd.f32 %v6580_v58, %v12300_v38  ;;  %v7553_v38 = vld [vmem:[#allocation3 + $0xa1] ss:$256 sm:$0x2]  ;;  %v7828_v58 = vld [vmem:[#allocation3 + $0xbb] ss:$256 sm:$0x1] }
 0x747   : > { %v7554_v7 = vor.u32 %v7553_v38, %v7552_v5  ;;  %v7830_v13 = vor.u32 %v7829_v39, %v7828_v58 }
 0x749   : > { %v7563_v8 = vmax.f32 %v7550_v19, %v7554_v7 }
 0x74b   : > { %v6578_v63 = vpop.f32.mrf.mxu3  ;;  %v7565_v31 = vmax.f32 %v7563_v8, %v7564_v17 }
 0x74c   : > { %v7816_v63 = vld [vmem:[#allocation3 + $0xaa] ss:$256 sm:$0x1] }
 0x74d   : > { %v12337_v46 = vpop.f32.mrf.mxu0  ;;  %v7566_v26 = vpack.c.bf16 %v7565_v31, %v7565_v31  ;;  %v7818_v43 = vor.u32 %v7817_v56, %v7816_v63 }
 0x750   : > { %9541 = vmatmul.msk.bf16.vlgmr.msrb.gmra.mxu3 %vm578_vm0, %v7512_v0 }
 0x751   : > { %7753 = vmatpush.bf16.msrb.mxu3 %v9917_v27  ;;  %v7820_v27 = vld [vmem:[#allocation3 + $0xab] ss:$256 sm:$0x1] }
 0x752   : > { %v7822_v44 = vor.u32 %v7821_v37, %v7820_v27 }
 0x753   : > { %v6683_v3 = vpop.f32.mrf.mxu3 }
 0x754   : > { %v6684_v18 = vadd.f32 %v6683_v3, %v12266_v25  ;;  %v7708_v25 = vld [vmem:[#allocation3 + $0xa6] ss:$256 sm:$0x1]  ;;  %v7831_v38 = vmax.f32 %v7818_v43, %v7822_v44  ;;  %v9971_v44 = vld [vmem:[%s12413_s8] ss:$0 sm:$0xff] }
 0x755   : > { %v7168_v9 = vpop.f32.mrf.mxu0  ;;  %7754 = vmatpush.bf16.msrb.mxu3 %v9916_v21  ;;  %v7710_v61 = vor.u32 %v7709_v47, %v7708_v25 }
 0x756   : > { %v6740_v24 = vadd.f32 %v12283_v45, %v6684_v18  ;;  %v7824_v45 = vld [vmem:[#allocation3 + $0xba] ss:$256 sm:$0x1] }
 0x757   : > { %v7723_v50 = vmax.f32 %v7710_v61, %v7714_v36  ;;  %v7826_v29 = vor.u32 %v7825_v51, %v7824_v45 }
 0x759   : > { %v7725_v55 = vmax.f32 %v7723_v50, %v7724_v23  ;;  %v7832_v52 = vmax.f32 %v7826_v29, %v7830_v13  ;;  %v9925_v23 = vld [vmem:[%s12412_s7 + $0x18] sm:$0xff]  ;;  %v9970_v13 = vld [vmem:[%s12411_s6] ss:$0 sm:$0xff] }
 0x75b   : > { %v6685_v15 = vpop.f32.mrf.mxu3  ;;  %v7726_v48 = vpack.c.bf16 %v7725_v55, %v7725_v55  ;;  %v7833_v21 = vmax.f32 %v7831_v38, %v7832_v52  ;;  %v9924_v55 = vld [vmem:[%s12412_s7 + $0x10] sm:$0xff] }
 0x75d   : > { %v12346_v42 = vpop.f32.mrf.mxu0  ;;  %v7834_v3 = vpack.c.bf16 %v7833_v21, %v7833_v21  ;;  %v10020_v21 = vmov 0.0  }
 0x75e   : > { %7975 = vst [vmem:[%s332_s24] sm:$0xff] %v10020_v21 }
 0x760   : > { %9567 = vmatmul.msk.bf16.vlgmr.msra.gmra.mxu3 %vm578_vm0, %v7566_v26 }
 0x761   : > { %7861 = vmatpush.bf16.msra.mxu3 %v9921_v30 }
 0x763   : > { %v6790_v4 = vpop.f32.mrf.mxu3 }
 0x764   : > { %v6794_v33 = vadd.f32 %v6790_v4, %v6740_v24 }
 0x765   : > { %v7301_v14 = vpop.f32.mrf.mxu0  ;;  %7862 = vmatpush.bf16.msra.mxu3 %v9920_v1 }
 0x766   : > { %v6848_v12 = vadd.f32 %v12302_v10, %v6794_v33  ;;  %v9928_v33 = vld [vmem:[%s12412_s7 + $0x30] sm:$0xff]  ;;  %v9926_v14 = vld [vmem:[%s12412_s7 + $0x20] sm:$0xff] }
 0x767   : > { %7950 = vmatpush.bf16.msra.mxu0 %v9928_v33 }
 0x76b   : > { %v6792_v16 = vpop.f32.mrf.mxu3 }
 0x76c   : > { %v9923_v16 = vld [vmem:[%s12412_s7 + $0x8] sm:$0xff] }
 0x76d   : > { %v7380_v35 = vpop.f32.mrf.mxu0 }
 0x770   : > { %9593 = vmatmul.msk.bf16.vlgmr.msrb.gmra.mxu3 %vm578_vm0, %v7726_v48  ;;  %v9922_v48 = vld [vmem:[%s12412_s7] sm:$0xff] }
 0x773   : > { %v6898_v41 = vpop.f32.mrf.mxu3 }
 0x774   : > { %v6902_v0 = vadd.f32 %v6898_v41, %v6848_v12 }
 0x775   : > { %v7382_v40 = vpop.f32.mrf.mxu0 }
 0x776   : > { %v7870_v57 = vadd.f32 %v12335_v32, %v6902_v0 }
 0x77b   : > { %v6900_v28 = vpop.f32.mrf.mxu3 }
 0x77d   : > { %v7488_v2 = vpop.f32.mrf.mxu0 }
 0x780   : > { %9619 = vmatmul.msk.bf16.vlgmr.msra.gmra.mxu3 %vm578_vm0, %v7834_v3 }
 0x783   : > { %v7005_v10 = vpop.f32.mrf.mxu3 }
 0x784   : > { %v7006_v7 = vadd.f32 %v7005_v10, %v12312_v11 }
 0x785   : > { %v7490_v22 = vpop.f32.mrf.mxu0 }
 0x786   : > { %v7062_v9 = vadd.f32 %v12324_v60, %v7006_v7 }
 0x78b   : > { %v7007_v5 = vpop.f32.mrf.mxu3 }
 0x78d   : > { %v7621_v19 = vpop.f32.mrf.mxu0 }
 0x793   : > { %v7112_v17 = vpop.f32.mrf.mxu3 }
 0x794   : > { %v7116_v8 = vadd.f32 %v7112_v17, %v7062_v9 }
 0x795   : > { %v7623_v31 = vpop.f32.mrf.mxu0 }
 0x796   : > { %v7170_v30 = vadd.f32 %v12337_v46, %v7116_v8 }
 0x79b   : > { %v7114_v32 = vpop.f32.mrf.mxu3 }
 0x79d   : > { %v7702_v15 = vpop.f32.mrf.mxu0 }
 0x7a3   : > { %v7220_v18 = vpop.f32.mrf.mxu3 }
 0x7a4   : > { %v7224_v26 = vadd.f32 %v7220_v18, %v7170_v30 }
 0x7a5   : > { %v7704_v53 = vpop.f32.mrf.mxu0 }
 0x7a6   : > { %v7871_v54 = vadd.f32 %v7870_v57, %v7224_v26 }
 0x7ab   : > { %v7222_v6 = vpop.f32.mrf.mxu3 }
 0x7ad   : > { %v7810_v47 = vpop.f32.mrf.mxu0 }
 0x7b3   : > { %v7327_v34 = vpop.f32.mrf.mxu3 }
 0x7b4   : > { %v7328_v11 = vadd.f32 %v7327_v34, %v12346_v42  ;;  %v9927_v42 = vld [vmem:[%s12412_s7 + $0x28] sm:$0xff] }
 0x7b5   : > { %v7812_v49 = vpop.f32.mrf.mxu0  ;;  %7951 = vmatpush.bf16.msra.mxu0 %v9927_v42 }
 0x7b6   : > { %v7384_v20 = vadd.f32 %v7380_v35, %v7328_v11 }
 0x7b9   : > { %7952 = vmatpush.bf16.msra.mxu0 %v9926_v14 }
 0x7bb   : > { %v7329_v1 = vpop.f32.mrf.mxu3 }
 0x7bd   : > { %7953 = vmatpush.bf16.msra.mxu0 %v9925_v23 }
 0x7c1   : > { %7954 = vmatpush.bf16.msra.mxu0 %v9924_v55 }
 0x7c3   : > { %v7434_v24 = vpop.f32.mrf.mxu3 }
 0x7c4   : > { %v7438_v46 = vadd.f32 %v7434_v24, %v7384_v20 }
 0x7c5   : > { %7955 = vmatpush.bf16.msra.mxu0 %v9923_v16 }
 0x7c6   : > { %v7492_v4 = vadd.f32 %v7488_v2, %v7438_v46 }
 0x7c9   : > { %7956 = vmatpush.bf16.msra.mxu0 %v9922_v48 }
 0x7cb   : > { %v7436_v60 = vpop.f32.mrf.mxu3 }
 0x7d3   : > { %v7542_v25 = vpop.f32.mrf.mxu3 }
 0x7d4   : > { %v7546_v62 = vadd.f32 %v7542_v25, %v7492_v4 }
 0x7d6   : > { %v7872_v61 = vadd.f32 %v7871_v54, %v7546_v62 }
 0x7db   : > { %v7544_v36 = vpop.f32.mrf.mxu3 }
 0x7e3   : > { %v7649_v50 = vpop.f32.mrf.mxu3 }
 0x7e4   : > { %v7650_v39 = vadd.f32 %v7649_v50, %v7621_v19 }
 0x7e6   : > { %v7706_v58 = vadd.f32 %v7702_v15, %v7650_v39 }
 0x7eb   : > { %v7651_v35 = vpop.f32.mrf.mxu3 }
 0x7f3   : > { %v7756_v51 = vpop.f32.mrf.mxu3 }
 0x7f4   : > { %v7760_v56 = vadd.f32 %v7756_v51, %v7706_v58 }
 0x7f6   : > { %v7814_v37 = vadd.f32 %v7810_v47, %v7760_v56 }
 0x7fb   : > { %v7758_v45 = vpop.f32.mrf.mxu3 }
 0x803   : > { %v7864_v12 = vpop.f32.mrf.mxu3 }
 0x804   : > { %v7868_v29 = vadd.f32 %v7864_v12, %v7814_v37 }
 0x806   : > { %v7873_v41 = vadd.f32 %v7872_v61, %v7868_v29 }
 0x808   : > { %v7878_v63 = vadd.f32 %v9970_v13, %v7873_v41 }
 0x80a   : > { %v7879_v27 = vmax.f32 %v7878_v63, 0.0 }
 0x80b   : > { %v7866_v0 = vpop.f32.mrf.mxu3 }
 0x80c   : > { %v7880_v43 = vpack.c.bf16 %v7879_v27, %v7879_v27 }
 0x80e   : > { %7957 = vmatmul.bf16.vlgmr.msra.gmra.mxu0 %v7880_v43 }
 0x88b   : > { %v7958_v40 = vpop.f32.mrf.mxu0 }
 0x88c   : > { %v7959_v57 = vadd.f32 %v9971_v44, %v7958_v40 }
 0x88e   : > { %v7963_v52 = vsel %vm7962_vm4, %v7959_v57, -inf }
 0x88f   : > { %7964 = vmax.xlane.f32.xlu0 %v7963_v52 }
 0x893   : > { %v7960_v38 = vpop.f32.mrf.mxu0 }
 0x902   : > { %v7965_v28 = vpop.xlane.xlu0 %7964 }
 0x903   : > { %v7966_v2 = vsub.f32 %v7959_v57, %v7965_v28 }
 0x905   : > { %v7967_v3 = vmul.f32 1.442695, %v7966_v2 }
 0x907   : > { %9972 = vpow2.f32 %v7967_v3 }
 0x90d   : > { %v9973_v10 = vpop.eup %9972 }
 0x90e   : > { %v7969_v22 = vsel %vm7962_vm4, %v9973_v10, 0.0 }
 0x90f   : > { %7970 = vadd.xlane.f32.xlu0 %v7969_v22 }
 0x982   : > { %v7971_v5 = vpop.xlane.xlu0 %7970 }
 0x983   : > { %9974 = vlog2.f32 %v7971_v5 }
 0x989   : > { %v9975_v19 = vpop.eup %9974 }
 0x98a   : > { %v7973_v7 = vmul.f32 0.6931472, %v9975_v19 }
 0x98c   : > { %v7974_v9 = vsub.f32 %v7966_v2, %v7973_v7 }
 0x98e   : > { %7976 = vst [vmem:[%s332_s24] sm:$0x3] %v7974_v9 }
 0x98f PF: > { %s19_s30 = sadd.s32 1, %s10018_s30  }
 0x990   : > { %p16_p5 = scmp.ge.s32.totalorder %s19_s30, 4  }
 0x992   :  { %18 = sbr.rel (!%p16_p5) target bundleno = 1 (0x1), region = 272 }

</bundles_post_ra>
